<compile_context>
chip_gen: v7x
topology: tpu7x:2x2x1
jax: 0.10.0
libtpu: 0.0.40
codegen_flags: <defaults>
</compile_context>

<pallas_src>
import math

import jax
import jax.numpy as jnp
from jax.experimental import pallas as pl
from jax.experimental.pallas import tpu as pltpu


# ----------------------------------------------------------------------------
# In-kernel helpers (3x3 "same" conv as 9 shifted MXU dots over a VMEM halo)
# ----------------------------------------------------------------------------
def _conv3x3_acc(x3d, w_ref, pad_ref):
    """Accumulate conv3x3(x3d) as 9 MXU dots.

    x3d: (H, W, Cin) value.  w_ref: (9, Cin, Cout) bf16 ref (BN scale folded).
    pad_ref: (H+2, W+2, Cin) f32 VMEM scratch whose border is already zero.
    Returns (H*W, Cout) float32 accumulator.
    """
    Hh, Ww, Cin = x3d.shape
    Cout = w_ref.shape[-1]
    pad_ref[1:Hh + 1, 1:Ww + 1, :] = x3d.astype(pad_ref.dtype)
    acc = jnp.zeros((Hh * Ww, Cout), jnp.float32)
    for kh in range(3):
        for kw in range(3):
            patch = pad_ref[kh:kh + Hh, kw:kw + Ww, :].reshape(Hh * Ww, Cin)
            acc = acc + jnp.dot(patch.astype(jnp.bfloat16),
                                w_ref[kh * 3 + kw],
                                preferred_element_type=jnp.float32)
    return acc


def _rebnconv(x3d, w_ref, b_ref, pad_ref):
    """REBNCONV: 3x3 conv (BN folded into W) + bias + ReLU -> (H*W, Cout) f32."""
    acc = _conv3x3_acc(x3d, w_ref, pad_ref) + b_ref[...]
    return jnp.maximum(acc, 0.0)


# ----------------------------------------------------------------------------
# Kernels
# ----------------------------------------------------------------------------
def _encode_kernel(x_ref, ws_ref, bs_ref, w1_ref, b1_ref,
                   hxin_ref, hx1_ref, pad_ref):
    """stem REBNCONV + enc1 REBNCONV, fully VMEM-resident."""
    pad_ref[...] = jnp.zeros(pad_ref.shape, pad_ref.dtype)   # zero halo once
    x = x_ref[0]                                             # (H, W, C) bf16
    Hh, Ww, Cc = x.shape
    hxin = _rebnconv(x, ws_ref, bs_ref, pad_ref)             # (H*W, C) f32
    hxin_bf = hxin.astype(jnp.bfloat16)
    hxin_ref[...] = hxin_bf.reshape(hxin_ref.shape)
    hx1 = _rebnconv(hxin_bf.reshape(Hh, Ww, Cc), w1_ref, b1_ref, pad_ref)
    hx1_ref[...] = hx1.astype(hx1_ref.dtype).reshape(hx1_ref.shape)


def _enc2_kernel(xp_ref, w_ref, b_ref, hx2_ref, pad_ref):
    """enc2 REBNCONV at half resolution."""
    pad_ref[...] = jnp.zeros(pad_ref.shape, pad_ref.dtype)
    h = _rebnconv(xp_ref[0], w_ref, b_ref, pad_ref)
    hx2_ref[...] = h.astype(hx2_ref.dtype).reshape(hx2_ref.shape)


def _decode_kernel(hx2up_ref, hx1_ref, hxin_ref,
                   wt_ref, wb_ref, bd_ref, ws_ref, bs_ref,
                   d0_ref, pad_ref):
    """dec1 (concat-free, two accumulating GEMMs) + residual + side head."""
    pad_ref[...] = jnp.zeros(pad_ref.shape, pad_ref.dtype)
    Hh, Ww, Cc = hx1_ref.shape[1:]

    # conv(concat([hx2up, hx1]), W) == conv(hx2up, W_top) + conv(hx1, W_bot)
    acc = _conv3x3_acc(hx2up_ref[0], wt_ref, pad_ref)
    acc = acc + _conv3x3_acc(hx1_ref[0], wb_ref, pad_ref)
    hx1d = jnp.maximum(acc + bd_ref[...], 0.0)               # (H*W, C) f32

    # fused residual add (RSU `hx1d + hxin`), no extra HBM round trip
    hsum = hx1d + hxin_ref[0].reshape(Hh * Ww, Cc).astype(jnp.float32)

    # side head: 3x3 conv -> 1 channel as VPU multiply + lane reduce
    # (avoids an N=1 masked-store GEMM), then sigmoid.
    pad_ref[1:Hh + 1, 1:Ww + 1, :] = hsum.reshape(Hh, Ww, Cc)
    side = jnp.zeros((Hh * Ww, 1), jnp.float32)
    for kh in range(3):
        for kw in range(3):
            patch = pad_ref[kh:kh + Hh, kw:kw + Ww, :].reshape(Hh * Ww, Cc)
            wrow = ws_ref[kh * 3 + kw].astype(jnp.float32)    # (1, C)
            side = side + jnp.sum(patch * wrow, axis=-1, keepdims=True)
    d0 = jax.nn.sigmoid(side + bs_ref[...])
    d0_ref[...] = d0.reshape(d0_ref.shape)


# ----------------------------------------------------------------------------
# pallas_call wrappers
# ----------------------------------------------------------------------------
def _full_spec(shape):
    zeros = (0,) * len(shape)
    return pl.BlockSpec(tuple(shape), lambda b: zeros)


def _batch_spec(shape):
    tail = (0,) * (len(shape) - 1)
    return pl.BlockSpec((1,) + tuple(shape[1:]), lambda b: (b,) + tail)


def _encode_call(x, ws, bs, w1, b1):
    B, Hh, Ww, Cc = x.shape
    out_sds = jax.ShapeDtypeStruct((B, Hh, Ww, Cc), jnp.bfloat16)
    flops = int(2 * 2 * B * Hh * Ww * 9 * Cc * Cc)            # two convs
    bytes_acc = int(x.size * 2 + 2 * B * Hh * Ww * Cc * 2
                    + (ws.size + w1.size) * 2 + (bs.size + b1.size) * 4)
    return pl.pallas_call(
        _encode_kernel,
        out_shape=(out_sds, out_sds),
        grid_spec=pltpu.PrefetchScalarGridSpec(
            num_scalar_prefetch=0,
            grid=(B,),
            in_specs=[_batch_spec(x.shape), _full_spec(ws.shape),
                      _full_spec(bs.shape), _full_spec(w1.shape),
                      _full_spec(b1.shape)],
            out_specs=(_batch_spec(out_sds.shape), _batch_spec(out_sds.shape)),
            scratch_shapes=[pltpu.VMEM((Hh + 2, Ww + 2, Cc), jnp.float32)]),
        compiler_params=pltpu.CompilerParams(dimension_semantics=("parallel",)),
        cost_estimate=pl.CostEstimate(flops=flops, transcendentals=0,
                                      bytes_accessed=bytes_acc),
    )(x, ws, bs, w1, b1)


def _enc2_call(xp, w, b):
    B, Hh, Ww, Cc = xp.shape
    out_sds = jax.ShapeDtypeStruct((B, Hh, Ww, Cc), jnp.bfloat16)
    flops = int(2 * B * Hh * Ww * 9 * Cc * Cc)
    bytes_acc = int(xp.size * 2 + B * Hh * Ww * Cc * 2 + w.size * 2 + b.size * 4)
    return pl.pallas_call(
        _enc2_kernel,
        out_shape=out_sds,
        grid_spec=pltpu.PrefetchScalarGridSpec(
            num_scalar_prefetch=0,
            grid=(B,),
            in_specs=[_batch_spec(xp.shape), _full_spec(w.shape),
                      _full_spec(b.shape)],
            out_specs=_batch_spec(out_sds.shape),
            scratch_shapes=[pltpu.VMEM((Hh + 2, Ww + 2, Cc), jnp.float32)]),
        compiler_params=pltpu.CompilerParams(dimension_semantics=("parallel",)),
        cost_estimate=pl.CostEstimate(flops=flops, transcendentals=0,
                                      bytes_accessed=bytes_acc),
    )(xp, w, b)


def _decode_call(hx2up, hx1, hxin, wt, wb, bd, ws_side, bs_side):
    B, Hh, Ww, Cc = hx1.shape
    out_sds = jax.ShapeDtypeStruct((B, Hh * Ww, 1), jnp.float32)
    flops = int(2 * B * Hh * Ww * 9 * Cc * (2 * Cc + 1))
    bytes_acc = int(3 * B * Hh * Ww * Cc * 2 + B * Hh * Ww * 4
                    + (wt.size + wb.size + ws_side.size) * 2
                    + (bd.size + bs_side.size) * 4)
    return pl.pallas_call(
        _decode_kernel,
        out_shape=out_sds,
        grid_spec=pltpu.PrefetchScalarGridSpec(
            num_scalar_prefetch=0,
            grid=(B,),
            in_specs=[_batch_spec(hx2up.shape), _batch_spec(hx1.shape),
                      _batch_spec(hxin.shape), _full_spec(wt.shape),
                      _full_spec(wb.shape), _full_spec(bd.shape),
                      _full_spec(ws_side.shape), _full_spec(bs_side.shape)],
            out_specs=_batch_spec(out_sds.shape),
            scratch_shapes=[pltpu.VMEM((Hh + 2, Ww + 2, Cc), jnp.float32)]),
        compiler_params=pltpu.CompilerParams(dimension_semantics=("parallel",)),
        cost_estimate=pl.CostEstimate(flops=flops,
                                      transcendentals=int(B * Hh * Ww),
                                      bytes_accessed=bytes_acc),
    )(hx2up, hx1, hxin, wt, wb, bd, ws_side, bs_side)


# ----------------------------------------------------------------------------
# Tiny XLA glue (pool / upsample on <=64 KiB tensors) and layout plumbing
# ----------------------------------------------------------------------------
def _maxpool2x2(x):
    B, Hh, Ww, Cc = x.shape
    return x.reshape(B, Hh // 2, 2, Ww // 2, 2, Cc).max(axis=(2, 4))


def _upsample2x(x):
    # TODO(synk): U2NET uses bilinear F.interpolate; nearest-neighbor used here.
    return jnp.repeat(jnp.repeat(x, 2, axis=1), 2, axis=2)


# ----------------------------------------------------------------------------
# Parameters (deterministic; eval-mode BatchNorm folded into W / bias)
# ----------------------------------------------------------------------------
def _folded_conv_params(key, cin, cout, cin_pad=None, with_bn=True):
    k_w, k_g, k_b, k_m, k_v, k_cb = jax.random.split(key, 6)
    w = jax.random.normal(k_w, (3, 3, cin, cout), jnp.float32) / math.sqrt(9 * cin)
    if with_bn:
        gamma = 1.0 + 0.1 * jax.random.normal(k_g, (cout,), jnp.float32)
        beta = 0.1 * jax.random.normal(k_b, (cout,), jnp.float32)
        mean = 0.1 * jax.random.normal(k_m, (cout,), jnp.float32)
        var = 1.0 + 0.1 * jax.random.uniform(k_v, (cout,), jnp.float32)
        scale = gamma / jnp.sqrt(var + 1e-5)
        bias = beta - mean * scale
    else:  # plain conv + bias (side head has no BN in U2NET)
        scale = jnp.ones((cout,), jnp.float32)
        bias = 0.01 * jax.random.normal(k_cb, (cout,), jnp.float32)
    w = w * scale                         # fold BN scale into weight columns
    w = w.reshape(9, cin, cout)           # (kh*3+kw, cin, cout)
    if cin_pad is not None and cin_pad > cin:
        w = jnp.pad(w, ((0, 0), (0, cin_pad - cin), (0, 0)))
    return w.astype(jnp.bfloat16), bias.reshape(1, cout).astype(jnp.float32)


def init_params(key, cin=3, c=16):
    ks = jax.random.split(key, 5)
    w_stem, b_stem = _folded_conv_params(ks[0], cin, c, cin_pad=c)
    w_enc1, b_enc1 = _folded_conv_params(ks[1], c, c)
    w_enc2, b_enc2 = _folded_conv_params(ks[2], c, c)
    w_dec, b_dec = _folded_conv_params(ks[3], 2 * c, c)          # concat weights
    w_side, b_side = _folded_conv_params(ks[4], c, 1, with_bn=False)
    return {
        "stem": (w_stem, b_stem),
        "enc1": (w_enc1, b_enc1),
        "enc2": (w_enc2, b_enc2),
        "dec1_top": w_dec[:, :c, :],       # multiplies hx2up (concat channels 0..C-1)
        "dec1_bot": w_dec[:, c:, :],       # multiplies hx1   (concat channels C..2C-1)
        "dec1_b": b_dec,
        "side_w": jnp.transpose(w_side, (0, 2, 1)),   # (9, 1, C) for VPU reduce
        "side_b": b_side,                              # (1, 1)
    }


# ----------------------------------------------------------------------------
# Forward
# ----------------------------------------------------------------------------
def u2net_forward(x_nchw, params):
    x = jnp.transpose(x_nchw, (0, 2, 3, 1)).astype(jnp.float32)   # NCHW -> NHWC
    B, Hh, Ww, Cin = x.shape
    c = params["stem"][0].shape[1]                                 # internal width
    x = jnp.pad(x, ((0, 0), (0, 0), (0, 0), (0, c - Cin))).astype(jnp.bfloat16)

    hxin, hx1 = _encode_call(x, *params["stem"], *params["enc1"])  # K1 (full res)
    hx2 = _enc2_call(_maxpool2x2(hx1), *params["enc2"])            # K2 (half res)
    hx2up = _upsample2x(hx2)                                       # tiny XLA glue
    d0 = _decode_call(hx2up, hx1, hxin,
                      params["dec1_top"], params["dec1_bot"], params["dec1_b"],
                      params["side_w"], params["side_b"])          # K3 (full res)

    d0 = d0.reshape(B, Hh, Ww, 1)
    return jnp.transpose(d0, (0, 3, 1, 2))                         # [B, 1, H, W]


if __name__ == "__main__":
    key = jax.random.PRNGKey(0)
    k_x, k_p = jax.random.split(key)
    x = jax.random.normal(k_x, (2, 3, 16, 16), jnp.float32)        # NCHW input
    params = init_params(k_p, cin=3, c=16)

    fwd = jax.jit(u2net_forward)
    out = jax.block_until_ready(fwd(x, params))

    assert out.shape == (2, 1, 16, 16), out.shape
    assert out.dtype == jnp.float32
    assert bool(jnp.all(jnp.isfinite(out)))
    assert bool(jnp.all((out >= 0.0) & (out <= 1.0)))              # sigmoid saliency
    print("KERNEL_OK")
</pallas_src>

<mosaic_0001>
module attributes {stable_mosaic.version = 11 : i64} {
  func.func @_encode_kernel(%arg0: i32, %arg1: memref<1x16x16x16xbf16, #tpu.memory_space<vmem>>, %arg2: memref<9x16x16xbf16, #tpu.memory_space<vmem>>, %arg3: memref<1x16xf32, #tpu.memory_space<vmem>>, %arg4: memref<9x16x16xbf16, #tpu.memory_space<vmem>>, %arg5: memref<1x16xf32, #tpu.memory_space<vmem>>, %arg6: memref<1x16x16x16xbf16, #tpu.memory_space<vmem>>, %arg7: memref<1x16x16x16xbf16, #tpu.memory_space<vmem>>, %arg8: memref<18x18x16xf32, #tpu.memory_space<vmem>>) attributes {dimension_semantics = [#tpu.dimension_semantics<parallel>], iteration_bounds = array<i64: 2>, scalar_prefetch = 0 : i64, scratch_operands = 1 : i64, tpu.core_type = #tpu.core_type<tc>, window_params = [{transform_indices = @transform_0, window_bounds = array<i64: 1, 16, 16, 16>}, {pipeline_mode = #tpu.pipeline_mode<synchronous>, transform_indices = @transform_1, window_bounds = array<i64: 9, 16, 16>}, {pipeline_mode = #tpu.pipeline_mode<synchronous>, transform_indices = @transform_2, window_bounds = array<i64: 1, 16>}, {pipeline_mode = #tpu.pipeline_mode<synchronous>, transform_indices = @transform_3, window_bounds = array<i64: 9, 16, 16>}, {pipeline_mode = #tpu.pipeline_mode<synchronous>, transform_indices = @transform_4, window_bounds = array<i64: 1, 16>}, {transform_indices = @transform_5, window_bounds = array<i64: 1, 16, 16, 16>}, {transform_indices = @transform_6, window_bounds = array<i64: 1, 16, 16, 16>}]} {
    %cst = arith.constant 0.000000e+00 : f32
    %0 = vector.broadcast %cst : f32 to vector<18x18x16xf32>
    %c0 = arith.constant 0 : index
    %c0_0 = arith.constant 0 : index
    %c0_1 = arith.constant 0 : index
    %1 = vector.load %arg8[%c0, %c0_0, %c0_1] : memref<18x18x16xf32, #tpu.memory_space<vmem>>, vector<18x18x16xf32>
    tpu.vector_store %arg8[%c0, %c0_0, %c0_1], %0 {strides = array<i32>} : memref<18x18x16xf32, #tpu.memory_space<vmem>>, vector<18x18x16xf32>,
    %c0_2 = arith.constant 0 : index
    %c0_3 = arith.constant 0 : index
    %c0_4 = arith.constant 0 : index
    %c0_5 = arith.constant 0 : index
    %2 = vector.load %arg1[%c0_2, %c0_3, %c0_4, %c0_5] : memref<1x16x16x16xbf16, #tpu.memory_space<vmem>>, vector<1x16x16x16xbf16>
    %3 = vector.shape_cast %2 : vector<1x16x16x16xbf16> to vector<16x16x16xbf16>
    %4 = arith.extf %3 : vector<16x16x16xbf16> to vector<16x16x16xf32>
    %c1 = arith.constant 1 : index
    %c1_6 = arith.constant 1 : index
    %c0_7 = arith.constant 0 : index
    %5 = vector.load %arg8[%c1, %c1_6, %c0_7] : memref<18x18x16xf32, #tpu.memory_space<vmem>>, vector<16x16x16xf32>
    tpu.vector_store %arg8[%c1, %c1_6, %c0_7], %4 {strides = array<i32>} : memref<18x18x16xf32, #tpu.memory_space<vmem>>, vector<16x16x16xf32>,
    %cst_8 = arith.constant 0.000000e+00 : f32
    %6 = vector.broadcast %cst_8 : f32 to vector<256x16xf32>
    %c0_9 = arith.constant 0 : index
    %c0_10 = arith.constant 0 : index
    %c0_11 = arith.constant 0 : index
    %7 = vector.load %arg8[%c0_9, %c0_10, %c0_11] : memref<18x18x16xf32, #tpu.memory_space<vmem>>, vector<16x16x16xf32>
    %8 = vector.shape_cast %7 : vector<16x16x16xf32> to vector<256x16xf32>
    %9 = arith.truncf %8 : vector<256x16xf32> to vector<256x16xbf16>
    %c0_12 = arith.constant 0 : index
    %c0_13 = arith.constant 0 : index
    %c0_14 = arith.constant 0 : index
    %10 = vector.load %arg2[%c0_12, %c0_13, %c0_14] : memref<9x16x16xbf16, #tpu.memory_space<vmem>>, vector<1x16x16xbf16>
    %11 = vector.shape_cast %10 : vector<1x16x16xbf16> to vector<16x16xbf16>
    %cst_15 = arith.constant dense<0.000000e+00> : vector<256x16xf32>
    %12 = tpu.matmul %9, %11, %cst_15 {dimension_numbers = #tpu.dot_dimension_numbers<[1], [0], [0], [1], [0, 0, 1, 1], [], []>} : vector<256x16xbf16>, vector<16x16xbf16>, vector<256x16xf32> -> vector<256x16xf32>
    %13 = arith.addf %6, %12 : vector<256x16xf32>
    %c0_16 = arith.constant 0 : index
    %c1_17 = arith.constant 1 : index
    %c0_18 = arith.constant 0 : index
    %14 = vector.load %arg8[%c0_16, %c1_17, %c0_18] : memref<18x18x16xf32, #tpu.memory_space<vmem>>, vector<16x16x16xf32>
    %15 = vector.shape_cast %14 : vector<16x16x16xf32> to vector<256x16xf32>
    %16 = arith.truncf %15 : vector<256x16xf32> to vector<256x16xbf16>
    %c1_19 = arith.constant 1 : index
    %c0_20 = arith.constant 0 : index
    %c0_21 = arith.constant 0 : index
    %17 = vector.load %arg2[%c1_19, %c0_20, %c0_21] : memref<9x16x16xbf16, #tpu.memory_space<vmem>>, vector<1x16x16xbf16>
    %18 = vector.shape_cast %17 : vector<1x16x16xbf16> to vector<16x16xbf16>
    %cst_22 = arith.constant dense<0.000000e+00> : vector<256x16xf32>
    %19 = tpu.matmul %16, %18, %cst_22 {dimension_numbers = #tpu.dot_dimension_numbers<[1], [0], [0], [1], [0, 0, 1, 1], [], []>} : vector<256x16xbf16>, vector<16x16xbf16>, vector<256x16xf32> -> vector<256x16xf32>
    %20 = arith.addf %13, %19 : vector<256x16xf32>
    %c0_23 = arith.constant 0 : index
    %c2 = arith.constant 2 : index
    %c0_24 = arith.constant 0 : index
    %21 = vector.load %arg8[%c0_23, %c2, %c0_24] : memref<18x18x16xf32, #tpu.memory_space<vmem>>, vector<16x16x16xf32>
    %22 = vector.shape_cast %21 : vector<16x16x16xf32> to vector<256x16xf32>
    %23 = arith.truncf %22 : vector<256x16xf32> to vector<256x16xbf16>
    %c2_25 = arith.constant 2 : index
    %c0_26 = arith.constant 0 : index
    %c0_27 = arith.constant 0 : index
    %24 = vector.load %arg2[%c2_25, %c0_26, %c0_27] : memref<9x16x16xbf16, #tpu.memory_space<vmem>>, vector<1x16x16xbf16>
    %25 = vector.shape_cast %24 : vector<1x16x16xbf16> to vector<16x16xbf16>
    %cst_28 = arith.constant dense<0.000000e+00> : vector<256x16xf32>
    %26 = tpu.matmul %23, %25, %cst_28 {dimension_numbers = #tpu.dot_dimension_numbers<[1], [0], [0], [1], [0, 0, 1, 1], [], []>} : vector<256x16xbf16>, vector<16x16xbf16>, vector<256x16xf32> -> vector<256x16xf32>
    %27 = arith.addf %20, %26 : vector<256x16xf32>
    %c1_29 = arith.constant 1 : index
    %c0_30 = arith.constant 0 : index
    %c0_31 = arith.constant 0 : index
    %28 = vector.load %arg8[%c1_29, %c0_30, %c0_31] : memref<18x18x16xf32, #tpu.memory_space<vmem>>, vector<16x16x16xf32>
    %29 = vector.shape_cast %28 : vector<16x16x16xf32> to vector<256x16xf32>
    %30 = arith.truncf %29 : vector<256x16xf32> to vector<256x16xbf16>
    %c3 = arith.constant 3 : index
    %c0_32 = arith.constant 0 : index
    %c0_33 = arith.constant 0 : index
    %31 = vector.load %arg2[%c3, %c0_32, %c0_33] : memref<9x16x16xbf16, #tpu.memory_space<vmem>>, vector<1x16x16xbf16>
    %32 = vector.shape_cast %31 : vector<1x16x16xbf16> to vector<16x16xbf16>
    %cst_34 = arith.constant dense<0.000000e+00> : vector<256x16xf32>
    %33 = tpu.matmul %30, %32, %cst_34 {dimension_numbers = #tpu.dot_dimension_numbers<[1], [0], [0], [1], [0, 0, 1, 1], [], []>} : vector<256x16xbf16>, vector<16x16xbf16>, vector<256x16xf32> -> vector<256x16xf32>
    %34 = arith.addf %27, %33 : vector<256x16xf32>
    %c1_35 = arith.constant 1 : index
    %c1_36 = arith.constant 1 : index
    %c0_37 = arith.constant 0 : index
    %35 = vector.load %arg8[%c1_35, %c1_36, %c0_37] : memref<18x18x16xf32, #tpu.memory_space<vmem>>, vector<16x16x16xf32>
    %36 = vector.shape_cast %35 : vector<16x16x16xf32> to vector<256x16xf32>
    %37 = arith.truncf %36 : vector<256x16xf32> to vector<256x16xbf16>
    %c4 = arith.constant 4 : index
    %c0_38 = arith.constant 0 : index
    %c0_39 = arith.constant 0 : index
    %38 = vector.load %arg2[%c4, %c0_38, %c0_39] : memref<9x16x16xbf16, #tpu.memory_space<vmem>>, vector<1x16x16xbf16>
    %39 = vector.shape_cast %38 : vector<1x16x16xbf16> to vector<16x16xbf16>
    %cst_40 = arith.constant dense<0.000000e+00> : vector<256x16xf32>
    %40 = tpu.matmul %37, %39, %cst_40 {dimension_numbers = #tpu.dot_dimension_numbers<[1], [0], [0], [1], [0, 0, 1, 1], [], []>} : vector<256x16xbf16>, vector<16x16xbf16>, vector<256x16xf32> -> vector<256x16xf32>
    %41 = arith.addf %34, %40 : vector<256x16xf32>
    %c1_41 = arith.constant 1 : index
    %c2_42 = arith.constant 2 : index
    %c0_43 = arith.constant 0 : index
    %42 = vector.load %arg8[%c1_41, %c2_42, %c0_43] : memref<18x18x16xf32, #tpu.memory_space<vmem>>, vector<16x16x16xf32>
    %43 = vector.shape_cast %42 : vector<16x16x16xf32> to vector<256x16xf32>
    %44 = arith.truncf %43 : vector<256x16xf32> to vector<256x16xbf16>
    %c5 = arith.constant 5 : index
    %c0_44 = arith.constant 0 : index
    %c0_45 = arith.constant 0 : index
    %45 = vector.load %arg2[%c5, %c0_44, %c0_45] : memref<9x16x16xbf16, #tpu.memory_space<vmem>>, vector<1x16x16xbf16>
    %46 = vector.shape_cast %45 : vector<1x16x16xbf16> to vector<16x16xbf16>
    %cst_46 = arith.constant dense<0.000000e+00> : vector<256x16xf32>
    %47 = tpu.matmul %44, %46, %cst_46 {dimension_numbers = #tpu.dot_dimension_numbers<[1], [0], [0], [1], [0, 0, 1, 1], [], []>} : vector<256x16xbf16>, vector<16x16xbf16>, vector<256x16xf32> -> vector<256x16xf32>
    %48 = arith.addf %41, %47 : vector<256x16xf32>
    %c2_47 = arith.constant 2 : index
    %c0_48 = arith.constant 0 : index
    %c0_49 = arith.constant 0 : index
    %49 = vector.load %arg8[%c2_47, %c0_48, %c0_49] : memref<18x18x16xf32, #tpu.memory_space<vmem>>, vector<16x16x16xf32>
    %50 = vector.shape_cast %49 : vector<16x16x16xf32> to vector<256x16xf32>
    %51 = arith.truncf %50 : vector<256x16xf32> to vector<256x16xbf16>
    %c6 = arith.constant 6 : index
    %c0_50 = arith.constant 0 : index
    %c0_51 = arith.constant 0 : index
    %52 = vector.load %arg2[%c6, %c0_50, %c0_51] : memref<9x16x16xbf16, #tpu.memory_space<vmem>>, vector<1x16x16xbf16>
    %53 = vector.shape_cast %52 : vector<1x16x16xbf16> to vector<16x16xbf16>
    %cst_52 = arith.constant dense<0.000000e+00> : vector<256x16xf32>
    %54 = tpu.matmul %51, %53, %cst_52 {dimension_numbers = #tpu.dot_dimension_numbers<[1], [0], [0], [1], [0, 0, 1, 1], [], []>} : vector<256x16xbf16>, vector<16x16xbf16>, vector<256x16xf32> -> vector<256x16xf32>
    %55 = arith.addf %48, %54 : vector<256x16xf32>
    %c2_53 = arith.constant 2 : index
    %c1_54 = arith.constant 1 : index
    %c0_55 = arith.constant 0 : index
    %56 = vector.load %arg8[%c2_53, %c1_54, %c0_55] : memref<18x18x16xf32, #tpu.memory_space<vmem>>, vector<16x16x16xf32>
    %57 = vector.shape_cast %56 : vector<16x16x16xf32> to vector<256x16xf32>
    %58 = arith.truncf %57 : vector<256x16xf32> to vector<256x16xbf16>
    %c7 = arith.constant 7 : index
    %c0_56 = arith.constant 0 : index
    %c0_57 = arith.constant 0 : index
    %59 = vector.load %arg2[%c7, %c0_56, %c0_57] : memref<9x16x16xbf16, #tpu.memory_space<vmem>>, vector<1x16x16xbf16>
    %60 = vector.shape_cast %59 : vector<1x16x16xbf16> to vector<16x16xbf16>
    %cst_58 = arith.constant dense<0.000000e+00> : vector<256x16xf32>
    %61 = tpu.matmul %58, %60, %cst_58 {dimension_numbers = #tpu.dot_dimension_numbers<[1], [0], [0], [1], [0, 0, 1, 1], [], []>} : vector<256x16xbf16>, vector<16x16xbf16>, vector<256x16xf32> -> vector<256x16xf32>
    %62 = arith.addf %55, %61 : vector<256x16xf32>
    %c2_59 = arith.constant 2 : index
    %c2_60 = arith.constant 2 : index
    %c0_61 = arith.constant 0 : index
    %63 = vector.load %arg8[%c2_59, %c2_60, %c0_61] : memref<18x18x16xf32, #tpu.memory_space<vmem>>, vector<16x16x16xf32>
    %64 = vector.shape_cast %63 : vector<16x16x16xf32> to vector<256x16xf32>
    %65 = arith.truncf %64 : vector<256x16xf32> to vector<256x16xbf16>
    %c8 = arith.constant 8 : index
    %c0_62 = arith.constant 0 : index
    %c0_63 = arith.constant 0 : index
    %66 = vector.load %arg2[%c8, %c0_62, %c0_63] : memref<9x16x16xbf16, #tpu.memory_space<vmem>>, vector<1x16x16xbf16>
    %67 = vector.shape_cast %66 : vector<1x16x16xbf16> to vector<16x16xbf16>
    %cst_64 = arith.constant dense<0.000000e+00> : vector<256x16xf32>
    %68 = tpu.matmul %65, %67, %cst_64 {dimension_numbers = #tpu.dot_dimension_numbers<[1], [0], [0], [1], [0, 0, 1, 1], [], []>} : vector<256x16xbf16>, vector<16x16xbf16>, vector<256x16xf32> -> vector<256x16xf32>
    %69 = arith.addf %62, %68 : vector<256x16xf32>
    %c0_65 = arith.constant 0 : index
    %c0_66 = arith.constant 0 : index
    %70 = vector.load %arg3[%c0_65, %c0_66] : memref<1x16xf32, #tpu.memory_space<vmem>>, vector<1x16xf32>
    %71 = vector.broadcast %70 : vector<1x16xf32> to vector<256x16xf32>
    %72 = arith.addf %69, %71 : vector<256x16xf32>
    %cst_67 = arith.constant 0.000000e+00 : f32
    %73 = vector.broadcast %cst_67 : f32 to vector<256x16xf32>
    %74 = arith.maximumf %72, %73 : vector<256x16xf32>
    %75 = arith.truncf %74 : vector<256x16xf32> to vector<256x16xbf16>
    %76 = vector.shape_cast %75 : vector<256x16xbf16> to vector<1x16x16x16xbf16>
    %c0_68 = arith.constant 0 : index
    %c0_69 = arith.constant 0 : index
    %c0_70 = arith.constant 0 : index
    %c0_71 = arith.constant 0 : index
    %77 = vector.load %arg6[%c0_68, %c0_69, %c0_70, %c0_71] : memref<1x16x16x16xbf16, #tpu.memory_space<vmem>>, vector<1x16x16x16xbf16>
    tpu.vector_store %arg6[%c0_68, %c0_69, %c0_70, %c0_71], %76 {strides = array<i32>} : memref<1x16x16x16xbf16, #tpu.memory_space<vmem>>, vector<1x16x16x16xbf16>,
    %78 = vector.shape_cast %75 : vector<256x16xbf16> to vector<16x16x16xbf16>
    %79 = arith.extf %78 : vector<16x16x16xbf16> to vector<16x16x16xf32>
    %c1_72 = arith.constant 1 : index
    %c1_73 = arith.constant 1 : index
    %c0_74 = arith.constant 0 : index
    %80 = vector.load %arg8[%c1_72, %c1_73, %c0_74] : memref<18x18x16xf32, #tpu.memory_space<vmem>>, vector<16x16x16xf32>
    tpu.vector_store %arg8[%c1_72, %c1_73, %c0_74], %79 {strides = array<i32>} : memref<18x18x16xf32, #tpu.memory_space<vmem>>, vector<16x16x16xf32>,
    %cst_75 = arith.constant 0.000000e+00 : f32
    %81 = vector.broadcast %cst_75 : f32 to vector<256x16xf32>
    %c0_76 = arith.constant 0 : index
    %c0_77 = arith.constant 0 : index
    %c0_78 = arith.constant 0 : index
    %82 = vector.load %arg8[%c0_76, %c0_77, %c0_78] : memref<18x18x16xf32, #tpu.memory_space<vmem>>, vector<16x16x16xf32>
    %83 = vector.shape_cast %82 : vector<16x16x16xf32> to vector<256x16xf32>
    %84 = arith.truncf %83 : vector<256x16xf32> to vector<256x16xbf16>
    %c0_79 = arith.constant 0 : index
    %c0_80 = arith.constant 0 : index
    %c0_81 = arith.constant 0 : index
    %85 = vector.load %arg4[%c0_79, %c0_80, %c0_81] : memref<9x16x16xbf16, #tpu.memory_space<vmem>>, vector<1x16x16xbf16>
    %86 = vector.shape_cast %85 : vector<1x16x16xbf16> to vector<16x16xbf16>
    %cst_82 = arith.constant dense<0.000000e+00> : vector<256x16xf32>
    %87 = tpu.matmul %84, %86, %cst_82 {dimension_numbers = #tpu.dot_dimension_numbers<[1], [0], [0], [1], [0, 0, 1, 1], [], []>} : vector<256x16xbf16>, vector<16x16xbf16>, vector<256x16xf32> -> vector<256x16xf32>
    %88 = arith.addf %81, %87 : vector<256x16xf32>
    %c0_83 = arith.constant 0 : index
    %c1_84 = arith.constant 1 : index
    %c0_85 = arith.constant 0 : index
    %89 = vector.load %arg8[%c0_83, %c1_84, %c0_85] : memref<18x18x16xf32, #tpu.memory_space<vmem>>, vector<16x16x16xf32>
    %90 = vector.shape_cast %89 : vector<16x16x16xf32> to vector<256x16xf32>
    %91 = arith.truncf %90 : vector<256x16xf32> to vector<256x16xbf16>
    %c1_86 = arith.constant 1 : index
    %c0_87 = arith.constant 0 : index
    %c0_88 = arith.constant 0 : index
    %92 = vector.load %arg4[%c1_86, %c0_87, %c0_88] : memref<9x16x16xbf16, #tpu.memory_space<vmem>>, vector<1x16x16xbf16>
    %93 = vector.shape_cast %92 : vector<1x16x16xbf16> to vector<16x16xbf16>
    %cst_89 = arith.constant dense<0.000000e+00> : vector<256x16xf32>
    %94 = tpu.matmul %91, %93, %cst_89 {dimension_numbers = #tpu.dot_dimension_numbers<[1], [0], [0], [1], [0, 0, 1, 1], [], []>} : vector<256x16xbf16>, vector<16x16xbf16>, vector<256x16xf32> -> vector<256x16xf32>
    %95 = arith.addf %88, %94 : vector<256x16xf32>
    %c0_90 = arith.constant 0 : index
    %c2_91 = arith.constant 2 : index
    %c0_92 = arith.constant 0 : index
    %96 = vector.load %arg8[%c0_90, %c2_91, %c0_92] : memref<18x18x16xf32, #tpu.memory_space<vmem>>, vector<16x16x16xf32>
    %97 = vector.shape_cast %96 : vector<16x16x16xf32> to vector<256x16xf32>
    %98 = arith.truncf %97 : vector<256x16xf32> to vector<256x16xbf16>
    %c2_93 = arith.constant 2 : index
    %c0_94 = arith.constant 0 : index
    %c0_95 = arith.constant 0 : index
    %99 = vector.load %arg4[%c2_93, %c0_94, %c0_95] : memref<9x16x16xbf16, #tpu.memory_space<vmem>>, vector<1x16x16xbf16>
    %100 = vector.shape_cast %99 : vector<1x16x16xbf16> to vector<16x16xbf16>
    %cst_96 = arith.constant dense<0.000000e+00> : vector<256x16xf32>
    %101 = tpu.matmul %98, %100, %cst_96 {dimension_numbers = #tpu.dot_dimension_numbers<[1], [0], [0], [1], [0, 0, 1, 1], [], []>} : vector<256x16xbf16>, vector<16x16xbf16>, vector<256x16xf32> -> vector<256x16xf32>
    %102 = arith.addf %95, %101 : vector<256x16xf32>
    %c1_97 = arith.constant 1 : index
    %c0_98 = arith.constant 0 : index
    %c0_99 = arith.constant 0 : index
    %103 = vector.load %arg8[%c1_97, %c0_98, %c0_99] : memref<18x18x16xf32, #tpu.memory_space<vmem>>, vector<16x16x16xf32>
    %104 = vector.shape_cast %103 : vector<16x16x16xf32> to vector<256x16xf32>
    %105 = arith.truncf %104 : vector<256x16xf32> to vector<256x16xbf16>
    %c3_100 = arith.constant 3 : index
    %c0_101 = arith.constant 0 : index
    %c0_102 = arith.constant 0 : index
    %106 = vector.load %arg4[%c3_100, %c0_101, %c0_102] : memref<9x16x16xbf16, #tpu.memory_space<vmem>>, vector<1x16x16xbf16>
    %107 = vector.shape_cast %106 : vector<1x16x16xbf16> to vector<16x16xbf16>
    %cst_103 = arith.constant dense<0.000000e+00> : vector<256x16xf32>
    %108 = tpu.matmul %105, %107, %cst_103 {dimension_numbers = #tpu.dot_dimension_numbers<[1], [0], [0], [1], [0, 0, 1, 1], [], []>} : vector<256x16xbf16>, vector<16x16xbf16>, vector<256x16xf32> -> vector<256x16xf32>
    %109 = arith.addf %102, %108 : vector<256x16xf32>
    %c1_104 = arith.constant 1 : index
    %c1_105 = arith.constant 1 : index
    %c0_106 = arith.constant 0 : index
    %110 = vector.load %arg8[%c1_104, %c1_105, %c0_106] : memref<18x18x16xf32, #tpu.memory_space<vmem>>, vector<16x16x16xf32>
    %111 = vector.shape_cast %110 : vector<16x16x16xf32> to vector<256x16xf32>
    %112 = arith.truncf %111 : vector<256x16xf32> to vector<256x16xbf16>
    %c4_107 = arith.constant 4 : index
    %c0_108 = arith.constant 0 : index
    %c0_109 = arith.constant 0 : index
    %113 = vector.load %arg4[%c4_107, %c0_108, %c0_109] : memref<9x16x16xbf16, #tpu.memory_space<vmem>>, vector<1x16x16xbf16>
    %114 = vector.shape_cast %113 : vector<1x16x16xbf16> to vector<16x16xbf16>
    %cst_110 = arith.constant dense<0.000000e+00> : vector<256x16xf32>
    %115 = tpu.matmul %112, %114, %cst_110 {dimension_numbers = #tpu.dot_dimension_numbers<[1], [0], [0], [1], [0, 0, 1, 1], [], []>} : vector<256x16xbf16>, vector<16x16xbf16>, vector<256x16xf32> -> vector<256x16xf32>
    %116 = arith.addf %109, %115 : vector<256x16xf32>
    %c1_111 = arith.constant 1 : index
    %c2_112 = arith.constant 2 : index
    %c0_113 = arith.constant 0 : index
    %117 = vector.load %arg8[%c1_111, %c2_112, %c0_113] : memref<18x18x16xf32, #tpu.memory_space<vmem>>, vector<16x16x16xf32>
    %118 = vector.shape_cast %117 : vector<16x16x16xf32> to vector<256x16xf32>
    %119 = arith.truncf %118 : vector<256x16xf32> to vector<256x16xbf16>
    %c5_114 = arith.constant 5 : index
    %c0_115 = arith.constant 0 : index
    %c0_116 = arith.constant 0 : index
    %120 = vector.load %arg4[%c5_114, %c0_115, %c0_116] : memref<9x16x16xbf16, #tpu.memory_space<vmem>>, vector<1x16x16xbf16>
    %121 = vector.shape_cast %120 : vector<1x16x16xbf16> to vector<16x16xbf16>
    %cst_117 = arith.constant dense<0.000000e+00> : vector<256x16xf32>
    %122 = tpu.matmul %119, %121, %cst_117 {dimension_numbers = #tpu.dot_dimension_numbers<[1], [0], [0], [1], [0, 0, 1, 1], [], []>} : vector<256x16xbf16>, vector<16x16xbf16>, vector<256x16xf32> -> vector<256x16xf32>
    %123 = arith.addf %116, %122 : vector<256x16xf32>
    %c2_118 = arith.constant 2 : index
    %c0_119 = arith.constant 0 : index
    %c0_120 = arith.constant 0 : index
    %124 = vector.load %arg8[%c2_118, %c0_119, %c0_120] : memref<18x18x16xf32, #tpu.memory_space<vmem>>, vector<16x16x16xf32>
    %125 = vector.shape_cast %124 : vector<16x16x16xf32> to vector<256x16xf32>
    %126 = arith.truncf %125 : vector<256x16xf32> to vector<256x16xbf16>
    %c6_121 = arith.constant 6 : index
    %c0_122 = arith.constant 0 : index
    %c0_123 = arith.constant 0 : index
    %127 = vector.load %arg4[%c6_121, %c0_122, %c0_123] : memref<9x16x16xbf16, #tpu.memory_space<vmem>>, vector<1x16x16xbf16>
    %128 = vector.shape_cast %127 : vector<1x16x16xbf16> to vector<16x16xbf16>
    %cst_124 = arith.constant dense<0.000000e+00> : vector<256x16xf32>
    %129 = tpu.matmul %126, %128, %cst_124 {dimension_numbers = #tpu.dot_dimension_numbers<[1], [0], [0], [1], [0, 0, 1, 1], [], []>} : vector<256x16xbf16>, vector<16x16xbf16>, vector<256x16xf32> -> vector<256x16xf32>
    %130 = arith.addf %123, %129 : vector<256x16xf32>
    %c2_125 = arith.constant 2 : index
    %c1_126 = arith.constant 1 : index
    %c0_127 = arith.constant 0 : index
    %131 = vector.load %arg8[%c2_125, %c1_126, %c0_127] : memref<18x18x16xf32, #tpu.memory_space<vmem>>, vector<16x16x16xf32>
    %132 = vector.shape_cast %131 : vector<16x16x16xf32> to vector<256x16xf32>
    %133 = arith.truncf %132 : vector<256x16xf32> to vector<256x16xbf16>
    %c7_128 = arith.constant 7 : index
    %c0_129 = arith.constant 0 : index
    %c0_130 = arith.constant 0 : index
    %134 = vector.load %arg4[%c7_128, %c0_129, %c0_130] : memref<9x16x16xbf16, #tpu.memory_space<vmem>>, vector<1x16x16xbf16>
    %135 = vector.shape_cast %134 : vector<1x16x16xbf16> to vector<16x16xbf16>
    %cst_131 = arith.constant dense<0.000000e+00> : vector<256x16xf32>
    %136 = tpu.matmul %133, %135, %cst_131 {dimension_numbers = #tpu.dot_dimension_numbers<[1], [0], [0], [1], [0, 0, 1, 1], [], []>} : vector<256x16xbf16>, vector<16x16xbf16>, vector<256x16xf32> -> vector<256x16xf32>
    %137 = arith.addf %130, %136 : vector<256x16xf32>
    %c2_132 = arith.constant 2 : index
    %c2_133 = arith.constant 2 : index
    %c0_134 = arith.constant 0 : index
    %138 = vector.load %arg8[%c2_132, %c2_133, %c0_134] : memref<18x18x16xf32, #tpu.memory_space<vmem>>, vector<16x16x16xf32>
    %139 = vector.shape_cast %138 : vector<16x16x16xf32> to vector<256x16xf32>
    %140 = arith.truncf %139 : vector<256x16xf32> to vector<256x16xbf16>
    %c8_135 = arith.constant 8 : index
    %c0_136 = arith.constant 0 : index
    %c0_137 = arith.constant 0 : index
    %141 = vector.load %arg4[%c8_135, %c0_136, %c0_137] : memref<9x16x16xbf16, #tpu.memory_space<vmem>>, vector<1x16x16xbf16>
    %142 = vector.shape_cast %141 : vector<1x16x16xbf16> to vector<16x16xbf16>
    %cst_138 = arith.constant dense<0.000000e+00> : vector<256x16xf32>
    %143 = tpu.matmul %140, %142, %cst_138 {dimension_numbers = #tpu.dot_dimension_numbers<[1], [0], [0], [1], [0, 0, 1, 1], [], []>} : vector<256x16xbf16>, vector<16x16xbf16>, vector<256x16xf32> -> vector<256x16xf32>
    %144 = arith.addf %137, %143 : vector<256x16xf32>
    %c0_139 = arith.constant 0 : index
    %c0_140 = arith.constant 0 : index
    %145 = vector.load %arg5[%c0_139, %c0_140] : memref<1x16xf32, #tpu.memory_space<vmem>>, vector<1x16xf32>
    %146 = vector.broadcast %145 : vector<1x16xf32> to vector<256x16xf32>
    %147 = arith.addf %144, %146 : vector<256x16xf32>
    %cst_141 = arith.constant 0.000000e+00 : f32
    %148 = vector.broadcast %cst_141 : f32 to vector<256x16xf32>
    %149 = arith.maximumf %147, %148 : vector<256x16xf32>
    %150 = arith.truncf %149 : vector<256x16xf32> to vector<256x16xbf16>
    %151 = vector.shape_cast %150 : vector<256x16xbf16> to vector<1x16x16x16xbf16>
    %c0_142 = arith.constant 0 : index
    %c0_143 = arith.constant 0 : index
    %c0_144 = arith.constant 0 : index
    %c0_145 = arith.constant 0 : index
    %152 = vector.load %arg7[%c0_142, %c0_143, %c0_144, %c0_145] : memref<1x16x16x16xbf16, #tpu.memory_space<vmem>>, vector<1x16x16x16xbf16>
    tpu.vector_store %arg7[%c0_142, %c0_143, %c0_144, %c0_145], %151 {strides = array<i32>} : memref<1x16x16x16xbf16, #tpu.memory_space<vmem>>, vector<1x16x16x16xbf16>,
    return
  }
  func.func @transform_0(%arg0: i32) -> (i32, i32, i32, i32) {
    %c0_i32 = arith.constant 0 : i32
    %c0_i32_0 = arith.constant 0 : i32
    %c0_i32_1 = arith.constant 0 : i32
    %c0_i32_2 = arith.constant 0 : i32
    return %arg0, %c0_i32, %c0_i32_0, %c0_i32_1 : i32, i32, i32, i32
  }
  func.func @transform_1(%arg0: i32) -> (i32, i32, i32) {
    %c0_i32 = arith.constant 0 : i32
    %c0_i32_0 = arith.constant 0 : i32
    %c0_i32_1 = arith.constant 0 : i32
    %c0_i32_2 = arith.constant 0 : i32
    return %c0_i32, %c0_i32_0, %c0_i32_1 : i32, i32, i32
  }
  func.func @transform_2(%arg0: i32) -> (i32, i32) {
    %c0_i32 = arith.constant 0 : i32
    %c0_i32_0 = arith.constant 0 : i32
    %c0_i32_1 = arith.constant 0 : i32
    return %c0_i32, %c0_i32_0 : i32, i32
  }
  func.func @transform_3(%arg0: i32) -> (i32, i32, i32) {
    %c0_i32 = arith.constant 0 : i32
    %c0_i32_0 = arith.constant 0 : i32
    %c0_i32_1 = arith.constant 0 : i32
    %c0_i32_2 = arith.constant 0 : i32
    return %c0_i32, %c0_i32_0, %c0_i32_1 : i32, i32, i32
  }
  func.func @transform_4(%arg0: i32) -> (i32, i32) {
    %c0_i32 = arith.constant 0 : i32
    %c0_i32_0 = arith.constant 0 : i32
    %c0_i32_1 = arith.constant 0 : i32
    return %c0_i32, %c0_i32_0 : i32, i32
  }
  func.func @transform_5(%arg0: i32) -> (i32, i32, i32, i32) {
    %c0_i32 = arith.constant 0 : i32
    %c0_i32_0 = arith.constant 0 : i32
    %c0_i32_1 = arith.constant 0 : i32
    %c0_i32_2 = arith.constant 0 : i32
    return %arg0, %c0_i32, %c0_i32_0, %c0_i32_1 : i32, i32, i32, i32
  }
  func.func @transform_6(%arg0: i32) -> (i32, i32, i32, i32) {
    %c0_i32 = arith.constant 0 : i32
    %c0_i32_0 = arith.constant 0 : i32
    %c0_i32_1 = arith.constant 0 : i32
    %c0_i32_2 = arith.constant 0 : i32
    return %arg0, %c0_i32, %c0_i32_0, %c0_i32_1 : i32, i32, i32, i32
  }
}

module attributes {stable_mosaic.version = 11 : i64} {
  func.func @_enc2_kernel(%arg0: i32, %arg1: memref<1x8x8x16xbf16, #tpu.memory_space<vmem>>, %arg2: memref<9x16x16xbf16, #tpu.memory_space<vmem>>, %arg3: memref<1x16xf32, #tpu.memory_space<vmem>>, %arg4: memref<1x8x8x16xbf16, #tpu.memory_space<vmem>>, %arg5: memref<10x10x16xf32, #tpu.memory_space<vmem>>) attributes {dimension_semantics = [#tpu.dimension_semantics<parallel>], iteration_bounds = array<i64: 2>, scalar_prefetch = 0 : i64, scratch_operands = 1 : i64, tpu.core_type = #tpu.core_type<tc>, window_params = [{transform_indices = @transform_0, window_bounds = array<i64: 1, 8, 8, 16>}, {pipeline_mode = #tpu.pipeline_mode<synchronous>, transform_indices = @transform_1, window_bounds = array<i64: 9, 16, 16>}, {pipeline_mode = #tpu.pipeline_mode<synchronous>, transform_indices = @transform_2, window_bounds = array<i64: 1, 16>}, {transform_indices = @transform_3, window_bounds = array<i64: 1, 8, 8, 16>}]} {
    %cst = arith.constant 0.000000e+00 : f32
    %0 = vector.broadcast %cst : f32 to vector<10x10x16xf32>
    %c0 = arith.constant 0 : index
    %c0_0 = arith.constant 0 : index
    %c0_1 = arith.constant 0 : index
    %1 = vector.load %arg5[%c0, %c0_0, %c0_1] : memref<10x10x16xf32, #tpu.memory_space<vmem>>, vector<10x10x16xf32>
    tpu.vector_store %arg5[%c0, %c0_0, %c0_1], %0 {strides = array<i32>} : memref<10x10x16xf32, #tpu.memory_space<vmem>>, vector<10x10x16xf32>,
    %c0_2 = arith.constant 0 : index
    %c0_3 = arith.constant 0 : index
    %c0_4 = arith.constant 0 : index
    %c0_5 = arith.constant 0 : index
    %2 = vector.load %arg1[%c0_2, %c0_3, %c0_4, %c0_5] : memref<1x8x8x16xbf16, #tpu.memory_space<vmem>>, vector<1x8x8x16xbf16>
    %3 = vector.shape_cast %2 : vector<1x8x8x16xbf16> to vector<8x8x16xbf16>
    %4 = arith.extf %3 : vector<8x8x16xbf16> to vector<8x8x16xf32>
    %c1 = arith.constant 1 : index
    %c1_6 = arith.constant 1 : index
    %c0_7 = arith.constant 0 : index
    %5 = vector.load %arg5[%c1, %c1_6, %c0_7] : memref<10x10x16xf32, #tpu.memory_space<vmem>>, vector<8x8x16xf32>
    tpu.vector_store %arg5[%c1, %c1_6, %c0_7], %4 {strides = array<i32>} : memref<10x10x16xf32, #tpu.memory_space<vmem>>, vector<8x8x16xf32>,
    %cst_8 = arith.constant 0.000000e+00 : f32
    %6 = vector.broadcast %cst_8 : f32 to vector<64x16xf32>
    %c0_9 = arith.constant 0 : index
    %c0_10 = arith.constant 0 : index
    %c0_11 = arith.constant 0 : index
    %7 = vector.load %arg5[%c0_9, %c0_10, %c0_11] : memref<10x10x16xf32, #tpu.memory_space<vmem>>, vector<8x8x16xf32>
    %8 = vector.shape_cast %7 : vector<8x8x16xf32> to vector<64x16xf32>
    %9 = arith.truncf %8 : vector<64x16xf32> to vector<64x16xbf16>
    %c0_12 = arith.constant 0 : index
    %c0_13 = arith.constant 0 : index
    %c0_14 = arith.constant 0 : index
    %10 = vector.load %arg2[%c0_12, %c0_13, %c0_14] : memref<9x16x16xbf16, #tpu.memory_space<vmem>>, vector<1x16x16xbf16>
    %11 = vector.shape_cast %10 : vector<1x16x16xbf16> to vector<16x16xbf16>
    %cst_15 = arith.constant dense<0.000000e+00> : vector<64x16xf32>
    %12 = tpu.matmul %9, %11, %cst_15 {dimension_numbers = #tpu.dot_dimension_numbers<[1], [0], [0], [1], [0, 0, 1, 1], [], []>} : vector<64x16xbf16>, vector<16x16xbf16>, vector<64x16xf32> -> vector<64x16xf32>
    %13 = arith.addf %6, %12 : vector<64x16xf32>
    %c0_16 = arith.constant 0 : index
    %c1_17 = arith.constant 1 : index
    %c0_18 = arith.constant 0 : index
    %14 = vector.load %arg5[%c0_16, %c1_17, %c0_18] : memref<10x10x16xf32, #tpu.memory_space<vmem>>, vector<8x8x16xf32>
    %15 = vector.shape_cast %14 : vector<8x8x16xf32> to vector<64x16xf32>
    %16 = arith.truncf %15 : vector<64x16xf32> to vector<64x16xbf16>
    %c1_19 = arith.constant 1 : index
    %c0_20 = arith.constant 0 : index
    %c0_21 = arith.constant 0 : index
    %17 = vector.load %arg2[%c1_19, %c0_20, %c0_21] : memref<9x16x16xbf16, #tpu.memory_space<vmem>>, vector<1x16x16xbf16>
    %18 = vector.shape_cast %17 : vector<1x16x16xbf16> to vector<16x16xbf16>
    %cst_22 = arith.constant dense<0.000000e+00> : vector<64x16xf32>
    %19 = tpu.matmul %16, %18, %cst_22 {dimension_numbers = #tpu.dot_dimension_numbers<[1], [0], [0], [1], [0, 0, 1, 1], [], []>} : vector<64x16xbf16>, vector<16x16xbf16>, vector<64x16xf32> -> vector<64x16xf32>
    %20 = arith.addf %13, %19 : vector<64x16xf32>
    %c0_23 = arith.constant 0 : index
    %c2 = arith.constant 2 : index
    %c0_24 = arith.constant 0 : index
    %21 = vector.load %arg5[%c0_23, %c2, %c0_24] : memref<10x10x16xf32, #tpu.memory_space<vmem>>, vector<8x8x16xf32>
    %22 = vector.shape_cast %21 : vector<8x8x16xf32> to vector<64x16xf32>
    %23 = arith.truncf %22 : vector<64x16xf32> to vector<64x16xbf16>
    %c2_25 = arith.constant 2 : index
    %c0_26 = arith.constant 0 : index
    %c0_27 = arith.constant 0 : index
    %24 = vector.load %arg2[%c2_25, %c0_26, %c0_27] : memref<9x16x16xbf16, #tpu.memory_space<vmem>>, vector<1x16x16xbf16>
    %25 = vector.shape_cast %24 : vector<1x16x16xbf16> to vector<16x16xbf16>
    %cst_28 = arith.constant dense<0.000000e+00> : vector<64x16xf32>
    %26 = tpu.matmul %23, %25, %cst_28 {dimension_numbers = #tpu.dot_dimension_numbers<[1], [0], [0], [1], [0, 0, 1, 1], [], []>} : vector<64x16xbf16>, vector<16x16xbf16>, vector<64x16xf32> -> vector<64x16xf32>
    %27 = arith.addf %20, %26 : vector<64x16xf32>
    %c1_29 = arith.constant 1 : index
    %c0_30 = arith.constant 0 : index
    %c0_31 = arith.constant 0 : index
    %28 = vector.load %arg5[%c1_29, %c0_30, %c0_31] : memref<10x10x16xf32, #tpu.memory_space<vmem>>, vector<8x8x16xf32>
    %29 = vector.shape_cast %28 : vector<8x8x16xf32> to vector<64x16xf32>
    %30 = arith.truncf %29 : vector<64x16xf32> to vector<64x16xbf16>
    %c3 = arith.constant 3 : index
    %c0_32 = arith.constant 0 : index
    %c0_33 = arith.constant 0 : index
    %31 = vector.load %arg2[%c3, %c0_32, %c0_33] : memref<9x16x16xbf16, #tpu.memory_space<vmem>>, vector<1x16x16xbf16>
    %32 = vector.shape_cast %31 : vector<1x16x16xbf16> to vector<16x16xbf16>
    %cst_34 = arith.constant dense<0.000000e+00> : vector<64x16xf32>
    %33 = tpu.matmul %30, %32, %cst_34 {dimension_numbers = #tpu.dot_dimension_numbers<[1], [0], [0], [1], [0, 0, 1, 1], [], []>} : vector<64x16xbf16>, vector<16x16xbf16>, vector<64x16xf32> -> vector<64x16xf32>
    %34 = arith.addf %27, %33 : vector<64x16xf32>
    %c1_35 = arith.constant 1 : index
    %c1_36 = arith.constant 1 : index
    %c0_37 = arith.constant 0 : index
    %35 = vector.load %arg5[%c1_35, %c1_36, %c0_37] : memref<10x10x16xf32, #tpu.memory_space<vmem>>, vector<8x8x16xf32>
    %36 = vector.shape_cast %35 : vector<8x8x16xf32> to vector<64x16xf32>
    %37 = arith.truncf %36 : vector<64x16xf32> to vector<64x16xbf16>
    %c4 = arith.constant 4 : index
    %c0_38 = arith.constant 0 : index
    %c0_39 = arith.constant 0 : index
    %38 = vector.load %arg2[%c4, %c0_38, %c0_39] : memref<9x16x16xbf16, #tpu.memory_space<vmem>>, vector<1x16x16xbf16>
    %39 = vector.shape_cast %38 : vector<1x16x16xbf16> to vector<16x16xbf16>
    %cst_40 = arith.constant dense<0.000000e+00> : vector<64x16xf32>
    %40 = tpu.matmul %37, %39, %cst_40 {dimension_numbers = #tpu.dot_dimension_numbers<[1], [0], [0], [1], [0, 0, 1, 1], [], []>} : vector<64x16xbf16>, vector<16x16xbf16>, vector<64x16xf32> -> vector<64x16xf32>
    %41 = arith.addf %34, %40 : vector<64x16xf32>
    %c1_41 = arith.constant 1 : index
    %c2_42 = arith.constant 2 : index
    %c0_43 = arith.constant 0 : index
    %42 = vector.load %arg5[%c1_41, %c2_42, %c0_43] : memref<10x10x16xf32, #tpu.memory_space<vmem>>, vector<8x8x16xf32>
    %43 = vector.shape_cast %42 : vector<8x8x16xf32> to vector<64x16xf32>
    %44 = arith.truncf %43 : vector<64x16xf32> to vector<64x16xbf16>
    %c5 = arith.constant 5 : index
    %c0_44 = arith.constant 0 : index
    %c0_45 = arith.constant 0 : index
    %45 = vector.load %arg2[%c5, %c0_44, %c0_45] : memref<9x16x16xbf16, #tpu.memory_space<vmem>>, vector<1x16x16xbf16>
    %46 = vector.shape_cast %45 : vector<1x16x16xbf16> to vector<16x16xbf16>
    %cst_46 = arith.constant dense<0.000000e+00> : vector<64x16xf32>
    %47 = tpu.matmul %44, %46, %cst_46 {dimension_numbers = #tpu.dot_dimension_numbers<[1], [0], [0], [1], [0, 0, 1, 1], [], []>} : vector<64x16xbf16>, vector<16x16xbf16>, vector<64x16xf32> -> vector<64x16xf32>
    %48 = arith.addf %41, %47 : vector<64x16xf32>
    %c2_47 = arith.constant 2 : index
    %c0_48 = arith.constant 0 : index
    %c0_49 = arith.constant 0 : index
    %49 = vector.load %arg5[%c2_47, %c0_48, %c0_49] : memref<10x10x16xf32, #tpu.memory_space<vmem>>, vector<8x8x16xf32>
    %50 = vector.shape_cast %49 : vector<8x8x16xf32> to vector<64x16xf32>
    %51 = arith.truncf %50 : vector<64x16xf32> to vector<64x16xbf16>
    %c6 = arith.constant 6 : index
    %c0_50 = arith.constant 0 : index
    %c0_51 = arith.constant 0 : index
    %52 = vector.load %arg2[%c6, %c0_50, %c0_51] : memref<9x16x16xbf16, #tpu.memory_space<vmem>>, vector<1x16x16xbf16>
    %53 = vector.shape_cast %52 : vector<1x16x16xbf16> to vector<16x16xbf16>
    %cst_52 = arith.constant dense<0.000000e+00> : vector<64x16xf32>
    %54 = tpu.matmul %51, %53, %cst_52 {dimension_numbers = #tpu.dot_dimension_numbers<[1], [0], [0], [1], [0, 0, 1, 1], [], []>} : vector<64x16xbf16>, vector<16x16xbf16>, vector<64x16xf32> -> vector<64x16xf32>
    %55 = arith.addf %48, %54 : vector<64x16xf32>
    %c2_53 = arith.constant 2 : index
    %c1_54 = arith.constant 1 : index
    %c0_55 = arith.constant 0 : index
    %56 = vector.load %arg5[%c2_53, %c1_54, %c0_55] : memref<10x10x16xf32, #tpu.memory_space<vmem>>, vector<8x8x16xf32>
    %57 = vector.shape_cast %56 : vector<8x8x16xf32> to vector<64x16xf32>
    %58 = arith.truncf %57 : vector<64x16xf32> to vector<64x16xbf16>
    %c7 = arith.constant 7 : index
    %c0_56 = arith.constant 0 : index
    %c0_57 = arith.constant 0 : index
    %59 = vector.load %arg2[%c7, %c0_56, %c0_57] : memref<9x16x16xbf16, #tpu.memory_space<vmem>>, vector<1x16x16xbf16>
    %60 = vector.shape_cast %59 : vector<1x16x16xbf16> to vector<16x16xbf16>
    %cst_58 = arith.constant dense<0.000000e+00> : vector<64x16xf32>
    %61 = tpu.matmul %58, %60, %cst_58 {dimension_numbers = #tpu.dot_dimension_numbers<[1], [0], [0], [1], [0, 0, 1, 1], [], []>} : vector<64x16xbf16>, vector<16x16xbf16>, vector<64x16xf32> -> vector<64x16xf32>
    %62 = arith.addf %55, %61 : vector<64x16xf32>
    %c2_59 = arith.constant 2 : index
    %c2_60 = arith.constant 2 : index
    %c0_61 = arith.constant 0 : index
    %63 = vector.load %arg5[%c2_59, %c2_60, %c0_61] : memref<10x10x16xf32, #tpu.memory_space<vmem>>, vector<8x8x16xf32>
    %64 = vector.shape_cast %63 : vector<8x8x16xf32> to vector<64x16xf32>
    %65 = arith.truncf %64 : vector<64x16xf32> to vector<64x16xbf16>
    %c8 = arith.constant 8 : index
    %c0_62 = arith.constant 0 : index
    %c0_63 = arith.constant 0 : index
    %66 = vector.load %arg2[%c8, %c0_62, %c0_63] : memref<9x16x16xbf16, #tpu.memory_space<vmem>>, vector<1x16x16xbf16>
    %67 = vector.shape_cast %66 : vector<1x16x16xbf16> to vector<16x16xbf16>
    %cst_64 = arith.constant dense<0.000000e+00> : vector<64x16xf32>
    %68 = tpu.matmul %65, %67, %cst_64 {dimension_numbers = #tpu.dot_dimension_numbers<[1], [0], [0], [1], [0, 0, 1, 1], [], []>} : vector<64x16xbf16>, vector<16x16xbf16>, vector<64x16xf32> -> vector<64x16xf32>
    %69 = arith.addf %62, %68 : vector<64x16xf32>
    %c0_65 = arith.constant 0 : index
    %c0_66 = arith.constant 0 : index
    %70 = vector.load %arg3[%c0_65, %c0_66] : memref<1x16xf32, #tpu.memory_space<vmem>>, vector<1x16xf32>
    %71 = vector.broadcast %70 : vector<1x16xf32> to vector<64x16xf32>
    %72 = arith.addf %69, %71 : vector<64x16xf32>
    %cst_67 = arith.constant 0.000000e+00 : f32
    %73 = vector.broadcast %cst_67 : f32 to vector<64x16xf32>
    %74 = arith.maximumf %72, %73 : vector<64x16xf32>
    %75 = arith.truncf %74 : vector<64x16xf32> to vector<64x16xbf16>
    %76 = vector.shape_cast %75 : vector<64x16xbf16> to vector<1x8x8x16xbf16>
    %c0_68 = arith.constant 0 : index
    %c0_69 = arith.constant 0 : index
    %c0_70 = arith.constant 0 : index
    %c0_71 = arith.constant 0 : index
    %77 = vector.load %arg4[%c0_68, %c0_69, %c0_70, %c0_71] : memref<1x8x8x16xbf16, #tpu.memory_space<vmem>>, vector<1x8x8x16xbf16>
    tpu.vector_store %arg4[%c0_68, %c0_69, %c0_70, %c0_71], %76 {strides = array<i32>} : memref<1x8x8x16xbf16, #tpu.memory_space<vmem>>, vector<1x8x8x16xbf16>,
    return
  }
  func.func @transform_0(%arg0: i32) -> (i32, i32, i32, i32) {
    %c0_i32 = arith.constant 0 : i32
    %c0_i32_0 = arith.constant 0 : i32
    %c0_i32_1 = arith.constant 0 : i32
    %c0_i32_2 = arith.constant 0 : i32
    return %arg0, %c0_i32, %c0_i32_0, %c0_i32_1 : i32, i32, i32, i32
  }
  func.func @transform_1(%arg0: i32) -> (i32, i32, i32) {
    %c0_i32 = arith.constant 0 : i32
    %c0_i32_0 = arith.constant 0 : i32
    %c0_i32_1 = arith.constant 0 : i32
    %c0_i32_2 = arith.constant 0 : i32
    return %c0_i32, %c0_i32_0, %c0_i32_1 : i32, i32, i32
  }
  func.func @transform_2(%arg0: i32) -> (i32, i32) {
    %c0_i32 = arith.constant 0 : i32
    %c0_i32_0 = arith.constant 0 : i32
    %c0_i32_1 = arith.constant 0 : i32
    return %c0_i32, %c0_i32_0 : i32, i32
  }
  func.func @transform_3(%arg0: i32) -> (i32, i32, i32, i32) {
    %c0_i32 = arith.constant 0 : i32
    %c0_i32_0 = arith.constant 0 : i32
    %c0_i32_1 = arith.constant 0 : i32
    %c0_i32_2 = arith.constant 0 : i32
    return %arg0, %c0_i32, %c0_i32_0, %c0_i32_1 : i32, i32, i32, i32
  }
}

module attributes {stable_mosaic.version = 11 : i64} {
  func.func @_decode_kernel(%arg0: i32, %arg1: memref<1x16x16x16xbf16, #tpu.memory_space<vmem>>, %arg2: memref<1x16x16x16xbf16, #tpu.memory_space<vmem>>, %arg3: memref<1x16x16x16xbf16, #tpu.memory_space<vmem>>, %arg4: memref<9x16x16xbf16, #tpu.memory_space<vmem>>, %arg5: memref<9x16x16xbf16, #tpu.memory_space<vmem>>, %arg6: memref<1x16xf32, #tpu.memory_space<vmem>>, %arg7: memref<9x1x16xbf16, #tpu.memory_space<vmem>>, %arg8: memref<1x1xf32, #tpu.memory_space<vmem>>, %arg9: memref<1x256x1xf32, #tpu.memory_space<vmem>>, %arg10: memref<18x18x16xf32, #tpu.memory_space<vmem>>) attributes {dimension_semantics = [#tpu.dimension_semantics<parallel>], iteration_bounds = array<i64: 2>, scalar_prefetch = 0 : i64, scratch_operands = 1 : i64, tpu.core_type = #tpu.core_type<tc>, window_params = [{transform_indices = @transform_0, window_bounds = array<i64: 1, 16, 16, 16>}, {transform_indices = @transform_1, window_bounds = array<i64: 1, 16, 16, 16>}, {transform_indices = @transform_2, window_bounds = array<i64: 1, 16, 16, 16>}, {pipeline_mode = #tpu.pipeline_mode<synchronous>, transform_indices = @transform_3, window_bounds = array<i64: 9, 16, 16>}, {pipeline_mode = #tpu.pipeline_mode<synchronous>, transform_indices = @transform_4, window_bounds = array<i64: 9, 16, 16>}, {pipeline_mode = #tpu.pipeline_mode<synchronous>, transform_indices = @transform_5, window_bounds = array<i64: 1, 16>}, {pipeline_mode = #tpu.pipeline_mode<synchronous>, transform_indices = @transform_6, window_bounds = array<i64: 9, 1, 16>}, {pipeline_mode = #tpu.pipeline_mode<synchronous>, transform_indices = @transform_7, window_bounds = array<i64: 1, 1>}, {transform_indices = @transform_8, window_bounds = array<i64: 1, 256, 1>}]} {
    %cst = arith.constant 0.000000e+00 : f32
    %0 = vector.broadcast %cst : f32 to vector<18x18x16xf32>
    %c0 = arith.constant 0 : index
    %c0_0 = arith.constant 0 : index
    %c0_1 = arith.constant 0 : index
    %1 = vector.load %arg10[%c0, %c0_0, %c0_1] : memref<18x18x16xf32, #tpu.memory_space<vmem>>, vector<18x18x16xf32>
    tpu.vector_store %arg10[%c0, %c0_0, %c0_1], %0 {strides = array<i32>} : memref<18x18x16xf32, #tpu.memory_space<vmem>>, vector<18x18x16xf32>,
    %c0_2 = arith.constant 0 : index
    %c0_3 = arith.constant 0 : index
    %c0_4 = arith.constant 0 : index
    %c0_5 = arith.constant 0 : index
    %2 = vector.load %arg1[%c0_2, %c0_3, %c0_4, %c0_5] : memref<1x16x16x16xbf16, #tpu.memory_space<vmem>>, vector<1x16x16x16xbf16>
    %3 = vector.shape_cast %2 : vector<1x16x16x16xbf16> to vector<16x16x16xbf16>
    %4 = arith.extf %3 : vector<16x16x16xbf16> to vector<16x16x16xf32>
    %c1 = arith.constant 1 : index
    %c1_6 = arith.constant 1 : index
    %c0_7 = arith.constant 0 : index
    %5 = vector.load %arg10[%c1, %c1_6, %c0_7] : memref<18x18x16xf32, #tpu.memory_space<vmem>>, vector<16x16x16xf32>
    tpu.vector_store %arg10[%c1, %c1_6, %c0_7], %4 {strides = array<i32>} : memref<18x18x16xf32, #tpu.memory_space<vmem>>, vector<16x16x16xf32>,
    %cst_8 = arith.constant 0.000000e+00 : f32
    %6 = vector.broadcast %cst_8 : f32 to vector<256x16xf32>
    %c0_9 = arith.constant 0 : index
    %c0_10 = arith.constant 0 : index
    %c0_11 = arith.constant 0 : index
    %7 = vector.load %arg10[%c0_9, %c0_10, %c0_11] : memref<18x18x16xf32, #tpu.memory_space<vmem>>, vector<16x16x16xf32>
    %8 = vector.shape_cast %7 : vector<16x16x16xf32> to vector<256x16xf32>
    %9 = arith.truncf %8 : vector<256x16xf32> to vector<256x16xbf16>
    %c0_12 = arith.constant 0 : index
    %c0_13 = arith.constant 0 : index
    %c0_14 = arith.constant 0 : index
    %10 = vector.load %arg4[%c0_12, %c0_13, %c0_14] : memref<9x16x16xbf16, #tpu.memory_space<vmem>>, vector<1x16x16xbf16>
    %11 = vector.shape_cast %10 : vector<1x16x16xbf16> to vector<16x16xbf16>
    %cst_15 = arith.constant dense<0.000000e+00> : vector<256x16xf32>
    %12 = tpu.matmul %9, %11, %cst_15 {dimension_numbers = #tpu.dot_dimension_numbers<[1], [0], [0], [1], [0, 0, 1, 1], [], []>} : vector<256x16xbf16>, vector<16x16xbf16>, vector<256x16xf32> -> vector<256x16xf32>
    %13 = arith.addf %6, %12 : vector<256x16xf32>
    %c0_16 = arith.constant 0 : index
    %c1_17 = arith.constant 1 : index
    %c0_18 = arith.constant 0 : index
    %14 = vector.load %arg10[%c0_16, %c1_17, %c0_18] : memref<18x18x16xf32, #tpu.memory_space<vmem>>, vector<16x16x16xf32>
    %15 = vector.shape_cast %14 : vector<16x16x16xf32> to vector<256x16xf32>
    %16 = arith.truncf %15 : vector<256x16xf32> to vector<256x16xbf16>
    %c1_19 = arith.constant 1 : index
    %c0_20 = arith.constant 0 : index
    %c0_21 = arith.constant 0 : index
    %17 = vector.load %arg4[%c1_19, %c0_20, %c0_21] : memref<9x16x16xbf16, #tpu.memory_space<vmem>>, vector<1x16x16xbf16>
    %18 = vector.shape_cast %17 : vector<1x16x16xbf16> to vector<16x16xbf16>
    %cst_22 = arith.constant dense<0.000000e+00> : vector<256x16xf32>
    %19 = tpu.matmul %16, %18, %cst_22 {dimension_numbers = #tpu.dot_dimension_numbers<[1], [0], [0], [1], [0, 0, 1, 1], [], []>} : vector<256x16xbf16>, vector<16x16xbf16>, vector<256x16xf32> -> vector<256x16xf32>
    %20 = arith.addf %13, %19 : vector<256x16xf32>
    %c0_23 = arith.constant 0 : index
    %c2 = arith.constant 2 : index
    %c0_24 = arith.constant 0 : index
    %21 = vector.load %arg10[%c0_23, %c2, %c0_24] : memref<18x18x16xf32, #tpu.memory_space<vmem>>, vector<16x16x16xf32>
    %22 = vector.shape_cast %21 : vector<16x16x16xf32> to vector<256x16xf32>
    %23 = arith.truncf %22 : vector<256x16xf32> to vector<256x16xbf16>
    %c2_25 = arith.constant 2 : index
    %c0_26 = arith.constant 0 : index
    %c0_27 = arith.constant 0 : index
    %24 = vector.load %arg4[%c2_25, %c0_26, %c0_27] : memref<9x16x16xbf16, #tpu.memory_space<vmem>>, vector<1x16x16xbf16>
    %25 = vector.shape_cast %24 : vector<1x16x16xbf16> to vector<16x16xbf16>
    %cst_28 = arith.constant dense<0.000000e+00> : vector<256x16xf32>
    %26 = tpu.matmul %23, %25, %cst_28 {dimension_numbers = #tpu.dot_dimension_numbers<[1], [0], [0], [1], [0, 0, 1, 1], [], []>} : vector<256x16xbf16>, vector<16x16xbf16>, vector<256x16xf32> -> vector<256x16xf32>
    %27 = arith.addf %20, %26 : vector<256x16xf32>
    %c1_29 = arith.constant 1 : index
    %c0_30 = arith.constant 0 : index
    %c0_31 = arith.constant 0 : index
    %28 = vector.load %arg10[%c1_29, %c0_30, %c0_31] : memref<18x18x16xf32, #tpu.memory_space<vmem>>, vector<16x16x16xf32>
    %29 = vector.shape_cast %28 : vector<16x16x16xf32> to vector<256x16xf32>
    %30 = arith.truncf %29 : vector<256x16xf32> to vector<256x16xbf16>
    %c3 = arith.constant 3 : index
    %c0_32 = arith.constant 0 : index
    %c0_33 = arith.constant 0 : index
    %31 = vector.load %arg4[%c3, %c0_32, %c0_33] : memref<9x16x16xbf16, #tpu.memory_space<vmem>>, vector<1x16x16xbf16>
    %32 = vector.shape_cast %31 : vector<1x16x16xbf16> to vector<16x16xbf16>
    %cst_34 = arith.constant dense<0.000000e+00> : vector<256x16xf32>
    %33 = tpu.matmul %30, %32, %cst_34 {dimension_numbers = #tpu.dot_dimension_numbers<[1], [0], [0], [1], [0, 0, 1, 1], [], []>} : vector<256x16xbf16>, vector<16x16xbf16>, vector<256x16xf32> -> vector<256x16xf32>
    %34 = arith.addf %27, %33 : vector<256x16xf32>
    %c1_35 = arith.constant 1 : index
    %c1_36 = arith.constant 1 : index
    %c0_37 = arith.constant 0 : index
    %35 = vector.load %arg10[%c1_35, %c1_36, %c0_37] : memref<18x18x16xf32, #tpu.memory_space<vmem>>, vector<16x16x16xf32>
    %36 = vector.shape_cast %35 : vector<16x16x16xf32> to vector<256x16xf32>
    %37 = arith.truncf %36 : vector<256x16xf32> to vector<256x16xbf16>
    %c4 = arith.constant 4 : index
    %c0_38 = arith.constant 0 : index
    %c0_39 = arith.constant 0 : index
    %38 = vector.load %arg4[%c4, %c0_38, %c0_39] : memref<9x16x16xbf16, #tpu.memory_space<vmem>>, vector<1x16x16xbf16>
    %39 = vector.shape_cast %38 : vector<1x16x16xbf16> to vector<16x16xbf16>
    %cst_40 = arith.constant dense<0.000000e+00> : vector<256x16xf32>
    %40 = tpu.matmul %37, %39, %cst_40 {dimension_numbers = #tpu.dot_dimension_numbers<[1], [0], [0], [1], [0, 0, 1, 1], [], []>} : vector<256x16xbf16>, vector<16x16xbf16>, vector<256x16xf32> -> vector<256x16xf32>
    %41 = arith.addf %34, %40 : vector<256x16xf32>
    %c1_41 = arith.constant 1 : index
    %c2_42 = arith.constant 2 : index
    %c0_43 = arith.constant 0 : index
    %42 = vector.load %arg10[%c1_41, %c2_42, %c0_43] : memref<18x18x16xf32, #tpu.memory_space<vmem>>, vector<16x16x16xf32>
    %43 = vector.shape_cast %42 : vector<16x16x16xf32> to vector<256x16xf32>
    %44 = arith.truncf %43 : vector<256x16xf32> to vector<256x16xbf16>
    %c5 = arith.constant 5 : index
    %c0_44 = arith.constant 0 : index
    %c0_45 = arith.constant 0 : index
    %45 = vector.load %arg4[%c5, %c0_44, %c0_45] : memref<9x16x16xbf16, #tpu.memory_space<vmem>>, vector<1x16x16xbf16>
    %46 = vector.shape_cast %45 : vector<1x16x16xbf16> to vector<16x16xbf16>
    %cst_46 = arith.constant dense<0.000000e+00> : vector<256x16xf32>
    %47 = tpu.matmul %44, %46, %cst_46 {dimension_numbers = #tpu.dot_dimension_numbers<[1], [0], [0], [1], [0, 0, 1, 1], [], []>} : vector<256x16xbf16>, vector<16x16xbf16>, vector<256x16xf32> -> vector<256x16xf32>
    %48 = arith.addf %41, %47 : vector<256x16xf32>
    %c2_47 = arith.constant 2 : index
    %c0_48 = arith.constant 0 : index
    %c0_49 = arith.constant 0 : index
    %49 = vector.load %arg10[%c2_47, %c0_48, %c0_49] : memref<18x18x16xf32, #tpu.memory_space<vmem>>, vector<16x16x16xf32>
    %50 = vector.shape_cast %49 : vector<16x16x16xf32> to vector<256x16xf32>
    %51 = arith.truncf %50 : vector<256x16xf32> to vector<256x16xbf16>
    %c6 = arith.constant 6 : index
    %c0_50 = arith.constant 0 : index
    %c0_51 = arith.constant 0 : index
    %52 = vector.load %arg4[%c6, %c0_50, %c0_51] : memref<9x16x16xbf16, #tpu.memory_space<vmem>>, vector<1x16x16xbf16>
    %53 = vector.shape_cast %52 : vector<1x16x16xbf16> to vector<16x16xbf16>
    %cst_52 = arith.constant dense<0.000000e+00> : vector<256x16xf32>
    %54 = tpu.matmul %51, %53, %cst_52 {dimension_numbers = #tpu.dot_dimension_numbers<[1], [0], [0], [1], [0, 0, 1, 1], [], []>} : vector<256x16xbf16>, vector<16x16xbf16>, vector<256x16xf32> -> vector<256x16xf32>
    %55 = arith.addf %48, %54 : vector<256x16xf32>
    %c2_53 = arith.constant 2 : index
    %c1_54 = arith.constant 1 : index
    %c0_55 = arith.constant 0 : index
    %56 = vector.load %arg10[%c2_53, %c1_54, %c0_55] : memref<18x18x16xf32, #tpu.memory_space<vmem>>, vector<16x16x16xf32>
    %57 = vector.shape_cast %56 : vector<16x16x16xf32> to vector<256x16xf32>
    %58 = arith.truncf %57 : vector<256x16xf32> to vector<256x16xbf16>
    %c7 = arith.constant 7 : index
    %c0_56 = arith.constant 0 : index
    %c0_57 = arith.constant 0 : index
    %59 = vector.load %arg4[%c7, %c0_56, %c0_57] : memref<9x16x16xbf16, #tpu.memory_space<vmem>>, vector<1x16x16xbf16>
    %60 = vector.shape_cast %59 : vector<1x16x16xbf16> to vector<16x16xbf16>
    %cst_58 = arith.constant dense<0.000000e+00> : vector<256x16xf32>
    %61 = tpu.matmul %58, %60, %cst_58 {dimension_numbers = #tpu.dot_dimension_numbers<[1], [0], [0], [1], [0, 0, 1, 1], [], []>} : vector<256x16xbf16>, vector<16x16xbf16>, vector<256x16xf32> -> vector<256x16xf32>
    %62 = arith.addf %55, %61 : vector<256x16xf32>
    %c2_59 = arith.constant 2 : index
    %c2_60 = arith.constant 2 : index
    %c0_61 = arith.constant 0 : index
    %63 = vector.load %arg10[%c2_59, %c2_60, %c0_61] : memref<18x18x16xf32, #tpu.memory_space<vmem>>, vector<16x16x16xf32>
    %64 = vector.shape_cast %63 : vector<16x16x16xf32> to vector<256x16xf32>
    %65 = arith.truncf %64 : vector<256x16xf32> to vector<256x16xbf16>
    %c8 = arith.constant 8 : index
    %c0_62 = arith.constant 0 : index
    %c0_63 = arith.constant 0 : index
    %66 = vector.load %arg4[%c8, %c0_62, %c0_63] : memref<9x16x16xbf16, #tpu.memory_space<vmem>>, vector<1x16x16xbf16>
    %67 = vector.shape_cast %66 : vector<1x16x16xbf16> to vector<16x16xbf16>
    %cst_64 = arith.constant dense<0.000000e+00> : vector<256x16xf32>
    %68 = tpu.matmul %65, %67, %cst_64 {dimension_numbers = #tpu.dot_dimension_numbers<[1], [0], [0], [1], [0, 0, 1, 1], [], []>} : vector<256x16xbf16>, vector<16x16xbf16>, vector<256x16xf32> -> vector<256x16xf32>
    %69 = arith.addf %62, %68 : vector<256x16xf32>
    %c0_65 = arith.constant 0 : index
    %c0_66 = arith.constant 0 : index
    %c0_67 = arith.constant 0 : index
    %c0_68 = arith.constant 0 : index
    %70 = vector.load %arg2[%c0_65, %c0_66, %c0_67, %c0_68] : memref<1x16x16x16xbf16, #tpu.memory_space<vmem>>, vector<1x16x16x16xbf16>
    %71 = vector.shape_cast %70 : vector<1x16x16x16xbf16> to vector<16x16x16xbf16>
    %72 = arith.extf %71 : vector<16x16x16xbf16> to vector<16x16x16xf32>
    %c1_69 = arith.constant 1 : index
    %c1_70 = arith.constant 1 : index
    %c0_71 = arith.constant 0 : index
    %73 = vector.load %arg10[%c1_69, %c1_70, %c0_71] : memref<18x18x16xf32, #tpu.memory_space<vmem>>, vector<16x16x16xf32>
    tpu.vector_store %arg10[%c1_69, %c1_70, %c0_71], %72 {strides = array<i32>} : memref<18x18x16xf32, #tpu.memory_space<vmem>>, vector<16x16x16xf32>,
    %cst_72 = arith.constant 0.000000e+00 : f32
    %74 = vector.broadcast %cst_72 : f32 to vector<256x16xf32>
    %c0_73 = arith.constant 0 : index
    %c0_74 = arith.constant 0 : index
    %c0_75 = arith.constant 0 : index
    %75 = vector.load %arg10[%c0_73, %c0_74, %c0_75] : memref<18x18x16xf32, #tpu.memory_space<vmem>>, vector<16x16x16xf32>
    %76 = vector.shape_cast %75 : vector<16x16x16xf32> to vector<256x16xf32>
    %77 = arith.truncf %76 : vector<256x16xf32> to vector<256x16xbf16>
    %c0_76 = arith.constant 0 : index
    %c0_77 = arith.constant 0 : index
    %c0_78 = arith.constant 0 : index
    %78 = vector.load %arg5[%c0_76, %c0_77, %c0_78] : memref<9x16x16xbf16, #tpu.memory_space<vmem>>, vector<1x16x16xbf16>
    %79 = vector.shape_cast %78 : vector<1x16x16xbf16> to vector<16x16xbf16>
    %cst_79 = arith.constant dense<0.000000e+00> : vector<256x16xf32>
    %80 = tpu.matmul %77, %79, %cst_79 {dimension_numbers = #tpu.dot_dimension_numbers<[1], [0], [0], [1], [0, 0, 1, 1], [], []>} : vector<256x16xbf16>, vector<16x16xbf16>, vector<256x16xf32> -> vector<256x16xf32>
    %81 = arith.addf %74, %80 : vector<256x16xf32>
    %c0_80 = arith.constant 0 : index
    %c1_81 = arith.constant 1 : index
    %c0_82 = arith.constant 0 : index
    %82 = vector.load %arg10[%c0_80, %c1_81, %c0_82] : memref<18x18x16xf32, #tpu.memory_space<vmem>>, vector<16x16x16xf32>
    %83 = vector.shape_cast %82 : vector<16x16x16xf32> to vector<256x16xf32>
    %84 = arith.truncf %83 : vector<256x16xf32> to vector<256x16xbf16>
    %c1_83 = arith.constant 1 : index
    %c0_84 = arith.constant 0 : index
    %c0_85 = arith.constant 0 : index
    %85 = vector.load %arg5[%c1_83, %c0_84, %c0_85] : memref<9x16x16xbf16, #tpu.memory_space<vmem>>, vector<1x16x16xbf16>
    %86 = vector.shape_cast %85 : vector<1x16x16xbf16> to vector<16x16xbf16>
    %cst_86 = arith.constant dense<0.000000e+00> : vector<256x16xf32>
    %87 = tpu.matmul %84, %86, %cst_86 {dimension_numbers = #tpu.dot_dimension_numbers<[1], [0], [0], [1], [0, 0, 1, 1], [], []>} : vector<256x16xbf16>, vector<16x16xbf16>, vector<256x16xf32> -> vector<256x16xf32>
    %88 = arith.addf %81, %87 : vector<256x16xf32>
    %c0_87 = arith.constant 0 : index
    %c2_88 = arith.constant 2 : index
    %c0_89 = arith.constant 0 : index
    %89 = vector.load %arg10[%c0_87, %c2_88, %c0_89] : memref<18x18x16xf32, #tpu.memory_space<vmem>>, vector<16x16x16xf32>
    %90 = vector.shape_cast %89 : vector<16x16x16xf32> to vector<256x16xf32>
    %91 = arith.truncf %90 : vector<256x16xf32> to vector<256x16xbf16>
    %c2_90 = arith.constant 2 : index
    %c0_91 = arith.constant 0 : index
    %c0_92 = arith.constant 0 : index
    %92 = vector.load %arg5[%c2_90, %c0_91, %c0_92] : memref<9x16x16xbf16, #tpu.memory_space<vmem>>, vector<1x16x16xbf16>
    %93 = vector.shape_cast %92 : vector<1x16x16xbf16> to vector<16x16xbf16>
    %cst_93 = arith.constant dense<0.000000e+00> : vector<256x16xf32>
    %94 = tpu.matmul %91, %93, %cst_93 {dimension_numbers = #tpu.dot_dimension_numbers<[1], [0], [0], [1], [0, 0, 1, 1], [], []>} : vector<256x16xbf16>, vector<16x16xbf16>, vector<256x16xf32> -> vector<256x16xf32>
    %95 = arith.addf %88, %94 : vector<256x16xf32>
    %c1_94 = arith.constant 1 : index
    %c0_95 = arith.constant 0 : index
    %c0_96 = arith.constant 0 : index
    %96 = vector.load %arg10[%c1_94, %c0_95, %c0_96] : memref<18x18x16xf32, #tpu.memory_space<vmem>>, vector<16x16x16xf32>
    %97 = vector.shape_cast %96 : vector<16x16x16xf32> to vector<256x16xf32>
    %98 = arith.truncf %97 : vector<256x16xf32> to vector<256x16xbf16>
    %c3_97 = arith.constant 3 : index
    %c0_98 = arith.constant 0 : index
    %c0_99 = arith.constant 0 : index
    %99 = vector.load %arg5[%c3_97, %c0_98, %c0_99] : memref<9x16x16xbf16, #tpu.memory_space<vmem>>, vector<1x16x16xbf16>
    %100 = vector.shape_cast %99 : vector<1x16x16xbf16> to vector<16x16xbf16>
    %cst_100 = arith.constant dense<0.000000e+00> : vector<256x16xf32>
    %101 = tpu.matmul %98, %100, %cst_100 {dimension_numbers = #tpu.dot_dimension_numbers<[1], [0], [0], [1], [0, 0, 1, 1], [], []>} : vector<256x16xbf16>, vector<16x16xbf16>, vector<256x16xf32> -> vector<256x16xf32>
    %102 = arith.addf %95, %101 : vector<256x16xf32>
    %c1_101 = arith.constant 1 : index
    %c1_102 = arith.constant 1 : index
    %c0_103 = arith.constant 0 : index
    %103 = vector.load %arg10[%c1_101, %c1_102, %c0_103] : memref<18x18x16xf32, #tpu.memory_space<vmem>>, vector<16x16x16xf32>
    %104 = vector.shape_cast %103 : vector<16x16x16xf32> to vector<256x16xf32>
    %105 = arith.truncf %104 : vector<256x16xf32> to vector<256x16xbf16>
    %c4_104 = arith.constant 4 : index
    %c0_105 = arith.constant 0 : index
    %c0_106 = arith.constant 0 : index
    %106 = vector.load %arg5[%c4_104, %c0_105, %c0_106] : memref<9x16x16xbf16, #tpu.memory_space<vmem>>, vector<1x16x16xbf16>
    %107 = vector.shape_cast %106 : vector<1x16x16xbf16> to vector<16x16xbf16>
    %cst_107 = arith.constant dense<0.000000e+00> : vector<256x16xf32>
    %108 = tpu.matmul %105, %107, %cst_107 {dimension_numbers = #tpu.dot_dimension_numbers<[1], [0], [0], [1], [0, 0, 1, 1], [], []>} : vector<256x16xbf16>, vector<16x16xbf16>, vector<256x16xf32> -> vector<256x16xf32>
    %109 = arith.addf %102, %108 : vector<256x16xf32>
    %c1_108 = arith.constant 1 : index
    %c2_109 = arith.constant 2 : index
    %c0_110 = arith.constant 0 : index
    %110 = vector.load %arg10[%c1_108, %c2_109, %c0_110] : memref<18x18x16xf32, #tpu.memory_space<vmem>>, vector<16x16x16xf32>
    %111 = vector.shape_cast %110 : vector<16x16x16xf32> to vector<256x16xf32>
    %112 = arith.truncf %111 : vector<256x16xf32> to vector<256x16xbf16>
    %c5_111 = arith.constant 5 : index
    %c0_112 = arith.constant 0 : index
    %c0_113 = arith.constant 0 : index
    %113 = vector.load %arg5[%c5_111, %c0_112, %c0_113] : memref<9x16x16xbf16, #tpu.memory_space<vmem>>, vector<1x16x16xbf16>
    %114 = vector.shape_cast %113 : vector<1x16x16xbf16> to vector<16x16xbf16>
    %cst_114 = arith.constant dense<0.000000e+00> : vector<256x16xf32>
    %115 = tpu.matmul %112, %114, %cst_114 {dimension_numbers = #tpu.dot_dimension_numbers<[1], [0], [0], [1], [0, 0, 1, 1], [], []>} : vector<256x16xbf16>, vector<16x16xbf16>, vector<256x16xf32> -> vector<256x16xf32>
    %116 = arith.addf %109, %115 : vector<256x16xf32>
    %c2_115 = arith.constant 2 : index
    %c0_116 = arith.constant 0 : index
    %c0_117 = arith.constant 0 : index
    %117 = vector.load %arg10[%c2_115, %c0_116, %c0_117] : memref<18x18x16xf32, #tpu.memory_space<vmem>>, vector<16x16x16xf32>
    %118 = vector.shape_cast %117 : vector<16x16x16xf32> to vector<256x16xf32>
    %119 = arith.truncf %118 : vector<256x16xf32> to vector<256x16xbf16>
    %c6_118 = arith.constant 6 : index
    %c0_119 = arith.constant 0 : index
    %c0_120 = arith.constant 0 : index
    %120 = vector.load %arg5[%c6_118, %c0_119, %c0_120] : memref<9x16x16xbf16, #tpu.memory_space<vmem>>, vector<1x16x16xbf16>
    %121 = vector.shape_cast %120 : vector<1x16x16xbf16> to vector<16x16xbf16>
    %cst_121 = arith.constant dense<0.000000e+00> : vector<256x16xf32>
    %122 = tpu.matmul %119, %121, %cst_121 {dimension_numbers = #tpu.dot_dimension_numbers<[1], [0], [0], [1], [0, 0, 1, 1], [], []>} : vector<256x16xbf16>, vector<16x16xbf16>, vector<256x16xf32> -> vector<256x16xf32>
    %123 = arith.addf %116, %122 : vector<256x16xf32>
    %c2_122 = arith.constant 2 : index
    %c1_123 = arith.constant 1 : index
    %c0_124 = arith.constant 0 : index
    %124 = vector.load %arg10[%c2_122, %c1_123, %c0_124] : memref<18x18x16xf32, #tpu.memory_space<vmem>>, vector<16x16x16xf32>
    %125 = vector.shape_cast %124 : vector<16x16x16xf32> to vector<256x16xf32>
    %126 = arith.truncf %125 : vector<256x16xf32> to vector<256x16xbf16>
    %c7_125 = arith.constant 7 : index
    %c0_126 = arith.constant 0 : index
    %c0_127 = arith.constant 0 : index
    %127 = vector.load %arg5[%c7_125, %c0_126, %c0_127] : memref<9x16x16xbf16, #tpu.memory_space<vmem>>, vector<1x16x16xbf16>
    %128 = vector.shape_cast %127 : vector<1x16x16xbf16> to vector<16x16xbf16>
    %cst_128 = arith.constant dense<0.000000e+00> : vector<256x16xf32>
    %129 = tpu.matmul %126, %128, %cst_128 {dimension_numbers = #tpu.dot_dimension_numbers<[1], [0], [0], [1], [0, 0, 1, 1], [], []>} : vector<256x16xbf16>, vector<16x16xbf16>, vector<256x16xf32> -> vector<256x16xf32>
    %130 = arith.addf %123, %129 : vector<256x16xf32>
    %c2_129 = arith.constant 2 : index
    %c2_130 = arith.constant 2 : index
    %c0_131 = arith.constant 0 : index
    %131 = vector.load %arg10[%c2_129, %c2_130, %c0_131] : memref<18x18x16xf32, #tpu.memory_space<vmem>>, vector<16x16x16xf32>
    %132 = vector.shape_cast %131 : vector<16x16x16xf32> to vector<256x16xf32>
    %133 = arith.truncf %132 : vector<256x16xf32> to vector<256x16xbf16>
    %c8_132 = arith.constant 8 : index
    %c0_133 = arith.constant 0 : index
    %c0_134 = arith.constant 0 : index
    %134 = vector.load %arg5[%c8_132, %c0_133, %c0_134] : memref<9x16x16xbf16, #tpu.memory_space<vmem>>, vector<1x16x16xbf16>
    %135 = vector.shape_cast %134 : vector<1x16x16xbf16> to vector<16x16xbf16>
    %cst_135 = arith.constant dense<0.000000e+00> : vector<256x16xf32>
    %136 = tpu.matmul %133, %135, %cst_135 {dimension_numbers = #tpu.dot_dimension_numbers<[1], [0], [0], [1], [0, 0, 1, 1], [], []>} : vector<256x16xbf16>, vector<16x16xbf16>, vector<256x16xf32> -> vector<256x16xf32>
    %137 = arith.addf %130, %136 : vector<256x16xf32>
    %138 = arith.addf %69, %137 : vector<256x16xf32>
    %c0_136 = arith.constant 0 : index
    %c0_137 = arith.constant 0 : index
    %139 = vector.load %arg6[%c0_136, %c0_137] : memref<1x16xf32, #tpu.memory_space<vmem>>, vector<1x16xf32>
    %140 = vector.broadcast %139 : vector<1x16xf32> to vector<256x16xf32>
    %141 = arith.addf %138, %140 : vector<256x16xf32>
    %cst_138 = arith.constant 0.000000e+00 : f32
    %142 = vector.broadcast %cst_138 : f32 to vector<256x16xf32>
    %143 = arith.maximumf %141, %142 : vector<256x16xf32>
    %c0_139 = arith.constant 0 : index
    %c0_140 = arith.constant 0 : index
    %c0_141 = arith.constant 0 : index
    %c0_142 = arith.constant 0 : index
    %144 = vector.load %arg3[%c0_139, %c0_140, %c0_141, %c0_142] : memref<1x16x16x16xbf16, #tpu.memory_space<vmem>>, vector<1x16x16x16xbf16>
    %145 = vector.shape_cast %144 : vector<1x16x16x16xbf16> to vector<16x16x16xbf16>
    %146 = vector.shape_cast %145 : vector<16x16x16xbf16> to vector<256x16xbf16>
    %147 = arith.extf %146 : vector<256x16xbf16> to vector<256x16xf32>
    %148 = arith.addf %143, %147 : vector<256x16xf32>
    %149 = vector.shape_cast %148 : vector<256x16xf32> to vector<16x16x16xf32>
    %c1_143 = arith.constant 1 : index
    %c1_144 = arith.constant 1 : index
    %c0_145 = arith.constant 0 : index
    %150 = vector.load %arg10[%c1_143, %c1_144, %c0_145] : memref<18x18x16xf32, #tpu.memory_space<vmem>>, vector<16x16x16xf32>
    tpu.vector_store %arg10[%c1_143, %c1_144, %c0_145], %149 {strides = array<i32>} : memref<18x18x16xf32, #tpu.memory_space<vmem>>, vector<16x16x16xf32>,
    %cst_146 = arith.constant 0.000000e+00 : f32
    %151 = vector.broadcast %cst_146 : f32 to vector<256x1xf32>
    %c0_147 = arith.constant 0 : index
    %c0_148 = arith.constant 0 : index
    %c0_149 = arith.constant 0 : index
    %152 = vector.load %arg10[%c0_147, %c0_148, %c0_149] : memref<18x18x16xf32, #tpu.memory_space<vmem>>, vector<16x16x16xf32>
    %153 = vector.shape_cast %152 : vector<16x16x16xf32> to vector<256x16xf32>
    %c0_150 = arith.constant 0 : index
    %c0_151 = arith.constant 0 : index
    %c0_152 = arith.constant 0 : index
    %154 = vector.load %arg7[%c0_150, %c0_151, %c0_152] : memref<9x1x16xbf16, #tpu.memory_space<vmem>>, vector<1x1x16xbf16>
    %155 = vector.shape_cast %154 : vector<1x1x16xbf16> to vector<1x16xbf16>
    %156 = arith.extf %155 : vector<1x16xbf16> to vector<1x16xf32>
    %157 = vector.broadcast %156 : vector<1x16xf32> to vector<256x16xf32>
    %158 = arith.mulf %153, %157 : vector<256x16xf32>
    %cst_153 = arith.constant dense<0.000000e+00> : vector<256xf32>
    %159 = vector.multi_reduction <add>, %158, %cst_153 [1] : vector<256x16xf32> to vector<256xf32>
    %160 = vector.shape_cast %159 : vector<256xf32> to vector<256x1xf32>
    %161 = arith.addf %151, %160 : vector<256x1xf32>
    %c0_154 = arith.constant 0 : index
    %c1_155 = arith.constant 1 : index
    %c0_156 = arith.constant 0 : index
    %162 = vector.load %arg10[%c0_154, %c1_155, %c0_156] : memref<18x18x16xf32, #tpu.memory_space<vmem>>, vector<16x16x16xf32>
    %163 = vector.shape_cast %162 : vector<16x16x16xf32> to vector<256x16xf32>
    %c1_157 = arith.constant 1 : index
    %c0_158 = arith.constant 0 : index
    %c0_159 = arith.constant 0 : index
    %164 = vector.load %arg7[%c1_157, %c0_158, %c0_159] : memref<9x1x16xbf16, #tpu.memory_space<vmem>>, vector<1x1x16xbf16>
    %165 = vector.shape_cast %164 : vector<1x1x16xbf16> to vector<1x16xbf16>
    %166 = arith.extf %165 : vector<1x16xbf16> to vector<1x16xf32>
    %167 = vector.broadcast %166 : vector<1x16xf32> to vector<256x16xf32>
    %168 = arith.mulf %163, %167 : vector<256x16xf32>
    %cst_160 = arith.constant dense<0.000000e+00> : vector<256xf32>
    %169 = vector.multi_reduction <add>, %168, %cst_160 [1] : vector<256x16xf32> to vector<256xf32>
    %170 = vector.shape_cast %169 : vector<256xf32> to vector<256x1xf32>
    %171 = arith.addf %161, %170 : vector<256x1xf32>
    %c0_161 = arith.constant 0 : index
    %c2_162 = arith.constant 2 : index
    %c0_163 = arith.constant 0 : index
    %172 = vector.load %arg10[%c0_161, %c2_162, %c0_163] : memref<18x18x16xf32, #tpu.memory_space<vmem>>, vector<16x16x16xf32>
    %173 = vector.shape_cast %172 : vector<16x16x16xf32> to vector<256x16xf32>
    %c2_164 = arith.constant 2 : index
    %c0_165 = arith.constant 0 : index
    %c0_166 = arith.constant 0 : index
    %174 = vector.load %arg7[%c2_164, %c0_165, %c0_166] : memref<9x1x16xbf16, #tpu.memory_space<vmem>>, vector<1x1x16xbf16>
    %175 = vector.shape_cast %174 : vector<1x1x16xbf16> to vector<1x16xbf16>
    %176 = arith.extf %175 : vector<1x16xbf16> to vector<1x16xf32>
    %177 = vector.broadcast %176 : vector<1x16xf32> to vector<256x16xf32>
    %178 = arith.mulf %173, %177 : vector<256x16xf32>
    %cst_167 = arith.constant dense<0.000000e+00> : vector<256xf32>
    %179 = vector.multi_reduction <add>, %178, %cst_167 [1] : vector<256x16xf32> to vector<256xf32>
    %180 = vector.shape_cast %179 : vector<256xf32> to vector<256x1xf32>
    %181 = arith.addf %171, %180 : vector<256x1xf32>
    %c1_168 = arith.constant 1 : index
    %c0_169 = arith.constant 0 : index
    %c0_170 = arith.constant 0 : index
    %182 = vector.load %arg10[%c1_168, %c0_169, %c0_170] : memref<18x18x16xf32, #tpu.memory_space<vmem>>, vector<16x16x16xf32>
    %183 = vector.shape_cast %182 : vector<16x16x16xf32> to vector<256x16xf32>
    %c3_171 = arith.constant 3 : index
    %c0_172 = arith.constant 0 : index
    %c0_173 = arith.constant 0 : index
    %184 = vector.load %arg7[%c3_171, %c0_172, %c0_173] : memref<9x1x16xbf16, #tpu.memory_space<vmem>>, vector<1x1x16xbf16>
    %185 = vector.shape_cast %184 : vector<1x1x16xbf16> to vector<1x16xbf16>
    %186 = arith.extf %185 : vector<1x16xbf16> to vector<1x16xf32>
    %187 = vector.broadcast %186 : vector<1x16xf32> to vector<256x16xf32>
    %188 = arith.mulf %183, %187 : vector<256x16xf32>
    %cst_174 = arith.constant dense<0.000000e+00> : vector<256xf32>
    %189 = vector.multi_reduction <add>, %188, %cst_174 [1] : vector<256x16xf32> to vector<256xf32>
    %190 = vector.shape_cast %189 : vector<256xf32> to vector<256x1xf32>
    %191 = arith.addf %181, %190 : vector<256x1xf32>
    %c1_175 = arith.constant 1 : index
    %c1_176 = arith.constant 1 : index
    %c0_177 = arith.constant 0 : index
    %192 = vector.load %arg10[%c1_175, %c1_176, %c0_177] : memref<18x18x16xf32, #tpu.memory_space<vmem>>, vector<16x16x16xf32>
    %193 = vector.shape_cast %192 : vector<16x16x16xf32> to vector<256x16xf32>
    %c4_178 = arith.constant 4 : index
    %c0_179 = arith.constant 0 : index
    %c0_180 = arith.constant 0 : index
    %194 = vector.load %arg7[%c4_178, %c0_179, %c0_180] : memref<9x1x16xbf16, #tpu.memory_space<vmem>>, vector<1x1x16xbf16>
    %195 = vector.shape_cast %194 : vector<1x1x16xbf16> to vector<1x16xbf16>
    %196 = arith.extf %195 : vector<1x16xbf16> to vector<1x16xf32>
    %197 = vector.broadcast %196 : vector<1x16xf32> to vector<256x16xf32>
    %198 = arith.mulf %193, %197 : vector<256x16xf32>
    %cst_181 = arith.constant dense<0.000000e+00> : vector<256xf32>
    %199 = vector.multi_reduction <add>, %198, %cst_181 [1] : vector<256x16xf32> to vector<256xf32>
    %200 = vector.shape_cast %199 : vector<256xf32> to vector<256x1xf32>
    %201 = arith.addf %191, %200 : vector<256x1xf32>
    %c1_182 = arith.constant 1 : index
    %c2_183 = arith.constant 2 : index
    %c0_184 = arith.constant 0 : index
    %202 = vector.load %arg10[%c1_182, %c2_183, %c0_184] : memref<18x18x16xf32, #tpu.memory_space<vmem>>, vector<16x16x16xf32>
    %203 = vector.shape_cast %202 : vector<16x16x16xf32> to vector<256x16xf32>
    %c5_185 = arith.constant 5 : index
    %c0_186 = arith.constant 0 : index
    %c0_187 = arith.constant 0 : index
    %204 = vector.load %arg7[%c5_185, %c0_186, %c0_187] : memref<9x1x16xbf16, #tpu.memory_space<vmem>>, vector<1x1x16xbf16>
    %205 = vector.shape_cast %204 : vector<1x1x16xbf16> to vector<1x16xbf16>
    %206 = arith.extf %205 : vector<1x16xbf16> to vector<1x16xf32>
    %207 = vector.broadcast %206 : vector<1x16xf32> to vector<256x16xf32>
    %208 = arith.mulf %203, %207 : vector<256x16xf32>
    %cst_188 = arith.constant dense<0.000000e+00> : vector<256xf32>
    %209 = vector.multi_reduction <add>, %208, %cst_188 [1] : vector<256x16xf32> to vector<256xf32>
    %210 = vector.shape_cast %209 : vector<256xf32> to vector<256x1xf32>
    %211 = arith.addf %201, %210 : vector<256x1xf32>
    %c2_189 = arith.constant 2 : index
    %c0_190 = arith.constant 0 : index
    %c0_191 = arith.constant 0 : index
    %212 = vector.load %arg10[%c2_189, %c0_190, %c0_191] : memref<18x18x16xf32, #tpu.memory_space<vmem>>, vector<16x16x16xf32>
    %213 = vector.shape_cast %212 : vector<16x16x16xf32> to vector<256x16xf32>
    %c6_192 = arith.constant 6 : index
    %c0_193 = arith.constant 0 : index
    %c0_194 = arith.constant 0 : index
    %214 = vector.load %arg7[%c6_192, %c0_193, %c0_194] : memref<9x1x16xbf16, #tpu.memory_space<vmem>>, vector<1x1x16xbf16>
    %215 = vector.shape_cast %214 : vector<1x1x16xbf16> to vector<1x16xbf16>
    %216 = arith.extf %215 : vector<1x16xbf16> to vector<1x16xf32>
    %217 = vector.broadcast %216 : vector<1x16xf32> to vector<256x16xf32>
    %218 = arith.mulf %213, %217 : vector<256x16xf32>
    %cst_195 = arith.constant dense<0.000000e+00> : vector<256xf32>
    %219 = vector.multi_reduction <add>, %218, %cst_195 [1] : vector<256x16xf32> to vector<256xf32>
    %220 = vector.shape_cast %219 : vector<256xf32> to vector<256x1xf32>
    %221 = arith.addf %211, %220 : vector<256x1xf32>
    %c2_196 = arith.constant 2 : index
    %c1_197 = arith.constant 1 : index
    %c0_198 = arith.constant 0 : index
    %222 = vector.load %arg10[%c2_196, %c1_197, %c0_198] : memref<18x18x16xf32, #tpu.memory_space<vmem>>, vector<16x16x16xf32>
    %223 = vector.shape_cast %222 : vector<16x16x16xf32> to vector<256x16xf32>
    %c7_199 = arith.constant 7 : index
    %c0_200 = arith.constant 0 : index
    %c0_201 = arith.constant 0 : index
    %224 = vector.load %arg7[%c7_199, %c0_200, %c0_201] : memref<9x1x16xbf16, #tpu.memory_space<vmem>>, vector<1x1x16xbf16>
    %225 = vector.shape_cast %224 : vector<1x1x16xbf16> to vector<1x16xbf16>
    %226 = arith.extf %225 : vector<1x16xbf16> to vector<1x16xf32>
    %227 = vector.broadcast %226 : vector<1x16xf32> to vector<256x16xf32>
    %228 = arith.mulf %223, %227 : vector<256x16xf32>
    %cst_202 = arith.constant dense<0.000000e+00> : vector<256xf32>
    %229 = vector.multi_reduction <add>, %228, %cst_202 [1] : vector<256x16xf32> to vector<256xf32>
    %230 = vector.shape_cast %229 : vector<256xf32> to vector<256x1xf32>
    %231 = arith.addf %221, %230 : vector<256x1xf32>
    %c2_203 = arith.constant 2 : index
    %c2_204 = arith.constant 2 : index
    %c0_205 = arith.constant 0 : index
    %232 = vector.load %arg10[%c2_203, %c2_204, %c0_205] : memref<18x18x16xf32, #tpu.memory_space<vmem>>, vector<16x16x16xf32>
    %233 = vector.shape_cast %232 : vector<16x16x16xf32> to vector<256x16xf32>
    %c8_206 = arith.constant 8 : index
    %c0_207 = arith.constant 0 : index
    %c0_208 = arith.constant 0 : index
    %234 = vector.load %arg7[%c8_206, %c0_207, %c0_208] : memref<9x1x16xbf16, #tpu.memory_space<vmem>>, vector<1x1x16xbf16>
    %235 = vector.shape_cast %234 : vector<1x1x16xbf16> to vector<1x16xbf16>
    %236 = arith.extf %235 : vector<1x16xbf16> to vector<1x16xf32>
    %237 = vector.broadcast %236 : vector<1x16xf32> to vector<256x16xf32>
    %238 = arith.mulf %233, %237 : vector<256x16xf32>
    %cst_209 = arith.constant dense<0.000000e+00> : vector<256xf32>
    %239 = vector.multi_reduction <add>, %238, %cst_209 [1] : vector<256x16xf32> to vector<256xf32>
    %240 = vector.shape_cast %239 : vector<256xf32> to vector<256x1xf32>
    %241 = arith.addf %231, %240 : vector<256x1xf32>
    %c0_210 = arith.constant 0 : index
    %c0_211 = arith.constant 0 : index
    %242 = vector.load %arg8[%c0_210, %c0_211] : memref<1x1xf32, #tpu.memory_space<vmem>>, vector<1x1xf32>
    %243 = vector.broadcast %242 : vector<1x1xf32> to vector<256x1xf32>
    %244 = arith.addf %241, %243 : vector<256x1xf32>
    %245 = arith.negf %244 : vector<256x1xf32>
    %246 = math.exp %245 : vector<256x1xf32>
    %cst_212 = arith.constant 1.000000e+00 : f32
    %247 = vector.broadcast %cst_212 : f32 to vector<256x1xf32>
    %248 = arith.addf %247, %246 : vector<256x1xf32>
    %249 = arith.divf %247, %248 : vector<256x1xf32>
    %250 = vector.shape_cast %249 : vector<256x1xf32> to vector<1x256x1xf32>
    %c0_213 = arith.constant 0 : index
    %c0_214 = arith.constant 0 : index
    %c0_215 = arith.constant 0 : index
    %251 = vector.load %arg9[%c0_213, %c0_214, %c0_215] : memref<1x256x1xf32, #tpu.memory_space<vmem>>, vector<1x256x1xf32>
    tpu.vector_store %arg9[%c0_213, %c0_214, %c0_215], %250 {strides = array<i32>} : memref<1x256x1xf32, #tpu.memory_space<vmem>>, vector<1x256x1xf32>,
    return
  }
  func.func @transform_0(%arg0: i32) -> (i32, i32, i32, i32) {
    %c0_i32 = arith.constant 0 : i32
    %c0_i32_0 = arith.constant 0 : i32
    %c0_i32_1 = arith.constant 0 : i32
    %c0_i32_2 = arith.constant 0 : i32
    return %arg0, %c0_i32, %c0_i32_0, %c0_i32_1 : i32, i32, i32, i32
  }
  func.func @transform_1(%arg0: i32) -> (i32, i32, i32, i32) {
    %c0_i32 = arith.constant 0 : i32
    %c0_i32_0 = arith.constant 0 : i32
    %c0_i32_1 = arith.constant 0 : i32
    %c0_i32_2 = arith.constant 0 : i32
    return %arg0, %c0_i32, %c0_i32_0, %c0_i32_1 : i32, i32, i32, i32
  }
  func.func @transform_2(%arg0: i32) -> (i32, i32, i32, i32) {
    %c0_i32 = arith.constant 0 : i32
    %c0_i32_0 = arith.constant 0 : i32
    %c0_i32_1 = arith.constant 0 : i32
    %c0_i32_2 = arith.constant 0 : i32
    return %arg0, %c0_i32, %c0_i32_0, %c0_i32_1 : i32, i32, i32, i32
  }
  func.func @transform_3(%arg0: i32) -> (i32, i32, i32) {
    %c0_i32 = arith.constant 0 : i32
    %c0_i32_0 = arith.constant 0 : i32
    %c0_i32_1 = arith.constant 0 : i32
    %c0_i32_2 = arith.constant 0 : i32
    return %c0_i32, %c0_i32_0, %c0_i32_1 : i32, i32, i32
  }
  func.func @transform_4(%arg0: i32) -> (i32, i32, i32) {
    %c0_i32 = arith.constant 0 : i32
    %c0_i32_0 = arith.constant 0 : i32
    %c0_i32_1 = arith.constant 0 : i32
    %c0_i32_2 = arith.constant 0 : i32
    return %c0_i32, %c0_i32_0, %c0_i32_1 : i32, i32, i32
  }
  func.func @transform_5(%arg0: i32) -> (i32, i32) {
    %c0_i32 = arith.constant 0 : i32
    %c0_i32_0 = arith.constant 0 : i32
    %c0_i32_1 = arith.constant 0 : i32
    return %c0_i32, %c0_i32_0 : i32, i32
  }
  func.func @transform_6(%arg0: i32) -> (i32, i32, i32) {
    %c0_i32 = arith.constant 0 : i32
    %c0_i32_0 = arith.constant 0 : i32
    %c0_i32_1 = arith.constant 0 : i32
    %c0_i32_2 = arith.constant 0 : i32
    return %c0_i32, %c0_i32_0, %c0_i32_1 : i32, i32, i32
  }
  func.func @transform_7(%arg0: i32) -> (i32, i32) {
    %c0_i32 = arith.constant 0 : i32
    %c0_i32_0 = arith.constant 0 : i32
    %c0_i32_1 = arith.constant 0 : i32
    return %c0_i32, %c0_i32_0 : i32, i32
  }
  func.func @transform_8(%arg0: i32) -> (i32, i32, i32) {
    %c0_i32 = arith.constant 0 : i32
    %c0_i32_0 = arith.constant 0 : i32
    %c0_i32_1 = arith.constant 0 : i32
    return %arg0, %c0_i32, %c0_i32_0 : i32, i32, i32
  }
}

</mosaic_0001>

<bundles_post_ra>
// kernel: u2net_forward.4
= control target key start
LH: loop header
LB: loop body
LE: loop exit
PB: predicated region body
PF: predicated region fallthrough
CT: control target
= control target key end

     0   :  { %s1634_s12 = smov 0   ;;  %s1800_s0 = inlined_call_operand.vmem [shape: bf16[2,8,8,16], index: 0, kind: input, shape index: {}]   ;;  %s1801_s1 = inlined_call_operand.vmem [shape: bf16[9,16,16], index: 1, kind: input, shape index: {}]   ;;  %s1802_s2 = inlined_call_operand.vmem [shape: f32[1,16], index: 2, kind: input, shape index: {}]   ;;  %s1803_s3 = inlined_call_operand.vmem [shape: bf16[2,8,8,16], index: 3, kind: output, shape index: {}]  }
   0x1 LB: > { %s1276_s13 = sadd.s32 4294967295, %s1611_s12   ;;  %p1280_p0 = scmp.ge.s32.totalorder %s1611_s12, 1  ;;  %s1611_s12 = sphi %s1634_s12, %s13_s12  }
   0x2   : > { %p137_p1 = scmp.lt.s32.totalorder %s1611_s12, 3 }
   0x4   : > { %p138_p2 = pnand %p1280_p0, %p137_p1 }
   0x5   : > { %v1596_v0 = vld [vmem:[%s1801_s1 + $0x8] sm:$0xff] (!%p138_p2)   ;;  %p161_p3 = scmp.lt.s32.totalorder (!%p138_p2), %s1276_s13, 1  ;;  %v1648_v1 = vld [vmem:[%s1801_s1 + $0x20] sm:$0xff] (!%p138_p2)   ;;  %vm172_vm0 = vcmask (!%p138_p2), 130048   ;;  %vm174_vm1 = vcmask (!%p138_p2), 123904   ;;  %v1613_v3 = vmov (!%p138_p2), 0.0  }
   0x6   : > { %141 = sbr.rel (%p138_p2) target bundleno = 322 (0x142), region = 32  ;;  %1431 = vmatprep.subr.bf16.mxu1 (!%p138_p2), %v1596_v0  ;;  %v1655_v2 = vld [vmem:[%s1801_s1] sm:$0xff] (!%p138_p2)   ;;  %1471 = vmatprep.subr.bf16.mxu0 (!%p138_p2), %v1648_v1  ;;  %173 = vst.msk [vmem:[#allocation2] sm:$0xff] (!%p138_p2), %vm172_vm0, %v1613_v3  ;;  %176 = vst.msk [vmem:[#allocation2 + $0x10] sm:$0xff] (!%p138_p2), %vm172_vm0, %v1613_v3  ;;  %v1599_v4 = vld [vmem:[%s1801_s1 + $0x28] sm:$0xff] (!%p138_p2)   ;;  %vm1212_vm2 = vcmask (!%p138_p2), 125952  }
   0x7   : > { %1432 = vmatpush3.bf16.msra.mxu1 (!%p138_p2), %v1596_v0  ;;  %175 = vst.msk [vmem:[#allocation2 + $0x8] sm:$0x3] (!%p138_p2), %vm174_vm1, %v1613_v3  ;;  %177 = vst.msk [vmem:[#allocation2 + $0x18] sm:$0x3] (!%p138_p2), %vm174_vm1, %v1613_v3  ;;  %1472 = vmatpush3.bf16.msra.mxu0 (!%p138_p2), %v1648_v1  ;;  %v1600_v31 = vld [vmem:[%s1801_s1 + $0x30] sm:$0xff] (!%p138_p2)   ;;  %v1602_v49 = vld [vmem:[%s1801_s1 + $0x38] sm:$0xff] (!%p138_p2)  }
   0x8   : > { %178 = vst.msk [vmem:[#allocation2 + $0x20] sm:$0xff] (!%p138_p2), %vm172_vm0, %v1613_v3  ;;  %180 = vst.msk [vmem:[#allocation2 + $0x30] sm:$0xff] (!%p138_p2), %vm172_vm0, %v1613_v3  ;;  %1441 = vmatprep.subr.bf16.mxu1 (!%p138_p2), %v1655_v2  ;;  %1481 = vmatprep.subr.bf16.mxu0 (!%p138_p2), %v1599_v4  ;;  %v1601_v32 = vld [vmem:[%s1801_s1 + $0x10] sm:$0xff] (!%p138_p2)   ;;  %v1603_v54 = vld [vmem:[%s1801_s1 + $0x18] sm:$0xff] (!%p138_p2)  }
   0x9   : > { %179 = vst.msk [vmem:[#allocation2 + $0x28] sm:$0x3] (!%p138_p2), %vm174_vm1, %v1613_v3  ;;  %181 = vst.msk [vmem:[#allocation2 + $0x38] sm:$0x3] (!%p138_p2), %vm174_vm1, %v1613_v3  ;;  %v1604_v61 = vld [vmem:[%s1801_s1 + $0x40] sm:$0xff] (!%p138_p2)  }
   0xa   : > { %182 = vst.msk [vmem:[#allocation2 + $0x40] sm:$0xff] (!%p138_p2), %vm172_vm0, %v1613_v3  ;;  %184 = vst.msk [vmem:[#allocation2 + $0x50] sm:$0xff] (!%p138_p2), %vm172_vm0, %v1613_v3 }
   0xb   : > { %183 = vst.msk [vmem:[#allocation2 + $0x48] sm:$0x3] (!%p138_p2), %vm174_vm1, %v1613_v3  ;;  %185 = vst.msk [vmem:[#allocation2 + $0x58] sm:$0x3] (!%p138_p2), %vm174_vm1, %v1613_v3 }
   0xc   : > { %186 = vst.msk [vmem:[#allocation2 + $0x60] sm:$0xff] (!%p138_p2), %vm172_vm0, %v1613_v3  ;;  %188 = vst.msk [vmem:[#allocation2 + $0x70] sm:$0xff] (!%p138_p2), %vm172_vm0, %v1613_v3 }
   0xd   : > { %s1805_s13 = smov (!%p161_p3, %s1276_s13), 1  ;;  %187 = vst.msk [vmem:[#allocation2 + $0x68] sm:$0x3] %vm174_vm1, %v1613_v3  ;;  %189 = vst.msk [vmem:[#allocation2 + $0x78] sm:$0x3] %vm174_vm1, %v1613_v3  ;;  %v219_v35 = vld [vmem:[#allocation2] sm:$0xff] }
   0xe   : > { %190 = vst.msk [vmem:[#allocation2 + $0x80] sm:$0xff] %vm172_vm0, %v1613_v3  ;;  %192 = vst.msk [vmem:[#allocation2 + $0x90] sm:$0xff] %vm172_vm0, %v1613_v3  ;;  %s1357_s20 = sshll.u32 %s1805_s13, 5  ;;  %v233_v17 = vld [vmem:[#allocation2 + $0x1] sm:$0xff] }
   0xf   : > { %191 = vst.msk [vmem:[#allocation2 + $0x88] sm:$0x3] %vm174_vm1, %v1613_v3  ;;  %193 = vst.msk [vmem:[#allocation2 + $0x98] sm:$0x3] %vm174_vm1, %v1613_v3  ;;  %s165_s25 = scalar_lea.vmem %s1800_s0, %s1357_s20  ;;  %v414_v58 = vld [vmem:[#allocation2 + $0x2] sm:$0xff]  ;;  %s1779_s15 = scalar_lea.vmem %s1803_s3, %s1357_s20 }
  0x10   : > { %v1368_v5 = vld [vmem:[%s165_s25] sm:$0xff]   ;;  %v1383_v6 = vld [vmem:[%s165_s25 + $0x8] sm:$0xff]   ;;  %v1384_v7 = vld [vmem:[%s165_s25 + $0x10] sm:$0xff]  }
  0x11   : > { %v1369_v8 = vunpack.c.l.bf16 %v1368_v5  ;;  %v1370_v9 = vunpack.c.h.bf16 %v1368_v5  ;;  %v1373_v10 = vunpack.c.l.bf16 %v1383_v6  ;;  %v1374_v11 = vunpack.c.h.bf16 %v1383_v6  ;;  %v1385_v12 = vld [vmem:[%s165_s25 + $0x18] sm:$0xff]  }
  0x12   : > { %v1377_v13 = vunpack.c.l.bf16 %v1384_v7  ;;  %v1378_v14 = vunpack.c.h.bf16 %v1384_v7  ;;  %v1381_v15 = vunpack.c.l.bf16 %v1385_v12  ;;  %v1382_v16 = vunpack.c.h.bf16 %v1385_v12 }
  0x13   : > { %211 = vst.msk [vmem:[#allocation2 + $0x11] sm:$0xff] %vm172_vm0, %v1369_v8  ;;  %212 = vst.msk [vmem:[#allocation2 + $0x21] sm:$0xff] %vm172_vm0, %v1370_v9 }
  0x14   : > { %213 = vst.msk [vmem:[#allocation2 + $0x31] sm:$0xff] %vm172_vm0, %v1373_v10  ;;  %214 = vst.msk [vmem:[#allocation2 + $0x41] sm:$0xff] %vm172_vm0, %v1374_v11 }
  0x15   : > { %215 = vst.msk [vmem:[#allocation2 + $0x51] sm:$0xff] %vm172_vm0, %v1377_v13  ;;  %216 = vst.msk [vmem:[#allocation2 + $0x61] sm:$0xff] %vm172_vm0, %v1378_v14  ;;  %v846_v0 = vld [vmem:[#allocation2 + $0x90] sm:$0xff] }
  0x16   : > { %217 = vst.msk [vmem:[#allocation2 + $0x71] sm:$0xff] %vm172_vm0, %v1381_v15  ;;  %218 = vst.msk [vmem:[#allocation2 + $0x81] sm:$0xff] %vm172_vm0, %v1382_v16  ;;  %v952_v8 = vld [vmem:[#allocation2 + $0x91] sm:$0xff] }
  0x17   : > { %v1058_v13 = vld [vmem:[#allocation2 + $0x92] sm:$0xff] }
  0x1a   : > { %v234_v18 = vld [vmem:[#allocation2 + $0x11] sm:$0xff]  ;;  %v627_v19 = vld [vmem:[#allocation2 + $0x21] sm:$0xff] }
  0x1b   : > { %v236_v20 = vld [vmem:[#allocation2 + $0x31] sm:$0xff]  ;;  %v241_v21 = vpack.c.bf16 %v234_v18, %v233_v17  ;;  %v634_v22 = vpack.c.bf16 %v627_v19, %v234_v18  ;;  %v629_v24 = vld [vmem:[#allocation2 + $0x41] sm:$0xff] }
  0x1c   : > { %v1697_v23 = vpack.c.bf16 %v236_v20, %v627_v19  ;;  %v1699_v25 = vld [vmem:[#allocation2 + $0x51] sm:$0xff]  ;;  %v635_v26 = vpack.c.bf16 %v629_v24, %v236_v20  ;;  %v733_v29 = vld [vmem:[#allocation2 + $0x22] sm:$0xff]  ;;  %v1346_v20 = vld [vmem:[%s1802_s2] ss:$0 sm:$0xff] }
  0x1d   : > { %v1702_v27 = vpack.c.bf16 %v1699_v25, %v629_v24  ;;  %v732_v28 = vld [vmem:[#allocation2 + $0x12] sm:$0xff]  ;;  %1433 = vmatprep.mubr.msk.bf16.mxu1 %vm172_vm0, %v241_v21  ;;  %1473 = vmatprep.mubr.msk.bf16.mxu0 %vm172_vm0, %v634_v22  ;;  %v1716_v33 = vld [vmem:[#allocation2 + $0x61] sm:$0xff] }
  0x1e   : > { %v740_v30 = vpack.c.bf16 %v733_v29, %v732_v28  ;;  %1434 = vmatmul.mubr.msk.bf16.vlgmr.msra.gmra.mrb[0].mxu1 %vm172_vm0, %v1697_v23  ;;  %1474 = vmatmul.mubr.msk.bf16.vlgmr.msra.gmra.mrb[0].mxu0 %vm172_vm0, %v635_v26  ;;  %v1718_v34 = vld [vmem:[#allocation2 + $0x71] sm:$0xff]  ;;  %v735_v39 = vld [vmem:[#allocation2 + $0x42] sm:$0xff]  ;;  %v422_v60 = vpack.c.bf16 %v732_v28, %v414_v58  ;;  %v636_v12 = vpack.c.bf16 %v1716_v33, %v1699_v25 }
  0x1f   : > { %1442 = vmatpush3.bf16.msra.mxu1 %v1655_v2  ;;  %1482 = vmatpush3.bf16.msra.mxu0 %v1599_v4  ;;  %v220_v36 = vld [vmem:[#allocation2 + $0x10] sm:$0xff]  ;;  %v244_v37 = vpack.c.bf16 %v1718_v34, %v1716_v33  ;;  %v737_v42 = vld [vmem:[#allocation2 + $0x62] sm:$0xff] }
  0x20   : > { %1437 = vmatprep.mubr.msk.bf16.mxu1 %vm172_vm0, %v1702_v27  ;;  %1483 = vmatprep.mubr.msk.bf16.mxu0 %vm172_vm0, %v740_v30  ;;  %v734_v38 = vld [vmem:[#allocation2 + $0x32] sm:$0xff]  ;;  %v227_v40 = vpack.c.bf16 %v220_v36, %v219_v35  ;;  %v221_v44 = vld [vmem:[#allocation2 + $0x20] sm:$0xff] }
  0x21   : > { %1491 = vmatprep.subr.bf16.mxu0 %v1600_v31  ;;  %1451 = vmatprep.subr.bf16.mxu1 %v1601_v32  ;;  %v736_v41 = vld [vmem:[#allocation2 + $0x52] sm:$0xff]  ;;  %v741_v43 = vpack.c.bf16 %v735_v39, %v734_v38  ;;  %v223_v47 = vld [vmem:[#allocation2 + $0x40] sm:$0xff]  ;;  %v423_v62 = vpack.c.bf16 %v734_v38, %v733_v29  ;;  %v528_v5 = vpack.c.bf16 %v221_v44, %v220_v36 }
  0x22   : > { %v222_v45 = vld [vmem:[#allocation2 + $0x30] sm:$0xff]  ;;  %v742_v46 = vpack.c.bf16 %v737_v42, %v736_v41  ;;  %v739_v52 = vld [vmem:[#allocation2 + $0x82] sm:$0xff]  ;;  %v424_v2 = vpack.c.bf16 %v736_v41, %v735_v39 }
  0x23   : > { %v224_v48 = vld [vmem:[#allocation2 + $0x50] sm:$0xff]  ;;  %v228_v50 = vpack.c.bf16 %v222_v45, %v221_v44  ;;  %v225_v56 = vld [vmem:[#allocation2 + $0x60] sm:$0xff]  ;;  %v529_v6 = vpack.c.bf16 %v223_v47, %v222_v45  ;;  %v1062_v14 = vpack.c.bf16 %v1058_v13, %v739_v52 }
  0x24   : > { %v738_v51 = vld [vmem:[#allocation2 + $0x72] sm:$0xff]  ;;  %v229_v53 = vpack.c.bf16 %v224_v48, %v223_v47  ;;  %v845_v63 = vld [vmem:[#allocation2 + $0x80] sm:$0xff]  ;;  %v530_v9 = vpack.c.bf16 %v225_v56, %v224_v48 }
  0x25   : > { %v743_v55 = vpack.c.bf16 %v739_v52, %v738_v51  ;;  %v226_v57 = vld [vmem:[#allocation2 + $0x70] sm:$0xff]  ;;  %v850_v3 = vpack.c.bf16 %v846_v0, %v845_v63  ;;  %v425_v4 = vpack.c.bf16 %v738_v51, %v737_v42  ;;  %v951_v7 = vld [vmem:[#allocation2 + $0x81] sm:$0xff] }
  0x26   : > { %1438 = vmatmul.mubr.msk.bf16.gmra.mrb[4].mxu1 %vm172_vm0, %v244_v37  ;;  %v230_v59 = vpack.c.bf16 %v226_v57, %v225_v56  ;;  %v956_v10 = vpack.c.bf16 %v952_v8, %v951_v7  ;;  %v531_v11 = vpack.c.bf16 %v845_v63, %v226_v57 }
  0x27   : > { %1443 = vmatprep.mubr.msk.bf16.mxu1 %vm172_vm0, %v227_v40 }
  0x2a   : > { %1484 = vmatmul.mubr.msk.bf16.vlgmr.msra.gmra.mrb[0].mxu0 %vm172_vm0, %v741_v43 }
  0x2b   : > { %1492 = vmatpush3.bf16.msra.mxu0 %v1600_v31  ;;  %1487 = vmatprep.mubr.msk.bf16.mxu0 %vm172_vm0, %v742_v46 }
  0x2c   : > { %1501 = vmatprep.subr.bf16.mxu0 %v1602_v49 }
  0x2e   : > { %1444 = vmatmul.mubr.msk.bf16.vlgmr.msra.gmra.mrb[0].mxu1 %vm172_vm0, %v228_v50 }
  0x2f   : > { %1452 = vmatpush3.bf16.msra.mxu1 %v1601_v32  ;;  %1447 = vmatprep.mubr.msk.bf16.mxu1 %vm172_vm0, %v229_v53 }
  0x30   : > { %1461 = vmatprep.subr.bf16.mxu1 %v1603_v54 }
  0x32   : > { %1488 = vmatmul.mubr.msk.bf16.gmra.mrb[4].mxu0 %vm172_vm0, %v743_v55 }
  0x33   : > { %1493 = vmatprep.mubr.msk.bf16.mxu0 %vm172_vm0, %v228_v50 }
  0x36   : > { %1448 = vmatmul.mubr.msk.bf16.gmra.mrb[4].mxu1 %vm172_vm0, %v230_v59 }
  0x37   : > { %1453 = vmatprep.mubr.msk.bf16.mxu1 %vm172_vm0, %v422_v60 }
  0x3a   : > { %1494 = vmatmul.mubr.msk.bf16.vlgmr.msra.gmra.mrb[0].mxu0 %vm172_vm0, %v229_v53 }
  0x3b   : > { %1502 = vmatpush3.bf16.msra.mxu0 %v1602_v49  ;;  %1497 = vmatprep.mubr.msk.bf16.mxu0 %vm172_vm0, %v230_v59 }
  0x3c   : > { %1511 = vmatprep.subr.bf16.mxu0 %v1604_v61 }
  0x3e   : > { %1454 = vmatmul.mubr.msk.bf16.vlgmr.msra.gmra.mrb[0].mxu1 %vm172_vm0, %v423_v62 }
  0x3f   : > { %1462 = vmatpush3.bf16.msra.mxu1 %v1603_v54  ;;  %1457 = vmatprep.mubr.msk.bf16.mxu1 %vm172_vm0, %v424_v2 }
  0x40   : > { %1521 = vmatprep.subr.bf16.mxu1 %v1648_v1 }
  0x42   : > { %1498 = vmatmul.mubr.msk.bf16.gmra.mrb[4].mxu0 %vm172_vm0, %v850_v3 }
  0x43   : > { %1503 = vmatprep.mubr.msk.bf16.mxu0 %vm172_vm0, %v1697_v23 }
  0x46   : > { %1458 = vmatmul.mubr.msk.bf16.gmra.mrb[4].mxu1 %vm172_vm0, %v425_v4 }
  0x47   : > { %1463 = vmatprep.mubr.msk.bf16.mxu1 %vm172_vm0, %v528_v5 }
  0x4a   : > { %1504 = vmatmul.mubr.msk.bf16.vlgmr.msra.gmra.mrb[0].mxu0 %vm172_vm0, %v1702_v27 }
  0x4b   : > { %1512 = vmatpush3.bf16.msra.mxu0 %v1604_v61  ;;  %1507 = vmatprep.mubr.msk.bf16.mxu0 %vm172_vm0, %v244_v37 }
  0x4e   : > { %1464 = vmatmul.mubr.msk.bf16.vlgmr.msra.gmra.mrb[0].mxu1 %vm172_vm0, %v529_v6 }
  0x4f   : > { %1522 = vmatpush3.bf16.msra.mxu1 %v1648_v1  ;;  %1467 = vmatprep.mubr.msk.bf16.mxu1 %vm172_vm0, %v530_v9  ;;  %v637_v1 = vpack.c.bf16 %v951_v7, %v1718_v34 }
  0x52   : > { %1508 = vmatmul.mubr.msk.bf16.gmra.mrb[4].mxu0 %vm172_vm0, %v956_v10 }
  0x53   : > { %1513 = vmatprep.mubr.msk.bf16.mxu0 %vm172_vm0, %v423_v62 }
  0x56   : > { %1468 = vmatmul.mubr.msk.bf16.gmra.mrb[4].mxu1 %vm172_vm0, %v531_v11 }
  0x57   : > { %1477 = vmatprep.mubr.msk.bf16.mxu1 %vm172_vm0, %v636_v12 }
  0x5a   : > { %1514 = vmatmul.mubr.msk.bf16.vlgmr.msra.gmra.mrb[0].mxu0 %vm172_vm0, %v424_v2 }
  0x5b   : > { %1517 = vmatprep.mubr.msk.bf16.mxu0 %vm172_vm0, %v425_v4 }
  0x62   : > { %1478 = vmatmul.mubr.msk.bf16.vlgmr.msra.gmra.mrb[4].mxu1 %vm172_vm0, %v637_v1  ;;  %1518 = vmatmul.mubr.msk.bf16.gmra.mrb[4].mxu0 %vm172_vm0, %v1062_v14 }
 0x121   : > { %v1465_v15 = vpop.f32.mrb[0].mxu1 }
 0x122   : > { %v587_v16 = vpop.f32.mrb[1].mxu1 }
 0x123   : > { %v1466_v17 = vpop.f32.mrb[2].mxu1 }
 0x124   : > { %v590_v18 = vpop.f32.mrb[3].mxu1 }
 0x12d   : > { %v1515_v19 = vpop.f32.mrb[0].mxu0 }
 0x12e   : > { %v1523_v21 = vadd.f32 %v1515_v19, %v1465_v15  ;;  %v1118_v22 = vpop.f32.mrb[1].mxu0 }
 0x12f   : > { %v1524_v23 = vadd.f32 %v1118_v22, %v587_v16  ;;  %v1516_v24 = vpop.f32.mrb[2].mxu0 }
 0x130   : > { %v1166_v25 = vadd.f32 %v1523_v21, %v1346_v20  ;;  %v1525_v26 = vadd.f32 %v1516_v24, %v1466_v17  ;;  %v1121_v27 = vpop.f32.mrb[3].mxu0 }
 0x131   : > { %v1164_v28 = vadd.f32 %v1524_v23, %v1346_v20  ;;  %v1526_v29 = vadd.f32 %v1121_v27, %v590_v18 }
 0x132   : > { %v1174_v30 = vmax.f32 %v1166_v25, 0.0  ;;  %v1167_v31 = vadd.f32 %v1525_v26, %v1346_v20 }
 0x133   : > { %v1172_v32 = vmax.f32 %v1164_v28, 0.0  ;;  %v1165_v33 = vadd.f32 %v1526_v29, %v1346_v20 }
 0x134   : > { %v1361_v34 = vpack.c.bf16 %v1174_v30, %v1174_v30  ;;  %v1175_v35 = vmax.f32 %v1167_v31, 0.0 }
 0x135   : > { %v1359_v36 = vpack.c.bf16 %v1172_v32, %v1172_v32  ;;  %v1173_v37 = vmax.f32 %v1165_v33, 0.0  ;;  %v1479_v38 = vpop.f32.mrb[4].mxu1  ;;  %v1519_v39 = vpop.f32.mrb[4].mxu0 }
 0x136   : > { %1215 = vst.msk [vmem:[%s1779_s15 + $0x8] sm:$0xf] %vm1212_vm2, %v1361_v34  ;;  %v1362_v40 = vpack.c.bf16 %v1175_v35, %v1175_v35  ;;  %v1527_v41 = vadd.f32 %v1519_v39, %v1479_v38  ;;  %v709_v42 = vpop.f32.mrb[5].mxu1  ;;  %v1134_v43 = vpop.f32.mrb[5].mxu0 }
 0x137   : > { %1213 = vst.msk [vmem:[%s1779_s15] sm:$0xf] %vm1212_vm2, %v1359_v36  ;;  %v1360_v44 = vpack.c.bf16 %v1173_v37, %v1173_v37  ;;  %v1528_v45 = vadd.f32 %v1134_v43, %v709_v42  ;;  %v1480_v46 = vpop.f32.mrb[6].mxu1  ;;  %v1520_v47 = vpop.f32.mrb[6].mxu0 }
 0x138   : > { %1216 = vst.msk [vmem:[%s1779_s15 + $0xc] sm:$0xf] %vm1212_vm2, %v1362_v40  ;;  %v1170_v48 = vadd.f32 %v1527_v41, %v1346_v20  ;;  %v1529_v49 = vadd.f32 %v1520_v47, %v1480_v46  ;;  %v712_v50 = vpop.f32.mrb[7].mxu1  ;;  %v1137_v51 = vpop.f32.mrb[7].mxu0 }
 0x139   : > { %1214 = vst.msk [vmem:[%s1779_s15 + $0x4] sm:$0xf] %vm1212_vm2, %v1360_v44  ;;  %v1168_v52 = vadd.f32 %v1528_v45, %v1346_v20  ;;  %v1530_v53 = vadd.f32 %v1137_v51, %v712_v50 }
 0x13a   : > { %v1178_v54 = vmax.f32 %v1170_v48, 0.0  ;;  %v1171_v55 = vadd.f32 %v1529_v49, %v1346_v20 }
 0x13b   : > { %v1176_v56 = vmax.f32 %v1168_v52, 0.0  ;;  %v1169_v57 = vadd.f32 %v1530_v53, %v1346_v20 }
 0x13c   : > { %v1365_v58 = vpack.c.bf16 %v1178_v54, %v1178_v54  ;;  %v1179_v59 = vmax.f32 %v1171_v55, 0.0 }
 0x13d   : > { %v1363_v60 = vpack.c.bf16 %v1176_v56, %v1176_v56  ;;  %v1177_v61 = vmax.f32 %v1169_v57, 0.0 }
 0x13e   : > { %1219 = vst.msk [vmem:[%s1779_s15 + $0x18] sm:$0xf] %vm1212_vm2, %v1365_v58  ;;  %v1366_v62 = vpack.c.bf16 %v1179_v59, %v1179_v59 }
 0x13f   : > { %1217 = vst.msk [vmem:[%s1779_s15 + $0x10] sm:$0xf] %vm1212_vm2, %v1363_v60  ;;  %v1364_v63 = vpack.c.bf16 %v1177_v61, %v1177_v61 }
 0x140   : > { %1220 = vst.msk [vmem:[%s1779_s15 + $0x1c] sm:$0xf] %vm1212_vm2, %v1366_v62 }
 0x141   : > { %1218 = vst.msk [vmem:[%s1779_s15 + $0x14] sm:$0xf] %vm1212_vm2, %v1364_v63 }
 0x142 PF: > { %s13_s12 = sadd.s32 1, %s1611_s12  }
 0x143   : > { %p10_p4 = scmp.ge.s32.totalorder %s13_s12, 4  }
 0x145   :  { %12 = sbr.rel (!%p10_p4) target bundleno = 1 (0x1), region = 72 }

// kernel: u2net_forward.3
= control target key start
LH: loop header
LB: loop body
LE: loop exit
PB: predicated region body
PF: predicated region fallthrough
CT: control target
= control target key end

     0   :  { %s8333_s21 = smov 0   ;;  %s9524_s0 = inlined_call_operand.vmem [shape: bf16[2,16,16,16], index: 0, kind: input, shape index: {}]   ;;  %s9525_s1 = inlined_call_operand.vmem [shape: bf16[9,16,16], index: 1, kind: input, shape index: {}]   ;;  %s9526_s2 = inlined_call_operand.vmem [shape: f32[1,16], index: 2, kind: input, shape index: {}]   ;;  %s9527_s3 = inlined_call_operand.vmem [shape: bf16[9,16,16], index: 3, kind: input, shape index: {}]   ;;  %s9528_s4 = inlined_call_operand.vmem [shape: f32[1,16], index: 4, kind: input, shape index: {}]   ;;  %s9529_s5 = inlined_call_operand.vmem [shape: bf16[2,16,16,16], index: 5, kind: output, shape index: {0}]   ;;  %s9530_s6 = inlined_call_operand.vmem [shape: bf16[2,16,16,16], index: 6, kind: output, shape index: {1}]  }
   0x1 LB: > { %s6269_s22 = sadd.s32 4294967295, %s8295_s21   ;;  %p6273_p0 = scmp.ge.s32.totalorder %s8295_s21, 1  ;;  %s8295_s21 = sphi %s8333_s21, %s17_s21  }
   0x2   : > { %p215_p1 = scmp.lt.s32.totalorder %s8295_s21, 3 }
   0x4   : > { %p216_p2 = pnand %p6273_p0, %p215_p1 }
   0x5   : > { %v8271_v0 = vld [vmem:[%s9525_s1 + $0x8] sm:$0xff] (!%p216_p2)   ;;  %vm266_vm0 = vcmask (!%p216_p2), 130048   ;;  %vm269_vm1 = vcmask (!%p216_p2), 123904   ;;  %v8297_v1 = vmov (!%p216_p2), 0.0   ;;  %v8401_v2 = vld [vmem:[%s9525_s1] sm:$0xff] (!%p216_p2)   ;;  %p250_p3 = scmp.lt.s32.totalorder (!%p216_p2), %s6269_s22, 1 }
   0x6   : > { %219 = sbr.rel (%p216_p2) target bundleno = 1578 (0x62a), region = 40  ;;  %7138 = vmatprep.subr.bf16.mxu0 (!%p216_p2), %v8271_v0  ;;  %267 = vst.msk [vmem:[#allocation2] sm:$0xff] (!%p216_p2), %vm266_vm0, %v8297_v1  ;;  %268 = vst.msk [vmem:[#allocation2 + $0x8] sm:$0xff] (!%p216_p2), %vm266_vm0, %v8297_v1  ;;  %v8467_v56 = vld [vmem:[%s9525_s1 + $0x10] sm:$0xff] (!%p216_p2)   ;;  %vm3236_vm2 = vcmask (!%p216_p2), 125952  }
   0x7   : > { %270 = vst.msk [vmem:[#allocation2 + $0x10] sm:$0x3] (!%p216_p2), %vm269_vm1, %v8297_v1  ;;  %273 = vst.msk [vmem:[#allocation2 + $0x28] sm:$0x3] (!%p216_p2), %vm269_vm1, %v8297_v1  ;;  %7139 = vmatpush3.bf16.msra.mxu0 (!%p216_p2), %v8271_v0 }
   0x8   : > { %271 = vst.msk [vmem:[#allocation2 + $0x18] sm:$0xff] (!%p216_p2), %vm266_vm0, %v8297_v1  ;;  %272 = vst.msk [vmem:[#allocation2 + $0x20] sm:$0xff] (!%p216_p2), %vm266_vm0, %v8297_v1  ;;  %7172 = vmatprep.subr.bf16.mxu0 (!%p216_p2), %v8401_v2 }
   0x9   : > { %274 = vst.msk [vmem:[#allocation2 + $0x30] sm:$0xff] (!%p216_p2), %vm266_vm0, %v8297_v1  ;;  %275 = vst.msk [vmem:[#allocation2 + $0x38] sm:$0xff] (!%p216_p2), %vm266_vm0, %v8297_v1 }
   0xa   : > { %276 = vst.msk [vmem:[#allocation2 + $0x40] sm:$0x3] (!%p216_p2), %vm269_vm1, %v8297_v1  ;;  %279 = vst.msk [vmem:[#allocation2 + $0x58] sm:$0x3] (!%p216_p2), %vm269_vm1, %v8297_v1 }
   0xb   : > { %277 = vst.msk [vmem:[#allocation2 + $0x48] sm:$0xff] (!%p216_p2), %vm266_vm0, %v8297_v1  ;;  %278 = vst.msk [vmem:[#allocation2 + $0x50] sm:$0xff] (!%p216_p2), %vm266_vm0, %v8297_v1 }
   0xc   : > { %280 = vst.msk [vmem:[#allocation2 + $0x60] sm:$0xff] (!%p216_p2), %vm266_vm0, %v8297_v1  ;;  %281 = vst.msk [vmem:[#allocation2 + $0x68] sm:$0xff] (!%p216_p2), %vm266_vm0, %v8297_v1 }
   0xd   : > { %282 = vst.msk [vmem:[#allocation2 + $0x70] sm:$0x3] %vm269_vm1, %v8297_v1  ;;  %285 = vst.msk [vmem:[#allocation2 + $0x88] sm:$0x3] %vm269_vm1, %v8297_v1  ;;  %s9532_s22 = smov (!%p250_p3, %s6269_s22), 1  ;;  %v469_v6 = vld [vmem:[#allocation2 + $0x1] sm:$0xff] }
   0xe   : > { %283 = vst.msk [vmem:[#allocation2 + $0x78] sm:$0xff] %vm266_vm0, %v8297_v1  ;;  %284 = vst.msk [vmem:[#allocation2 + $0x80] sm:$0xff] %vm266_vm0, %v8297_v1  ;;  %s8408_s27 = sshll.u32 %s9532_s22, 7  ;;  %v470_v7 = vld [vmem:[#allocation2 + $0x9] sm:$0xff] }
   0xf   : > { %286 = vst.msk [vmem:[#allocation2 + $0x90] sm:$0xff] %vm266_vm0, %v8297_v1  ;;  %287 = vst.msk [vmem:[#allocation2 + $0x98] sm:$0xff] %vm266_vm0, %v8297_v1  ;;  %s8414_s30 = scalar_lea.vmem %s9524_s0, %s8408_s27  ;;  %v501_v13 = vpack.c.bf16 %v470_v7, %v469_v6  ;;  %s8887_s7 = scalar_lea.vmem %s9529_s5, %s8408_s27 }
  0x10   : > { %288 = vst.msk [vmem:[#allocation2 + $0xa0] sm:$0x3] %vm269_vm1, %v8297_v1  ;;  %291 = vst.msk [vmem:[#allocation2 + $0xb8] sm:$0x3] %vm269_vm1, %v8297_v1  ;;  %v6754_v3 = vld [vmem:[%s8414_s30] sm:$0xff]   ;;  %v6817_v4 = vld [vmem:[%s8414_s30 + $0x8] sm:$0xff]   ;;  %s9426_s28 = scalar_lea.vmem %s9530_s6, %s8408_s27 }
  0x11   : > { %289 = vst.msk [vmem:[#allocation2 + $0xa8] sm:$0xff] %vm266_vm0, %v8297_v1  ;;  %290 = vst.msk [vmem:[#allocation2 + $0xb0] sm:$0xff] %vm266_vm0, %v8297_v1  ;;  %v6818_v5 = vld [vmem:[%s8414_s30 + $0x10] sm:$0xff]   ;;  %v6755_v8 = vunpack.c.l.bf16 %v6754_v3  ;;  %v6756_v9 = vunpack.c.h.bf16 %v6754_v3  ;;  %v6759_v10 = vunpack.c.l.bf16 %v6817_v4  ;;  %v6760_v11 = vunpack.c.h.bf16 %v6817_v4  ;;  %v6819_v12 = vld [vmem:[%s8414_s30 + $0x18] sm:$0xff]   ;;  %7140 = vmatprep.mubr.msk.bf16.mxu0 %vm266_vm0, %v501_v13 }
  0x12   : > { %292 = vst.msk [vmem:[#allocation2 + $0xc0] sm:$0xff] %vm266_vm0, %v8297_v1  ;;  %293 = vst.msk [vmem:[#allocation2 + $0xc8] sm:$0xff] %vm266_vm0, %v8297_v1  ;;  %v6763_v14 = vunpack.c.l.bf16 %v6818_v5  ;;  %v6764_v15 = vunpack.c.h.bf16 %v6818_v5  ;;  %v6767_v16 = vunpack.c.l.bf16 %v6819_v12  ;;  %v6820_v17 = vld [vmem:[%s8414_s30 + $0x20] sm:$0xff]   ;;  %v6821_v18 = vld [vmem:[%s8414_s30 + $0x28] sm:$0xff]   ;;  %v6768_v20 = vunpack.c.h.bf16 %v6819_v12 }
  0x13   : > { %294 = vst.msk [vmem:[#allocation2 + $0xd0] sm:$0x3] %vm269_vm1, %v8297_v1  ;;  %297 = vst.msk [vmem:[#allocation2 + $0xe8] sm:$0x3] %vm269_vm1, %v8297_v1  ;;  %v6822_v19 = vld [vmem:[%s8414_s30 + $0x30] sm:$0xff]   ;;  %v6771_v21 = vunpack.c.l.bf16 %v6820_v17  ;;  %v6772_v22 = vunpack.c.h.bf16 %v6820_v17  ;;  %v6775_v23 = vunpack.c.l.bf16 %v6821_v18  ;;  %v6823_v24 = vld [vmem:[%s8414_s30 + $0x38] sm:$0xff]   ;;  %v6776_v27 = vunpack.c.h.bf16 %v6821_v18 }
  0x14   : > { %295 = vst.msk [vmem:[#allocation2 + $0xd8] sm:$0xff] %vm266_vm0, %v8297_v1  ;;  %296 = vst.msk [vmem:[#allocation2 + $0xe0] sm:$0xff] %vm266_vm0, %v8297_v1  ;;  %v6824_v25 = vld [vmem:[%s8414_s30 + $0x40] sm:$0xff]   ;;  %v6825_v26 = vld [vmem:[%s8414_s30 + $0x48] sm:$0xff]   ;;  %v6779_v28 = vunpack.c.l.bf16 %v6822_v19  ;;  %v6780_v29 = vunpack.c.h.bf16 %v6822_v19  ;;  %v6783_v30 = vunpack.c.l.bf16 %v6823_v24  ;;  %v6784_v34 = vunpack.c.h.bf16 %v6823_v24 }
  0x15   : > { %298 = vst.msk [vmem:[#allocation2 + $0xf0] sm:$0xff] %vm266_vm0, %v8297_v1  ;;  %299 = vst.msk [vmem:[#allocation2 + $0xf8] sm:$0xff] %vm266_vm0, %v8297_v1  ;;  %v6826_v31 = vld [vmem:[%s8414_s30 + $0x50] sm:$0xff]   ;;  %v6827_v32 = vld [vmem:[%s8414_s30 + $0x58] sm:$0xff]   ;;  %v6787_v35 = vunpack.c.l.bf16 %v6824_v25  ;;  %v6788_v36 = vunpack.c.h.bf16 %v6824_v25  ;;  %v6791_v37 = vunpack.c.l.bf16 %v6825_v26  ;;  %v6792_v40 = vunpack.c.h.bf16 %v6825_v26 }
  0x16   : > { %300 = vst.msk [vmem:[#allocation2 + $0x100] sm:$0x3] %vm269_vm1, %v8297_v1  ;;  %303 = vst.msk [vmem:[#allocation2 + $0x118] sm:$0x3] %vm269_vm1, %v8297_v1  ;;  %v6828_v33 = vld [vmem:[%s8414_s30 + $0x60] sm:$0xff]   ;;  %v6829_v38 = vld [vmem:[%s8414_s30 + $0x68] sm:$0xff]   ;;  %v6795_v41 = vunpack.c.l.bf16 %v6826_v31  ;;  %v6796_v42 = vunpack.c.h.bf16 %v6826_v31  ;;  %v6799_v43 = vunpack.c.l.bf16 %v6827_v32  ;;  %v6800_v44 = vunpack.c.h.bf16 %v6827_v32 }
  0x17   : > { %301 = vst.msk [vmem:[#allocation2 + $0x108] sm:$0xff] %vm266_vm0, %v8297_v1  ;;  %302 = vst.msk [vmem:[#allocation2 + $0x110] sm:$0xff] %vm266_vm0, %v8297_v1  ;;  %v6830_v39 = vld [vmem:[%s8414_s30 + $0x70] sm:$0xff]   ;;  %v6803_v45 = vunpack.c.l.bf16 %v6828_v33  ;;  %v6804_v46 = vunpack.c.h.bf16 %v6828_v33  ;;  %v6807_v47 = vunpack.c.l.bf16 %v6829_v38  ;;  %v6808_v48 = vunpack.c.h.bf16 %v6829_v38  ;;  %v419_v32 = vld [vmem:[#allocation2] sm:$0xff] }
  0x18   : > { %304 = vst.msk [vmem:[#allocation2 + $0x120] sm:$0xff] %vm266_vm0, %v8297_v1  ;;  %305 = vst.msk [vmem:[#allocation2 + $0x128] sm:$0xff] %vm266_vm0, %v8297_v1  ;;  %v6811_v49 = vunpack.c.l.bf16 %v6830_v39  ;;  %v6812_v50 = vunpack.c.h.bf16 %v6830_v39  ;;  %v420_v33 = vld [vmem:[#allocation2 + $0x8] sm:$0xff] }
  0x19   : > { %306 = vst.msk [vmem:[#allocation2 + $0x130] sm:$0x3] %vm269_vm1, %v8297_v1  ;;  %309 = vst.msk [vmem:[#allocation2 + $0x148] sm:$0x3] %vm269_vm1, %v8297_v1 }
  0x1a   : > { %307 = vst.msk [vmem:[#allocation2 + $0x138] sm:$0xff] %vm266_vm0, %v8297_v1  ;;  %308 = vst.msk [vmem:[#allocation2 + $0x140] sm:$0xff] %vm266_vm0, %v8297_v1 }
  0x1b   : > { %310 = vst.msk [vmem:[#allocation2 + $0x150] sm:$0xff] %vm266_vm0, %v8297_v1  ;;  %311 = vst.msk [vmem:[#allocation2 + $0x158] sm:$0xff] %vm266_vm0, %v8297_v1 }
  0x1c   : > { %312 = vst.msk [vmem:[#allocation2 + $0x160] sm:$0x3] %vm269_vm1, %v8297_v1  ;;  %315 = vst.msk [vmem:[#allocation2 + $0x178] sm:$0x3] %vm269_vm1, %v8297_v1 }
  0x1d   : > { %313 = vst.msk [vmem:[#allocation2 + $0x168] sm:$0xff] %vm266_vm0, %v8297_v1  ;;  %314 = vst.msk [vmem:[#allocation2 + $0x170] sm:$0xff] %vm266_vm0, %v8297_v1 }
  0x1e   : > { %316 = vst.msk [vmem:[#allocation2 + $0x180] sm:$0xff] %vm266_vm0, %v8297_v1  ;;  %317 = vst.msk [vmem:[#allocation2 + $0x188] sm:$0xff] %vm266_vm0, %v8297_v1 }
  0x1f   : > { %318 = vst.msk [vmem:[#allocation2 + $0x190] sm:$0x3] %vm269_vm1, %v8297_v1  ;;  %321 = vst.msk [vmem:[#allocation2 + $0x1a8] sm:$0x3] %vm269_vm1, %v8297_v1 }
  0x20   : > { %319 = vst.msk [vmem:[#allocation2 + $0x198] sm:$0xff] %vm266_vm0, %v8297_v1  ;;  %320 = vst.msk [vmem:[#allocation2 + $0x1a0] sm:$0xff] %vm266_vm0, %v8297_v1 }
  0x21   : > { %387 = vst.msk [vmem:[#allocation2 + $0x19] sm:$0xff] %vm266_vm0, %v6755_v8  ;;  %388 = vst.msk [vmem:[#allocation2 + $0x21] sm:$0xff] %vm266_vm0, %v6756_v9 }
  0x22   : > { %389 = vst.msk [vmem:[#allocation2 + $0x31] sm:$0xff] %vm266_vm0, %v6759_v10  ;;  %390 = vst.msk [vmem:[#allocation2 + $0x39] sm:$0xff] %vm266_vm0, %v6760_v11 }
  0x23   : > { %391 = vst.msk [vmem:[#allocation2 + $0x49] sm:$0xff] %vm266_vm0, %v6763_v14  ;;  %392 = vst.msk [vmem:[#allocation2 + $0x51] sm:$0xff] %vm266_vm0, %v6764_v15 }
  0x24   : > { %393 = vst.msk [vmem:[#allocation2 + $0x61] sm:$0xff] %vm266_vm0, %v6767_v16  ;;  %394 = vst.msk [vmem:[#allocation2 + $0x69] sm:$0xff] %vm266_vm0, %v6768_v20 }
  0x25   : > { %395 = vst.msk [vmem:[#allocation2 + $0x79] sm:$0xff] %vm266_vm0, %v6771_v21  ;;  %396 = vst.msk [vmem:[#allocation2 + $0x81] sm:$0xff] %vm266_vm0, %v6772_v22 }
  0x26   : > { %397 = vst.msk [vmem:[#allocation2 + $0x91] sm:$0xff] %vm266_vm0, %v6775_v23  ;;  %398 = vst.msk [vmem:[#allocation2 + $0x99] sm:$0xff] %vm266_vm0, %v6776_v27 }
  0x27   : > { %399 = vst.msk [vmem:[#allocation2 + $0xa9] sm:$0xff] %vm266_vm0, %v6779_v28  ;;  %400 = vst.msk [vmem:[#allocation2 + $0xb1] sm:$0xff] %vm266_vm0, %v6780_v29 }
  0x28   : > { %401 = vst.msk [vmem:[#allocation2 + $0xc1] sm:$0xff] %vm266_vm0, %v6783_v30  ;;  %402 = vst.msk [vmem:[#allocation2 + $0xc9] sm:$0xff] %vm266_vm0, %v6784_v34  ;;  %v471_v51 = vld [vmem:[#allocation2 + $0x19] sm:$0xff]  ;;  %v472_v52 = vld [vmem:[#allocation2 + $0x21] sm:$0xff] }
  0x29   : > { %403 = vst.msk [vmem:[#allocation2 + $0xd9] sm:$0xff] %vm266_vm0, %v6787_v35  ;;  %404 = vst.msk [vmem:[#allocation2 + $0xe1] sm:$0xff] %vm266_vm0, %v6788_v36  ;;  %v473_v53 = vld [vmem:[#allocation2 + $0x31] sm:$0xff]  ;;  %v8462_v54 = vpack.c.bf16 %v472_v52, %v471_v51  ;;  %v474_v55 = vld [vmem:[#allocation2 + $0x39] sm:$0xff]  ;;  %v451_v35 = vpack.c.bf16 %v420_v33, %v419_v32 }
  0x2a   : > { %405 = vst.msk [vmem:[#allocation2 + $0xf1] sm:$0xff] %vm266_vm0, %v6791_v37  ;;  %406 = vst.msk [vmem:[#allocation2 + $0xf9] sm:$0xff] %vm266_vm0, %v6792_v40  ;;  %v8469_v57 = vpack.c.bf16 %v474_v55, %v473_v53  ;;  %v475_v58 = vld [vmem:[#allocation2 + $0x49] sm:$0xff]  ;;  %v476_v59 = vld [vmem:[#allocation2 + $0x51] sm:$0xff] }
  0x2b   : > { %407 = vst.msk [vmem:[#allocation2 + $0x109] sm:$0xff] %vm266_vm0, %v6795_v41  ;;  %408 = vst.msk [vmem:[#allocation2 + $0x111] sm:$0xff] %vm266_vm0, %v6796_v42  ;;  %7141 = vmatmul.mubr.msk.bf16.vlgmr.msra.gmra.mrb[0].mxu0 %vm266_vm0, %v8462_v54  ;;  %v477_v60 = vld [vmem:[#allocation2 + $0x61] sm:$0xff]  ;;  %v478_v61 = vld [vmem:[#allocation2 + $0x69] sm:$0xff]  ;;  %v8477_v62 = vpack.c.bf16 %v476_v59, %v475_v58 }
  0x2c   : > { %409 = vst.msk [vmem:[#allocation2 + $0x121] sm:$0xff] %vm266_vm0, %v6799_v43  ;;  %410 = vst.msk [vmem:[#allocation2 + $0x129] sm:$0xff] %vm266_vm0, %v6800_v44  ;;  %7173 = vmatpush3.bf16.msra.mxu0 %v8401_v2  ;;  %7144 = vmatprep.mubr.msk.bf16.mxu0 %vm266_vm0, %v8469_v57  ;;  %v8479_v63 = vpack.c.bf16 %v478_v61, %v477_v60  ;;  %v479_v0 = vld [vmem:[#allocation2 + $0x79] sm:$0xff]  ;;  %v480_v1 = vld [vmem:[#allocation2 + $0x81] sm:$0xff] }
  0x2d   : > { %411 = vst.msk [vmem:[#allocation2 + $0x139] sm:$0xff] %vm266_vm0, %v6803_v45  ;;  %412 = vst.msk [vmem:[#allocation2 + $0x141] sm:$0xff] %vm266_vm0, %v6804_v46  ;;  %7206 = vmatprep.subr.bf16.mxu0 %v8467_v56  ;;  %v481_v2 = vld [vmem:[#allocation2 + $0x91] sm:$0xff]  ;;  %v482_v3 = vld [vmem:[#allocation2 + $0x99] sm:$0xff]  ;;  %v8485_v4 = vpack.c.bf16 %v480_v1, %v479_v0 }
  0x2e   : > { %413 = vst.msk [vmem:[#allocation2 + $0x151] sm:$0xff] %vm266_vm0, %v6807_v47  ;;  %414 = vst.msk [vmem:[#allocation2 + $0x159] sm:$0xff] %vm266_vm0, %v6808_v48  ;;  %v8487_v5 = vpack.c.bf16 %v482_v3, %v481_v2  ;;  %v483_v6 = vld [vmem:[#allocation2 + $0xa9] sm:$0xff]  ;;  %v484_v7 = vld [vmem:[#allocation2 + $0xb1] sm:$0xff] }
  0x2f   : > { %415 = vst.msk [vmem:[#allocation2 + $0x169] sm:$0xff] %vm266_vm0, %v6811_v49  ;;  %416 = vst.msk [vmem:[#allocation2 + $0x171] sm:$0xff] %vm266_vm0, %v6812_v50  ;;  %v485_v8 = vld [vmem:[#allocation2 + $0xc1] sm:$0xff]  ;;  %v486_v9 = vld [vmem:[#allocation2 + $0xc9] sm:$0xff]  ;;  %v8493_v10 = vpack.c.bf16 %v484_v7, %v483_v6 }
  0x30   : > { %v8495_v11 = vpack.c.bf16 %v486_v9, %v485_v8  ;;  %v487_v12 = vld [vmem:[#allocation2 + $0xd9] sm:$0xff]  ;;  %v488_v13 = vld [vmem:[#allocation2 + $0xe1] sm:$0xff]  ;;  %v423_v38 = vld [vmem:[#allocation2 + $0x30] sm:$0xff] }
  0x31   : > { %v489_v14 = vld [vmem:[#allocation2 + $0xf1] sm:$0xff]  ;;  %v490_v15 = vld [vmem:[#allocation2 + $0xf9] sm:$0xff]  ;;  %v8501_v16 = vpack.c.bf16 %v488_v13, %v487_v12  ;;  %v425_v43 = vld [vmem:[#allocation2 + $0x48] sm:$0xff] }
  0x32   : > { %v8503_v17 = vpack.c.bf16 %v490_v15, %v489_v14  ;;  %v491_v18 = vld [vmem:[#allocation2 + $0x109] sm:$0xff]  ;;  %v492_v19 = vld [vmem:[#allocation2 + $0x111] sm:$0xff]  ;;  %v422_v37 = vld [vmem:[#allocation2 + $0x20] sm:$0xff] }
  0x33   : > { %7145 = vmatmul.mubr.msk.bf16.gmra.mrb[4].mxu0 %vm266_vm0, %v8477_v62  ;;  %v493_v20 = vld [vmem:[#allocation2 + $0x121] sm:$0xff]  ;;  %v494_v21 = vld [vmem:[#allocation2 + $0x129] sm:$0xff]  ;;  %v8509_v22 = vpack.c.bf16 %v492_v19, %v491_v18  ;;  %v421_v36 = vld [vmem:[#allocation2 + $0x18] sm:$0xff] }
  0x34   : > { %7148 = vmatprep.mubr.msk.bf16.mxu0 %vm266_vm0, %v8479_v63  ;;  %v8511_v23 = vpack.c.bf16 %v494_v21, %v493_v20  ;;  %v495_v24 = vld [vmem:[#allocation2 + $0x139] sm:$0xff]  ;;  %v496_v25 = vld [vmem:[#allocation2 + $0x141] sm:$0xff]  ;;  %v8530_v40 = vpack.c.bf16 %v422_v37, %v421_v36  ;;  %v426_v44 = vld [vmem:[#allocation2 + $0x50] sm:$0xff] }
  0x35   : > { %v497_v26 = vld [vmem:[#allocation2 + $0x151] sm:$0xff]  ;;  %v498_v27 = vld [vmem:[#allocation2 + $0x159] sm:$0xff]  ;;  %v8517_v28 = vpack.c.bf16 %v496_v25, %v495_v24  ;;  %v428_v46 = vld [vmem:[#allocation2 + $0x68] sm:$0xff]  ;;  %v8545_v47 = vpack.c.bf16 %v426_v44, %v425_v43 }
  0x36   : > { %v8519_v29 = vpack.c.bf16 %v498_v27, %v497_v26  ;;  %v499_v30 = vld [vmem:[#allocation2 + $0x169] sm:$0xff]  ;;  %v500_v31 = vld [vmem:[#allocation2 + $0x171] sm:$0xff]  ;;  %v427_v45 = vld [vmem:[#allocation2 + $0x60] sm:$0xff] }
  0x37   : > { %v8525_v34 = vpack.c.bf16 %v500_v31, %v499_v30  ;;  %v424_v39 = vld [vmem:[#allocation2 + $0x38] sm:$0xff]  ;;  %v8547_v48 = vpack.c.bf16 %v428_v46, %v427_v45  ;;  %v430_v50 = vld [vmem:[#allocation2 + $0x80] sm:$0xff]  ;;  %v431_v51 = vld [vmem:[#allocation2 + $0x90] sm:$0xff] }
  0x38   : > { %v8532_v41 = vpack.c.bf16 %v424_v39, %v423_v38  ;;  %v8537_v42 = vld [vmem:[%s9525_s1 + $0x18] sm:$0xff]   ;;  %v434_v58 = vld [vmem:[#allocation2 + $0xb0] sm:$0xff]  ;;  %v435_v59 = vld [vmem:[#allocation2 + $0xc0] sm:$0xff] }
  0x39   : > { %v429_v49 = vld [vmem:[#allocation2 + $0x78] sm:$0xff]  ;;  %v436_v60 = vld [vmem:[#allocation2 + $0xc8] sm:$0xff]  ;;  %v438_v2 = vld [vmem:[#allocation2 + $0xe0] sm:$0xff] }
  0x3a   : > { %v432_v52 = vld [vmem:[#allocation2 + $0x98] sm:$0xff]  ;;  %v8553_v53 = vpack.c.bf16 %v430_v50, %v429_v49  ;;  %v8563_v0 = vpack.c.bf16 %v436_v60, %v435_v59  ;;  %v439_v3 = vld [vmem:[#allocation2 + $0xf0] sm:$0xff]  ;;  %v441_v9 = vld [vmem:[#allocation2 + $0x108] sm:$0xff] }
  0x3b   : > { %7149 = vmatmul.mubr.msk.bf16.gmra.mrb[8].mxu0 %vm266_vm0, %v8485_v4  ;;  %v8555_v55 = vpack.c.bf16 %v432_v52, %v431_v51  ;;  %v437_v1 = vld [vmem:[#allocation2 + $0xd8] sm:$0xff]  ;;  %v442_v12 = vld [vmem:[#allocation2 + $0x110] sm:$0xff]  ;;  %v443_v13 = vld [vmem:[#allocation2 + $0x120] sm:$0xff] }
  0x3c   : > { %7152 = vmatprep.mubr.msk.bf16.mxu0 %vm266_vm0, %v8487_v5  ;;  %v440_v6 = vld [vmem:[#allocation2 + $0xf8] sm:$0xff]  ;;  %v8569_v7 = vpack.c.bf16 %v438_v2, %v437_v1  ;;  %v444_v14 = vld [vmem:[#allocation2 + $0x128] sm:$0xff]  ;;  %v8577_v15 = vpack.c.bf16 %v442_v12, %v441_v9  ;;  %v446_v20 = vld [vmem:[#allocation2 + $0x140] sm:$0xff] }
  0x3d   : > { %v8571_v8 = vpack.c.bf16 %v440_v6, %v439_v3  ;;  %v8579_v18 = vpack.c.bf16 %v444_v14, %v443_v13  ;;  %v445_v19 = vld [vmem:[#allocation2 + $0x138] sm:$0xff]  ;;  %v447_v21 = vld [vmem:[#allocation2 + $0x150] sm:$0xff]  ;;  %v449_v32 = vld [vmem:[#allocation2 + $0x168] sm:$0xff] }
  0x3e   : > { %v448_v24 = vld [vmem:[#allocation2 + $0x158] sm:$0xff]  ;;  %v8586_v26 = vpack.c.bf16 %v446_v20, %v445_v19  ;;  %v450_v33 = vld [vmem:[#allocation2 + $0x170] sm:$0xff]  ;;  %v953_v43 = vld [vmem:[#allocation2 + $0x22] sm:$0xff] }
  0x3f   : > { %v6831_v25 = vld [vmem:[%s8414_s30 + $0x78] sm:$0xff]   ;;  %v8588_v31 = vpack.c.bf16 %v448_v24, %v447_v21  ;;  %v951_v36 = vld [vmem:[#allocation2 + $0xa] sm:$0xff]  ;;  %v8596_v37 = vpack.c.bf16 %v450_v33, %v449_v32  ;;  %v8275_v50 = vld [vmem:[%s9525_s1 + $0x20] sm:$0xff]  }
  0x40   : > { %v6815_v27 = vunpack.c.l.bf16 %v6831_v25  ;;  %v6816_v30 = vunpack.c.h.bf16 %v6831_v25  ;;  %v952_v39 = vld [vmem:[#allocation2 + $0x1a] sm:$0xff]  ;;  %v954_v44 = vld [vmem:[#allocation2 + $0x32] sm:$0xff]  ;;  %v956_v51 = vld [vmem:[#allocation2 + $0x4a] sm:$0xff] }
  0x41   : > { %v955_v45 = vld [vmem:[#allocation2 + $0x3a] sm:$0xff]  ;;  %v8601_v46 = vpack.c.bf16 %v953_v43, %v952_v39  ;;  %v957_v52 = vld [vmem:[#allocation2 + $0x52] sm:$0xff]  ;;  %v964_v12 = vld [vmem:[#allocation2 + $0xaa] sm:$0xff] }
  0x42   : > { %417 = vst.msk [vmem:[#allocation2 + $0x181] sm:$0xff] %vm266_vm0, %v6815_v27  ;;  %418 = vst.msk [vmem:[#allocation2 + $0x189] sm:$0xff] %vm266_vm0, %v6816_v30  ;;  %v8603_v49 = vpack.c.bf16 %v955_v45, %v954_v44  ;;  %v8613_v59 = vpack.c.bf16 %v957_v52, %v956_v51  ;;  %v960_v1 = vld [vmem:[#allocation2 + $0x7a] sm:$0xff]  ;;  %v962_v2 = vld [vmem:[#allocation2 + $0x92] sm:$0xff] }
  0x43   : > { %7153 = vmatmul.mubr.msk.bf16.gmra.mrb[12].mxu0 %vm266_vm0, %v8493_v10  ;;  %v963_v3 = vld [vmem:[#allocation2 + $0x9a] sm:$0xff]  ;;  %v965_v13 = vld [vmem:[#allocation2 + $0xb2] sm:$0xff]  ;;  %v966_v14 = vld [vmem:[#allocation2 + $0xc2] sm:$0xff] }
  0x44   : > { %7156 = vmatprep.mubr.msk.bf16.mxu0 %vm266_vm0, %v8495_v11  ;;  %v8623_v9 = vpack.c.bf16 %v963_v3, %v962_v2  ;;  %v967_v19 = vld [vmem:[#allocation2 + $0xca] sm:$0xff]  ;;  %v8629_v20 = vpack.c.bf16 %v965_v13, %v964_v12  ;;  %v968_v24 = vld [vmem:[#allocation2 + $0xda] sm:$0xff]  ;;  %v969_v25 = vld [vmem:[#allocation2 + $0xe2] sm:$0xff] }
  0x45   : > { %v8631_v21 = vpack.c.bf16 %v967_v19, %v966_v14  ;;  %v970_v27 = vld [vmem:[#allocation2 + $0xf2] sm:$0xff]  ;;  %v971_v30 = vld [vmem:[#allocation2 + $0xfa] sm:$0xff]  ;;  %v8637_v32 = vpack.c.bf16 %v969_v25, %v968_v24  ;;  %v975_v39 = vld [vmem:[#allocation2 + $0x12a] sm:$0xff] }
  0x46   : > { %v8639_v33 = vpack.c.bf16 %v971_v30, %v970_v27  ;;  %v976_v45 = vld [vmem:[#allocation2 + $0x13a] sm:$0xff]  ;;  %v977_v51 = vld [vmem:[#allocation2 + $0x142] sm:$0xff]  ;;  %v978_v52 = vld [vmem:[#allocation2 + $0x152] sm:$0xff] }
  0x47   : > { %v981_v2 = vld [vmem:[#allocation2 + $0x172] sm:$0xff]  ;;  %v8276_v12 = vld [vmem:[%s9525_s1 + $0x28] sm:$0xff]  }
  0x48   : > { %v8277_v14 = vld [vmem:[%s9525_s1 + $0x30] sm:$0xff]   ;;  %v2450_v19 = vld [vmem:[#allocation2 + $0x99] sm:$0xff] }
  0x49   : > { %v2451_v27 = vld [vmem:[#allocation2 + $0xa9] sm:$0xff]  ;;  %v2452_v30 = vld [vmem:[#allocation2 + $0xb1] sm:$0xff] }
  0x4b   : > { %7157 = vmatmul.mubr.msk.bf16.gmra.mrb[16].mxu0 %vm266_vm0, %v8501_v16 }
  0x4c   : > { %7160 = vmatprep.mubr.msk.bf16.mxu0 %vm266_vm0, %v8503_v17 }
  0x53   : > { %7161 = vmatmul.mubr.msk.bf16.gmra.mrb[20].mxu0 %vm266_vm0, %v8509_v22 }
  0x54   : > { %7164 = vmatprep.mubr.msk.bf16.mxu0 %vm266_vm0, %v8511_v23 }
  0x5b   : > { %7165 = vmatmul.mubr.msk.bf16.gmra.mrb[24].mxu0 %vm266_vm0, %v8517_v28 }
  0x5c   : > { %7168 = vmatprep.mubr.msk.bf16.mxu0 %vm266_vm0, %v8519_v29 }
  0x63   : > { %7169 = vmatmul.mubr.msk.bf16.gmra.mrb[28].mxu0 %vm266_vm0, %v8525_v34 }
  0x64   : > { %7174 = vmatprep.mubr.msk.bf16.mxu0 %vm266_vm0, %v451_v35  ;;  %v950_v35 = vld [vmem:[#allocation2 + $0x2] sm:$0xff] }
  0x65   : > { %v982_v38 = vpack.c.bf16 %v951_v36, %v950_v35  ;;  %v972_v35 = vld [vmem:[#allocation2 + $0x10a] sm:$0xff]  ;;  %v973_v36 = vld [vmem:[#allocation2 + $0x112] sm:$0xff] }
  0x66   : > { %v8645_v43 = vpack.c.bf16 %v973_v36, %v972_v35  ;;  %v2453_v35 = vld [vmem:[#allocation2 + $0xc1] sm:$0xff]  ;;  %v2454_v36 = vld [vmem:[#allocation2 + $0xc9] sm:$0xff] }
  0x6b   : > { %7175 = vmatmul.mubr.msk.bf16.vlgmr.msra.gmra.mrb[0].mxu0 %vm266_vm0, %v8530_v40 }
  0x6c   : > { %7207 = vmatpush3.bf16.msra.mxu0 %v8467_v56  ;;  %7178 = vmatprep.mubr.msk.bf16.mxu0 %vm266_vm0, %v8532_v41  ;;  %v433_v56 = vld [vmem:[#allocation2 + $0xa8] sm:$0xff] }
  0x6d   : > { %7240 = vmatprep.subr.bf16.mxu0 %v8537_v42  ;;  %v8561_v61 = vpack.c.bf16 %v434_v58, %v433_v56  ;;  %v958_v56 = vld [vmem:[#allocation2 + $0x62] sm:$0xff]  ;;  %v959_v58 = vld [vmem:[#allocation2 + $0x6a] sm:$0xff] }
  0x6e   : > { %v8615_v60 = vpack.c.bf16 %v959_v58, %v958_v56  ;;  %v979_v56 = vld [vmem:[#allocation2 + $0x15a] sm:$0xff]  ;;  %v8653_v58 = vpack.c.bf16 %v977_v51, %v976_v45 }
  0x73   : > { %7179 = vmatmul.mubr.msk.bf16.gmra.mrb[4].mxu0 %vm266_vm0, %v8545_v47 }
  0x74   : > { %7182 = vmatprep.mubr.msk.bf16.mxu0 %vm266_vm0, %v8547_v48 }
  0x7b   : > { %7183 = vmatmul.mubr.msk.bf16.gmra.mrb[8].mxu0 %vm266_vm0, %v8553_v53 }
  0x7c   : > { %7186 = vmatprep.mubr.msk.bf16.mxu0 %vm266_vm0, %v8555_v55 }
  0x83   : > { %7187 = vmatmul.mubr.msk.bf16.gmra.mrb[12].mxu0 %vm266_vm0, %v8561_v61 }
  0x84   : > { %7190 = vmatprep.mubr.msk.bf16.mxu0 %vm266_vm0, %v8563_v0 }
  0x8b   : > { %7191 = vmatmul.mubr.msk.bf16.gmra.mrb[16].mxu0 %vm266_vm0, %v8569_v7 }
  0x8c   : > { %7194 = vmatprep.mubr.msk.bf16.mxu0 %vm266_vm0, %v8571_v8 }
  0x93   : > { %7195 = vmatmul.mubr.msk.bf16.gmra.mrb[20].mxu0 %vm266_vm0, %v8577_v15 }
  0x94   : > { %7198 = vmatprep.mubr.msk.bf16.mxu0 %vm266_vm0, %v8579_v18 }
  0x9b   : > { %7199 = vmatmul.mubr.msk.bf16.gmra.mrb[24].mxu0 %vm266_vm0, %v8586_v26 }
  0x9c   : > { %7202 = vmatprep.mubr.msk.bf16.mxu0 %vm266_vm0, %v8588_v31 }
  0xa3   : > { %7203 = vmatmul.mubr.msk.bf16.gmra.mrb[28].mxu0 %vm266_vm0, %v8596_v37 }
  0xa4   : > { %7208 = vmatprep.mubr.msk.bf16.mxu0 %vm266_vm0, %v982_v38  ;;  %v974_v38 = vld [vmem:[#allocation2 + $0x122] sm:$0xff] }
  0xa5   : > { %v8647_v44 = vpack.c.bf16 %v975_v39, %v974_v38  ;;  %v2478_v38 = vpack.c.bf16 %v2452_v30, %v2451_v27  ;;  %v2479_v39 = vpack.c.bf16 %v2454_v36, %v2453_v35 }
  0xab   : > { %7209 = vmatmul.mubr.msk.bf16.vlgmr.msra.gmra.mrb[0].mxu0 %vm266_vm0, %v8601_v46 }
  0xac   : > { %7241 = vmatpush3.bf16.msra.mxu0 %v8537_v42  ;;  %7212 = vmatprep.mubr.msk.bf16.mxu0 %vm266_vm0, %v8603_v49  ;;  %v961_v42 = vld [vmem:[#allocation2 + $0x82] sm:$0xff] }
  0xad   : > { %7274 = vmatprep.subr.bf16.mxu0 %v8275_v50  ;;  %v8621_v6 = vpack.c.bf16 %v961_v42, %v960_v1  ;;  %v8655_v1 = vpack.c.bf16 %v979_v56, %v978_v52  ;;  %v980_v42 = vld [vmem:[#allocation2 + $0x16a] sm:$0xff] }
  0xae   : > { %v8661_v3 = vpack.c.bf16 %v981_v2, %v980_v42 }
  0xb3   : > { %7213 = vmatmul.mubr.msk.bf16.gmra.mrb[4].mxu0 %vm266_vm0, %v8613_v59 }
  0xb4   : > { %7216 = vmatprep.mubr.msk.bf16.mxu0 %vm266_vm0, %v8615_v60 }
  0xbb   : > { %7217 = vmatmul.mubr.msk.bf16.gmra.mrb[8].mxu0 %vm266_vm0, %v8621_v6 }
  0xbc   : > { %7220 = vmatprep.mubr.msk.bf16.mxu0 %vm266_vm0, %v8623_v9 }
  0xc3   : > { %7221 = vmatmul.mubr.msk.bf16.gmra.mrb[12].mxu0 %vm266_vm0, %v8629_v20 }
  0xc4   : > { %7224 = vmatprep.mubr.msk.bf16.mxu0 %vm266_vm0, %v8631_v21 }
  0xcb   : > { %7225 = vmatmul.mubr.msk.bf16.gmra.mrb[16].mxu0 %vm266_vm0, %v8637_v32 }
  0xcc   : > { %7228 = vmatprep.mubr.msk.bf16.mxu0 %vm266_vm0, %v8639_v33 }
  0xd3   : > { %7229 = vmatmul.mubr.msk.bf16.gmra.mrb[20].mxu0 %vm266_vm0, %v8645_v43 }
  0xd4   : > { %7232 = vmatprep.mubr.msk.bf16.mxu0 %vm266_vm0, %v8647_v44 }
  0xdb   : > { %7233 = vmatmul.mubr.msk.bf16.gmra.mrb[24].mxu0 %vm266_vm0, %v8653_v58 }
  0xdc   : > { %7236 = vmatprep.mubr.msk.bf16.mxu0 %vm266_vm0, %v8655_v1 }
  0xe3   : > { %7237 = vmatmul.mubr.msk.bf16.gmra.mrb[28].mxu0 %vm266_vm0, %v8661_v3 }
  0xe4   : > { %7242 = vmatprep.mubr.msk.bf16.mxu0 %vm266_vm0, %v8530_v40  ;;  %v1278_v40 = vld [vmem:[#allocation2 + $0x180] sm:$0xff] }
  0xeb   : > { %7243 = vmatmul.mubr.msk.bf16.vlgmr.msra.gmra.mrb[0].mxu0 %vm266_vm0, %v8532_v41 }
  0xec   : > { %7275 = vmatpush3.bf16.msra.mxu0 %v8275_v50  ;;  %7246 = vmatprep.mubr.msk.bf16.mxu0 %vm266_vm0, %v8545_v47  ;;  %v1279_v50 = vld [vmem:[#allocation2 + $0x188] sm:$0xff] }
  0xed   : > { %7308 = vmatprep.subr.bf16.mxu0 %v8276_v12  ;;  %v8698_v13 = vpack.c.bf16 %v1279_v50, %v1278_v40 }
  0xf3   : > { %7247 = vmatmul.mubr.msk.bf16.gmra.mrb[4].mxu0 %vm266_vm0, %v8547_v48 }
  0xf4   : > { %7250 = vmatprep.mubr.msk.bf16.mxu0 %vm266_vm0, %v8553_v53 }
  0xfb   : > { %7251 = vmatmul.mubr.msk.bf16.gmra.mrb[8].mxu0 %vm266_vm0, %v8555_v55 }
  0xfc   : > { %7254 = vmatprep.mubr.msk.bf16.mxu0 %vm266_vm0, %v8561_v61 }
 0x103   : > { %7255 = vmatmul.mubr.msk.bf16.gmra.mrb[12].mxu0 %vm266_vm0, %v8563_v0 }
 0x104   : > { %7258 = vmatprep.mubr.msk.bf16.mxu0 %vm266_vm0, %v8569_v7 }
 0x10b   : > { %7259 = vmatmul.mubr.msk.bf16.gmra.mrb[16].mxu0 %vm266_vm0, %v8571_v8 }
 0x10c   : > { %7262 = vmatprep.mubr.msk.bf16.mxu0 %vm266_vm0, %v8577_v15 }
 0x113   : > { %7263 = vmatmul.mubr.msk.bf16.gmra.mrb[20].mxu0 %vm266_vm0, %v8579_v18 }
 0x114   : > { %7266 = vmatprep.mubr.msk.bf16.mxu0 %vm266_vm0, %v8586_v26 }
 0x11b   : > { %7267 = vmatmul.mubr.msk.bf16.gmra.mrb[24].mxu0 %vm266_vm0, %v8588_v31 }
 0x11c   : > { %7270 = vmatprep.mubr.msk.bf16.mxu0 %vm266_vm0, %v8596_v37 }
 0x123   : > { %7271 = vmatmul.mubr.msk.bf16.gmra.mrb[28].mxu0 %vm266_vm0, %v8698_v13 }
 0x124   : > { %7276 = vmatprep.mubr.msk.bf16.mxu0 %vm266_vm0, %v8462_v54  ;;  %v1576_v54 = vld [vmem:[#allocation2 + $0x181] sm:$0xff] }
 0x12b   : > { %7277 = vmatmul.mubr.msk.bf16.vlgmr.msra.gmra.mrb[0].mxu0 %vm266_vm0, %v8469_v57  ;;  %v1577_v57 = vld [vmem:[#allocation2 + $0x189] sm:$0xff] }
 0x12c   : > { %7309 = vmatpush3.bf16.msra.mxu0 %v8276_v12  ;;  %7280 = vmatprep.mubr.msk.bf16.mxu0 %vm266_vm0, %v8477_v62  ;;  %v8735_v62 = vpack.c.bf16 %v1577_v57, %v1576_v54 }
 0x12d   : > { %7342 = vmatprep.subr.bf16.mxu0 %v8277_v14 }
 0x133   : > { %7281 = vmatmul.mubr.msk.bf16.gmra.mrb[4].mxu0 %vm266_vm0, %v8479_v63  ;;  %v8278_v63 = vld [vmem:[%s9525_s1 + $0x38] sm:$0xff]  }
 0x134   : > { %7284 = vmatprep.mubr.msk.bf16.mxu0 %vm266_vm0, %v8485_v4  ;;  %v1874_v4 = vld [vmem:[#allocation2 + $0x182] sm:$0xff] }
 0x13b   : > { %7285 = vmatmul.mubr.msk.bf16.gmra.mrb[8].mxu0 %vm266_vm0, %v8487_v5  ;;  %v1875_v5 = vld [vmem:[#allocation2 + $0x18a] sm:$0xff] }
 0x13c   : > { %7288 = vmatprep.mubr.msk.bf16.mxu0 %vm266_vm0, %v8493_v10  ;;  %v8772_v10 = vpack.c.bf16 %v1875_v5, %v1874_v4 }
 0x143   : > { %7289 = vmatmul.mubr.msk.bf16.gmra.mrb[12].mxu0 %vm266_vm0, %v8495_v11  ;;  %v8279_v11 = vld [vmem:[%s9525_s1 + $0x40] sm:$0xff]  }
 0x144   : > { %7292 = vmatprep.mubr.msk.bf16.mxu0 %vm266_vm0, %v8501_v16 }
 0x14b   : > { %7293 = vmatmul.mubr.msk.bf16.gmra.mrb[16].mxu0 %vm266_vm0, %v8503_v17 }
 0x14c   : > { %7296 = vmatprep.mubr.msk.bf16.mxu0 %vm266_vm0, %v8509_v22 }
 0x153   : > { %7297 = vmatmul.mubr.msk.bf16.gmra.mrb[20].mxu0 %vm266_vm0, %v8511_v23 }
 0x154   : > { %7300 = vmatprep.mubr.msk.bf16.mxu0 %vm266_vm0, %v8517_v28 }
 0x15b   : > { %7301 = vmatmul.mubr.msk.bf16.gmra.mrb[24].mxu0 %vm266_vm0, %v8519_v29 }
 0x15c   : > { %7304 = vmatprep.mubr.msk.bf16.mxu0 %vm266_vm0, %v8525_v34 }
 0x163   : > { %7305 = vmatmul.mubr.msk.bf16.gmra.mrb[28].mxu0 %vm266_vm0, %v8735_v62 }
 0x164   : > { %7310 = vmatprep.mubr.msk.bf16.mxu0 %vm266_vm0, %v8601_v46  ;;  %v2449_v46 = vld [vmem:[#allocation2 + $0x91] sm:$0xff] }
 0x165   : > { %v2477_v25 = vpack.c.bf16 %v2450_v19, %v2449_v46 }
 0x16b   : > { %7311 = vmatmul.mubr.msk.bf16.vlgmr.msra.gmra.mrb[0].mxu0 %vm266_vm0, %v8603_v49 }
 0x16c   : > { %7343 = vmatpush3.bf16.msra.mxu0 %v8277_v14  ;;  %7314 = vmatprep.mubr.msk.bf16.mxu0 %vm266_vm0, %v8613_v59 }
 0x16d   : > { %7376 = vmatprep.subr.bf16.mxu0 %v8278_v63 }
 0x173   : > { %7315 = vmatmul.mubr.msk.bf16.gmra.mrb[4].mxu0 %vm266_vm0, %v8615_v60 }
 0x174   : > { %7318 = vmatprep.mubr.msk.bf16.mxu0 %vm266_vm0, %v8621_v6 }
 0x17b   : > { %7319 = vmatmul.mubr.msk.bf16.gmra.mrb[8].mxu0 %vm266_vm0, %v8623_v9 }
 0x17c   : > { %7322 = vmatprep.mubr.msk.bf16.mxu0 %vm266_vm0, %v8629_v20 }
 0x183   : > { %7323 = vmatmul.mubr.msk.bf16.gmra.mrb[12].mxu0 %vm266_vm0, %v8631_v21 }
 0x184   : > { %7326 = vmatprep.mubr.msk.bf16.mxu0 %vm266_vm0, %v8637_v32 }
 0x18b   : > { %7327 = vmatmul.mubr.msk.bf16.gmra.mrb[16].mxu0 %vm266_vm0, %v8639_v33 }
 0x18c   : > { %7330 = vmatprep.mubr.msk.bf16.mxu0 %vm266_vm0, %v8645_v43 }
 0x193   : > { %7331 = vmatmul.mubr.msk.bf16.gmra.mrb[20].mxu0 %vm266_vm0, %v8647_v44 }
 0x194   : > { %7334 = vmatprep.mubr.msk.bf16.mxu0 %vm266_vm0, %v8653_v58 }
 0x19b   : > { %7335 = vmatmul.mubr.msk.bf16.gmra.mrb[24].mxu0 %vm266_vm0, %v8655_v1 }
 0x19c   : > { %7338 = vmatprep.mubr.msk.bf16.mxu0 %vm266_vm0, %v8661_v3 }
 0x1a3   : > { %7339 = vmatmul.mubr.msk.bf16.gmra.mrb[28].mxu0 %vm266_vm0, %v8772_v10 }
 0x1a4   : > { %7344 = vmatprep.mubr.msk.bf16.mxu0 %vm266_vm0, %v8532_v41  ;;  %v2173_v41 = vld [vmem:[#allocation2 + $0x198] sm:$0xff] }
 0x1ab   : > { %7345 = vmatmul.mubr.msk.bf16.vlgmr.msra.gmra.mrb[0].mxu0 %vm266_vm0, %v8545_v47  ;;  %v2174_v47 = vld [vmem:[#allocation2 + $0x1a0] sm:$0xff] }
 0x1ac   : > { %7377 = vmatpush3.bf16.msra.mxu0 %v8278_v63  ;;  %7348 = vmatprep.mubr.msk.bf16.mxu0 %vm266_vm0, %v8547_v48  ;;  %v2441_v48 = vld [vmem:[#allocation2 + $0x31] sm:$0xff] }
 0x1ad   : > { %7410 = vmatprep.subr.bf16.mxu0 %v8279_v11 }
 0x1b3   : > { %7349 = vmatmul.mubr.msk.bf16.gmra.mrb[4].mxu0 %vm266_vm0, %v8553_v53  ;;  %v2442_v53 = vld [vmem:[#allocation2 + $0x39] sm:$0xff] }
 0x1b4   : > { %7352 = vmatprep.mubr.msk.bf16.mxu0 %vm266_vm0, %v8555_v55  ;;  %v2190_v55 = vpack.c.bf16 %v2174_v47, %v2173_v41 }
 0x1bb   : > { %7353 = vmatmul.mubr.msk.bf16.gmra.mrb[8].mxu0 %vm266_vm0, %v8561_v61  ;;  %v2473_v61 = vpack.c.bf16 %v2442_v53, %v2441_v48 }
 0x1bc   : > { %7356 = vmatprep.mubr.msk.bf16.mxu0 %vm266_vm0, %v8563_v0  ;;  %v2443_v0 = vld [vmem:[#allocation2 + $0x49] sm:$0xff] }
 0x1c3   : > { %7357 = vmatmul.mubr.msk.bf16.gmra.mrb[12].mxu0 %vm266_vm0, %v8569_v7  ;;  %v2444_v7 = vld [vmem:[#allocation2 + $0x51] sm:$0xff] }
 0x1c4   : > { %7360 = vmatprep.mubr.msk.bf16.mxu0 %vm266_vm0, %v8571_v8  ;;  %v2445_v8 = vld [vmem:[#allocation2 + $0x61] sm:$0xff] }
 0x1cb   : > { %7361 = vmatmul.mubr.msk.bf16.gmra.mrb[16].mxu0 %vm266_vm0, %v8577_v15  ;;  %v2446_v15 = vld [vmem:[#allocation2 + $0x69] sm:$0xff] }
 0x1cc   : > { %7364 = vmatprep.mubr.msk.bf16.mxu0 %vm266_vm0, %v8579_v18  ;;  %v2474_v18 = vpack.c.bf16 %v2444_v7, %v2443_v0 }
 0x1d3   : > { %7365 = vmatmul.mubr.msk.bf16.gmra.mrb[20].mxu0 %vm266_vm0, %v8586_v26  ;;  %v2475_v26 = vpack.c.bf16 %v2446_v15, %v2445_v8 }
 0x1d4   : > { %7368 = vmatprep.mubr.msk.bf16.mxu0 %vm266_vm0, %v8588_v31  ;;  %v2447_v31 = vld [vmem:[#allocation2 + $0x79] sm:$0xff] }
 0x1db   : > { %7369 = vmatmul.mubr.msk.bf16.gmra.mrb[24].mxu0 %vm266_vm0, %v8596_v37  ;;  %v2448_v37 = vld [vmem:[#allocation2 + $0x81] sm:$0xff] }
 0x1dc   : > { %7372 = vmatprep.mubr.msk.bf16.mxu0 %vm266_vm0, %v8698_v13  ;;  %v2476_v24 = vpack.c.bf16 %v2448_v37, %v2447_v31 }
 0x1e3   : > { %7373 = vmatmul.mubr.msk.bf16.gmra.mrb[28].mxu0 %vm266_vm0, %v2190_v55 }
 0x1e4   : > { %7378 = vmatprep.mubr.msk.bf16.mxu0 %vm266_vm0, %v2473_v61 }
 0x1eb   : > { %7379 = vmatmul.mubr.msk.bf16.vlgmr.msra.gmra.mrb[0].mxu0 %vm266_vm0, %v2474_v18 }
 0x1ec   : > { %7411 = vmatpush3.bf16.msra.mxu0 %v8279_v11  ;;  %7382 = vmatprep.mubr.msk.bf16.mxu0 %vm266_vm0, %v2475_v26 }
 0x1f3   : > { %7383 = vmatmul.mubr.msk.bf16.gmra.mrb[4].mxu0 %vm266_vm0, %v2476_v24 }
 0x1f4   : > { %7386 = vmatprep.mubr.msk.bf16.mxu0 %vm266_vm0, %v2477_v25 }
 0x1fb   : > { %7387 = vmatmul.mubr.msk.bf16.gmra.mrb[8].mxu0 %vm266_vm0, %v2478_v38 }
 0x1fc   : > { %7390 = vmatprep.mubr.msk.bf16.mxu0 %vm266_vm0, %v2479_v39 }
 0x203   : > { %7391 = vmatmul.mubr.msk.bf16.gmra.mrb[12].mxu0 %vm266_vm0, %v8501_v16  ;;  %v2471_v16 = vld [vmem:[#allocation2 + $0x199] sm:$0xff] }
 0x204   : > { %7394 = vmatprep.mubr.msk.bf16.mxu0 %vm266_vm0, %v8503_v17  ;;  %v2472_v17 = vld [vmem:[#allocation2 + $0x1a1] sm:$0xff] }
 0x205   : > { %v2488_v45 = vpack.c.bf16 %v2472_v17, %v2471_v16 }
 0x20b   : > { %7395 = vmatmul.mubr.msk.bf16.gmra.mrb[16].mxu0 %vm266_vm0, %v8509_v22  ;;  %v2769_v22 = vld [vmem:[#allocation2 + $0x19a] sm:$0xff] }
 0x20c   : > { %7398 = vmatprep.mubr.msk.bf16.mxu0 %vm266_vm0, %v8511_v23  ;;  %v2770_v23 = vld [vmem:[#allocation2 + $0x1a2] sm:$0xff] }
 0x213   : > { %7399 = vmatmul.mubr.msk.bf16.gmra.mrb[20].mxu0 %vm266_vm0, %v8517_v28  ;;  %v2786_v28 = vpack.c.bf16 %v2770_v23, %v2769_v22 }
 0x214   : > { %7402 = vmatprep.mubr.msk.bf16.mxu0 %vm266_vm0, %v8519_v29  ;;  %v8280_v29 = vld [vmem:[%s9527_s3 + $0x8] sm:$0xff]  }
 0x215   : > { %7444 = vmatprep.subr.bf16.mxu1 %v8280_v29 }
 0x216   : > { %7445 = vmatpush3.bf16.msra.mxu1 %v8280_v29 }
 0x21b   : > { %7403 = vmatmul.mubr.msk.bf16.gmra.mrb[24].mxu0 %vm266_vm0, %v8525_v34  ;;  %v3383_v34 = vld [vmem:[#allocation2 + $0x1] sm:$0xff] }
 0x21c   : > { %7406 = vmatprep.mubr.msk.bf16.mxu0 %vm266_vm0, %v8735_v62 }
 0x223   : > { %7407 = vmatmul.mubr.msk.bf16.gmra.mrb[28].mxu0 %vm266_vm0, %v2488_v45 }
 0x224   : > { %7412 = vmatprep.mubr.msk.bf16.mxu0 %vm266_vm0, %v8603_v49  ;;  %v3384_v49 = vld [vmem:[#allocation2 + $0x9] sm:$0xff] }
 0x22b   : > { %7413 = vmatmul.mubr.msk.bf16.vlgmr.msra.gmra.mrb[0].mxu0 %vm266_vm0, %v8613_v59  ;;  %v3415_v59 = vpack.c.bf16 %v3384_v49, %v3383_v34  ;;  %v8927_v34 = vld [vmem:[%s9527_s3 + $0x10] sm:$0xff]  }
 0x22c   : > { %7416 = vmatprep.mubr.msk.bf16.mxu0 %vm266_vm0, %v8615_v60  ;;  %v8872_v60 = vld [vmem:[%s9527_s3] sm:$0xff]  }
 0x22d   : > { %7446 = vmatprep.mubr.msk.bf16.mxu1 %vm266_vm0, %v3415_v59  ;;  %7478 = vmatprep.subr.bf16.mxu1 %v8872_v60 }
 0x233   : > { %7417 = vmatmul.mubr.msk.bf16.gmra.mrb[4].mxu0 %vm266_vm0, %v8621_v6  ;;  %v8878_v6 = vld [vmem:[%s9526_s2] ss:$0 sm:$0xff] }
 0x234   : > { %7420 = vmatprep.mubr.msk.bf16.mxu0 %vm266_vm0, %v8623_v9 }
 0x23b   : > { %7421 = vmatmul.mubr.msk.bf16.gmra.mrb[8].mxu0 %vm266_vm0, %v8629_v20 }
 0x23c   : > { %7424 = vmatprep.mubr.msk.bf16.mxu0 %vm266_vm0, %v8631_v21 }
 0x243   : > { %7425 = vmatmul.mubr.msk.bf16.gmra.mrb[12].mxu0 %vm266_vm0, %v8637_v32 }
 0x244   : > { %7428 = vmatprep.mubr.msk.bf16.mxu0 %vm266_vm0, %v8639_v33 }
 0x24b   : > { %7429 = vmatmul.mubr.msk.bf16.gmra.mrb[16].mxu0 %vm266_vm0, %v8645_v43 }
 0x24c   : > { %7432 = vmatprep.mubr.msk.bf16.mxu0 %vm266_vm0, %v8647_v44 }
 0x253   : > { %7433 = vmatmul.mubr.msk.bf16.gmra.mrb[20].mxu0 %vm266_vm0, %v8653_v58 }
 0x254   : > { %7436 = vmatprep.mubr.msk.bf16.mxu0 %vm266_vm0, %v8655_v1 }
 0x25b   : > { %7437 = vmatmul.mubr.msk.bf16.gmra.mrb[24].mxu0 %vm266_vm0, %v8661_v3 }
 0x25c   : > { %7440 = vmatprep.mubr.msk.bf16.mxu0 %vm266_vm0, %v8772_v10 }
 0x263   : > { %7441 = vmatmul.mubr.msk.bf16.gmra.mrb[28].mxu0 %vm266_vm0, %v2786_v28 }
 0x2fe   : > { %v7414_v9 = vpop.f32.mrb[0].mxu0 }
 0x2ff   : > { %v3046_v20 = vadd.f32 %v7414_v9, %v8878_v6  ;;  %v2878_v21 = vpop.f32.mrb[1].mxu0 }
 0x300   : > { %v3044_v32 = vadd.f32 %v8878_v6, %v2878_v21  ;;  %v7415_v33 = vpop.f32.mrb[2].mxu0 }
 0x301   : > { %v3078_v43 = vmax.f32 %v3046_v20, 0.0  ;;  %v3047_v44 = vadd.f32 %v7415_v33, %v8878_v6  ;;  %v2881_v51 = vpop.f32.mrb[3].mxu0 }
 0x302   : > { %v3076_v52 = vmax.f32 %v3044_v32, 0.0  ;;  %v3045_v56 = vadd.f32 %v8878_v6, %v2881_v51 }
 0x303   : > { %v6691_v58 = vpack.c.bf16 %v3078_v43, %v3078_v43  ;;  %v3079_v1 = vmax.f32 %v3047_v44, 0.0 }
 0x304   : > { %v6689_v42 = vpack.c.bf16 %v3076_v52, %v3076_v52  ;;  %v3077_v2 = vmax.f32 %v3045_v56, 0.0 }
 0x305   : > { %3239 = vst.msk [vmem:[%s8887_s7 + $0x8] sm:$0xf] %vm3236_vm2, %v6691_v58  ;;  %v3109_v3 = vpack.c.bf16 %v3079_v1, %v3078_v43  ;;  %v6692_v12 = vpack.c.bf16 %v3079_v1, %v3079_v1 }
 0x306   : > { %3237 = vst.msk [vmem:[%s8887_s7] sm:$0xf] %vm3236_vm2, %v6689_v42  ;;  %v3108_v40 = vpack.c.bf16 %v3077_v2, %v3076_v52  ;;  %v6690_v50 = vpack.c.bf16 %v3077_v2, %v3077_v2  ;;  %v7418_v13 = vpop.f32.mrb[4].mxu0 }
 0x307   : > { %3240 = vst.msk [vmem:[%s8887_s7 + $0xc] sm:$0xf] %vm3236_vm2, %v6692_v12  ;;  %v3271_v14 = vunpack.c.l.bf16 %v3109_v3  ;;  %v3272_v54 = vunpack.c.h.bf16 %v3109_v3  ;;  %v3050_v57 = vadd.f32 %v7418_v13, %v8878_v6  ;;  %v2894_v62 = vpop.f32.mrb[5].mxu0 }
 0x308   : > { %3238 = vst.msk [vmem:[%s8887_s7 + $0x4] sm:$0xf] %vm3236_vm2, %v6690_v50  ;;  %v3269_v63 = vunpack.c.l.bf16 %v3108_v40  ;;  %v3270_v4 = vunpack.c.h.bf16 %v3108_v40  ;;  %v3048_v5 = vadd.f32 %v8878_v6, %v2894_v62  ;;  %v7419_v10 = vpop.f32.mrb[6].mxu0 }
 0x309   : > { %3303 = vst.msk [vmem:[#allocation2 + $0x31] sm:$0xff] %vm266_vm0, %v3271_v14  ;;  %3304 = vst.msk [vmem:[#allocation2 + $0x39] sm:$0xff] %vm266_vm0, %v3272_v54  ;;  %v3082_v11 = vmax.f32 %v3050_v57, 0.0  ;;  %v3051_v41 = vadd.f32 %v7419_v10, %v8878_v6  ;;  %v2897_v47 = vpop.f32.mrb[7].mxu0 }
 0x30a   : > { %3301 = vst.msk [vmem:[#allocation2 + $0x19] sm:$0xff] %vm266_vm0, %v3269_v63  ;;  %3302 = vst.msk [vmem:[#allocation2 + $0x21] sm:$0xff] %vm266_vm0, %v3270_v4  ;;  %v3080_v48 = vmax.f32 %v3048_v5, 0.0  ;;  %v3049_v53 = vadd.f32 %v8878_v6, %v2897_v47 }
 0x30b   : > { %v6695_v55 = vpack.c.bf16 %v3082_v11, %v3082_v11  ;;  %v3083_v61 = vmax.f32 %v3051_v41, 0.0 }
 0x30c   : > { %v6693_v0 = vpack.c.bf16 %v3080_v48, %v3080_v48  ;;  %v3081_v7 = vmax.f32 %v3049_v53, 0.0 }
 0x30d   : > { %3243 = vst.msk [vmem:[%s8887_s7 + $0x18] sm:$0xf] %vm3236_vm2, %v6695_v55  ;;  %v3111_v8 = vpack.c.bf16 %v3083_v61, %v3082_v11  ;;  %v6696_v15 = vpack.c.bf16 %v3083_v61, %v3083_v61 }
 0x30e   : > { %3241 = vst.msk [vmem:[%s8887_s7 + $0x10] sm:$0xf] %vm3236_vm2, %v6693_v0  ;;  %v3110_v18 = vpack.c.bf16 %v3081_v7, %v3080_v48  ;;  %v6694_v26 = vpack.c.bf16 %v3081_v7, %v3081_v7  ;;  %v7422_v31 = vpop.f32.mrb[8].mxu0 }
 0x30f   : > { %3244 = vst.msk [vmem:[%s8887_s7 + $0x1c] sm:$0xf] %vm3236_vm2, %v6696_v15  ;;  %v3275_v37 = vunpack.c.l.bf16 %v3111_v8  ;;  %v3276_v46 = vunpack.c.h.bf16 %v3111_v8  ;;  %v3054_v19 = vadd.f32 %v7422_v31, %v8878_v6  ;;  %v2910_v24 = vpop.f32.mrb[9].mxu0 }
 0x310   : > { %3242 = vst.msk [vmem:[%s8887_s7 + $0x14] sm:$0xf] %vm3236_vm2, %v6694_v26  ;;  %v3273_v25 = vunpack.c.l.bf16 %v3110_v18  ;;  %v3274_v27 = vunpack.c.h.bf16 %v3110_v18  ;;  %v3052_v30 = vadd.f32 %v8878_v6, %v2910_v24  ;;  %v7423_v35 = vpop.f32.mrb[10].mxu0  ;;  %v3387_v36 = vld [vmem:[#allocation2 + $0x31] sm:$0xff]  ;;  %v3388_v38 = vld [vmem:[#allocation2 + $0x39] sm:$0xff] }
 0x311   : > { %3307 = vst.msk [vmem:[#allocation2 + $0x61] sm:$0xff] %vm266_vm0, %v3275_v37  ;;  %3308 = vst.msk [vmem:[#allocation2 + $0x69] sm:$0xff] %vm266_vm0, %v3276_v46  ;;  %v3086_v39 = vmax.f32 %v3054_v19, 0.0  ;;  %v3055_v16 = vadd.f32 %v7423_v35, %v8878_v6  ;;  %v2913_v17 = vpop.f32.mrb[11].mxu0  ;;  %v3385_v45 = vld [vmem:[#allocation2 + $0x19] sm:$0xff]  ;;  %v3386_v22 = vld [vmem:[#allocation2 + $0x21] sm:$0xff]  ;;  %v8929_v9 = vpack.c.bf16 %v3388_v38, %v3387_v36 }
 0x312   : > { %3305 = vst.msk [vmem:[#allocation2 + $0x49] sm:$0xff] %vm266_vm0, %v3273_v25  ;;  %3306 = vst.msk [vmem:[#allocation2 + $0x51] sm:$0xff] %vm266_vm0, %v3274_v27  ;;  %v3084_v23 = vmax.f32 %v3052_v30, 0.0  ;;  %v3053_v28 = vadd.f32 %v8878_v6, %v2913_v17  ;;  %v8922_v29 = vpack.c.bf16 %v3386_v22, %v3385_v45 }
 0x313   : > { %v6699_v49 = vpack.c.bf16 %v3086_v39, %v3086_v39  ;;  %v3087_v59 = vmax.f32 %v3055_v16, 0.0 }
 0x314   : > { %v6697_v20 = vpack.c.bf16 %v3084_v23, %v3084_v23  ;;  %v3085_v21 = vmax.f32 %v3053_v28, 0.0  ;;  %7447 = vmatmul.mubr.msk.bf16.vlgmr.msra.gmra.mrb[0].mxu1 %vm266_vm0, %v8922_v29 }
 0x315   : > { %3247 = vst.msk [vmem:[%s8887_s7 + $0x28] sm:$0xf] %vm3236_vm2, %v6699_v49  ;;  %v3113_v32 = vpack.c.bf16 %v3087_v59, %v3086_v39  ;;  %v6700_v33 = vpack.c.bf16 %v3087_v59, %v3087_v59  ;;  %7479 = vmatpush3.bf16.msra.mxu1 %v8872_v60  ;;  %7450 = vmatprep.mubr.msk.bf16.mxu1 %vm266_vm0, %v8929_v9 }
 0x316   : > { %3245 = vst.msk [vmem:[%s8887_s7 + $0x20] sm:$0xf] %vm3236_vm2, %v6697_v20  ;;  %v3112_v43 = vpack.c.bf16 %v3085_v21, %v3084_v23  ;;  %v6698_v44 = vpack.c.bf16 %v3085_v21, %v3085_v21  ;;  %v7426_v51 = vpop.f32.mrb[12].mxu0  ;;  %7512 = vmatprep.subr.bf16.mxu1 %v8927_v34 }
 0x317   : > { %3248 = vst.msk [vmem:[%s8887_s7 + $0x2c] sm:$0xf] %vm3236_vm2, %v6700_v33  ;;  %v3279_v52 = vunpack.c.l.bf16 %v3113_v32  ;;  %v3280_v56 = vunpack.c.h.bf16 %v3113_v32  ;;  %v3058_v58 = vadd.f32 %v7426_v51, %v8878_v6  ;;  %v2926_v1 = vpop.f32.mrb[13].mxu0 }
 0x318   : > { %3246 = vst.msk [vmem:[%s8887_s7 + $0x24] sm:$0xf] %vm3236_vm2, %v6698_v44  ;;  %v3277_v60 = vunpack.c.l.bf16 %v3112_v43  ;;  %v3278_v42 = vunpack.c.h.bf16 %v3112_v43  ;;  %v3056_v2 = vadd.f32 %v8878_v6, %v2926_v1  ;;  %v7427_v3 = vpop.f32.mrb[14].mxu0  ;;  %v3391_v12 = vld [vmem:[#allocation2 + $0x61] sm:$0xff]  ;;  %v3392_v40 = vld [vmem:[#allocation2 + $0x69] sm:$0xff] }
 0x319   : > { %3311 = vst.msk [vmem:[#allocation2 + $0x91] sm:$0xff] %vm266_vm0, %v3279_v52  ;;  %3312 = vst.msk [vmem:[#allocation2 + $0x99] sm:$0xff] %vm266_vm0, %v3280_v56  ;;  %v3090_v50 = vmax.f32 %v3058_v58, 0.0  ;;  %v3059_v13 = vadd.f32 %v7427_v3, %v8878_v6  ;;  %v2929_v14 = vpop.f32.mrb[15].mxu0  ;;  %v3389_v54 = vld [vmem:[#allocation2 + $0x49] sm:$0xff]  ;;  %v3390_v57 = vld [vmem:[#allocation2 + $0x51] sm:$0xff]  ;;  %v8955_v11 = vpack.c.bf16 %v3392_v40, %v3391_v12 }
 0x31a   : > { %3309 = vst.msk [vmem:[#allocation2 + $0x79] sm:$0xff] %vm266_vm0, %v3277_v60  ;;  %3310 = vst.msk [vmem:[#allocation2 + $0x81] sm:$0xff] %vm266_vm0, %v3278_v42  ;;  %v3088_v62 = vmax.f32 %v3056_v2, 0.0  ;;  %v3057_v63 = vadd.f32 %v8878_v6, %v2929_v14  ;;  %v8953_v4 = vpack.c.bf16 %v3390_v57, %v3389_v54 }
 0x31b   : > { %v6703_v5 = vpack.c.bf16 %v3090_v50, %v3090_v50  ;;  %v3091_v10 = vmax.f32 %v3059_v13, 0.0 }
 0x31c   : > { %v6701_v41 = vpack.c.bf16 %v3088_v62, %v3088_v62  ;;  %v3089_v47 = vmax.f32 %v3057_v63, 0.0  ;;  %7451 = vmatmul.mubr.msk.bf16.gmra.mrb[4].mxu1 %vm266_vm0, %v8953_v4 }
 0x31d   : > { %3251 = vst.msk [vmem:[%s8887_s7 + $0x38] sm:$0xf] %vm3236_vm2, %v6703_v5  ;;  %v3115_v48 = vpack.c.bf16 %v3091_v10, %v3090_v50  ;;  %v6704_v53 = vpack.c.bf16 %v3091_v10, %v3091_v10  ;;  %7454 = vmatprep.mubr.msk.bf16.mxu1 %vm266_vm0, %v8955_v11 }
 0x31e   : > { %3249 = vst.msk [vmem:[%s8887_s7 + $0x30] sm:$0xf] %vm3236_vm2, %v6701_v41  ;;  %v3114_v55 = vpack.c.bf16 %v3089_v47, %v3088_v62  ;;  %v6702_v61 = vpack.c.bf16 %v3089_v47, %v3089_v47  ;;  %v7430_v0 = vpop.f32.mrb[16].mxu0 }
 0x31f   : > { %3252 = vst.msk [vmem:[%s8887_s7 + $0x3c] sm:$0xf] %vm3236_vm2, %v6704_v53  ;;  %v3283_v7 = vunpack.c.l.bf16 %v3115_v48  ;;  %v3284_v8 = vunpack.c.h.bf16 %v3115_v48  ;;  %v3062_v15 = vadd.f32 %v7430_v0, %v8878_v6  ;;  %v2942_v18 = vpop.f32.mrb[17].mxu0 }
 0x320   : > { %3250 = vst.msk [vmem:[%s8887_s7 + $0x34] sm:$0xf] %vm3236_vm2, %v6702_v61  ;;  %v3281_v26 = vunpack.c.l.bf16 %v3114_v55  ;;  %v3282_v31 = vunpack.c.h.bf16 %v3114_v55  ;;  %v3060_v37 = vadd.f32 %v8878_v6, %v2942_v18  ;;  %v7431_v46 = vpop.f32.mrb[18].mxu0  ;;  %v3395_v19 = vld [vmem:[#allocation2 + $0x91] sm:$0xff]  ;;  %v3396_v24 = vld [vmem:[#allocation2 + $0x99] sm:$0xff] }
 0x321   : > { %3315 = vst.msk [vmem:[#allocation2 + $0xc1] sm:$0xff] %vm266_vm0, %v3283_v7  ;;  %3316 = vst.msk [vmem:[#allocation2 + $0xc9] sm:$0xff] %vm266_vm0, %v3284_v8  ;;  %v3094_v25 = vmax.f32 %v3062_v15, 0.0  ;;  %v3063_v27 = vadd.f32 %v7431_v46, %v8878_v6  ;;  %v2945_v30 = vpop.f32.mrb[19].mxu0  ;;  %v3393_v35 = vld [vmem:[#allocation2 + $0x79] sm:$0xff]  ;;  %v3394_v36 = vld [vmem:[#allocation2 + $0x81] sm:$0xff]  ;;  %v8979_v22 = vpack.c.bf16 %v3396_v24, %v3395_v19 }
 0x322   : > { %3313 = vst.msk [vmem:[#allocation2 + $0xa9] sm:$0xff] %vm266_vm0, %v3281_v26  ;;  %3314 = vst.msk [vmem:[#allocation2 + $0xb1] sm:$0xff] %vm266_vm0, %v3282_v31  ;;  %v3092_v38 = vmax.f32 %v3060_v37, 0.0  ;;  %v3061_v39 = vadd.f32 %v8878_v6, %v2945_v30  ;;  %v8977_v16 = vpack.c.bf16 %v3394_v36, %v3393_v35 }
 0x323   : > { %v6707_v17 = vpack.c.bf16 %v3094_v25, %v3094_v25  ;;  %v3095_v45 = vmax.f32 %v3063_v27, 0.0 }
 0x324   : > { %v6705_v23 = vpack.c.bf16 %v3092_v38, %v3092_v38  ;;  %v3093_v28 = vmax.f32 %v3061_v39, 0.0  ;;  %7455 = vmatmul.mubr.msk.bf16.gmra.mrb[8].mxu1 %vm266_vm0, %v8977_v16 }
 0x325   : > { %3255 = vst.msk [vmem:[%s8887_s7 + $0x48] sm:$0xf] %vm3236_vm2, %v6707_v17  ;;  %v3117_v49 = vpack.c.bf16 %v3095_v45, %v3094_v25  ;;  %v6708_v59 = vpack.c.bf16 %v3095_v45, %v3095_v45  ;;  %7458 = vmatprep.mubr.msk.bf16.mxu1 %vm266_vm0, %v8979_v22 }
 0x326   : > { %3253 = vst.msk [vmem:[%s8887_s7 + $0x40] sm:$0xf] %vm3236_vm2, %v6705_v23  ;;  %v3116_v20 = vpack.c.bf16 %v3093_v28, %v3092_v38  ;;  %v6706_v21 = vpack.c.bf16 %v3093_v28, %v3093_v28  ;;  %v7434_v32 = vpop.f32.mrb[20].mxu0 }
 0x327   : > { %3256 = vst.msk [vmem:[%s8887_s7 + $0x4c] sm:$0xf] %vm3236_vm2, %v6708_v59  ;;  %v3287_v33 = vunpack.c.l.bf16 %v3117_v49  ;;  %v3288_v43 = vunpack.c.h.bf16 %v3117_v49  ;;  %v3066_v44 = vadd.f32 %v7434_v32, %v8878_v6  ;;  %v2958_v51 = vpop.f32.mrb[21].mxu0 }
 0x328   : > { %3254 = vst.msk [vmem:[%s8887_s7 + $0x44] sm:$0xf] %vm3236_vm2, %v6706_v21  ;;  %v3285_v52 = vunpack.c.l.bf16 %v3116_v20  ;;  %v3286_v56 = vunpack.c.h.bf16 %v3116_v20  ;;  %v3064_v58 = vadd.f32 %v8878_v6, %v2958_v51  ;;  %v7435_v1 = vpop.f32.mrb[22].mxu0  ;;  %v3399_v60 = vld [vmem:[#allocation2 + $0xc1] sm:$0xff]  ;;  %v3400_v42 = vld [vmem:[#allocation2 + $0xc9] sm:$0xff] }
 0x329   : > { %3319 = vst.msk [vmem:[#allocation2 + $0xf1] sm:$0xff] %vm266_vm0, %v3287_v33  ;;  %3320 = vst.msk [vmem:[#allocation2 + $0xf9] sm:$0xff] %vm266_vm0, %v3288_v43  ;;  %v3098_v2 = vmax.f32 %v3066_v44, 0.0  ;;  %v3067_v3 = vadd.f32 %v7435_v1, %v8878_v6  ;;  %v2961_v12 = vpop.f32.mrb[23].mxu0  ;;  %v3397_v40 = vld [vmem:[#allocation2 + $0xa9] sm:$0xff]  ;;  %v3398_v50 = vld [vmem:[#allocation2 + $0xb1] sm:$0xff]  ;;  %v9003_v63 = vpack.c.bf16 %v3400_v42, %v3399_v60 }
 0x32a   : > { %3317 = vst.msk [vmem:[#allocation2 + $0xd9] sm:$0xff] %vm266_vm0, %v3285_v52  ;;  %3318 = vst.msk [vmem:[#allocation2 + $0xe1] sm:$0xff] %vm266_vm0, %v3286_v56  ;;  %v3096_v13 = vmax.f32 %v3064_v58, 0.0  ;;  %v3065_v14 = vadd.f32 %v8878_v6, %v2961_v12  ;;  %v9001_v54 = vpack.c.bf16 %v3398_v50, %v3397_v40 }
 0x32b   : > { %v6711_v57 = vpack.c.bf16 %v3098_v2, %v3098_v2  ;;  %v3099_v62 = vmax.f32 %v3067_v3, 0.0 }
 0x32c   : > { %v6709_v5 = vpack.c.bf16 %v3096_v13, %v3096_v13  ;;  %v3097_v10 = vmax.f32 %v3065_v14, 0.0  ;;  %7459 = vmatmul.mubr.msk.bf16.gmra.mrb[12].mxu1 %vm266_vm0, %v9001_v54 }
 0x32d   : > { %3259 = vst.msk [vmem:[%s8887_s7 + $0x58] sm:$0xf] %vm3236_vm2, %v6711_v57  ;;  %v3119_v41 = vpack.c.bf16 %v3099_v62, %v3098_v2  ;;  %v6712_v47 = vpack.c.bf16 %v3099_v62, %v3099_v62  ;;  %7462 = vmatprep.mubr.msk.bf16.mxu1 %vm266_vm0, %v9003_v63 }
 0x32e   : > { %3257 = vst.msk [vmem:[%s8887_s7 + $0x50] sm:$0xf] %vm3236_vm2, %v6709_v5  ;;  %v3118_v48 = vpack.c.bf16 %v3097_v10, %v3096_v13  ;;  %v6710_v53 = vpack.c.bf16 %v3097_v10, %v3097_v10  ;;  %v7438_v55 = vpop.f32.mrb[24].mxu0 }
 0x32f   : > { %3260 = vst.msk [vmem:[%s8887_s7 + $0x5c] sm:$0xf] %vm3236_vm2, %v6712_v47  ;;  %v3291_v61 = vunpack.c.l.bf16 %v3119_v41  ;;  %v3292_v0 = vunpack.c.h.bf16 %v3119_v41  ;;  %v3070_v7 = vadd.f32 %v7438_v55, %v8878_v6  ;;  %v2974_v8 = vpop.f32.mrb[25].mxu0 }
 0x330   : > { %3258 = vst.msk [vmem:[%s8887_s7 + $0x54] sm:$0xf] %vm3236_vm2, %v6710_v53  ;;  %v3289_v15 = vunpack.c.l.bf16 %v3118_v48  ;;  %v3290_v18 = vunpack.c.h.bf16 %v3118_v48  ;;  %v3068_v26 = vadd.f32 %v8878_v6, %v2974_v8  ;;  %v7439_v31 = vpop.f32.mrb[26].mxu0  ;;  %v3403_v37 = vld [vmem:[#allocation2 + $0xf1] sm:$0xff]  ;;  %v3404_v46 = vld [vmem:[#allocation2 + $0xf9] sm:$0xff] }
 0x331   : > { %3323 = vst.msk [vmem:[#allocation2 + $0x121] sm:$0xff] %vm266_vm0, %v3291_v61  ;;  %3324 = vst.msk [vmem:[#allocation2 + $0x129] sm:$0xff] %vm266_vm0, %v3292_v0  ;;  %v3102_v19 = vmax.f32 %v3070_v7, 0.0  ;;  %v3071_v24 = vadd.f32 %v7439_v31, %v8878_v6  ;;  %v2977_v25 = vpop.f32.mrb[27].mxu0  ;;  %v3401_v27 = vld [vmem:[#allocation2 + $0xd9] sm:$0xff]  ;;  %v3402_v30 = vld [vmem:[#allocation2 + $0xe1] sm:$0xff]  ;;  %v9027_v45 = vpack.c.bf16 %v3404_v46, %v3403_v37 }
 0x332   : > { %3321 = vst.msk [vmem:[#allocation2 + $0x109] sm:$0xff] %vm266_vm0, %v3289_v15  ;;  %3322 = vst.msk [vmem:[#allocation2 + $0x111] sm:$0xff] %vm266_vm0, %v3290_v18  ;;  %v3100_v35 = vmax.f32 %v3068_v26, 0.0  ;;  %v3069_v36 = vadd.f32 %v8878_v6, %v2977_v25  ;;  %v9025_v38 = vpack.c.bf16 %v3402_v30, %v3401_v27 }
 0x333   : > { %v6715_v39 = vpack.c.bf16 %v3102_v19, %v3102_v19  ;;  %v3103_v17 = vmax.f32 %v3071_v24, 0.0  ;;  %v3334_v24 = vld [vmem:[#allocation2 + $0x8] sm:$0xff] }
 0x334   : > { %v6713_v23 = vpack.c.bf16 %v3100_v35, %v3100_v35  ;;  %v3101_v28 = vmax.f32 %v3069_v36, 0.0  ;;  %7463 = vmatmul.mubr.msk.bf16.gmra.mrb[16].mxu1 %vm266_vm0, %v9025_v38  ;;  %v3335_v36 = vld [vmem:[#allocation2 + $0x18] sm:$0xff] }
 0x335   : > { %3263 = vst.msk [vmem:[%s8887_s7 + $0x68] sm:$0xf] %vm3236_vm2, %v6715_v39  ;;  %v3121_v49 = vpack.c.bf16 %v3103_v17, %v3102_v19  ;;  %v6716_v59 = vpack.c.bf16 %v3103_v17, %v3103_v17  ;;  %7466 = vmatprep.mubr.msk.bf16.mxu1 %vm266_vm0, %v9027_v45  ;;  %v3333_v19 = vld [vmem:[#allocation2] sm:$0xff]  ;;  %v3337_v17 = vld [vmem:[#allocation2 + $0x30] sm:$0xff] }
 0x336   : > { %3261 = vst.msk [vmem:[%s8887_s7 + $0x60] sm:$0xf] %vm3236_vm2, %v6713_v23  ;;  %v3120_v20 = vpack.c.bf16 %v3101_v28, %v3100_v35  ;;  %v6714_v21 = vpack.c.bf16 %v3101_v28, %v3101_v28  ;;  %v7442_v32 = vpop.f32.mrb[28].mxu0  ;;  %v3365_v30 = vpack.c.bf16 %v3334_v24, %v3333_v19  ;;  %v3336_v39 = vld [vmem:[#allocation2 + $0x20] sm:$0xff]  ;;  %v3338_v23 = vld [vmem:[#allocation2 + $0x38] sm:$0xff]  ;;  %v3865_v19 = vld [vmem:[#allocation2 + $0xa] sm:$0xff] }
 0x337   : > { %3264 = vst.msk [vmem:[%s8887_s7 + $0x6c] sm:$0xf] %vm3236_vm2, %v6716_v59  ;;  %v3295_v33 = vunpack.c.l.bf16 %v3121_v49  ;;  %v3296_v43 = vunpack.c.h.bf16 %v3121_v49  ;;  %v3074_v44 = vadd.f32 %v7442_v32, %v8878_v6  ;;  %v2990_v51 = vpop.f32.mrb[29].mxu0  ;;  %v9082_v28 = vpack.c.bf16 %v3336_v39, %v3335_v36  ;;  %v9087_v49 = vld [vmem:[%s9527_s3 + $0x18] sm:$0xff]   ;;  %v3341_v32 = vld [vmem:[#allocation2 + $0x60] sm:$0xff] }
 0x338   : > { %3262 = vst.msk [vmem:[%s8887_s7 + $0x64] sm:$0xf] %vm3236_vm2, %v6714_v21  ;;  %v3293_v52 = vunpack.c.l.bf16 %v3120_v20  ;;  %v3294_v56 = vunpack.c.h.bf16 %v3120_v20  ;;  %v3072_v58 = vadd.f32 %v8878_v6, %v2990_v51  ;;  %v7443_v1 = vpop.f32.mrb[30].mxu0  ;;  %v3407_v60 = vld [vmem:[#allocation2 + $0x121] sm:$0xff]  ;;  %v3408_v42 = vld [vmem:[#allocation2 + $0x129] sm:$0xff]  ;;  %v9089_v59 = vpack.c.bf16 %v3338_v23, %v3337_v17  ;;  %v3868_v17 = vld [vmem:[#allocation2 + $0x32] sm:$0xff] }
 0x339   : > { %3327 = vst.msk [vmem:[#allocation2 + $0x151] sm:$0xff] %vm266_vm0, %v3295_v33  ;;  %3328 = vst.msk [vmem:[#allocation2 + $0x159] sm:$0xff] %vm266_vm0, %v3296_v43  ;;  %v3106_v2 = vmax.f32 %v3074_v44, 0.0  ;;  %v3075_v3 = vadd.f32 %v7443_v1, %v8878_v6  ;;  %v2993_v12 = vpop.f32.mrb[31].mxu0  ;;  %v3405_v40 = vld [vmem:[#allocation2 + $0x109] sm:$0xff]  ;;  %v3406_v50 = vld [vmem:[#allocation2 + $0x111] sm:$0xff]  ;;  %v9051_v10 = vpack.c.bf16 %v3408_v42, %v3407_v60 }
 0x33a   : > { %3325 = vst.msk [vmem:[#allocation2 + $0x139] sm:$0xff] %vm266_vm0, %v3293_v52  ;;  %3326 = vst.msk [vmem:[#allocation2 + $0x141] sm:$0xff] %vm266_vm0, %v3294_v56  ;;  %v3104_v13 = vmax.f32 %v3072_v58, 0.0  ;;  %v3073_v14 = vadd.f32 %v8878_v6, %v2993_v12  ;;  %v9049_v57 = vpack.c.bf16 %v3406_v50, %v3405_v40  ;;  %v3339_v20 = vld [vmem:[#allocation2 + $0x48] sm:$0xff]  ;;  %v3340_v21 = vld [vmem:[#allocation2 + $0x50] sm:$0xff] }
 0x33b   : > { %v6719_v62 = vpack.c.bf16 %v3106_v2, %v3106_v2  ;;  %v3107_v5 = vmax.f32 %v3075_v3, 0.0  ;;  %v3342_v33 = vld [vmem:[#allocation2 + $0x68] sm:$0xff]  ;;  %v9097_v43 = vpack.c.bf16 %v3340_v21, %v3339_v20  ;;  %v3344_v51 = vld [vmem:[#allocation2 + $0x80] sm:$0xff]  ;;  %v3345_v52 = vld [vmem:[#allocation2 + $0x90] sm:$0xff] }
 0x33c   : > { %v6717_v41 = vpack.c.bf16 %v3104_v13, %v3104_v13  ;;  %v3105_v47 = vmax.f32 %v3073_v14, 0.0  ;;  %7467 = vmatmul.mubr.msk.bf16.gmra.mrb[20].mxu1 %vm266_vm0, %v9049_v57  ;;  %v9099_v44 = vpack.c.bf16 %v3342_v33, %v3341_v32  ;;  %v3346_v56 = vld [vmem:[#allocation2 + $0x98] sm:$0xff]  ;;  %v3347_v60 = vld [vmem:[#allocation2 + $0xa8] sm:$0xff]  ;;  %v3348_v42 = vld [vmem:[#allocation2 + $0xb0] sm:$0xff] }
 0x33d   : > { %3267 = vst.msk [vmem:[%s8887_s7 + $0x78] sm:$0xf] %vm3236_vm2, %v6719_v62  ;;  %v3123_v48 = vpack.c.bf16 %v3107_v5, %v3106_v2  ;;  %v6720_v53 = vpack.c.bf16 %v3107_v5, %v3107_v5  ;;  %7470 = vmatprep.mubr.msk.bf16.mxu1 %vm266_vm0, %v9051_v10  ;;  %v9107_v1 = vpack.c.bf16 %v3346_v56, %v3345_v52  ;;  %v3349_v2 = vld [vmem:[#allocation2 + $0xc0] sm:$0xff]  ;;  %v3350_v3 = vld [vmem:[#allocation2 + $0xc8] sm:$0xff]  ;;  %v3351_v50 = vld [vmem:[#allocation2 + $0xd8] sm:$0xff] }
 0x33e   : > { %3265 = vst.msk [vmem:[%s8887_s7 + $0x70] sm:$0xf] %vm3236_vm2, %v6717_v41  ;;  %v3122_v6 = vpack.c.bf16 %v3105_v47, %v3104_v13  ;;  %v6718_v55 = vpack.c.bf16 %v3105_v47, %v3105_v47  ;;  %v9113_v12 = vpack.c.bf16 %v3348_v42, %v3347_v60  ;;  %v9115_v40 = vpack.c.bf16 %v3350_v3, %v3349_v2  ;;  %v3352_v13 = vld [vmem:[#allocation2 + $0xe0] sm:$0xff]  ;;  %v3353_v14 = vld [vmem:[#allocation2 + $0xf0] sm:$0xff]  ;;  %v3354_v62 = vld [vmem:[#allocation2 + $0xf8] sm:$0xff] }
 0x33f   : > { %3268 = vst.msk [vmem:[%s8887_s7 + $0x7c] sm:$0xf] %vm3236_vm2, %v6720_v53  ;;  %v3299_v61 = vunpack.c.l.bf16 %v3123_v48  ;;  %v3300_v0 = vunpack.c.h.bf16 %v3123_v48  ;;  %v9121_v5 = vpack.c.bf16 %v3352_v13, %v3351_v50  ;;  %v9123_v41 = vpack.c.bf16 %v3354_v62, %v3353_v14  ;;  %v3355_v47 = vld [vmem:[#allocation2 + $0x108] sm:$0xff]  ;;  %v3356_v48 = vld [vmem:[#allocation2 + $0x110] sm:$0xff]  ;;  %v3357_v53 = vld [vmem:[#allocation2 + $0x120] sm:$0xff] }
 0x340   : > { %3266 = vst.msk [vmem:[%s8887_s7 + $0x74] sm:$0xf] %vm3236_vm2, %v6718_v55  ;;  %v3297_v7 = vunpack.c.l.bf16 %v3122_v6  ;;  %v3298_v8 = vunpack.c.h.bf16 %v3122_v6  ;;  %v3411_v15 = vld [vmem:[#allocation2 + $0x151] sm:$0xff]  ;;  %v3412_v18 = vld [vmem:[#allocation2 + $0x159] sm:$0xff]  ;;  %v3358_v6 = vld [vmem:[#allocation2 + $0x128] sm:$0xff]  ;;  %v9129_v55 = vpack.c.bf16 %v3356_v48, %v3355_v47 }
 0x341   : > { %3331 = vst.msk [vmem:[#allocation2 + $0x181] sm:$0xff] %vm266_vm0, %v3299_v61  ;;  %3332 = vst.msk [vmem:[#allocation2 + $0x189] sm:$0xff] %vm266_vm0, %v3300_v0  ;;  %v3409_v26 = vld [vmem:[#allocation2 + $0x139] sm:$0xff]  ;;  %v3410_v31 = vld [vmem:[#allocation2 + $0x141] sm:$0xff]  ;;  %v9071_v46 = vpack.c.bf16 %v3412_v18, %v3411_v15  ;;  %v9131_v61 = vpack.c.bf16 %v3358_v6, %v3357_v53 }
 0x342   : > { %3329 = vst.msk [vmem:[#allocation2 + $0x169] sm:$0xff] %vm266_vm0, %v3297_v7  ;;  %3330 = vst.msk [vmem:[#allocation2 + $0x171] sm:$0xff] %vm266_vm0, %v3298_v8  ;;  %v9069_v37 = vpack.c.bf16 %v3410_v31, %v3409_v26  ;;  %v3359_v0 = vld [vmem:[#allocation2 + $0x138] sm:$0xff]  ;;  %v3360_v7 = vld [vmem:[#allocation2 + $0x140] sm:$0xff] }
 0x343   : > { %v3361_v8 = vld [vmem:[#allocation2 + $0x150] sm:$0xff]  ;;  %v3362_v15 = vld [vmem:[#allocation2 + $0x158] sm:$0xff]  ;;  %v9137_v18 = vpack.c.bf16 %v3360_v7, %v3359_v0  ;;  %v3864_v31 = vld [vmem:[#allocation2 + $0x2] sm:$0xff] }
 0x344   : > { %7471 = vmatmul.mubr.msk.bf16.gmra.mrb[24].mxu1 %vm266_vm0, %v9069_v37  ;;  %v9139_v26 = vpack.c.bf16 %v3362_v15, %v3361_v8  ;;  %v3866_v36 = vld [vmem:[#allocation2 + $0x1a] sm:$0xff]  ;;  %v3867_v39 = vld [vmem:[#allocation2 + $0x22] sm:$0xff]  ;;  %v3870_v33 = vld [vmem:[#allocation2 + $0x4a] sm:$0xff] }
 0x345   : > { %7474 = vmatprep.mubr.msk.bf16.mxu1 %vm266_vm0, %v9071_v46  ;;  %v3869_v23 = vld [vmem:[#allocation2 + $0x3a] sm:$0xff]  ;;  %v9150_v20 = vpack.c.bf16 %v3867_v39, %v3866_v36  ;;  %v3873_v52 = vld [vmem:[#allocation2 + $0x6a] sm:$0xff]  ;;  %v3876_v2 = vld [vmem:[#allocation2 + $0x92] sm:$0xff] }
 0x346   : > { %v8284_v21 = vld [vmem:[%s9527_s3 + $0x20] sm:$0xff]   ;;  %v9155_v32 = vpack.c.bf16 %v3869_v23, %v3868_v17  ;;  %v3878_v14 = vld [vmem:[#allocation2 + $0xaa] sm:$0xff]  ;;  %v3879_v62 = vld [vmem:[#allocation2 + $0xb2] sm:$0xff] }
 0x347   : > { %v3874_v42 = vld [vmem:[#allocation2 + $0x7a] sm:$0xff]  ;;  %v3880_v47 = vld [vmem:[#allocation2 + $0xc2] sm:$0xff]  ;;  %v3881_v48 = vld [vmem:[#allocation2 + $0xca] sm:$0xff]  ;;  %v9178_v53 = vpack.c.bf16 %v3879_v62, %v3878_v14 }
 0x348   : > { %v3877_v3 = vld [vmem:[#allocation2 + $0x9a] sm:$0xff]  ;;  %v9180_v6 = vpack.c.bf16 %v3881_v48, %v3880_v47  ;;  %v3883_v7 = vld [vmem:[#allocation2 + $0xe2] sm:$0xff]  ;;  %v3884_v8 = vld [vmem:[#allocation2 + $0xf2] sm:$0xff] }
 0x349   : > { %v3413_v25 = vld [vmem:[#allocation2 + $0x169] sm:$0xff]  ;;  %v3414_v27 = vld [vmem:[#allocation2 + $0x171] sm:$0xff]  ;;  %v9172_v13 = vpack.c.bf16 %v3877_v3, %v3876_v2  ;;  %v3882_v0 = vld [vmem:[#allocation2 + $0xda] sm:$0xff] }
 0x34a   : > { %v9077_v35 = vpack.c.bf16 %v3414_v27, %v3413_v25  ;;  %v3363_v24 = vld [vmem:[#allocation2 + $0x168] sm:$0xff]  ;;  %v3364_v25 = vld [vmem:[#allocation2 + $0x170] sm:$0xff]  ;;  %v3896_v27 = vpack.c.bf16 %v3865_v19, %v3864_v31  ;;  %v3885_v15 = vld [vmem:[#allocation2 + $0xfa] sm:$0xff]  ;;  %v9186_v31 = vpack.c.bf16 %v3883_v7, %v3882_v0 }
 0x34b   : > { %v9188_v19 = vpack.c.bf16 %v3885_v15, %v3884_v8  ;;  %v3889_v36 = vld [vmem:[#allocation2 + $0x12a] sm:$0xff]  ;;  %v3890_v23 = vld [vmem:[#allocation2 + $0x13a] sm:$0xff]  ;;  %v3895_v2 = vld [vmem:[#allocation2 + $0x172] sm:$0xff] }
 0x34c   : > { %7475 = vmatmul.mubr.msk.bf16.gmra.mrb[28].mxu1 %vm266_vm0, %v9077_v35  ;;  %v8285_v14 = vld [vmem:[%s9527_s3 + $0x28] sm:$0xff]   ;;  %v8286_v47 = vld [vmem:[%s9527_s3 + $0x30] sm:$0xff]   ;;  %v5363_v48 = vld [vmem:[#allocation2 + $0x99] sm:$0xff] }
 0x34d   : > { %7480 = vmatprep.mubr.msk.bf16.mxu1 %vm266_vm0, %v3365_v30  ;;  %v9145_v30 = vpack.c.bf16 %v3364_v25, %v3363_v24  ;;  %v3886_v24 = vld [vmem:[#allocation2 + $0x10a] sm:$0xff]  ;;  %v3887_v25 = vld [vmem:[#allocation2 + $0x112] sm:$0xff] }
 0x34e   : > { %v9194_v39 = vpack.c.bf16 %v3887_v25, %v3886_v24  ;;  %v5364_v8 = vld [vmem:[#allocation2 + $0xa9] sm:$0xff]  ;;  %v5365_v15 = vld [vmem:[#allocation2 + $0xb1] sm:$0xff]  ;;  %v5366_v24 = vld [vmem:[#allocation2 + $0xc1] sm:$0xff] }
 0x34f   : > { %v5367_v25 = vld [vmem:[#allocation2 + $0xc9] sm:$0xff] }
 0x354   : > { %7481 = vmatmul.mubr.msk.bf16.vlgmr.msra.gmra.mrb[0].mxu1 %vm266_vm0, %v9082_v28 }
 0x355   : > { %7513 = vmatpush3.bf16.msra.mxu1 %v8927_v34  ;;  %7484 = vmatprep.mubr.msk.bf16.mxu1 %vm266_vm0, %v9089_v59  ;;  %v3343_v34 = vld [vmem:[#allocation2 + $0x78] sm:$0xff] }
 0x356   : > { %7546 = vmatprep.subr.bf16.mxu1 %v9087_v49  ;;  %v9105_v58 = vpack.c.bf16 %v3344_v51, %v3343_v34  ;;  %v3871_v34 = vld [vmem:[#allocation2 + $0x52] sm:$0xff]  ;;  %v3872_v51 = vld [vmem:[#allocation2 + $0x62] sm:$0xff] }
 0x357   : > { %v9162_v56 = vpack.c.bf16 %v3871_v34, %v3870_v33  ;;  %v9164_v60 = vpack.c.bf16 %v3873_v52, %v3872_v51  ;;  %v3891_v33 = vld [vmem:[#allocation2 + $0x142] sm:$0xff]  ;;  %v3892_v34 = vld [vmem:[#allocation2 + $0x152] sm:$0xff]  ;;  %v3893_v51 = vld [vmem:[#allocation2 + $0x15a] sm:$0xff] }
 0x358   : > { %v9202_v52 = vpack.c.bf16 %v3891_v33, %v3890_v23 }
 0x35c   : > { %7485 = vmatmul.mubr.msk.bf16.gmra.mrb[4].mxu1 %vm266_vm0, %v9097_v43 }
 0x35d   : > { %7488 = vmatprep.mubr.msk.bf16.mxu1 %vm266_vm0, %v9099_v44 }
 0x364   : > { %7489 = vmatmul.mubr.msk.bf16.gmra.mrb[8].mxu1 %vm266_vm0, %v9105_v58 }
 0x365   : > { %7492 = vmatprep.mubr.msk.bf16.mxu1 %vm266_vm0, %v9107_v1 }
 0x36c   : > { %7493 = vmatmul.mubr.msk.bf16.gmra.mrb[12].mxu1 %vm266_vm0, %v9113_v12 }
 0x36d   : > { %7496 = vmatprep.mubr.msk.bf16.mxu1 %vm266_vm0, %v9115_v40 }
 0x374   : > { %7497 = vmatmul.mubr.msk.bf16.gmra.mrb[16].mxu1 %vm266_vm0, %v9121_v5 }
 0x375   : > { %7500 = vmatprep.mubr.msk.bf16.mxu1 %vm266_vm0, %v9123_v41 }
 0x37c   : > { %7501 = vmatmul.mubr.msk.bf16.gmra.mrb[20].mxu1 %vm266_vm0, %v9129_v55 }
 0x37d   : > { %7504 = vmatprep.mubr.msk.bf16.mxu1 %vm266_vm0, %v9131_v61 }
 0x384   : > { %7505 = vmatmul.mubr.msk.bf16.gmra.mrb[24].mxu1 %vm266_vm0, %v9137_v18 }
 0x385   : > { %7508 = vmatprep.mubr.msk.bf16.mxu1 %vm266_vm0, %v9139_v26 }
 0x38c   : > { %7509 = vmatmul.mubr.msk.bf16.gmra.mrb[28].mxu1 %vm266_vm0, %v9145_v30 }
 0x38d   : > { %7514 = vmatprep.mubr.msk.bf16.mxu1 %vm266_vm0, %v3896_v27  ;;  %v3888_v27 = vld [vmem:[#allocation2 + $0x122] sm:$0xff] }
 0x38e   : > { %v9196_v17 = vpack.c.bf16 %v3889_v36, %v3888_v27  ;;  %v5391_v27 = vpack.c.bf16 %v5365_v15, %v5364_v8  ;;  %v5392_v36 = vpack.c.bf16 %v5367_v25, %v5366_v24 }
 0x394   : > { %7515 = vmatmul.mubr.msk.bf16.vlgmr.msra.gmra.mrb[0].mxu1 %vm266_vm0, %v9150_v20 }
 0x395   : > { %7547 = vmatpush3.bf16.msra.mxu1 %v9087_v49  ;;  %7518 = vmatprep.mubr.msk.bf16.mxu1 %vm266_vm0, %v9155_v32  ;;  %v3875_v49 = vld [vmem:[#allocation2 + $0x82] sm:$0xff] }
 0x396   : > { %7580 = vmatprep.subr.bf16.mxu1 %v8284_v21  ;;  %v9170_v50 = vpack.c.bf16 %v3875_v49, %v3874_v42  ;;  %v9204_v42 = vpack.c.bf16 %v3893_v51, %v3892_v34  ;;  %v3894_v49 = vld [vmem:[#allocation2 + $0x16a] sm:$0xff] }
 0x397   : > { %v9210_v3 = vpack.c.bf16 %v3895_v2, %v3894_v49 }
 0x39c   : > { %7519 = vmatmul.mubr.msk.bf16.gmra.mrb[4].mxu1 %vm266_vm0, %v9162_v56 }
 0x39d   : > { %7522 = vmatprep.mubr.msk.bf16.mxu1 %vm266_vm0, %v9164_v60 }
 0x3a4   : > { %7523 = vmatmul.mubr.msk.bf16.gmra.mrb[8].mxu1 %vm266_vm0, %v9170_v50 }
 0x3a5   : > { %7526 = vmatprep.mubr.msk.bf16.mxu1 %vm266_vm0, %v9172_v13 }
 0x3ac   : > { %7527 = vmatmul.mubr.msk.bf16.gmra.mrb[12].mxu1 %vm266_vm0, %v9178_v53 }
 0x3ad   : > { %7530 = vmatprep.mubr.msk.bf16.mxu1 %vm266_vm0, %v9180_v6 }
 0x3b4   : > { %7531 = vmatmul.mubr.msk.bf16.gmra.mrb[16].mxu1 %vm266_vm0, %v9186_v31 }
 0x3b5   : > { %7534 = vmatprep.mubr.msk.bf16.mxu1 %vm266_vm0, %v9188_v19 }
 0x3bc   : > { %7535 = vmatmul.mubr.msk.bf16.gmra.mrb[20].mxu1 %vm266_vm0, %v9194_v39 }
 0x3bd   : > { %7538 = vmatprep.mubr.msk.bf16.mxu1 %vm266_vm0, %v9196_v17 }
 0x3c4   : > { %7539 = vmatmul.mubr.msk.bf16.gmra.mrb[24].mxu1 %vm266_vm0, %v9202_v52 }
 0x3c5   : > { %7542 = vmatprep.mubr.msk.bf16.mxu1 %vm266_vm0, %v9204_v42 }
 0x3cc   : > { %7543 = vmatmul.mubr.msk.bf16.gmra.mrb[28].mxu1 %vm266_vm0, %v9210_v3 }
 0x3cd   : > { %7548 = vmatprep.mubr.msk.bf16.mxu1 %vm266_vm0, %v9082_v28  ;;  %v4192_v28 = vld [vmem:[#allocation2 + $0x180] sm:$0xff] }
 0x3d4   : > { %7549 = vmatmul.mubr.msk.bf16.vlgmr.msra.gmra.mrb[0].mxu1 %vm266_vm0, %v9089_v59 }
 0x3d5   : > { %7581 = vmatpush3.bf16.msra.mxu1 %v8284_v21  ;;  %7552 = vmatprep.mubr.msk.bf16.mxu1 %vm266_vm0, %v9097_v43  ;;  %v4193_v21 = vld [vmem:[#allocation2 + $0x188] sm:$0xff] }
 0x3d6   : > { %7614 = vmatprep.subr.bf16.mxu1 %v8285_v14  ;;  %v9247_v62 = vpack.c.bf16 %v4193_v21, %v4192_v28 }
 0x3dc   : > { %7553 = vmatmul.mubr.msk.bf16.gmra.mrb[4].mxu1 %vm266_vm0, %v9099_v44 }
 0x3dd   : > { %7556 = vmatprep.mubr.msk.bf16.mxu1 %vm266_vm0, %v9105_v58 }
 0x3e4   : > { %7557 = vmatmul.mubr.msk.bf16.gmra.mrb[8].mxu1 %vm266_vm0, %v9107_v1 }
 0x3e5   : > { %7560 = vmatprep.mubr.msk.bf16.mxu1 %vm266_vm0, %v9113_v12 }
 0x3ec   : > { %7561 = vmatmul.mubr.msk.bf16.gmra.mrb[12].mxu1 %vm266_vm0, %v9115_v40 }
 0x3ed   : > { %7564 = vmatprep.mubr.msk.bf16.mxu1 %vm266_vm0, %v9121_v5 }
 0x3f4   : > { %7565 = vmatmul.mubr.msk.bf16.gmra.mrb[16].mxu1 %vm266_vm0, %v9123_v41 }
 0x3f5   : > { %7568 = vmatprep.mubr.msk.bf16.mxu1 %vm266_vm0, %v9129_v55 }
 0x3fc   : > { %7569 = vmatmul.mubr.msk.bf16.gmra.mrb[20].mxu1 %vm266_vm0, %v9131_v61 }
 0x3fd   : > { %7572 = vmatprep.mubr.msk.bf16.mxu1 %vm266_vm0, %v9137_v18 }
 0x404   : > { %7573 = vmatmul.mubr.msk.bf16.gmra.mrb[24].mxu1 %vm266_vm0, %v9139_v26 }
 0x405   : > { %7576 = vmatprep.mubr.msk.bf16.mxu1 %vm266_vm0, %v9145_v30 }
 0x40c   : > { %7577 = vmatmul.mubr.msk.bf16.gmra.mrb[28].mxu1 %vm266_vm0, %v9247_v62 }
 0x40d   : > { %7582 = vmatprep.mubr.msk.bf16.mxu1 %vm266_vm0, %v8922_v29  ;;  %v4490_v29 = vld [vmem:[#allocation2 + $0x181] sm:$0xff] }
 0x414   : > { %7583 = vmatmul.mubr.msk.bf16.vlgmr.msra.gmra.mrb[0].mxu1 %vm266_vm0, %v8929_v9  ;;  %v4491_v9 = vld [vmem:[#allocation2 + $0x189] sm:$0xff] }
 0x415   : > { %7615 = vmatpush3.bf16.msra.mxu1 %v8285_v14  ;;  %7586 = vmatprep.mubr.msk.bf16.mxu1 %vm266_vm0, %v8953_v4  ;;  %v9284_v4 = vpack.c.bf16 %v4491_v9, %v4490_v29 }
 0x416   : > { %7648 = vmatprep.subr.bf16.mxu1 %v8286_v47 }
 0x41c   : > { %7587 = vmatmul.mubr.msk.bf16.gmra.mrb[4].mxu1 %vm266_vm0, %v8955_v11  ;;  %v8287_v11 = vld [vmem:[%s9527_s3 + $0x38] sm:$0xff]  }
 0x41d   : > { %7590 = vmatprep.mubr.msk.bf16.mxu1 %vm266_vm0, %v8977_v16  ;;  %v4788_v16 = vld [vmem:[#allocation2 + $0x182] sm:$0xff] }
 0x424   : > { %7591 = vmatmul.mubr.msk.bf16.gmra.mrb[8].mxu1 %vm266_vm0, %v8979_v22  ;;  %v4789_v22 = vld [vmem:[#allocation2 + $0x18a] sm:$0xff] }
 0x425   : > { %7594 = vmatprep.mubr.msk.bf16.mxu1 %vm266_vm0, %v9001_v54  ;;  %v9321_v54 = vpack.c.bf16 %v4789_v22, %v4788_v16 }
 0x42c   : > { %7595 = vmatmul.mubr.msk.bf16.gmra.mrb[12].mxu1 %vm266_vm0, %v9003_v63  ;;  %v8288_v63 = vld [vmem:[%s9527_s3 + $0x40] sm:$0xff]  }
 0x42d   : > { %7598 = vmatprep.mubr.msk.bf16.mxu1 %vm266_vm0, %v9025_v38 }
 0x434   : > { %7599 = vmatmul.mubr.msk.bf16.gmra.mrb[16].mxu1 %vm266_vm0, %v9027_v45 }
 0x435   : > { %7602 = vmatprep.mubr.msk.bf16.mxu1 %vm266_vm0, %v9049_v57 }
 0x43c   : > { %7603 = vmatmul.mubr.msk.bf16.gmra.mrb[20].mxu1 %vm266_vm0, %v9051_v10 }
 0x43d   : > { %7606 = vmatprep.mubr.msk.bf16.mxu1 %vm266_vm0, %v9069_v37 }
 0x444   : > { %7607 = vmatmul.mubr.msk.bf16.gmra.mrb[24].mxu1 %vm266_vm0, %v9071_v46 }
 0x445   : > { %7610 = vmatprep.mubr.msk.bf16.mxu1 %vm266_vm0, %v9077_v35 }
 0x44c   : > { %7611 = vmatmul.mubr.msk.bf16.gmra.mrb[28].mxu1 %vm266_vm0, %v9284_v4 }
 0x44d   : > { %7616 = vmatprep.mubr.msk.bf16.mxu1 %vm266_vm0, %v9150_v20  ;;  %v5362_v20 = vld [vmem:[#allocation2 + $0x91] sm:$0xff] }
 0x44e   : > { %v5390_v7 = vpack.c.bf16 %v5363_v48, %v5362_v20 }
 0x454   : > { %7617 = vmatmul.mubr.msk.bf16.vlgmr.msra.gmra.mrb[0].mxu1 %vm266_vm0, %v9155_v32 }
 0x455   : > { %7649 = vmatpush3.bf16.msra.mxu1 %v8286_v47  ;;  %7620 = vmatprep.mubr.msk.bf16.mxu1 %vm266_vm0, %v9162_v56 }
 0x456   : > { %7682 = vmatprep.subr.bf16.mxu1 %v8287_v11 }
 0x45c   : > { %7621 = vmatmul.mubr.msk.bf16.gmra.mrb[4].mxu1 %vm266_vm0, %v9164_v60 }
 0x45d   : > { %7624 = vmatprep.mubr.msk.bf16.mxu1 %vm266_vm0, %v9170_v50 }
 0x464   : > { %7625 = vmatmul.mubr.msk.bf16.gmra.mrb[8].mxu1 %vm266_vm0, %v9172_v13 }
 0x465   : > { %7628 = vmatprep.mubr.msk.bf16.mxu1 %vm266_vm0, %v9178_v53 }
 0x46c   : > { %7629 = vmatmul.mubr.msk.bf16.gmra.mrb[12].mxu1 %vm266_vm0, %v9180_v6 }
 0x46d   : > { %7632 = vmatprep.mubr.msk.bf16.mxu1 %vm266_vm0, %v9186_v31 }
 0x474   : > { %7633 = vmatmul.mubr.msk.bf16.gmra.mrb[16].mxu1 %vm266_vm0, %v9188_v19 }
 0x475   : > { %7636 = vmatprep.mubr.msk.bf16.mxu1 %vm266_vm0, %v9194_v39 }
 0x47c   : > { %7637 = vmatmul.mubr.msk.bf16.gmra.mrb[20].mxu1 %vm266_vm0, %v9196_v17 }
 0x47d   : > { %7640 = vmatprep.mubr.msk.bf16.mxu1 %vm266_vm0, %v9202_v52 }
 0x484   : > { %7641 = vmatmul.mubr.msk.bf16.gmra.mrb[24].mxu1 %vm266_vm0, %v9204_v42 }
 0x485   : > { %7644 = vmatprep.mubr.msk.bf16.mxu1 %vm266_vm0, %v9210_v3 }
 0x48c   : > { %7645 = vmatmul.mubr.msk.bf16.gmra.mrb[28].mxu1 %vm266_vm0, %v9321_v54 }
 0x48d   : > { %7650 = vmatprep.mubr.msk.bf16.mxu1 %vm266_vm0, %v9089_v59  ;;  %v5086_v59 = vld [vmem:[#allocation2 + $0x198] sm:$0xff] }
 0x494   : > { %7651 = vmatmul.mubr.msk.bf16.vlgmr.msra.gmra.mrb[0].mxu1 %vm266_vm0, %v9097_v43  ;;  %v5087_v43 = vld [vmem:[#allocation2 + $0x1a0] sm:$0xff] }
 0x495   : > { %7683 = vmatpush3.bf16.msra.mxu1 %v8287_v11  ;;  %7654 = vmatprep.mubr.msk.bf16.mxu1 %vm266_vm0, %v9099_v44  ;;  %v5103_v44 = vpack.c.bf16 %v5087_v43, %v5086_v59 }
 0x496   : > { %7716 = vmatprep.subr.bf16.mxu1 %v8288_v63 }
 0x49c   : > { %7655 = vmatmul.mubr.msk.bf16.gmra.mrb[4].mxu1 %vm266_vm0, %v9105_v58  ;;  %v5354_v58 = vld [vmem:[#allocation2 + $0x31] sm:$0xff] }
 0x49d   : > { %7658 = vmatprep.mubr.msk.bf16.mxu1 %vm266_vm0, %v9107_v1  ;;  %v5355_v1 = vld [vmem:[#allocation2 + $0x39] sm:$0xff] }
 0x4a4   : > { %7659 = vmatmul.mubr.msk.bf16.gmra.mrb[8].mxu1 %vm266_vm0, %v9113_v12  ;;  %v5386_v12 = vpack.c.bf16 %v5355_v1, %v5354_v58 }
 0x4a5   : > { %7662 = vmatprep.mubr.msk.bf16.mxu1 %vm266_vm0, %v9115_v40  ;;  %v5356_v40 = vld [vmem:[#allocation2 + $0x49] sm:$0xff] }
 0x4ac   : > { %7663 = vmatmul.mubr.msk.bf16.gmra.mrb[12].mxu1 %vm266_vm0, %v9121_v5  ;;  %v5357_v5 = vld [vmem:[#allocation2 + $0x51] sm:$0xff] }
 0x4ad   : > { %7666 = vmatprep.mubr.msk.bf16.mxu1 %vm266_vm0, %v9123_v41  ;;  %v5358_v41 = vld [vmem:[#allocation2 + $0x61] sm:$0xff] }
 0x4b4   : > { %7667 = vmatmul.mubr.msk.bf16.gmra.mrb[16].mxu1 %vm266_vm0, %v9129_v55  ;;  %v5359_v55 = vld [vmem:[#allocation2 + $0x69] sm:$0xff] }
 0x4b5   : > { %7670 = vmatprep.mubr.msk.bf16.mxu1 %vm266_vm0, %v9131_v61  ;;  %v5387_v61 = vpack.c.bf16 %v5357_v5, %v5356_v40 }
 0x4bc   : > { %7671 = vmatmul.mubr.msk.bf16.gmra.mrb[20].mxu1 %vm266_vm0, %v9137_v18  ;;  %v5388_v18 = vpack.c.bf16 %v5359_v55, %v5358_v41 }
 0x4bd   : > { %7674 = vmatprep.mubr.msk.bf16.mxu1 %vm266_vm0, %v9139_v26  ;;  %v5360_v26 = vld [vmem:[#allocation2 + $0x79] sm:$0xff] }
 0x4c4   : > { %7675 = vmatmul.mubr.msk.bf16.gmra.mrb[24].mxu1 %vm266_vm0, %v9145_v30  ;;  %v5361_v30 = vld [vmem:[#allocation2 + $0x81] sm:$0xff] }
 0x4c5   : > { %7678 = vmatprep.mubr.msk.bf16.mxu1 %vm266_vm0, %v9247_v62  ;;  %v5389_v0 = vpack.c.bf16 %v5361_v30, %v5360_v26 }
 0x4cc   : > { %7679 = vmatmul.mubr.msk.bf16.gmra.mrb[28].mxu1 %vm266_vm0, %v5103_v44 }
 0x4cd   : > { %7684 = vmatprep.mubr.msk.bf16.mxu1 %vm266_vm0, %v5386_v12 }
 0x4d4   : > { %7685 = vmatmul.mubr.msk.bf16.vlgmr.msra.gmra.mrb[0].mxu1 %vm266_vm0, %v5387_v61 }
 0x4d5   : > { %7717 = vmatpush3.bf16.msra.mxu1 %v8288_v63  ;;  %7688 = vmatprep.mubr.msk.bf16.mxu1 %vm266_vm0, %v5388_v18 }
 0x4dc   : > { %7689 = vmatmul.mubr.msk.bf16.gmra.mrb[4].mxu1 %vm266_vm0, %v5389_v0 }
 0x4dd   : > { %7692 = vmatprep.mubr.msk.bf16.mxu1 %vm266_vm0, %v5390_v7 }
 0x4e4   : > { %7693 = vmatmul.mubr.msk.bf16.gmra.mrb[8].mxu1 %vm266_vm0, %v5391_v27 }
 0x4e5   : > { %7696 = vmatprep.mubr.msk.bf16.mxu1 %vm266_vm0, %v5392_v36 }
 0x4ec   : > { %7697 = vmatmul.mubr.msk.bf16.gmra.mrb[12].mxu1 %vm266_vm0, %v9025_v38  ;;  %v5384_v38 = vld [vmem:[#allocation2 + $0x199] sm:$0xff] }
 0x4ed   : > { %7700 = vmatprep.mubr.msk.bf16.mxu1 %vm266_vm0, %v9027_v45  ;;  %v5385_v45 = vld [vmem:[#allocation2 + $0x1a1] sm:$0xff] }
 0x4ee   : > { %v5401_v23 = vpack.c.bf16 %v5385_v45, %v5384_v38 }
 0x4f4   : > { %7701 = vmatmul.mubr.msk.bf16.gmra.mrb[16].mxu1 %vm266_vm0, %v9049_v57  ;;  %v5682_v57 = vld [vmem:[#allocation2 + $0x19a] sm:$0xff] }
 0x4f5   : > { %7704 = vmatprep.mubr.msk.bf16.mxu1 %vm266_vm0, %v9051_v10  ;;  %v5683_v10 = vld [vmem:[#allocation2 + $0x1a2] sm:$0xff] }
 0x4fc   : > { %7705 = vmatmul.mubr.msk.bf16.gmra.mrb[20].mxu1 %vm266_vm0, %v9069_v37  ;;  %v5699_v37 = vpack.c.bf16 %v5683_v10, %v5682_v57 }
 0x4fd   : > { %7708 = vmatprep.mubr.msk.bf16.mxu1 %vm266_vm0, %v9071_v46  ;;  %v9417_v46 = vld [vmem:[%s9528_s4] ss:$0 sm:$0xff] }
 0x504   : > { %7709 = vmatmul.mubr.msk.bf16.gmra.mrb[24].mxu1 %vm266_vm0, %v9077_v35 }
 0x505   : > { %7712 = vmatprep.mubr.msk.bf16.mxu1 %vm266_vm0, %v9284_v4 }
 0x50c   : > { %7713 = vmatmul.mubr.msk.bf16.gmra.mrb[28].mxu1 %vm266_vm0, %v5401_v23 }
 0x50d   : > { %7718 = vmatprep.mubr.msk.bf16.mxu1 %vm266_vm0, %v9155_v32 }
 0x514   : > { %7719 = vmatmul.mubr.msk.bf16.vlgmr.msra.gmra.mrb[0].mxu1 %vm266_vm0, %v9162_v56 }
 0x515   : > { %7722 = vmatprep.mubr.msk.bf16.mxu1 %vm266_vm0, %v9164_v60 }
 0x51c   : > { %7723 = vmatmul.mubr.msk.bf16.gmra.mrb[4].mxu1 %vm266_vm0, %v9170_v50 }
 0x51d   : > { %7726 = vmatprep.mubr.msk.bf16.mxu1 %vm266_vm0, %v9172_v13 }
 0x524   : > { %7727 = vmatmul.mubr.msk.bf16.gmra.mrb[8].mxu1 %vm266_vm0, %v9178_v53 }
 0x525   : > { %7730 = vmatprep.mubr.msk.bf16.mxu1 %vm266_vm0, %v9180_v6 }
 0x52c   : > { %7731 = vmatmul.mubr.msk.bf16.gmra.mrb[12].mxu1 %vm266_vm0, %v9186_v31 }
 0x52d   : > { %7734 = vmatprep.mubr.msk.bf16.mxu1 %vm266_vm0, %v9188_v19 }
 0x534   : > { %7735 = vmatmul.mubr.msk.bf16.gmra.mrb[16].mxu1 %vm266_vm0, %v9194_v39 }
 0x535   : > { %7738 = vmatprep.mubr.msk.bf16.mxu1 %vm266_vm0, %v9196_v17 }
 0x53c   : > { %7739 = vmatmul.mubr.msk.bf16.gmra.mrb[20].mxu1 %vm266_vm0, %v9202_v52 }
 0x53d   : > { %7742 = vmatprep.mubr.msk.bf16.mxu1 %vm266_vm0, %v9204_v42 }
 0x544   : > { %7743 = vmatmul.mubr.msk.bf16.gmra.mrb[24].mxu1 %vm266_vm0, %v9210_v3 }
 0x545   : > { %7746 = vmatprep.mubr.msk.bf16.mxu1 %vm266_vm0, %v9321_v54 }
 0x54c   : > { %7747 = vmatmul.mubr.msk.bf16.gmra.mrb[28].mxu1 %vm266_vm0, %v5699_v37 }
 0x5e7   : > { %v7720_v35 = vpop.f32.mrb[0].mxu1 }
 0x5e8   : > { %v5959_v32 = vadd.f32 %v7720_v35, %v9417_v46  ;;  %v5791_v56 = vpop.f32.mrb[1].mxu1 }
 0x5e9   : > { %v5957_v60 = vadd.f32 %v9417_v46, %v5791_v56  ;;  %v7721_v50 = vpop.f32.mrb[2].mxu1 }
 0x5ea   : > { %v5991_v13 = vmax.f32 %v5959_v32, 0.0  ;;  %v5960_v53 = vadd.f32 %v7721_v50, %v9417_v46  ;;  %v5794_v6 = vpop.f32.mrb[3].mxu1 }
 0x5eb   : > { %v5989_v31 = vmax.f32 %v5957_v60, 0.0  ;;  %v5958_v19 = vadd.f32 %v9417_v46, %v5794_v6 }
 0x5ec   : > { %v6723_v39 = vpack.c.bf16 %v5991_v13, %v5991_v13  ;;  %v5992_v17 = vmax.f32 %v5960_v53, 0.0 }
 0x5ed   : > { %v6721_v33 = vpack.c.bf16 %v5989_v31, %v5989_v31  ;;  %v5990_v34 = vmax.f32 %v5958_v19, 0.0 }
 0x5ee   : > { %6151 = vst.msk [vmem:[%s9426_s28 + $0x8] sm:$0xf] %vm3236_vm2, %v6723_v39  ;;  %v6724_v51 = vpack.c.bf16 %v5992_v17, %v5992_v17 }
 0x5ef   : > { %6149 = vst.msk [vmem:[%s9426_s28] sm:$0xf] %vm3236_vm2, %v6721_v33  ;;  %v6722_v52 = vpack.c.bf16 %v5990_v34, %v5990_v34  ;;  %v7724_v42 = vpop.f32.mrb[4].mxu1 }
 0x5f0   : > { %6152 = vst.msk [vmem:[%s9426_s28 + $0xc] sm:$0xf] %vm3236_vm2, %v6724_v51  ;;  %v5963_v49 = vadd.f32 %v7724_v42, %v9417_v46  ;;  %v5807_v2 = vpop.f32.mrb[5].mxu1 }
 0x5f1   : > { %6150 = vst.msk [vmem:[%s9426_s28 + $0x4] sm:$0xf] %vm3236_vm2, %v6722_v52  ;;  %v5961_v3 = vadd.f32 %v9417_v46, %v5807_v2  ;;  %v7725_v14 = vpop.f32.mrb[6].mxu1 }
 0x5f2   : > { %v5995_v28 = vmax.f32 %v5963_v49, 0.0  ;;  %v5964_v21 = vadd.f32 %v7725_v14, %v9417_v46  ;;  %v5810_v62 = vpop.f32.mrb[7].mxu1 }
 0x5f3   : > { %v5993_v47 = vmax.f32 %v5961_v3, 0.0  ;;  %v5962_v29 = vadd.f32 %v9417_v46, %v5810_v62 }
 0x5f4   : > { %v6727_v9 = vpack.c.bf16 %v5995_v28, %v5995_v28  ;;  %v5996_v4 = vmax.f32 %v5964_v21, 0.0 }
 0x5f5   : > { %v6725_v11 = vpack.c.bf16 %v5993_v47, %v5993_v47  ;;  %v5994_v16 = vmax.f32 %v5962_v29, 0.0 }
 0x5f6   : > { %6155 = vst.msk [vmem:[%s9426_s28 + $0x18] sm:$0xf] %vm3236_vm2, %v6727_v9  ;;  %v6728_v22 = vpack.c.bf16 %v5996_v4, %v5996_v4 }
 0x5f7   : > { %6153 = vst.msk [vmem:[%s9426_s28 + $0x10] sm:$0xf] %vm3236_vm2, %v6725_v11  ;;  %v6726_v54 = vpack.c.bf16 %v5994_v16, %v5994_v16  ;;  %v7728_v63 = vpop.f32.mrb[8].mxu1 }
 0x5f8   : > { %6156 = vst.msk [vmem:[%s9426_s28 + $0x1c] sm:$0xf] %vm3236_vm2, %v6728_v22  ;;  %v5967_v59 = vadd.f32 %v7728_v63, %v9417_v46  ;;  %v5823_v43 = vpop.f32.mrb[9].mxu1 }
 0x5f9   : > { %6154 = vst.msk [vmem:[%s9426_s28 + $0x14] sm:$0xf] %vm3236_vm2, %v6726_v54  ;;  %v5965_v44 = vadd.f32 %v9417_v46, %v5823_v43  ;;  %v7729_v58 = vpop.f32.mrb[10].mxu1 }
 0x5fa   : > { %v5999_v1 = vmax.f32 %v5967_v59, 0.0  ;;  %v5968_v12 = vadd.f32 %v7729_v58, %v9417_v46  ;;  %v5826_v40 = vpop.f32.mrb[11].mxu1 }
 0x5fb   : > { %v5997_v5 = vmax.f32 %v5965_v44, 0.0  ;;  %v5966_v41 = vadd.f32 %v9417_v46, %v5826_v40 }
 0x5fc   : > { %v6731_v55 = vpack.c.bf16 %v5999_v1, %v5999_v1  ;;  %v6000_v61 = vmax.f32 %v5968_v12, 0.0 }
 0x5fd   : > { %v6729_v18 = vpack.c.bf16 %v5997_v5, %v5997_v5  ;;  %v5998_v26 = vmax.f32 %v5966_v41, 0.0 }
 0x5fe   : > { %6159 = vst.msk [vmem:[%s9426_s28 + $0x28] sm:$0xf] %vm3236_vm2, %v6731_v55  ;;  %v6732_v30 = vpack.c.bf16 %v6000_v61, %v6000_v61 }
 0x5ff   : > { %6157 = vst.msk [vmem:[%s9426_s28 + $0x20] sm:$0xf] %vm3236_vm2, %v6729_v18  ;;  %v6730_v20 = vpack.c.bf16 %v5998_v26, %v5998_v26  ;;  %v7732_v48 = vpop.f32.mrb[12].mxu1 }
 0x600   : > { %6160 = vst.msk [vmem:[%s9426_s28 + $0x2c] sm:$0xf] %vm3236_vm2, %v6732_v30  ;;  %v5971_v0 = vadd.f32 %v7732_v48, %v9417_v46  ;;  %v5839_v7 = vpop.f32.mrb[13].mxu1 }
 0x601   : > { %6158 = vst.msk [vmem:[%s9426_s28 + $0x24] sm:$0xf] %vm3236_vm2, %v6730_v20  ;;  %v5969_v8 = vadd.f32 %v9417_v46, %v5839_v7  ;;  %v7733_v15 = vpop.f32.mrb[14].mxu1 }
 0x602   : > { %v6003_v24 = vmax.f32 %v5971_v0, 0.0  ;;  %v5972_v25 = vadd.f32 %v7733_v15, %v9417_v46  ;;  %v5842_v27 = vpop.f32.mrb[15].mxu1 }
 0x603   : > { %v6001_v36 = vmax.f32 %v5969_v8, 0.0  ;;  %v5970_v38 = vadd.f32 %v9417_v46, %v5842_v27 }
 0x604   : > { %v6735_v45 = vpack.c.bf16 %v6003_v24, %v6003_v24  ;;  %v6004_v23 = vmax.f32 %v5972_v25, 0.0 }
 0x605   : > { %v6733_v57 = vpack.c.bf16 %v6001_v36, %v6001_v36  ;;  %v6002_v10 = vmax.f32 %v5970_v38, 0.0 }
 0x606   : > { %6163 = vst.msk [vmem:[%s9426_s28 + $0x38] sm:$0xf] %vm3236_vm2, %v6735_v45  ;;  %v6736_v37 = vpack.c.bf16 %v6004_v23, %v6004_v23 }
 0x607   : > { %6161 = vst.msk [vmem:[%s9426_s28 + $0x30] sm:$0xf] %vm3236_vm2, %v6733_v57  ;;  %v6734_v35 = vpack.c.bf16 %v6002_v10, %v6002_v10  ;;  %v7736_v32 = vpop.f32.mrb[16].mxu1 }
 0x608   : > { %6164 = vst.msk [vmem:[%s9426_s28 + $0x3c] sm:$0xf] %vm3236_vm2, %v6736_v37  ;;  %v5975_v56 = vadd.f32 %v7736_v32, %v9417_v46  ;;  %v5855_v60 = vpop.f32.mrb[17].mxu1 }
 0x609   : > { %6162 = vst.msk [vmem:[%s9426_s28 + $0x34] sm:$0xf] %vm3236_vm2, %v6734_v35  ;;  %v5973_v50 = vadd.f32 %v9417_v46, %v5855_v60  ;;  %v7737_v13 = vpop.f32.mrb[18].mxu1 }
 0x60a   : > { %v6007_v53 = vmax.f32 %v5975_v56, 0.0  ;;  %v5976_v6 = vadd.f32 %v7737_v13, %v9417_v46  ;;  %v5858_v31 = vpop.f32.mrb[19].mxu1 }
 0x60b   : > { %v6005_v19 = vmax.f32 %v5973_v50, 0.0  ;;  %v5974_v39 = vadd.f32 %v9417_v46, %v5858_v31 }
 0x60c   : > { %v6739_v17 = vpack.c.bf16 %v6007_v53, %v6007_v53  ;;  %v6008_v33 = vmax.f32 %v5976_v6, 0.0 }
 0x60d   : > { %v6737_v34 = vpack.c.bf16 %v6005_v19, %v6005_v19  ;;  %v6006_v51 = vmax.f32 %v5974_v39, 0.0 }
 0x60e   : > { %6167 = vst.msk [vmem:[%s9426_s28 + $0x48] sm:$0xf] %vm3236_vm2, %v6739_v17  ;;  %v6740_v52 = vpack.c.bf16 %v6008_v33, %v6008_v33 }
 0x60f   : > { %6165 = vst.msk [vmem:[%s9426_s28 + $0x40] sm:$0xf] %vm3236_vm2, %v6737_v34  ;;  %v6738_v42 = vpack.c.bf16 %v6006_v51, %v6006_v51  ;;  %v7740_v49 = vpop.f32.mrb[20].mxu1 }
 0x610   : > { %6168 = vst.msk [vmem:[%s9426_s28 + $0x4c] sm:$0xf] %vm3236_vm2, %v6740_v52  ;;  %v5979_v2 = vadd.f32 %v7740_v49, %v9417_v46  ;;  %v5871_v3 = vpop.f32.mrb[21].mxu1 }
 0x611   : > { %6166 = vst.msk [vmem:[%s9426_s28 + $0x44] sm:$0xf] %vm3236_vm2, %v6738_v42  ;;  %v5977_v14 = vadd.f32 %v9417_v46, %v5871_v3  ;;  %v7741_v28 = vpop.f32.mrb[22].mxu1 }
 0x612   : > { %v6011_v21 = vmax.f32 %v5979_v2, 0.0  ;;  %v5980_v62 = vadd.f32 %v7741_v28, %v9417_v46  ;;  %v5874_v47 = vpop.f32.mrb[23].mxu1 }
 0x613   : > { %v6009_v29 = vmax.f32 %v5977_v14, 0.0  ;;  %v5978_v9 = vadd.f32 %v9417_v46, %v5874_v47 }
 0x614   : > { %v6743_v4 = vpack.c.bf16 %v6011_v21, %v6011_v21  ;;  %v6012_v11 = vmax.f32 %v5980_v62, 0.0 }
 0x615   : > { %v6741_v16 = vpack.c.bf16 %v6009_v29, %v6009_v29  ;;  %v6010_v22 = vmax.f32 %v5978_v9, 0.0 }
 0x616   : > { %6171 = vst.msk [vmem:[%s9426_s28 + $0x58] sm:$0xf] %vm3236_vm2, %v6743_v4  ;;  %v6744_v54 = vpack.c.bf16 %v6012_v11, %v6012_v11 }
 0x617   : > { %6169 = vst.msk [vmem:[%s9426_s28 + $0x50] sm:$0xf] %vm3236_vm2, %v6741_v16  ;;  %v6742_v63 = vpack.c.bf16 %v6010_v22, %v6010_v22  ;;  %v7744_v59 = vpop.f32.mrb[24].mxu1 }
 0x618   : > { %6172 = vst.msk [vmem:[%s9426_s28 + $0x5c] sm:$0xf] %vm3236_vm2, %v6744_v54  ;;  %v5983_v43 = vadd.f32 %v7744_v59, %v9417_v46  ;;  %v5887_v44 = vpop.f32.mrb[25].mxu1 }
 0x619   : > { %6170 = vst.msk [vmem:[%s9426_s28 + $0x54] sm:$0xf] %vm3236_vm2, %v6742_v63  ;;  %v5981_v58 = vadd.f32 %v9417_v46, %v5887_v44  ;;  %v7745_v1 = vpop.f32.mrb[26].mxu1 }
 0x61a   : > { %v6015_v12 = vmax.f32 %v5983_v43, 0.0  ;;  %v5984_v40 = vadd.f32 %v7745_v1, %v9417_v46  ;;  %v5890_v5 = vpop.f32.mrb[27].mxu1 }
 0x61b   : > { %v6013_v41 = vmax.f32 %v5981_v58, 0.0  ;;  %v5982_v55 = vadd.f32 %v9417_v46, %v5890_v5 }
 0x61c   : > { %v6747_v61 = vpack.c.bf16 %v6015_v12, %v6015_v12  ;;  %v6016_v18 = vmax.f32 %v5984_v40, 0.0 }
 0x61d   : > { %v6745_v26 = vpack.c.bf16 %v6013_v41, %v6013_v41  ;;  %v6014_v30 = vmax.f32 %v5982_v55, 0.0 }
 0x61e   : > { %6175 = vst.msk [vmem:[%s9426_s28 + $0x68] sm:$0xf] %vm3236_vm2, %v6747_v61  ;;  %v6748_v20 = vpack.c.bf16 %v6016_v18, %v6016_v18 }
 0x61f   : > { %6173 = vst.msk [vmem:[%s9426_s28 + $0x60] sm:$0xf] %vm3236_vm2, %v6745_v26  ;;  %v6746_v48 = vpack.c.bf16 %v6014_v30, %v6014_v30  ;;  %v7748_v0 = vpop.f32.mrb[28].mxu1 }
 0x620   : > { %6176 = vst.msk [vmem:[%s9426_s28 + $0x6c] sm:$0xf] %vm3236_vm2, %v6748_v20  ;;  %v5987_v7 = vadd.f32 %v7748_v0, %v9417_v46  ;;  %v5903_v8 = vpop.f32.mrb[29].mxu1 }
 0x621   : > { %6174 = vst.msk [vmem:[%s9426_s28 + $0x64] sm:$0xf] %vm3236_vm2, %v6746_v48  ;;  %v5985_v15 = vadd.f32 %v9417_v46, %v5903_v8  ;;  %v7749_v24 = vpop.f32.mrb[30].mxu1 }
 0x622   : > { %v6019_v25 = vmax.f32 %v5987_v7, 0.0  ;;  %v5988_v27 = vadd.f32 %v7749_v24, %v9417_v46  ;;  %v5906_v36 = vpop.f32.mrb[31].mxu1 }
 0x623   : > { %v6017_v38 = vmax.f32 %v5985_v15, 0.0  ;;  %v5986_v45 = vadd.f32 %v9417_v46, %v5906_v36 }
 0x624   : > { %v6751_v23 = vpack.c.bf16 %v6019_v25, %v6019_v25  ;;  %v6020_v57 = vmax.f32 %v5988_v27, 0.0 }
 0x625   : > { %v6749_v10 = vpack.c.bf16 %v6017_v38, %v6017_v38  ;;  %v6018_v37 = vmax.f32 %v5986_v45, 0.0 }
 0x626   : > { %6179 = vst.msk [vmem:[%s9426_s28 + $0x78] sm:$0xf] %vm3236_vm2, %v6751_v23  ;;  %v6752_v35 = vpack.c.bf16 %v6020_v57, %v6020_v57 }
 0x627   : > { %6177 = vst.msk [vmem:[%s9426_s28 + $0x70] sm:$0xf] %vm3236_vm2, %v6749_v10  ;;  %v6750_v32 = vpack.c.bf16 %v6018_v37, %v6018_v37 }
 0x628   : > { %6180 = vst.msk [vmem:[%s9426_s28 + $0x7c] sm:$0xf] %vm3236_vm2, %v6752_v35 }
 0x629   : > { %6178 = vst.msk [vmem:[%s9426_s28 + $0x74] sm:$0xf] %vm3236_vm2, %v6750_v32 }
 0x62a PF: > { %s17_s21 = sadd.s32 1, %s8295_s21  }
 0x62b   : > { %p14_p4 = scmp.ge.s32.totalorder %s17_s21, 4  }
 0x62d   :  { %16 = sbr.rel (!%p14_p4) target bundleno = 1 (0x1), region = 100 }

// kernel: u2net_forward.5
= control target key start
LH: loop header
LB: loop body
LE: loop exit
PB: predicated region body
PF: predicated region fallthrough
CT: control target
= control target key end

     0   :  { %s10509_s29 = smov 0   ;;  %s13221_s0 = inlined_call_operand.vmem [shape: bf16[2,16,16,16], index: 0, kind: input, shape index: {}]   ;;  %s13222_s1 = inlined_call_operand.vmem [shape: bf16[2,16,16,16], index: 1, kind: input, shape index: {}]   ;;  %s13223_s2 = inlined_call_operand.vmem [shape: bf16[2,16,16,16], index: 2, kind: input, shape index: {}]   ;;  %s13224_s3 = inlined_call_operand.vmem [shape: bf16[9,16,16], index: 3, kind: input, shape index: {}]   ;;  %s13225_s4 = inlined_call_operand.vmem [shape: bf16[9,16,16], index: 4, kind: input, shape index: {}]   ;;  %s13226_s5 = inlined_call_operand.vmem [shape: f32[1,16], index: 5, kind: input, shape index: {}]   ;;  %s13227_s6 = inlined_call_operand.vmem [shape: bf16[9,1,16], index: 6, kind: input, shape index: {}]   ;;  %s13228_s7 = inlined_call_operand.<no memory space> [shape: f32[1,1], index: 7, kind: input, shape index: {}]   ;;  %s13229_s8 = inlined_call_operand.vmem [shape: f32[2,256,1], index: 8, kind: output, shape index: {}]  }
   0x1   :  { %v13_v0 = vstv %s13228_s7 }
   0x2   :  { %14 = vst [vmem:[#allocation3] sm:$0x1] %v13_v0 }
   0x3 LB: > { %s8197_s30 = sadd.s32 4294967295, %s10458_s29   ;;  %p8201_p0 = scmp.ge.s32.totalorder %s10458_s29, 1  ;;  %s10458_s29 = sphi %s10509_s29, %s20_s29  }
   0x4   : > { %p284_p1 = scmp.lt.s32.totalorder %s10458_s29, 3 }
   0x6   : > { %p285_p2 = pnand %p8201_p0, %p284_p1 }
   0x8   : > { %288 = sbr.rel (%p285_p2) target bundleno = 1541 (0x605), region = 52 }
   0xf   : > { %v10304_v1 = vld [vmem:[%s13224_s3 + $0x8] sm:$0xff]   ;;  %vm349_vm0 = vcmask 130048   ;;  %vm352_vm1 = vcmask 123904   ;;  %p10522_p3 = scmp.lt.s32.totalorder %s8197_s30, 1  ;;  %v10460_v3 = vmov 0.0   ;;  %v10592_v4 = vld [vmem:[%s13224_s3] sm:$0xff]  }
  0x10   : > { %v10305_v2 = vld [vmem:[%s13225_s4 + $0x8] sm:$0xff]   ;;  %9139 = vmatprep.subr.bf16.mxu1 %v10304_v1  ;;  %350 = vst.msk [vmem:[#allocation2] sm:$0xff] %vm349_vm0, %v10460_v3  ;;  %351 = vst.msk [vmem:[#allocation2 + $0x8] sm:$0xff] %vm349_vm0, %v10460_v3  ;;  %v10597_v5 = vld [vmem:[%s13225_s4] sm:$0xff]   ;;  %vm8085_vm2 = vcmask 7168  }
  0x11   : > { %353 = vst.msk [vmem:[#allocation2 + $0x10] sm:$0x3] %vm352_vm1, %v10460_v3  ;;  %356 = vst.msk [vmem:[#allocation2 + $0x28] sm:$0x3] %vm352_vm1, %v10460_v3  ;;  %9140 = vmatpush3.bf16.msra.mxu1 %v10304_v1  ;;  %s13385_s30 = smov (!%p10522_p3, %s8197_s30), 1  ;;  %9445 = vmatprep.subr.bf16.mxu0 %v10305_v2  ;;  %v10672_v57 = vld [vmem:[%s13224_s3 + $0x10] sm:$0xff]  }
  0x12   : > { %354 = vst.msk [vmem:[#allocation2 + $0x18] sm:$0xff] %vm349_vm0, %v10460_v3  ;;  %355 = vst.msk [vmem:[#allocation2 + $0x20] sm:$0xff] %vm349_vm0, %v10460_v3  ;;  %9446 = vmatpush3.bf16.msra.mxu0 %v10305_v2  ;;  %s10600_s17 = sshll.u32 %s13385_s30, 7  ;;  %9173 = vmatprep.subr.bf16.mxu1 %v10592_v4  ;;  %s8595_s13 = sshll.u32 %s13385_s30, 8 }
  0x13   : > { %357 = vst.msk [vmem:[#allocation2 + $0x30] sm:$0xff] %vm349_vm0, %v10460_v3  ;;  %358 = vst.msk [vmem:[#allocation2 + $0x38] sm:$0xff] %vm349_vm0, %v10460_v3  ;;  %s10607_s20 = scalar_lea.vmem %s13221_s0, %s10600_s17  ;;  %9479 = vmatprep.subr.bf16.mxu0 %v10597_v5  ;;  %s10618_s23 = scalar_lea.vmem %s13222_s1, %s10600_s17 }
  0x14   : > { %359 = vst.msk [vmem:[#allocation2 + $0x40] sm:$0x3] %vm352_vm1, %v10460_v3  ;;  %362 = vst.msk [vmem:[#allocation2 + $0x58] sm:$0x3] %vm352_vm1, %v10460_v3  ;;  %v8597_v6 = vld [vmem:[%s10607_s20] sm:$0xff]   ;;  %v8788_v7 = vld [vmem:[%s10607_s20 + $0x8] sm:$0xff]   ;;  %s11803_s24 = scalar_lea.vmem %s13223_s2, %s10600_s17  ;;  %s12333_s16 = scalar_lea.vmem %s13229_s8, %s8595_s13 }
  0x15   : > { %360 = vst.msk [vmem:[#allocation2 + $0x48] sm:$0xff] %vm349_vm0, %v10460_v3  ;;  %361 = vst.msk [vmem:[#allocation2 + $0x50] sm:$0xff] %vm349_vm0, %v10460_v3  ;;  %v8598_v8 = vunpack.c.l.bf16 %v8597_v6  ;;  %v8599_v9 = vunpack.c.h.bf16 %v8597_v6  ;;  %v8789_v10 = vld [vmem:[%s10607_s20 + $0x10] sm:$0xff]   ;;  %v8790_v11 = vld [vmem:[%s10607_s20 + $0x18] sm:$0xff]   ;;  %v8602_v14 = vunpack.c.l.bf16 %v8788_v7  ;;  %v8603_v15 = vunpack.c.h.bf16 %v8788_v7 }
  0x16   : > { %363 = vst.msk [vmem:[#allocation2 + $0x60] sm:$0xff] %vm349_vm0, %v10460_v3  ;;  %364 = vst.msk [vmem:[#allocation2 + $0x68] sm:$0xff] %vm349_vm0, %v10460_v3  ;;  %v8606_v16 = vunpack.c.l.bf16 %v8789_v10  ;;  %v8607_v17 = vunpack.c.h.bf16 %v8789_v10  ;;  %v8791_v18 = vld [vmem:[%s10607_s20 + $0x20] sm:$0xff]   ;;  %v8610_v20 = vunpack.c.l.bf16 %v8790_v11  ;;  %v8611_v21 = vunpack.c.h.bf16 %v8790_v11  ;;  %v8792_v22 = vld [vmem:[%s10607_s20 + $0x28] sm:$0xff]  }
  0x17   : > { %365 = vst.msk [vmem:[#allocation2 + $0x70] sm:$0x3] %vm352_vm1, %v10460_v3  ;;  %368 = vst.msk [vmem:[#allocation2 + $0x88] sm:$0x3] %vm352_vm1, %v10460_v3  ;;  %v552_v12 = vld [vmem:[#allocation2 + $0x1] sm:$0xff]  ;;  %v8614_v23 = vunpack.c.l.bf16 %v8791_v18  ;;  %v8615_v24 = vunpack.c.h.bf16 %v8791_v18  ;;  %v8793_v25 = vld [vmem:[%s10607_s20 + $0x30] sm:$0xff]   ;;  %v8618_v28 = vunpack.c.l.bf16 %v8792_v22  ;;  %v8619_v29 = vunpack.c.h.bf16 %v8792_v22 }
  0x18   : > { %366 = vst.msk [vmem:[#allocation2 + $0x78] sm:$0xff] %vm349_vm0, %v10460_v3  ;;  %367 = vst.msk [vmem:[#allocation2 + $0x80] sm:$0xff] %vm349_vm0, %v10460_v3  ;;  %v553_v13 = vld [vmem:[#allocation2 + $0x9] sm:$0xff]  ;;  %v8794_v26 = vld [vmem:[%s10607_s20 + $0x38] sm:$0xff]   ;;  %v8622_v31 = vunpack.c.l.bf16 %v8793_v25  ;;  %v8623_v32 = vunpack.c.h.bf16 %v8793_v25 }
  0x19   : > { %369 = vst.msk [vmem:[#allocation2 + $0x90] sm:$0xff] %vm349_vm0, %v10460_v3  ;;  %370 = vst.msk [vmem:[#allocation2 + $0x98] sm:$0xff] %vm349_vm0, %v10460_v3  ;;  %v584_v19 = vpack.c.bf16 %v553_v13, %v552_v12  ;;  %v8661_v27 = vld [vmem:[%s10618_s23] sm:$0xff]   ;;  %v8796_v33 = vld [vmem:[%s10607_s20 + $0x48] sm:$0xff]   ;;  %v8626_v35 = vunpack.c.l.bf16 %v8794_v26  ;;  %v8627_v36 = vunpack.c.h.bf16 %v8794_v26 }
  0x1a   : > { %371 = vst.msk [vmem:[#allocation2 + $0xa0] sm:$0x3] %vm352_vm1, %v10460_v3  ;;  %374 = vst.msk [vmem:[#allocation2 + $0xb8] sm:$0x3] %vm352_vm1, %v10460_v3  ;;  %v8795_v30 = vld [vmem:[%s10607_s20 + $0x40] sm:$0xff]   ;;  %v10640_v34 = vld [vmem:[%s10618_s23 + $0x8] sm:$0xff]   ;;  %v8662_v38 = vunpack.c.l.bf16 %v8661_v27  ;;  %v8663_v39 = vunpack.c.h.bf16 %v8661_v27  ;;  %v8634_v45 = vunpack.c.l.bf16 %v8796_v33  ;;  %v8635_v46 = vunpack.c.h.bf16 %v8796_v33 }
  0x1b   : > { %372 = vst.msk [vmem:[#allocation2 + $0xa8] sm:$0xff] %vm349_vm0, %v10460_v3  ;;  %373 = vst.msk [vmem:[#allocation2 + $0xb0] sm:$0xff] %vm349_vm0, %v10460_v3  ;;  %9141 = vmatprep.mubr.msk.bf16.mxu1 %vm349_vm0, %v584_v19  ;;  %9447 = vmatprep.mubr.msk.bf16.mxu0 %vm349_vm0, %v584_v19  ;;  %v8797_v37 = vld [vmem:[%s10607_s20 + $0x50] sm:$0xff]   ;;  %v8630_v41 = vunpack.c.l.bf16 %v8795_v30  ;;  %v8631_v42 = vunpack.c.h.bf16 %v8795_v30  ;;  %v8798_v43 = vld [vmem:[%s10607_s20 + $0x58] sm:$0xff]   ;;  %v8666_v53 = vunpack.c.l.bf16 %v10640_v34  ;;  %v8667_v54 = vunpack.c.h.bf16 %v10640_v34 }
  0x1c   : > { %375 = vst.msk [vmem:[#allocation2 + $0xc0] sm:$0xff] %vm349_vm0, %v10460_v3  ;;  %376 = vst.msk [vmem:[#allocation2 + $0xc8] sm:$0xff] %vm349_vm0, %v10460_v3  ;;  %v10646_v40 = vld [vmem:[%s10618_s23 + $0x10] sm:$0xff]   ;;  %v10652_v44 = vld [vmem:[%s10618_s23 + $0x18] sm:$0xff]   ;;  %v8638_v55 = vunpack.c.l.bf16 %v8797_v37  ;;  %v8639_v56 = vunpack.c.h.bf16 %v8797_v37  ;;  %v8642_v62 = vunpack.c.l.bf16 %v8798_v43  ;;  %v8643_v63 = vunpack.c.h.bf16 %v8798_v43 }
  0x1d   : > { %377 = vst.msk [vmem:[#allocation2 + $0xd0] sm:$0x3] %vm352_vm1, %v10460_v3  ;;  %380 = vst.msk [vmem:[#allocation2 + $0xe8] sm:$0x3] %vm352_vm1, %v10460_v3  ;;  %v8799_v47 = vld [vmem:[%s10607_s20 + $0x60] sm:$0xff]   ;;  %v8800_v48 = vld [vmem:[%s10607_s20 + $0x68] sm:$0xff]   ;;  %v8670_v61 = vunpack.c.l.bf16 %v10646_v40  ;;  %v8671_v6 = vunpack.c.h.bf16 %v10646_v40  ;;  %v8674_v19 = vunpack.c.l.bf16 %v10652_v44 }
  0x1e   : > { %378 = vst.msk [vmem:[#allocation2 + $0xd8] sm:$0xff] %vm349_vm0, %v10460_v3  ;;  %379 = vst.msk [vmem:[#allocation2 + $0xe0] sm:$0xff] %vm349_vm0, %v10460_v3  ;;  %v10659_v49 = vld [vmem:[%s10607_s20 + $0x70] sm:$0xff]   ;;  %v10691_v7 = vld [vmem:[%s10618_s23 + $0x20] sm:$0xff]   ;;  %v8650_v13 = vunpack.c.l.bf16 %v8800_v48 }
  0x1f   : > { %381 = vst.msk [vmem:[#allocation2 + $0xf0] sm:$0xff] %vm349_vm0, %v10460_v3  ;;  %382 = vst.msk [vmem:[#allocation2 + $0xf8] sm:$0xff] %vm349_vm0, %v10460_v3  ;;  %v8654_v22 = vunpack.c.l.bf16 %v10659_v49  ;;  %v8655_v26 = vunpack.c.h.bf16 %v10659_v49  ;;  %v8679_v33 = vunpack.c.h.bf16 %v10691_v7 }
  0x20   : > { %383 = vst.msk [vmem:[#allocation2 + $0x100] sm:$0x3] %vm352_vm1, %v10460_v3  ;;  %386 = vst.msk [vmem:[#allocation2 + $0x118] sm:$0x3] %vm352_vm1, %v10460_v3 }
  0x21   : > { %384 = vst.msk [vmem:[#allocation2 + $0x108] sm:$0xff] %vm349_vm0, %v10460_v3  ;;  %385 = vst.msk [vmem:[#allocation2 + $0x110] sm:$0xff] %vm349_vm0, %v10460_v3 }
  0x22   : > { %387 = vst.msk [vmem:[#allocation2 + $0x120] sm:$0xff] %vm349_vm0, %v10460_v3  ;;  %388 = vst.msk [vmem:[#allocation2 + $0x128] sm:$0xff] %vm349_vm0, %v10460_v3 }
  0x23   : > { %389 = vst.msk [vmem:[#allocation2 + $0x130] sm:$0x3] %vm352_vm1, %v10460_v3  ;;  %392 = vst.msk [vmem:[#allocation2 + $0x148] sm:$0x3] %vm352_vm1, %v10460_v3 }
  0x24   : > { %390 = vst.msk [vmem:[#allocation2 + $0x138] sm:$0xff] %vm349_vm0, %v10460_v3  ;;  %391 = vst.msk [vmem:[#allocation2 + $0x140] sm:$0xff] %vm349_vm0, %v10460_v3 }
  0x25   : > { %393 = vst.msk [vmem:[#allocation2 + $0x150] sm:$0xff] %vm349_vm0, %v10460_v3  ;;  %394 = vst.msk [vmem:[#allocation2 + $0x158] sm:$0xff] %vm349_vm0, %v10460_v3 }
  0x26   : > { %395 = vst.msk [vmem:[#allocation2 + $0x160] sm:$0x3] %vm352_vm1, %v10460_v3  ;;  %398 = vst.msk [vmem:[#allocation2 + $0x178] sm:$0x3] %vm352_vm1, %v10460_v3 }
  0x27   : > { %396 = vst.msk [vmem:[#allocation2 + $0x168] sm:$0xff] %vm349_vm0, %v10460_v3  ;;  %397 = vst.msk [vmem:[#allocation2 + $0x170] sm:$0xff] %vm349_vm0, %v10460_v3 }
  0x28   : > { %399 = vst.msk [vmem:[#allocation2 + $0x180] sm:$0xff] %vm349_vm0, %v10460_v3  ;;  %400 = vst.msk [vmem:[#allocation2 + $0x188] sm:$0xff] %vm349_vm0, %v10460_v3 }
  0x29   : > { %401 = vst.msk [vmem:[#allocation2 + $0x190] sm:$0x3] %vm352_vm1, %v10460_v3  ;;  %404 = vst.msk [vmem:[#allocation2 + $0x1a8] sm:$0x3] %vm352_vm1, %v10460_v3 }
  0x2a   : > { %402 = vst.msk [vmem:[#allocation2 + $0x198] sm:$0xff] %vm349_vm0, %v10460_v3  ;;  %403 = vst.msk [vmem:[#allocation2 + $0x1a0] sm:$0xff] %vm349_vm0, %v10460_v3 }
  0x2b   : > { %470 = vst.msk [vmem:[#allocation2 + $0x19] sm:$0xff] %vm349_vm0, %v8598_v8  ;;  %471 = vst.msk [vmem:[#allocation2 + $0x21] sm:$0xff] %vm349_vm0, %v8599_v9  ;;  %v8646_v8 = vunpack.c.l.bf16 %v8799_v47  ;;  %v8647_v9 = vunpack.c.h.bf16 %v8799_v47 }
  0x2c   : > { %472 = vst.msk [vmem:[#allocation2 + $0x31] sm:$0xff] %vm349_vm0, %v8602_v14  ;;  %473 = vst.msk [vmem:[#allocation2 + $0x39] sm:$0xff] %vm349_vm0, %v8603_v15  ;;  %v8651_v14 = vunpack.c.h.bf16 %v8800_v48 }
  0x2d   : > { %474 = vst.msk [vmem:[#allocation2 + $0x49] sm:$0xff] %vm349_vm0, %v8606_v16  ;;  %475 = vst.msk [vmem:[#allocation2 + $0x51] sm:$0xff] %vm349_vm0, %v8607_v17 }
  0x2e   : > { %476 = vst.msk [vmem:[#allocation2 + $0x61] sm:$0xff] %vm349_vm0, %v8610_v20  ;;  %477 = vst.msk [vmem:[#allocation2 + $0x69] sm:$0xff] %vm349_vm0, %v8611_v21  ;;  %v8675_v20 = vunpack.c.h.bf16 %v10652_v44  ;;  %v10714_v21 = vld [vmem:[%s10618_s23 + $0x28] sm:$0xff]  }
  0x2f   : > { %478 = vst.msk [vmem:[#allocation2 + $0x79] sm:$0xff] %vm349_vm0, %v8614_v23  ;;  %479 = vst.msk [vmem:[#allocation2 + $0x81] sm:$0xff] %vm349_vm0, %v8615_v24  ;;  %v8682_v44 = vunpack.c.l.bf16 %v10714_v21  ;;  %v8683_v49 = vunpack.c.h.bf16 %v10714_v21  ;;  %v8811_v21 = vld [vmem:[%s10618_s23 + $0x48] sm:$0xff]  }
  0x30   : > { %480 = vst.msk [vmem:[#allocation2 + $0x91] sm:$0xff] %vm349_vm0, %v8618_v28  ;;  %481 = vst.msk [vmem:[#allocation2 + $0x99] sm:$0xff] %vm349_vm0, %v8619_v29 }
  0x31   : > { %482 = vst.msk [vmem:[#allocation2 + $0xa9] sm:$0xff] %vm349_vm0, %v8622_v31  ;;  %483 = vst.msk [vmem:[#allocation2 + $0xb1] sm:$0xff] %vm349_vm0, %v8623_v32  ;;  %v8678_v32 = vunpack.c.l.bf16 %v10691_v7 }
  0x32   : > { %484 = vst.msk [vmem:[#allocation2 + $0xc1] sm:$0xff] %vm349_vm0, %v8626_v35  ;;  %485 = vst.msk [vmem:[#allocation2 + $0xc9] sm:$0xff] %vm349_vm0, %v8627_v36  ;;  %v10661_v50 = vld [vmem:[#allocation2 + $0x18] sm:$0xff]  ;;  %v10663_v51 = vld [vmem:[#allocation2 + $0x20] sm:$0xff] }
  0x33   : > { %v554_v52 = vld [vmem:[#allocation2 + $0x19] sm:$0xff]  ;;  %486 = vst.msk [vmem:[#allocation2 + $0xd9] sm:$0xff] %vm349_vm0, %v8630_v41  ;;  %487 = vst.msk [vmem:[#allocation2 + $0xe1] sm:$0xff] %vm349_vm0, %v8631_v42  ;;  %v555_v58 = vld [vmem:[#allocation2 + $0x21] sm:$0xff] }
  0x34   : > { %v10674_v59 = vld [vmem:[#allocation2 + $0x1a] sm:$0xff]  ;;  %v10676_v60 = vld [vmem:[#allocation2 + $0x22] sm:$0xff]  ;;  %488 = vst.msk [vmem:[#allocation2 + $0xf1] sm:$0xff] %vm349_vm0, %v8634_v45  ;;  %489 = vst.msk [vmem:[#allocation2 + $0xf9] sm:$0xff] %vm349_vm0, %v8635_v46  ;;  %v10681_v0 = vpack.c.bf16 %v555_v58, %v554_v52 }
  0x35   : > { %3184 = vst.msk [vmem:[#allocation2 + $0x19] sm:$0xff] %vm349_vm0, %v8662_v38  ;;  %3185 = vst.msk [vmem:[#allocation2 + $0x21] sm:$0xff] %vm349_vm0, %v8663_v39  ;;  %v10685_v1 = vld [vmem:[#allocation2 + $0x30] sm:$0xff]  ;;  %v10687_v2 = vld [vmem:[#allocation2 + $0x38] sm:$0xff] }
  0x36   : > { %13276 = vst [vmem:[#allocation4_spill] sm:$0xff] %v10681_v0  ;;  %v556_v3 = vld [vmem:[#allocation2 + $0x31] sm:$0xff]  ;;  %490 = vst.msk [vmem:[#allocation2 + $0x109] sm:$0xff] %vm349_vm0, %v8638_v55  ;;  %v557_v10 = vld [vmem:[#allocation2 + $0x39] sm:$0xff]  ;;  %9142 = vmatmul.mubr.msk.bf16.vlgmr.msra.gmra.mrb[0].mxu1 %vm349_vm0, %v10681_v0 }
  0x37   : > { %491 = vst.msk [vmem:[#allocation2 + $0x111] sm:$0xff] %vm349_vm0, %v8639_v56  ;;  %v10695_v11 = vld [vmem:[#allocation2 + $0x32] sm:$0xff]  ;;  %v10697_v12 = vld [vmem:[#allocation2 + $0x3a] sm:$0xff]  ;;  %492 = vst.msk [vmem:[#allocation2 + $0x121] sm:$0xff] %vm349_vm0, %v8642_v62  ;;  %v10703_v15 = vpack.c.bf16 %v557_v10, %v556_v3  ;;  %9174 = vmatpush3.bf16.msra.mxu1 %v10592_v4 }
  0x38   : > { %493 = vst.msk [vmem:[#allocation2 + $0x129] sm:$0xff] %vm349_vm0, %v8643_v63  ;;  %v10705_v16 = vld [vmem:[#allocation2 + $0x48] sm:$0xff]  ;;  %v10707_v17 = vld [vmem:[#allocation2 + $0x50] sm:$0xff]  ;;  %3186 = vst.msk [vmem:[#allocation2 + $0x31] sm:$0xff] %vm349_vm0, %v8666_v53  ;;  %9207 = vmatprep.subr.bf16.mxu1 %v10672_v57 }
  0x39   : > { %13277 = vst [vmem:[#allocation5_spill] sm:$0xff] %v10703_v15  ;;  %v558_v18 = vld [vmem:[#allocation2 + $0x49] sm:$0xff]  ;;  %3187 = vst.msk [vmem:[#allocation2 + $0x39] sm:$0xff] %vm349_vm0, %v8667_v54  ;;  %v559_v23 = vld [vmem:[#allocation2 + $0x51] sm:$0xff]  ;;  %9145 = vmatprep.mubr.msk.bf16.mxu1 %vm349_vm0, %v10703_v15 }
  0x3a   : > { %494 = vst.msk [vmem:[#allocation2 + $0x139] sm:$0xff] %vm349_vm0, %v8646_v8  ;;  %495 = vst.msk [vmem:[#allocation2 + $0x141] sm:$0xff] %vm349_vm0, %v8647_v9  ;;  %v10719_v24 = vld [vmem:[#allocation2 + $0x4a] sm:$0xff]  ;;  %v10721_v25 = vld [vmem:[#allocation2 + $0x52] sm:$0xff]  ;;  %v10744_v34 = vpack.c.bf16 %v559_v23, %v558_v18 }
  0x3b   : > { %496 = vst.msk [vmem:[#allocation2 + $0x151] sm:$0xff] %vm349_vm0, %v8650_v13  ;;  %497 = vst.msk [vmem:[#allocation2 + $0x159] sm:$0xff] %vm349_vm0, %v8651_v14  ;;  %v10729_v27 = vld [vmem:[#allocation2 + $0x60] sm:$0xff]  ;;  %v10731_v28 = vld [vmem:[#allocation2 + $0x68] sm:$0xff] }
  0x3c   : > { %v560_v29 = vld [vmem:[#allocation2 + $0x61] sm:$0xff]  ;;  %3188 = vst.msk [vmem:[#allocation2 + $0x49] sm:$0xff] %vm349_vm0, %v8670_v61  ;;  %3189 = vst.msk [vmem:[#allocation2 + $0x51] sm:$0xff] %vm349_vm0, %v8671_v6  ;;  %v561_v4 = vld [vmem:[#allocation2 + $0x69] sm:$0xff] }
  0x3d   : > { %498 = vst.msk [vmem:[#allocation2 + $0x169] sm:$0xff] %vm349_vm0, %v8654_v22  ;;  %v10737_v30 = vld [vmem:[#allocation2 + $0x62] sm:$0xff]  ;;  %v10739_v31 = vld [vmem:[#allocation2 + $0x6a] sm:$0xff]  ;;  %499 = vst.msk [vmem:[#allocation2 + $0x171] sm:$0xff] %vm349_vm0, %v8655_v26  ;;  %v10758_v42 = vpack.c.bf16 %v561_v4, %v560_v29 }
  0x3e   : > { %13278 = vst [vmem:[#allocation6_spill] sm:$0xff] %v10737_v30  ;;  %13279 = vst [vmem:[#allocation7_spill] sm:$0xff] %v10739_v31  ;;  %v10746_v35 = vld [vmem:[#allocation2 + $0x78] sm:$0xff]  ;;  %v10748_v36 = vld [vmem:[#allocation2 + $0x80] sm:$0xff]  ;;  %9146 = vmatmul.mubr.msk.bf16.gmra.mrb[4].mxu1 %vm349_vm0, %v10744_v34 }
  0x3f   : > { %13280 = vst [vmem:[#allocation8_spill] sm:$0xff] %v10744_v34  ;;  %v562_v37 = vld [vmem:[#allocation2 + $0x79] sm:$0xff]  ;;  %3190 = vst.msk [vmem:[#allocation2 + $0x61] sm:$0xff] %vm349_vm0, %v8674_v19  ;;  %v8808_v38 = vld [vmem:[%s10618_s23 + $0x30] sm:$0xff]   ;;  %9149 = vmatprep.mubr.msk.bf16.mxu1 %vm349_vm0, %v10758_v42 }
  0x40   : > { %3191 = vst.msk [vmem:[#allocation2 + $0x69] sm:$0xff] %vm349_vm0, %v8675_v20  ;;  %v10756_v39 = vld [vmem:[%s13225_s4 + $0x10] sm:$0xff]   ;;  %v3268_v40 = vld [vmem:[#allocation2 + $0x19] sm:$0xff]  ;;  %v3269_v41 = vld [vmem:[#allocation2 + $0x21] sm:$0xff]  ;;  %v8686_v7 = vunpack.c.l.bf16 %v8808_v38  ;;  %v8687_v8 = vunpack.c.h.bf16 %v8808_v38 }
  0x41   : > { %13281 = vst [vmem:[#allocation9_spill] sm:$0xff] %v10758_v42  ;;  %v563_v43 = vld [vmem:[#allocation2 + $0x81] sm:$0xff]  ;;  %v3299_v45 = vpack.c.bf16 %v3269_v41, %v3268_v40  ;;  %v10765_v48 = vld [vmem:[#allocation2 + $0x90] sm:$0xff]  ;;  %v8809_v52 = vld [vmem:[%s10618_s23 + $0x38] sm:$0xff]  }
  0x42   : > { %v10761_v46 = vld [vmem:[#allocation2 + $0x7a] sm:$0xff]  ;;  %v10763_v47 = vld [vmem:[#allocation2 + $0x82] sm:$0xff]  ;;  %v3270_v53 = vld [vmem:[#allocation2 + $0x31] sm:$0xff]  ;;  %v8690_v20 = vunpack.c.l.bf16 %v8809_v52  ;;  %v10793_v22 = vpack.c.bf16 %v563_v43, %v562_v37 }
  0x43   : > { %13282 = vst [vmem:[#allocation10_spill] sm:$0xff] %v10761_v46  ;;  %13283 = vst [vmem:[#allocation11_spill] sm:$0xff] %v10763_v47  ;;  %v3271_v54 = vld [vmem:[#allocation2 + $0x39] sm:$0xff]  ;;  %9448 = vmatmul.mubr.msk.bf16.vlgmr.msra.gmra.mrb[0].mxu0 %vm349_vm0, %v3299_v45  ;;  %v564_v58 = vld [vmem:[#allocation2 + $0x91] sm:$0xff] }
  0x44   : > { %v10769_v55 = vld [vmem:[#allocation2 + $0x98] sm:$0xff]  ;;  %3192 = vst.msk [vmem:[#allocation2 + $0x79] sm:$0xff] %vm349_vm0, %v8678_v32  ;;  %3193 = vst.msk [vmem:[#allocation2 + $0x81] sm:$0xff] %vm349_vm0, %v8679_v33  ;;  %v3300_v56 = vpack.c.bf16 %v3271_v54, %v3270_v53  ;;  %9480 = vmatpush3.bf16.msra.mxu0 %v10597_v5  ;;  %v3272_v63 = vld [vmem:[#allocation2 + $0x49] sm:$0xff]  ;;  %v8691_v32 = vunpack.c.h.bf16 %v8809_v52 }
  0x45   : > { %v565_v61 = vld [vmem:[#allocation2 + $0x99] sm:$0xff]  ;;  %v3273_v3 = vld [vmem:[#allocation2 + $0x51] sm:$0xff]  ;;  %v10786_v10 = vld [vmem:[#allocation2 + $0xa8] sm:$0xff]  ;;  %9513 = vmatprep.subr.bf16.mxu0 %v10756_v39  ;;  %13286 = vst [vmem:[#allocation14_spill] sm:$0xff] %v10793_v22 }
  0x46   : > { %v10776_v62 = vld [vmem:[#allocation2 + $0x92] sm:$0xff]  ;;  %v10781_v6 = vld [vmem:[#allocation2 + $0x9a] sm:$0xff]  ;;  %9451 = vmatprep.mubr.msk.bf16.mxu0 %vm349_vm0, %v3300_v56  ;;  %v566_v5 = vld [vmem:[#allocation2 + $0xa9] sm:$0xff]  ;;  %v3301_v23 = vpack.c.bf16 %v3273_v3, %v3272_v63  ;;  %v10801_v33 = vpack.c.bf16 %v565_v61, %v564_v58  ;;  %9150 = vmatmul.mubr.msk.bf16.gmra.mrb[8].mxu1 %vm349_vm0, %v10793_v22 }
  0x47   : > { %13284 = vst [vmem:[#allocation12_spill] sm:$0xff] %v10776_v62  ;;  %13285 = vst [vmem:[#allocation13_spill] sm:$0xff] %v10781_v6  ;;  %v8810_v9 = vld [vmem:[%s10618_s23 + $0x40] sm:$0xff]   ;;  %v10788_v13 = vld [vmem:[#allocation2 + $0xb0] sm:$0xff] }
  0x48   : > { %3194 = vst.msk [vmem:[#allocation2 + $0x91] sm:$0xff] %vm349_vm0, %v8682_v44  ;;  %3195 = vst.msk [vmem:[#allocation2 + $0x99] sm:$0xff] %vm349_vm0, %v8683_v49  ;;  %v3274_v14 = vld [vmem:[#allocation2 + $0x61] sm:$0xff]  ;;  %v3275_v18 = vld [vmem:[#allocation2 + $0x69] sm:$0xff]  ;;  %v8694_v43 = vunpack.c.l.bf16 %v8810_v9  ;;  %v8695_v45 = vunpack.c.h.bf16 %v8810_v9  ;;  %9153 = vmatprep.mubr.msk.bf16.mxu1 %vm349_vm0, %v10801_v33 }
  0x49   : > { %v567_v19 = vld [vmem:[#allocation2 + $0xb1] sm:$0xff]  ;;  %v10799_v4 = vld [vmem:[#allocation2 + $0xc0] sm:$0xff]  ;;  %13289 = vst [vmem:[#allocation17_spill] sm:$0xff] %v10801_v33  ;;  %v3302_v38 = vpack.c.bf16 %v3275_v18, %v3274_v14  ;;  %v10803_v40 = vld [vmem:[#allocation2 + $0xc8] sm:$0xff] }
  0x4a   : > { %v10795_v26 = vld [vmem:[#allocation2 + $0xaa] sm:$0xff]  ;;  %v10797_v29 = vld [vmem:[#allocation2 + $0xb2] sm:$0xff]  ;;  %v568_v41 = vld [vmem:[#allocation2 + $0xc1] sm:$0xff]  ;;  %v10839_v15 = vpack.c.bf16 %v567_v19, %v566_v5 }
  0x4b   : > { %13287 = vst [vmem:[#allocation15_spill] sm:$0xff] %v10795_v26  ;;  %13288 = vst [vmem:[#allocation16_spill] sm:$0xff] %v10797_v29  ;;  %v569_v44 = vld [vmem:[#allocation2 + $0xc9] sm:$0xff]  ;;  %v3276_v53 = vld [vmem:[#allocation2 + $0x79] sm:$0xff]  ;;  %9452 = vmatmul.mubr.msk.bf16.gmra.mrb[4].mxu0 %vm349_vm0, %v3301_v23 }
  0x4c   : > { %3196 = vst.msk [vmem:[#allocation2 + $0xa9] sm:$0xff] %vm349_vm0, %v8686_v7  ;;  %3197 = vst.msk [vmem:[#allocation2 + $0xb1] sm:$0xff] %vm349_vm0, %v8687_v8  ;;  %v10807_v37 = vld [vmem:[#allocation2 + $0xc2] sm:$0xff]  ;;  %v8812_v49 = vld [vmem:[%s10618_s23 + $0x50] sm:$0xff]   ;;  %v8698_v7 = vunpack.c.l.bf16 %v8811_v21  ;;  %v8699_v8 = vunpack.c.h.bf16 %v8811_v21  ;;  %9455 = vmatprep.mubr.msk.bf16.mxu0 %vm349_vm0, %v3302_v38 }
  0x4d   : > { %13290 = vst [vmem:[#allocation18_spill] sm:$0xff] %v10807_v37  ;;  %v3277_v54 = vld [vmem:[#allocation2 + $0x81] sm:$0xff]  ;;  %v10810_v52 = vld [vmem:[#allocation2 + $0xca] sm:$0xff]  ;;  %v10812_v56 = vld [vmem:[#allocation2 + $0xd8] sm:$0xff]  ;;  %v8702_v38 = vunpack.c.l.bf16 %v8812_v49  ;;  %v8703_v34 = vunpack.c.h.bf16 %v8812_v49 }
  0x4e   : > { %13291 = vst [vmem:[#allocation19_spill] sm:$0xff] %v10810_v52  ;;  %v10814_v58 = vld [vmem:[#allocation2 + $0xe0] sm:$0xff]  ;;  %3198 = vst.msk [vmem:[#allocation2 + $0xc1] sm:$0xff] %vm349_vm0, %v8690_v20  ;;  %v8813_v9 = vld [vmem:[%s10618_s23 + $0x58] sm:$0xff]   ;;  %v3303_v0 = vpack.c.bf16 %v3277_v54, %v3276_v53  ;;  %9154 = vmatmul.mubr.msk.bf16.gmra.mrb[12].mxu1 %vm349_vm0, %v10839_v15 }
  0x4f   : > { %v3278_v61 = vld [vmem:[#allocation2 + $0x91] sm:$0xff]  ;;  %v570_v63 = vld [vmem:[#allocation2 + $0xd9] sm:$0xff]  ;;  %v571_v3 = vld [vmem:[#allocation2 + $0xe1] sm:$0xff]  ;;  %3199 = vst.msk [vmem:[#allocation2 + $0xc9] sm:$0xff] %vm349_vm0, %v8691_v32  ;;  %v8706_v52 = vunpack.c.l.bf16 %v8813_v9  ;;  %v8707_v19 = vunpack.c.h.bf16 %v8813_v9 }
  0x50   : > { %v3279_v14 = vld [vmem:[#allocation2 + $0x99] sm:$0xff]  ;;  %v10827_v20 = vld [vmem:[#allocation2 + $0xe2] sm:$0xff]  ;;  %v10829_v22 = vld [vmem:[#allocation2 + $0xf0] sm:$0xff]  ;;  %13296 = vst [vmem:[#allocation24_spill] sm:$0xff] %v10839_v15  ;;  %v10878_v29 = vpack.c.bf16 %v571_v3, %v570_v63 }
  0x51   : > { %v10825_v18 = vld [vmem:[#allocation2 + $0xda] sm:$0xff]  ;;  %13293 = vst [vmem:[#allocation21_spill] sm:$0xff] %v10827_v20  ;;  %v572_v42 = vld [vmem:[#allocation2 + $0xf1] sm:$0xff]  ;;  %v10841_v20 = vld [vmem:[#allocation2 + $0x108] sm:$0xff] }
  0x52   : > { %13292 = vst [vmem:[#allocation20_spill] sm:$0xff] %v10825_v18  ;;  %v10831_v23 = vld [vmem:[#allocation2 + $0xf8] sm:$0xff]  ;;  %3200 = vst.msk [vmem:[#allocation2 + $0xd9] sm:$0xff] %vm349_vm0, %v8694_v43  ;;  %v10845_v43 = vpack.c.bf16 %v569_v44, %v568_v41  ;;  %v10847_v18 = vld [vmem:[#allocation2 + $0x110] sm:$0xff] }
  0x53   : > { %3201 = vst.msk [vmem:[#allocation2 + $0xe1] sm:$0xff] %vm349_vm0, %v8695_v45  ;;  %v573_v21 = vld [vmem:[#allocation2 + $0xf9] sm:$0xff]  ;;  %v3304_v45 = vpack.c.bf16 %v3279_v14, %v3278_v61  ;;  %v10851_v37 = vld [vmem:[#allocation2 + $0x10a] sm:$0xff]  ;;  %9456 = vmatmul.mubr.msk.bf16.gmra.mrb[8].mxu0 %vm349_vm0, %v3303_v0  ;;  %v576_v41 = vld [vmem:[#allocation2 + $0x121] sm:$0xff] }
  0x54   : > { %v10835_v32 = vld [vmem:[#allocation2 + $0xf2] sm:$0xff]  ;;  %v10837_v33 = vld [vmem:[#allocation2 + $0xfa] sm:$0xff]  ;;  %13297 = vst [vmem:[#allocation25_spill] sm:$0xff] %v10845_v43  ;;  %13298 = vst [vmem:[#allocation26_spill] sm:$0xff] %v10851_v37  ;;  %9157 = vmatprep.mubr.msk.bf16.mxu1 %vm349_vm0, %v10845_v43 }
  0x55   : > { %13294 = vst [vmem:[#allocation22_spill] sm:$0xff] %v10835_v32  ;;  %13295 = vst [vmem:[#allocation23_spill] sm:$0xff] %v10837_v33  ;;  %v10849_v32 = vld [vmem:[#allocation2 + $0x109] sm:$0xff]  ;;  %v575_v33 = vld [vmem:[#allocation2 + $0x111] sm:$0xff]  ;;  %9459 = vmatprep.mubr.msk.bf16.mxu0 %vm349_vm0, %v3304_v45 }
  0x56   : > { %3202 = vst.msk [vmem:[#allocation2 + $0xf1] sm:$0xff] %vm349_vm0, %v8698_v7  ;;  %3203 = vst.msk [vmem:[#allocation2 + $0xf9] sm:$0xff] %vm349_vm0, %v8699_v8  ;;  %v10853_v5 = vld [vmem:[#allocation2 + $0x112] sm:$0xff]  ;;  %v8814_v49 = vld [vmem:[%s10618_s23 + $0x60] sm:$0xff]   ;;  %9158 = vmatmul.mubr.msk.bf16.gmra.mrb[16].mxu1 %vm349_vm0, %v10878_v29 }
  0x57   : > { %13299 = vst [vmem:[#allocation27_spill] sm:$0xff] %v10853_v5  ;;  %v3280_v53 = vld [vmem:[#allocation2 + $0xa9] sm:$0xff]  ;;  %v3281_v54 = vld [vmem:[#allocation2 + $0xb1] sm:$0xff]  ;;  %v10856_v7 = vld [vmem:[#allocation2 + $0x120] sm:$0xff] }
  0x58   : > { %v10858_v8 = vld [vmem:[#allocation2 + $0x128] sm:$0xff]  ;;  %3204 = vst.msk [vmem:[#allocation2 + $0x109] sm:$0xff] %vm349_vm0, %v8702_v38  ;;  %3205 = vst.msk [vmem:[#allocation2 + $0x111] sm:$0xff] %vm349_vm0, %v8703_v34  ;;  %v8710_v34 = vunpack.c.l.bf16 %v8814_v49  ;;  %v8711_v38 = vunpack.c.h.bf16 %v8814_v49  ;;  %v10873_v15 = vld [vmem:[#allocation2 + $0x138] sm:$0xff]  ;;  %v3305_v43 = vpack.c.bf16 %v3281_v54, %v3280_v53 }
  0x59   : > { %v577_v44 = vld [vmem:[#allocation2 + $0x129] sm:$0xff]  ;;  %v3282_v9 = vld [vmem:[#allocation2 + $0xc1] sm:$0xff]  ;;  %v578_v37 = vld [vmem:[#allocation2 + $0x139] sm:$0xff]  ;;  %13302 = vst [vmem:[#allocation30_spill] sm:$0xff] %v10878_v29 }
  0x5a   : > { %v10865_v61 = vld [vmem:[#allocation2 + $0x122] sm:$0xff]  ;;  %v10870_v5 = vld [vmem:[#allocation2 + $0x12a] sm:$0xff]  ;;  %v10880_v45 = vld [vmem:[#allocation2 + $0x13a] sm:$0xff]  ;;  %v10915_v31 = vpack.c.bf16 %v577_v44, %v576_v41 }
  0x5b   : > { %13300 = vst [vmem:[#allocation28_spill] sm:$0xff] %v10865_v61  ;;  %v3283_v14 = vld [vmem:[#allocation2 + $0xc9] sm:$0xff]  ;;  %13301 = vst [vmem:[#allocation29_spill] sm:$0xff] %v10870_v5  ;;  %v10875_v0 = vld [vmem:[#allocation2 + $0x140] sm:$0xff]  ;;  %v10884_v5 = vpack.c.bf16 %v573_v21, %v572_v42  ;;  %9460 = vmatmul.mubr.msk.bf16.gmra.mrb[12].mxu0 %vm349_vm0, %v3305_v43 }
  0x5c   : > { %3206 = vst.msk [vmem:[#allocation2 + $0x121] sm:$0xff] %vm349_vm0, %v8706_v52  ;;  %3207 = vst.msk [vmem:[#allocation2 + $0x129] sm:$0xff] %vm349_vm0, %v8707_v19  ;;  %v579_v61 = vld [vmem:[#allocation2 + $0x141] sm:$0xff]  ;;  %v3306_v52 = vpack.c.bf16 %v3283_v14, %v3282_v9  ;;  %v3284_v49 = vld [vmem:[#allocation2 + $0xd9] sm:$0xff] }
  0x5d   : > { %13303 = vst [vmem:[#allocation31_spill] sm:$0xff] %v10880_v45  ;;  %v10882_v26 = vld [vmem:[#allocation2 + $0x142] sm:$0xff]  ;;  %13305 = vst [vmem:[#allocation33_spill] sm:$0xff] %v10884_v5  ;;  %v3286_v63 = vld [vmem:[#allocation2 + $0xf1] sm:$0xff]  ;;  %9161 = vmatprep.mubr.msk.bf16.mxu1 %vm349_vm0, %v10884_v5  ;;  %v10913_v5 = vpack.c.bf16 %v575_v33, %v10849_v32  ;;  %v10927_v33 = vpack.c.bf16 %v579_v61, %v578_v37 }
  0x5e   : > { %13304 = vst [vmem:[#allocation32_spill] sm:$0xff] %v10882_v26  ;;  %3208 = vst.msk [vmem:[#allocation2 + $0x139] sm:$0xff] %vm349_vm0, %v8710_v34  ;;  %v3285_v6 = vld [vmem:[#allocation2 + $0xe1] sm:$0xff]  ;;  %v3287_v3 = vld [vmem:[#allocation2 + $0xf9] sm:$0xff]  ;;  %9463 = vmatprep.mubr.msk.bf16.mxu0 %vm349_vm0, %v3306_v52 }
  0x5f   : > { %3209 = vst.msk [vmem:[#allocation2 + $0x141] sm:$0xff] %vm349_vm0, %v8711_v38  ;;  %v10891_v19 = vld [vmem:[#allocation2 + $0x150] sm:$0xff]  ;;  %v10893_v53 = vld [vmem:[#allocation2 + $0x158] sm:$0xff]  ;;  %v10902_v14 = vld [vmem:[#allocation2 + $0x168] sm:$0xff]  ;;  %v3307_v52 = vpack.c.bf16 %v3285_v6, %v3284_v49  ;;  %v3308_v30 = vpack.c.bf16 %v3287_v3, %v3286_v63  ;;  %9162 = vmatmul.mubr.msk.bf16.gmra.mrb[20].mxu1 %vm349_vm0, %v10913_v5 }
  0x60   : > { %v580_v42 = vld [vmem:[#allocation2 + $0x151] sm:$0xff]  ;;  %v581_v21 = vld [vmem:[#allocation2 + $0x159] sm:$0xff]  ;;  %v582_v34 = vld [vmem:[#allocation2 + $0x169] sm:$0xff]  ;;  %9165 = vmatprep.mubr.msk.bf16.mxu1 %vm349_vm0, %v10915_v31 }
  0x61   : > { %v10895_v54 = vld [vmem:[#allocation2 + $0x152] sm:$0xff]  ;;  %v10900_v9 = vld [vmem:[#allocation2 + $0x15a] sm:$0xff]  ;;  %v8815_v29 = vld [vmem:[%s10618_s23 + $0x68] sm:$0xff]  }
  0x62   : > { %13306 = vst [vmem:[#allocation34_spill] sm:$0xff] %v10895_v54  ;;  %13307 = vst [vmem:[#allocation35_spill] sm:$0xff] %v10900_v9  ;;  %v10904_v43 = vld [vmem:[#allocation2 + $0x170] sm:$0xff]  ;;  %v8714_v62 = vunpack.c.l.bf16 %v8815_v29  ;;  %v8715_v54 = vunpack.c.h.bf16 %v8815_v29  ;;  %v502_v44 = vld [vmem:[#allocation2] sm:$0xff] }
  0x63   : > { %v583_v38 = vld [vmem:[#allocation2 + $0x171] sm:$0xff]  ;;  %9464 = vmatmul.mubr.msk.bf16.gmra.mrb[16].mxu0 %vm349_vm0, %v3307_v52  ;;  %v3290_v29 = vld [vmem:[#allocation2 + $0x121] sm:$0xff] }
  0x64   : > { %v10907_v26 = vld [vmem:[#allocation2 + $0x16a] sm:$0xff]  ;;  %v10909_v45 = vld [vmem:[#allocation2 + $0x172] sm:$0xff]  ;;  %3210 = vst.msk [vmem:[#allocation2 + $0x151] sm:$0xff] %vm349_vm0, %v8714_v62  ;;  %3211 = vst.msk [vmem:[#allocation2 + $0x159] sm:$0xff] %vm349_vm0, %v8715_v54  ;;  %9467 = vmatprep.mubr.msk.bf16.mxu0 %vm349_vm0, %v3308_v30  ;;  %v10943_v3 = vpack.c.bf16 %v583_v38, %v582_v34  ;;  %v10958_v34 = vpack.c.bf16 %v10663_v51, %v10661_v50 }
  0x65   : > { %v8816_v47 = vld [vmem:[%s10618_s23 + $0x70] sm:$0xff]   ;;  %v3292_v30 = vld [vmem:[#allocation2 + $0x139] sm:$0xff]  ;;  %v503_v61 = vld [vmem:[#allocation2 + $0x8] sm:$0xff] }
  0x66   : > { %v8718_v46 = vunpack.c.l.bf16 %v8816_v47  ;;  %v8719_v9 = vunpack.c.h.bf16 %v8816_v47  ;;  %v3288_v47 = vld [vmem:[#allocation2 + $0x109] sm:$0xff]  ;;  %v3289_v6 = vld [vmem:[#allocation2 + $0x111] sm:$0xff]  ;;  %v3293_v37 = vld [vmem:[#allocation2 + $0x141] sm:$0xff] }
  0x67   : > { %v3291_v62 = vld [vmem:[#allocation2 + $0x129] sm:$0xff]  ;;  %v10929_v32 = vpack.c.bf16 %v3289_v6, %v3288_v47  ;;  %9166 = vmatmul.mubr.msk.bf16.gmra.mrb[24].mxu1 %vm349_vm0, %v10927_v33  ;;  %v10964_v47 = vpack.c.bf16 %v10687_v2, %v10685_v1  ;;  %v10969_v6 = vld [vmem:[%s13224_s3 + $0x18] sm:$0xff]   ;;  %v3219_v51 = vld [vmem:[#allocation2 + $0x20] sm:$0xff] }
  0x68   : > { %3212 = vst.msk [vmem:[#allocation2 + $0x169] sm:$0xff] %vm349_vm0, %v8718_v46  ;;  %3213 = vst.msk [vmem:[#allocation2 + $0x171] sm:$0xff] %vm349_vm0, %v8719_v9  ;;  %v10931_v46 = vpack.c.bf16 %v581_v21, %v580_v42  ;;  %v10933_v41 = vpack.c.bf16 %v3291_v62, %v3290_v29  ;;  %v10945_v42 = vpack.c.bf16 %v3293_v37, %v3292_v30  ;;  %v3218_v50 = vld [vmem:[#allocation2 + $0x18] sm:$0xff]  ;;  %v3220_v1 = vld [vmem:[#allocation2 + $0x30] sm:$0xff] }
  0x69   : > { %v534_v21 = vpack.c.bf16 %v503_v61, %v502_v44  ;;  %v3221_v2 = vld [vmem:[#allocation2 + $0x38] sm:$0xff]  ;;  %v10982_v29 = vpack.c.bf16 %v10707_v17, %v10705_v16  ;;  %v10984_v62 = vpack.c.bf16 %v3219_v51, %v3218_v50  ;;  %v10988_v30 = vpack.c.bf16 %v10731_v28, %v10729_v27  ;;  %v3222_v16 = vld [vmem:[#allocation2 + $0x48] sm:$0xff]  ;;  %v3223_v17 = vld [vmem:[#allocation2 + $0x50] sm:$0xff] }
  0x6a   : > { %9169 = vmatprep.mubr.msk.bf16.mxu1 %vm349_vm0, %v10931_v46  ;;  %13308 = vst [vmem:[#allocation36_spill] sm:$0xff] %v10945_v42  ;;  %v10990_v37 = vpack.c.bf16 %v3221_v2, %v3220_v1  ;;  %v3224_v27 = vld [vmem:[#allocation2 + $0x60] sm:$0xff]  ;;  %v3225_v28 = vld [vmem:[#allocation2 + $0x68] sm:$0xff]  ;;  %v11009_v44 = vpack.c.bf16 %v10748_v36, %v10746_v35  ;;  %v11011_v61 = vpack.c.bf16 %v3223_v17, %v3222_v16  ;;  %v3226_v35 = vld [vmem:[#allocation2 + $0x78] sm:$0xff] }
  0x6b   : > { %9468 = vmatmul.mubr.msk.bf16.gmra.mrb[20].mxu0 %vm349_vm0, %v10929_v32  ;;  %v3294_v49 = vld [vmem:[#allocation2 + $0x151] sm:$0xff]  ;;  %v3295_v63 = vld [vmem:[#allocation2 + $0x159] sm:$0xff]  ;;  %v3233_v51 = vld [vmem:[#allocation2 + $0xc8] sm:$0xff]  ;;  %v11055_v1 = vpack.c.bf16 %v10831_v23, %v10829_v22  ;;  %v11069_v23 = vpack.c.bf16 %v10847_v18, %v10841_v20 }
  0x6c   : > { %9471 = vmatprep.mubr.msk.bf16.mxu0 %vm349_vm0, %v10933_v41  ;;  %v10947_v54 = vpack.c.bf16 %v3295_v63, %v3294_v49  ;;  %v11017_v49 = vpack.c.bf16 %v3225_v28, %v3224_v27  ;;  %v3227_v36 = vld [vmem:[#allocation2 + $0x80] sm:$0xff]  ;;  %v3228_v63 = vld [vmem:[#allocation2 + $0x90] sm:$0xff]  ;;  %v3237_v22 = vld [vmem:[#allocation2 + $0xf8] sm:$0xff]  ;;  %v11075_v27 = vpack.c.bf16 %v10858_v8, %v10856_v7  ;;  %v11090_v8 = vpack.c.bf16 %v10875_v0, %v10873_v15 }
  0x6d   : > { %v3232_v50 = vld [vmem:[#allocation2 + $0xc0] sm:$0xff]  ;;  %v3236_v16 = vld [vmem:[#allocation2 + $0xf0] sm:$0xff]  ;;  %v3238_v18 = vld [vmem:[#allocation2 + $0x108] sm:$0xff] }
  0x6e   : > { %13309 = vst [vmem:[#allocation37_spill] sm:$0xff] %v10947_v54  ;;  %v11057_v2 = vpack.c.bf16 %v3233_v51, %v3232_v50  ;;  %v11077_v28 = vpack.c.bf16 %v3237_v22, %v3236_v16  ;;  %v3239_v20 = vld [vmem:[#allocation2 + $0x110] sm:$0xff]  ;;  %v8802_v7 = vld [vmem:[%s10607_s20 + $0x78] sm:$0xff]   ;;  %v3243_v0 = vld [vmem:[#allocation2 + $0x140] sm:$0xff]  ;;  %v11113_v16 = vpack.c.bf16 %v10904_v43, %v10902_v14 }
  0x6f   : > { %9170 = vmatmul.mubr.msk.bf16.gmra.mrb[28].mxu1 %vm349_vm0, %v10943_v3  ;;  %v3296_v9 = vld [vmem:[#allocation2 + $0x169] sm:$0xff]  ;;  %v3297_v52 = vld [vmem:[#allocation2 + $0x171] sm:$0xff] }
  0x70   : > { %9175 = vmatprep.mubr.msk.bf16.mxu1 %vm349_vm0, %v534_v21  ;;  %v10960_v38 = vpack.c.bf16 %v3297_v52, %v3296_v9  ;;  %v11035_v9 = vpack.c.bf16 %v10803_v40, %v10799_v4  ;;  %v11049_v4 = vpack.c.bf16 %v10814_v58, %v10812_v56  ;;  %v3234_v56 = vld [vmem:[#allocation2 + $0xd8] sm:$0xff]  ;;  %v3235_v58 = vld [vmem:[#allocation2 + $0xe0] sm:$0xff]  ;;  %v3244_v51 = vld [vmem:[#allocation2 + $0x150] sm:$0xff] }
  0x71   : > { %v11071_v17 = vpack.c.bf16 %v3235_v58, %v3234_v56  ;;  %v3242_v15 = vld [vmem:[#allocation2 + $0x138] sm:$0xff]  ;;  %v3246_v14 = vld [vmem:[#allocation2 + $0x168] sm:$0xff]  ;;  %v3247_v43 = vld [vmem:[#allocation2 + $0x170] sm:$0xff] }
  0x72   : > { %13310 = vst [vmem:[#allocation38_spill] sm:$0xff] %v10960_v38  ;;  %v3245_v56 = vld [vmem:[#allocation2 + $0x158] sm:$0xff]  ;;  %v11115_v22 = vpack.c.bf16 %v3243_v0, %v3242_v15  ;;  %v11142_v15 = vpack.c.bf16 %v10676_v60, %v10674_v59  ;;  %v11144_v0 = vpack.c.bf16 %v3247_v43, %v3246_v14  ;;  %v3750_v60 = vld [vmem:[#allocation2 + $0x22] sm:$0xff]  ;;  %v3756_v43 = vld [vmem:[#allocation2 + $0x6a] sm:$0xff] }
  0x73   : > { %9472 = vmatmul.mubr.msk.bf16.gmra.mrb[24].mxu0 %vm349_vm0, %v10945_v42  ;;  %v8817_v58 = vld [vmem:[%s10618_s23 + $0x78] sm:$0xff]  }
  0x74   : > { %9475 = vmatprep.mubr.msk.bf16.mxu0 %vm349_vm0, %v10947_v54  ;;  %v3749_v59 = vld [vmem:[#allocation2 + $0x1a] sm:$0xff] }
  0x77   : > { %9176 = vmatmul.mubr.msk.bf16.vlgmr.msra.gmra.mrb[0].mxu1 %vm349_vm0, %v10958_v34 }
  0x78   : > { %9179 = vmatprep.mubr.msk.bf16.mxu1 %vm349_vm0, %v10964_v47  ;;  %9208 = vmatpush3.bf16.msra.mxu1 %v10672_v57  ;;  %v10995_v57 = vld [vmem:[%s13225_s4 + $0x18] sm:$0xff]  }
  0x79   : > { %9241 = vmatprep.subr.bf16.mxu1 %v10969_v6 }
  0x7b   : > { %9476 = vmatmul.mubr.msk.bf16.gmra.mrb[28].mxu0 %vm349_vm0, %v10960_v38 }
  0x7c   : > { %9481 = vmatprep.mubr.msk.bf16.mxu0 %vm349_vm0, %v534_v21  ;;  %v3229_v21 = vld [vmem:[#allocation2 + $0x98] sm:$0xff] }
  0x7d   : > { %v11037_v52 = vpack.c.bf16 %v3229_v21, %v3228_v63  ;;  %v11092_v63 = vpack.c.bf16 %v3239_v20, %v3238_v18  ;;  %v8658_v21 = vunpack.c.l.bf16 %v8802_v7  ;;  %v8722_v18 = vunpack.c.l.bf16 %v8817_v58 }
  0x7e   : > { %v8723_v20 = vunpack.c.h.bf16 %v8817_v58  ;;  %v13313_v58 = vld [vmem:[#allocation6_spill] sm:$0xff] }
  0x7f   : > { %9180 = vmatmul.mubr.msk.bf16.gmra.mrb[4].mxu1 %vm349_vm0, %v10982_v29  ;;  %500 = vst.msk [vmem:[#allocation2 + $0x181] sm:$0xff] %vm349_vm0, %v8658_v21 }
  0x80   : > { %9183 = vmatprep.mubr.msk.bf16.mxu1 %vm349_vm0, %v10988_v30 }
  0x83   : > { %9482 = vmatmul.mubr.msk.bf16.vlgmr.msra.gmra.mrb[0].mxu0 %vm349_vm0, %v10984_v62 }
  0x84   : > { %9514 = vmatpush3.bf16.msra.mxu0 %v10756_v39  ;;  %9485 = vmatprep.mubr.msk.bf16.mxu0 %vm349_vm0, %v10990_v37  ;;  %v11015_v39 = vpack.c.bf16 %v10769_v55, %v10765_v48  ;;  %v11029_v48 = vpack.c.bf16 %v10788_v13, %v10786_v10  ;;  %v11031_v55 = vpack.c.bf16 %v3227_v36, %v3226_v35  ;;  %v3230_v10 = vld [vmem:[#allocation2 + $0xa8] sm:$0xff]  ;;  %v3231_v13 = vld [vmem:[#allocation2 + $0xb0] sm:$0xff]  ;;  %v3240_v35 = vld [vmem:[#allocation2 + $0x120] sm:$0xff] }
  0x85   : > { %9547 = vmatprep.subr.bf16.mxu0 %v10995_v57  ;;  %v11051_v40 = vpack.c.bf16 %v3231_v13, %v3230_v10  ;;  %v3241_v36 = vld [vmem:[#allocation2 + $0x128] sm:$0xff]  ;;  %v8659_v10 = vunpack.c.h.bf16 %v8802_v7  ;;  %v11096_v13 = vpack.c.bf16 %v10893_v53, %v10891_v19 }
  0x86   : > { %v11098_v50 = vpack.c.bf16 %v3241_v36, %v3240_v35  ;;  %v1033_v19 = vld [vmem:[#allocation2 + $0x2] sm:$0xff]  ;;  %v1034_v53 = vld [vmem:[#allocation2 + $0xa] sm:$0xff]  ;;  %v11117_v36 = vpack.c.bf16 %v3245_v56, %v3244_v51  ;;  %v11166_v51 = vpack.c.bf16 %v10721_v25, %v10719_v24  ;;  %v11168_v56 = vpack.c.bf16 %v3750_v60, %v3749_v59  ;;  %v3754_v25 = vld [vmem:[#allocation2 + $0x52] sm:$0xff] }
  0x87   : > { %9184 = vmatmul.mubr.msk.bf16.gmra.mrb[8].mxu1 %vm349_vm0, %v11009_v44  ;;  %501 = vst.msk [vmem:[#allocation2 + $0x189] sm:$0xff] %vm349_vm0, %v8659_v10  ;;  %v1065_v35 = vpack.c.bf16 %v1034_v53, %v1033_v19  ;;  %v11119_v7 = vld [vmem:[#allocation2 + $0x180] sm:$0xff]  ;;  %v11148_v19 = vpack.c.bf16 %v10697_v12, %v10695_v11  ;;  %v3751_v11 = vld [vmem:[#allocation2 + $0x32] sm:$0xff]  ;;  %v3753_v24 = vld [vmem:[#allocation2 + $0x4a] sm:$0xff] }
  0x88   : > { %9187 = vmatprep.mubr.msk.bf16.mxu1 %vm349_vm0, %v11015_v39  ;;  %v11123_v10 = vld [vmem:[#allocation2 + $0x181] sm:$0xff]  ;;  %v13317_v60 = vld [vmem:[#allocation11_spill] sm:$0xff] }
  0x89   : > { %v11153_v53 = vld [vmem:[%s13224_s3 + $0x20] sm:$0xff]  }
  0x8a   : > { %v3752_v12 = vld [vmem:[#allocation2 + $0x3a] sm:$0xff] }
  0x8b   : > { %9486 = vmatmul.mubr.msk.bf16.gmra.mrb[4].mxu0 %vm349_vm0, %v11011_v61  ;;  %v11174_v14 = vpack.c.bf16 %v3752_v12, %v3751_v11  ;;  %v13316_v59 = vld [vmem:[#allocation10_spill] sm:$0xff]  ;;  %v11195_v12 = vpack.c.bf16 %v3754_v25, %v3753_v24 }
  0x8c   : > { %9489 = vmatprep.mubr.msk.bf16.mxu0 %vm349_vm0, %v11017_v49  ;;  %v11193_v11 = vpack.c.bf16 %v13317_v60, %v13316_v59  ;;  %v3757_v24 = vld [vmem:[#allocation2 + $0x7a] sm:$0xff]  ;;  %v3758_v25 = vld [vmem:[#allocation2 + $0x82] sm:$0xff]  ;;  %v3759_v59 = vld [vmem:[#allocation2 + $0x92] sm:$0xff] }
  0x8d   : > { %13315 = vst [vmem:[#allocation6_spill] sm:$0xff] %v11174_v14  ;;  %13319 = vst [vmem:[#allocation10_spill] sm:$0xff] %v11195_v12  ;;  %v3760_v60 = vld [vmem:[#allocation2 + $0x9a] sm:$0xff] }
  0x8e   : > { %v11121_v21 = vld [vmem:[#allocation2 + $0x188] sm:$0xff] }
  0x8f   : > { %9188 = vmatmul.mubr.msk.bf16.gmra.mrb[12].mxu1 %vm349_vm0, %v11029_v48  ;;  %v11125_v38 = vld [vmem:[#allocation2 + $0x182] sm:$0xff]  ;;  %v11129_v42 = vld [vmem:[#allocation2 + $0x18a] sm:$0xff] }
  0x90   : > { %9191 = vmatprep.mubr.msk.bf16.mxu1 %vm349_vm0, %v11035_v9  ;;  %13311 = vst [vmem:[#allocation39_spill] sm:$0xff] %v11125_v38  ;;  %v11127_v54 = vld [vmem:[#allocation2 + $0x189] sm:$0xff]  ;;  %13312 = vst [vmem:[#allocation40_spill] sm:$0xff] %v11129_v42  ;;  %v13328_v38 = vld [vmem:[#allocation18_spill] sm:$0xff] }
  0x91   : > { %3214 = vst.msk [vmem:[#allocation2 + $0x181] sm:$0xff] %vm349_vm0, %v8722_v18  ;;  %3215 = vst.msk [vmem:[#allocation2 + $0x189] sm:$0xff] %vm349_vm0, %v8723_v20  ;;  %v13314_v18 = vld [vmem:[#allocation7_spill] sm:$0xff] }
  0x92   : > { %v11172_v20 = vpack.c.bf16 %v13314_v18, %v13313_v58  ;;  %13318 = vst [vmem:[#allocation7_spill] sm:$0xff] %v11193_v11  ;;  %v13320_v58 = vld [vmem:[#allocation12_spill] sm:$0xff] }
  0x93   : > { %9490 = vmatmul.mubr.msk.bf16.gmra.mrb[8].mxu0 %vm349_vm0, %v11031_v55 }
  0x94   : > { %9493 = vmatprep.mubr.msk.bf16.mxu0 %vm349_vm0, %v11037_v52 }
  0x97   : > { %9192 = vmatmul.mubr.msk.bf16.gmra.mrb[16].mxu1 %vm349_vm0, %v11049_v4 }
  0x98   : > { %9195 = vmatprep.mubr.msk.bf16.mxu1 %vm349_vm0, %v11055_v1 }
  0x9b   : > { %9494 = vmatmul.mubr.msk.bf16.gmra.mrb[12].mxu0 %vm349_vm0, %v11051_v40 }
  0x9c   : > { %9497 = vmatprep.mubr.msk.bf16.mxu0 %vm349_vm0, %v11057_v2 }
  0x9f   : > { %9196 = vmatmul.mubr.msk.bf16.gmra.mrb[20].mxu1 %vm349_vm0, %v11069_v23 }
  0xa0   : > { %9199 = vmatprep.mubr.msk.bf16.mxu1 %vm349_vm0, %v11075_v27 }
  0xa3   : > { %9498 = vmatmul.mubr.msk.bf16.gmra.mrb[16].mxu0 %vm349_vm0, %v11071_v17 }
  0xa4   : > { %9501 = vmatprep.mubr.msk.bf16.mxu0 %vm349_vm0, %v11077_v28 }
  0xa7   : > { %9200 = vmatmul.mubr.msk.bf16.gmra.mrb[24].mxu1 %vm349_vm0, %v11090_v8 }
  0xa8   : > { %9203 = vmatprep.mubr.msk.bf16.mxu1 %vm349_vm0, %v11096_v13 }
  0xab   : > { %9502 = vmatmul.mubr.msk.bf16.gmra.mrb[20].mxu0 %vm349_vm0, %v11092_v63 }
  0xac   : > { %9505 = vmatprep.mubr.msk.bf16.mxu0 %vm349_vm0, %v11098_v50 }
  0xaf   : > { %9204 = vmatmul.mubr.msk.bf16.gmra.mrb[28].mxu1 %vm349_vm0, %v11113_v16 }
  0xb0   : > { %9209 = vmatprep.mubr.msk.bf16.mxu1 %vm349_vm0, %v1065_v35 }
  0xb3   : > { %9506 = vmatmul.mubr.msk.bf16.gmra.mrb[24].mxu0 %vm349_vm0, %v11115_v22 }
  0xb4   : > { %9509 = vmatprep.mubr.msk.bf16.mxu0 %vm349_vm0, %v11117_v36 }
  0xb7   : > { %9210 = vmatmul.mubr.msk.bf16.vlgmr.msra.gmra.mrb[0].mxu1 %vm349_vm0, %v11142_v15 }
  0xb8   : > { %9213 = vmatprep.mubr.msk.bf16.mxu1 %vm349_vm0, %v11148_v19  ;;  %9242 = vmatpush3.bf16.msra.mxu1 %v10969_v6  ;;  %v11179_v6 = vld [vmem:[%s13225_s4 + $0x20] sm:$0xff]  }
  0xb9   : > { %9275 = vmatprep.subr.bf16.mxu1 %v11153_v53 }
  0xbb   : > { %9510 = vmatmul.mubr.msk.bf16.gmra.mrb[28].mxu0 %vm349_vm0, %v11144_v0 }
  0xbc   : > { %9515 = vmatprep.mubr.msk.bf16.mxu0 %vm349_vm0, %v1065_v35  ;;  %v3755_v35 = vld [vmem:[#allocation2 + $0x62] sm:$0xff] }
  0xbd   : > { %v11201_v42 = vpack.c.bf16 %v3756_v43, %v3755_v35  ;;  %v11215_v43 = vpack.c.bf16 %v3758_v25, %v3757_v24  ;;  %v3761_v24 = vld [vmem:[#allocation2 + $0xaa] sm:$0xff]  ;;  %v3762_v25 = vld [vmem:[#allocation2 + $0xb2] sm:$0xff] }
  0xbf   : > { %9214 = vmatmul.mubr.msk.bf16.gmra.mrb[4].mxu1 %vm349_vm0, %v11166_v51  ;;  %13323 = vst [vmem:[#allocation12_spill] sm:$0xff] %v11201_v42 }
  0xc0   : > { %9217 = vmatprep.mubr.msk.bf16.mxu1 %vm349_vm0, %v11172_v20 }
  0xc3   : > { %9516 = vmatmul.mubr.msk.bf16.vlgmr.msra.gmra.mrb[0].mxu0 %vm349_vm0, %v11168_v56 }
  0xc4   : > { %9548 = vmatpush3.bf16.msra.mxu0 %v10995_v57  ;;  %9519 = vmatprep.mubr.msk.bf16.mxu0 %vm349_vm0, %v11174_v14  ;;  %v13321_v57 = vld [vmem:[#allocation13_spill] sm:$0xff] }
  0xc5   : > { %9581 = vmatprep.subr.bf16.mxu0 %v11179_v6  ;;  %v11199_v18 = vpack.c.bf16 %v13321_v57, %v13320_v58  ;;  %v13324_v58 = vld [vmem:[#allocation15_spill] sm:$0xff]  ;;  %v13325_v57 = vld [vmem:[#allocation16_spill] sm:$0xff] }
  0xc6   : > { %v11213_v35 = vpack.c.bf16 %v13325_v57, %v13324_v58  ;;  %13327 = vst [vmem:[#allocation15_spill] sm:$0xff] %v11215_v43  ;;  %v3763_v58 = vld [vmem:[#allocation2 + $0xc2] sm:$0xff]  ;;  %v3764_v57 = vld [vmem:[#allocation2 + $0xca] sm:$0xff] }
  0xc7   : > { %13322 = vst [vmem:[#allocation11_spill] sm:$0xff] %v11199_v18  ;;  %9218 = vmatmul.mubr.msk.bf16.gmra.mrb[8].mxu1 %vm349_vm0, %v11193_v11  ;;  %v13329_v11 = vld [vmem:[#allocation19_spill] sm:$0xff] }
  0xc8   : > { %9221 = vmatprep.mubr.msk.bf16.mxu1 %vm349_vm0, %v11199_v18  ;;  %13326 = vst [vmem:[#allocation13_spill] sm:$0xff] %v11213_v35  ;;  %v11219_v14 = vpack.c.bf16 %v13329_v11, %v13328_v38  ;;  %v13332_v38 = vld [vmem:[#allocation20_spill] sm:$0xff]  ;;  %v13333_v11 = vld [vmem:[#allocation21_spill] sm:$0xff] }
  0xca   : > { %13330 = vst [vmem:[#allocation16_spill] sm:$0xff] %v11219_v14 }
  0xcb   : > { %9520 = vmatmul.mubr.msk.bf16.gmra.mrb[4].mxu0 %vm349_vm0, %v11195_v12  ;;  %v11221_v12 = vpack.c.bf16 %v3760_v60, %v3759_v59  ;;  %v11233_v59 = vpack.c.bf16 %v13333_v11, %v13332_v38  ;;  %v11235_v60 = vpack.c.bf16 %v3762_v25, %v3761_v24  ;;  %v3765_v24 = vld [vmem:[#allocation2 + $0xda] sm:$0xff]  ;;  %v3766_v25 = vld [vmem:[#allocation2 + $0xe2] sm:$0xff]  ;;  %v3767_v38 = vld [vmem:[#allocation2 + $0xf2] sm:$0xff] }
  0xcc   : > { %9523 = vmatprep.mubr.msk.bf16.mxu0 %vm349_vm0, %v11201_v42  ;;  %v13337_v42 = vld [vmem:[#allocation23_spill] sm:$0xff]  ;;  %v3768_v11 = vld [vmem:[#allocation2 + $0xfa] sm:$0xff] }
  0xcd   : > { %13331 = vst [vmem:[#allocation18_spill] sm:$0xff] %v11221_v12  ;;  %13334 = vst [vmem:[#allocation19_spill] sm:$0xff] %v11233_v59 }
  0xce   : > { %13335 = vst [vmem:[#allocation20_spill] sm:$0xff] %v11235_v60 }
  0xcf   : > { %9222 = vmatmul.mubr.msk.bf16.gmra.mrb[12].mxu1 %vm349_vm0, %v11213_v35  ;;  %v13336_v35 = vld [vmem:[#allocation22_spill] sm:$0xff] }
  0xd0   : > { %9225 = vmatprep.mubr.msk.bf16.mxu1 %vm349_vm0, %v11219_v14  ;;  %v11239_v18 = vpack.c.bf16 %v13337_v42, %v13336_v35  ;;  %v13340_v42 = vld [vmem:[#allocation26_spill] sm:$0xff]  ;;  %v13341_v35 = vld [vmem:[#allocation27_spill] sm:$0xff] }
  0xd2   : > { %13338 = vst [vmem:[#allocation21_spill] sm:$0xff] %v11239_v18 }
  0xd3   : > { %9524 = vmatmul.mubr.msk.bf16.gmra.mrb[8].mxu0 %vm349_vm0, %v11215_v43  ;;  %v11241_v43 = vpack.c.bf16 %v3764_v57, %v3763_v58  ;;  %v11253_v58 = vpack.c.bf16 %v13341_v35, %v13340_v42  ;;  %v11255_v57 = vpack.c.bf16 %v3766_v25, %v3765_v24  ;;  %v3769_v24 = vld [vmem:[#allocation2 + $0x10a] sm:$0xff]  ;;  %v3770_v25 = vld [vmem:[#allocation2 + $0x112] sm:$0xff]  ;;  %v3771_v42 = vld [vmem:[#allocation2 + $0x122] sm:$0xff] }
  0xd4   : > { %9527 = vmatprep.mubr.msk.bf16.mxu0 %vm349_vm0, %v11221_v12  ;;  %v13345_v12 = vld [vmem:[#allocation29_spill] sm:$0xff]  ;;  %v3772_v35 = vld [vmem:[#allocation2 + $0x12a] sm:$0xff] }
  0xd5   : > { %13339 = vst [vmem:[#allocation22_spill] sm:$0xff] %v11241_v43  ;;  %13342 = vst [vmem:[#allocation23_spill] sm:$0xff] %v11253_v58 }
  0xd6   : > { %13343 = vst [vmem:[#allocation26_spill] sm:$0xff] %v11255_v57 }
  0xd7   : > { %9226 = vmatmul.mubr.msk.bf16.gmra.mrb[16].mxu1 %vm349_vm0, %v11233_v59  ;;  %v13344_v59 = vld [vmem:[#allocation28_spill] sm:$0xff] }
  0xd8   : > { %9229 = vmatprep.mubr.msk.bf16.mxu1 %vm349_vm0, %v11239_v18  ;;  %v11259_v14 = vpack.c.bf16 %v13345_v12, %v13344_v59  ;;  %v13346_v12 = vld [vmem:[#allocation31_spill] sm:$0xff]  ;;  %v13347_v59 = vld [vmem:[#allocation32_spill] sm:$0xff] }
  0xdb   : > { %9528 = vmatmul.mubr.msk.bf16.gmra.mrb[12].mxu0 %vm349_vm0, %v11235_v60  ;;  %v11261_v60 = vpack.c.bf16 %v3768_v11, %v3767_v38  ;;  %v11273_v38 = vpack.c.bf16 %v13347_v59, %v13346_v12  ;;  %v11275_v11 = vpack.c.bf16 %v3770_v25, %v3769_v24  ;;  %v3773_v24 = vld [vmem:[#allocation2 + $0x13a] sm:$0xff]  ;;  %v3774_v25 = vld [vmem:[#allocation2 + $0x142] sm:$0xff] }
  0xdc   : > { %9531 = vmatprep.mubr.msk.bf16.mxu0 %vm349_vm0, %v11241_v43  ;;  %v13349_v43 = vld [vmem:[#allocation35_spill] sm:$0xff]  ;;  %v11299_v12 = vpack.c.bf16 %v3774_v25, %v3773_v24  ;;  %v13354_v24 = vld [vmem:[#allocation14_spill] sm:$0xff] }
  0xdd   : > { %v4349_v25 = vld [vmem:[#allocation2 + $0x61] sm:$0xff] }
  0xdf   : > { %9230 = vmatmul.mubr.msk.bf16.gmra.mrb[20].mxu1 %vm349_vm0, %v11253_v58  ;;  %v13348_v58 = vld [vmem:[#allocation34_spill] sm:$0xff] }
  0xe0   : > { %9233 = vmatprep.mubr.msk.bf16.mxu1 %vm349_vm0, %v11259_v14  ;;  %v11279_v18 = vpack.c.bf16 %v13349_v43, %v13348_v58  ;;  %v11293_v43 = vpack.c.bf16 %v11127_v54, %v11123_v10  ;;  %v3775_v58 = vld [vmem:[#allocation2 + $0x152] sm:$0xff]  ;;  %v3777_v54 = vld [vmem:[#allocation2 + $0x16a] sm:$0xff] }
  0xe1   : > { %v3778_v10 = vld [vmem:[#allocation2 + $0x172] sm:$0xff] }
  0xe3   : > { %9532 = vmatmul.mubr.msk.bf16.gmra.mrb[16].mxu0 %vm349_vm0, %v11255_v57  ;;  %v11281_v57 = vpack.c.bf16 %v3772_v35, %v3771_v42  ;;  %v3776_v42 = vld [vmem:[#allocation2 + $0x15a] sm:$0xff]  ;;  %v11297_v35 = vpack.c.bf16 %v10909_v45, %v10907_v26  ;;  %v11311_v26 = vpack.c.bf16 %v3778_v10, %v3777_v54  ;;  %v10314_v45 = vld [vmem:[%s13224_s3 + $0x28] sm:$0xff]  }
  0xe4   : > { %9535 = vmatprep.mubr.msk.bf16.mxu0 %vm349_vm0, %v11261_v60  ;;  %v11301_v59 = vpack.c.bf16 %v3776_v42, %v3775_v58  ;;  %v4350_v58 = vld [vmem:[#allocation2 + $0x69] sm:$0xff]  ;;  %v4351_v42 = vld [vmem:[#allocation2 + $0x79] sm:$0xff]  ;;  %v4352_v54 = vld [vmem:[#allocation2 + $0x81] sm:$0xff] }
  0xe5   : > { %v11422_v10 = vpack.c.bf16 %v4350_v58, %v4349_v25  ;;  %v4358_v25 = vld [vmem:[#allocation2 + $0xc9] sm:$0xff]  ;;  %v4359_v58 = vld [vmem:[#allocation2 + $0xd9] sm:$0xff] }
  0xe7   : > { %9234 = vmatmul.mubr.msk.bf16.gmra.mrb[24].mxu1 %vm349_vm0, %v11273_v38 }
  0xe8   : > { %9237 = vmatprep.mubr.msk.bf16.mxu1 %vm349_vm0, %v11279_v18 }
  0xeb   : > { %9536 = vmatmul.mubr.msk.bf16.gmra.mrb[20].mxu0 %vm349_vm0, %v11275_v11 }
  0xec   : > { %9539 = vmatprep.mubr.msk.bf16.mxu0 %vm349_vm0, %v11281_v57 }
  0xef   : > { %9238 = vmatmul.mubr.msk.bf16.gmra.mrb[28].mxu1 %vm349_vm0, %v11297_v35 }
  0xf0   : > { %9243 = vmatprep.mubr.msk.bf16.mxu1 %vm349_vm0, %v10958_v34  ;;  %v10315_v34 = vld [vmem:[%s13225_s4 + $0x28] sm:$0xff]  }
  0xf3   : > { %9540 = vmatmul.mubr.msk.bf16.gmra.mrb[24].mxu0 %vm349_vm0, %v11299_v12 }
  0xf4   : > { %9543 = vmatprep.mubr.msk.bf16.mxu0 %vm349_vm0, %v11301_v59 }
  0xf7   : > { %9244 = vmatmul.mubr.msk.bf16.vlgmr.msra.gmra.mrb[0].mxu1 %vm349_vm0, %v10964_v47 }
  0xf8   : > { %9247 = vmatprep.mubr.msk.bf16.mxu1 %vm349_vm0, %v10982_v29  ;;  %9276 = vmatpush3.bf16.msra.mxu1 %v11153_v53  ;;  %v11411_v53 = vld [vmem:[%s13225_s4 + $0x30] sm:$0xff]  }
  0xf9   : > { %9309 = vmatprep.subr.bf16.mxu1 %v10314_v45 }
  0xfb   : > { %9544 = vmatmul.mubr.msk.bf16.gmra.mrb[28].mxu0 %vm349_vm0, %v11311_v26 }
  0xfc   : > { %9549 = vmatprep.mubr.msk.bf16.mxu0 %vm349_vm0, %v10984_v62  ;;  %v11379_v62 = vpack.c.bf16 %v11121_v21, %v11119_v7  ;;  %v4348_v7 = vld [vmem:[#allocation2 + $0x51] sm:$0xff] }
  0xff   : > { %9248 = vmatmul.mubr.msk.bf16.gmra.mrb[4].mxu1 %vm349_vm0, %v10988_v30 }
 0x100   : > { %9251 = vmatprep.mubr.msk.bf16.mxu1 %vm349_vm0, %v11009_v44 }
 0x103   : > { %9550 = vmatmul.mubr.msk.bf16.vlgmr.msra.gmra.mrb[0].mxu0 %vm349_vm0, %v10990_v37  ;;  %v13350_v37 = vld [vmem:[#allocation4_spill] sm:$0xff] }
 0x104   : > { %9582 = vmatpush3.bf16.msra.mxu0 %v11179_v6  ;;  %9553 = vmatprep.mubr.msk.bf16.mxu0 %vm349_vm0, %v11011_v61  ;;  %v4075_v61 = vld [vmem:[#allocation2 + $0x180] sm:$0xff] }
 0x105   : > { %9615 = vmatprep.subr.bf16.mxu0 %v10315_v34  ;;  %v13353_v6 = vld [vmem:[#allocation9_spill] sm:$0xff] }
 0x107   : > { %9252 = vmatmul.mubr.msk.bf16.gmra.mrb[8].mxu1 %vm349_vm0, %v11015_v39 }
 0x108   : > { %9255 = vmatprep.mubr.msk.bf16.mxu1 %vm349_vm0, %v11029_v48 }
 0x10b   : > { %9554 = vmatmul.mubr.msk.bf16.gmra.mrb[4].mxu0 %vm349_vm0, %v11017_v49  ;;  %v4076_v49 = vld [vmem:[#allocation2 + $0x188] sm:$0xff] }
 0x10c   : > { %9557 = vmatprep.mubr.msk.bf16.mxu0 %vm349_vm0, %v11031_v55  ;;  %v4343_v55 = vld [vmem:[#allocation2 + $0x19] sm:$0xff] }
 0x10f   : > { %9256 = vmatmul.mubr.msk.bf16.gmra.mrb[12].mxu1 %vm349_vm0, %v11035_v9 }
 0x110   : > { %9259 = vmatprep.mubr.msk.bf16.mxu1 %vm349_vm0, %v11049_v4 }
 0x113   : > { %9558 = vmatmul.mubr.msk.bf16.gmra.mrb[8].mxu0 %vm349_vm0, %v11037_v52  ;;  %v4344_v52 = vld [vmem:[#allocation2 + $0x21] sm:$0xff] }
 0x114   : > { %9561 = vmatprep.mubr.msk.bf16.mxu0 %vm349_vm0, %v11051_v40  ;;  %v11389_v40 = vpack.c.bf16 %v4076_v49, %v4075_v61  ;;  %v4353_v61 = vld [vmem:[#allocation2 + $0x91] sm:$0xff]  ;;  %v4354_v49 = vld [vmem:[#allocation2 + $0x99] sm:$0xff] }
 0x117   : > { %9260 = vmatmul.mubr.msk.bf16.gmra.mrb[16].mxu1 %vm349_vm0, %v11055_v1 }
 0x118   : > { %9263 = vmatprep.mubr.msk.bf16.mxu1 %vm349_vm0, %v11069_v23 }
 0x11b   : > { %9562 = vmatmul.mubr.msk.bf16.gmra.mrb[12].mxu0 %vm349_vm0, %v11057_v2  ;;  %v4375_v2 = vpack.c.bf16 %v4344_v52, %v4343_v55  ;;  %v4355_v55 = vld [vmem:[#allocation2 + $0xa9] sm:$0xff]  ;;  %v4356_v52 = vld [vmem:[#allocation2 + $0xb1] sm:$0xff] }
 0x11c   : > { %9565 = vmatprep.mubr.msk.bf16.mxu0 %vm349_vm0, %v11071_v17  ;;  %v11394_v17 = vld [vmem:[%s13224_s3 + $0x30] sm:$0xff]  }
 0x11f   : > { %9264 = vmatmul.mubr.msk.bf16.gmra.mrb[20].mxu1 %vm349_vm0, %v11075_v27 }
 0x120   : > { %9267 = vmatprep.mubr.msk.bf16.mxu1 %vm349_vm0, %v11090_v8 }
 0x123   : > { %9566 = vmatmul.mubr.msk.bf16.gmra.mrb[16].mxu0 %vm349_vm0, %v11077_v28  ;;  %v13351_v28 = vld [vmem:[#allocation5_spill] sm:$0xff] }
 0x124   : > { %9569 = vmatprep.mubr.msk.bf16.mxu0 %vm349_vm0, %v11092_v63  ;;  %v13352_v63 = vld [vmem:[#allocation8_spill] sm:$0xff] }
 0x127   : > { %9268 = vmatmul.mubr.msk.bf16.gmra.mrb[24].mxu1 %vm349_vm0, %v11096_v13 }
 0x128   : > { %9271 = vmatprep.mubr.msk.bf16.mxu1 %vm349_vm0, %v11113_v16 }
 0x12b   : > { %9570 = vmatmul.mubr.msk.bf16.gmra.mrb[20].mxu0 %vm349_vm0, %v11098_v50  ;;  %v4345_v50 = vld [vmem:[#allocation2 + $0x31] sm:$0xff] }
 0x12c   : > { %9573 = vmatprep.mubr.msk.bf16.mxu0 %vm349_vm0, %v11115_v22  ;;  %v4346_v22 = vld [vmem:[#allocation2 + $0x39] sm:$0xff] }
 0x12d   : > { %v11404_v21 = vpack.c.bf16 %v4346_v22, %v4345_v50  ;;  %v11436_v50 = vpack.c.bf16 %v4356_v52, %v4355_v55  ;;  %v13358_v22 = vld [vmem:[#allocation25_spill] sm:$0xff]  ;;  %v4361_v55 = vld [vmem:[#allocation2 + $0xf1] sm:$0xff] }
 0x12e   : > { %v4362_v52 = vld [vmem:[#allocation2 + $0xf9] sm:$0xff] }
 0x12f   : > { %9272 = vmatmul.mubr.msk.bf16.gmra.mrb[28].mxu1 %vm349_vm0, %v11379_v62  ;;  %13357 = vst [vmem:[#allocation27_spill] sm:$0xff] %v11436_v50 }
 0x130   : > { %9277 = vmatprep.mubr.msk.bf16.mxu1 %vm349_vm0, %v13350_v37  ;;  %v13355_v37 = vld [vmem:[#allocation17_spill] sm:$0xff] }
 0x133   : > { %9574 = vmatmul.mubr.msk.bf16.gmra.mrb[24].mxu0 %vm349_vm0, %v11117_v36  ;;  %v4347_v36 = vld [vmem:[#allocation2 + $0x49] sm:$0xff] }
 0x134   : > { %9577 = vmatprep.mubr.msk.bf16.mxu0 %vm349_vm0, %v11144_v0  ;;  %v11406_v0 = vpack.c.bf16 %v4348_v7, %v4347_v36  ;;  %v13359_v36 = vld [vmem:[#allocation30_spill] sm:$0xff] }
 0x135   : > { %v4357_v7 = vld [vmem:[#allocation2 + $0xc1] sm:$0xff] }
 0x137   : > { %9278 = vmatmul.mubr.msk.bf16.vlgmr.msra.gmra.mrb[0].mxu1 %vm349_vm0, %v13351_v28 }
 0x138   : > { %9281 = vmatprep.mubr.msk.bf16.mxu1 %vm349_vm0, %v13352_v63  ;;  %9310 = vmatpush3.bf16.msra.mxu1 %v10314_v45  ;;  %v11424_v45 = vpack.c.bf16 %v4352_v54, %v4351_v42  ;;  %v4360_v42 = vld [vmem:[#allocation2 + $0xe1] sm:$0xff]  ;;  %v11446_v54 = vpack.c.bf16 %v4358_v25, %v4357_v7  ;;  %v13361_v7 = vld [vmem:[#allocation36_spill] sm:$0xff]  ;;  %v13362_v25 = vld [vmem:[#allocation37_spill] sm:$0xff] }
 0x139   : > { %9343 = vmatprep.subr.bf16.mxu1 %v11394_v17 }
 0x13b   : > { %9578 = vmatmul.mubr.msk.bf16.gmra.mrb[28].mxu0 %vm349_vm0, %v11389_v40 }
 0x13c   : > { %9583 = vmatprep.mubr.msk.bf16.mxu0 %vm349_vm0, %v4375_v2  ;;  %v11434_v2 = vpack.c.bf16 %v4354_v49, %v4353_v61  ;;  %v11448_v61 = vpack.c.bf16 %v4360_v42, %v4359_v58  ;;  %v13360_v49 = vld [vmem:[#allocation33_spill] sm:$0xff]  ;;  %v4373_v58 = vld [vmem:[#allocation2 + $0x181] sm:$0xff] }
 0x13f   : > { %9282 = vmatmul.mubr.msk.bf16.gmra.mrb[4].mxu1 %vm349_vm0, %v13353_v6 }
 0x140   : > { %9285 = vmatprep.mubr.msk.bf16.mxu1 %vm349_vm0, %v13354_v24 }
 0x143   : > { %9584 = vmatmul.mubr.msk.bf16.vlgmr.msra.gmra.mrb[0].mxu0 %vm349_vm0, %v11404_v21 }
 0x144   : > { %9616 = vmatpush3.bf16.msra.mxu0 %v10315_v34  ;;  %9587 = vmatprep.mubr.msk.bf16.mxu0 %vm349_vm0, %v11406_v0  ;;  %v13356_v34 = vld [vmem:[#allocation24_spill] sm:$0xff] }
 0x145   : > { %9649 = vmatprep.subr.bf16.mxu0 %v11411_v53 }
 0x147   : > { %9286 = vmatmul.mubr.msk.bf16.gmra.mrb[8].mxu1 %vm349_vm0, %v13355_v37 }
 0x148   : > { %9289 = vmatprep.mubr.msk.bf16.mxu1 %vm349_vm0, %v13356_v34 }
 0x14b   : > { %9588 = vmatmul.mubr.msk.bf16.gmra.mrb[4].mxu0 %vm349_vm0, %v11422_v10 }
 0x14c   : > { %9591 = vmatprep.mubr.msk.bf16.mxu0 %vm349_vm0, %v11424_v45 }
 0x14f   : > { %9290 = vmatmul.mubr.msk.bf16.gmra.mrb[12].mxu1 %vm349_vm0, %v13358_v22 }
 0x150   : > { %9293 = vmatprep.mubr.msk.bf16.mxu1 %vm349_vm0, %v13359_v36 }
 0x153   : > { %9592 = vmatmul.mubr.msk.bf16.gmra.mrb[8].mxu0 %vm349_vm0, %v11434_v2 }
 0x154   : > { %9595 = vmatprep.mubr.msk.bf16.mxu0 %vm349_vm0, %v11436_v50  ;;  %v11458_v50 = vpack.c.bf16 %v4362_v52, %v4361_v55  ;;  %v10318_v55 = vld [vmem:[%s13224_s3 + $0x38] sm:$0xff]   ;;  %v13364_v52 = vld [vmem:[#allocation6_spill] sm:$0xff] }
 0x157   : > { %9294 = vmatmul.mubr.msk.bf16.gmra.mrb[16].mxu1 %vm349_vm0, %v13360_v49 }
 0x158   : > { %9297 = vmatprep.mubr.msk.bf16.mxu1 %vm349_vm0, %v10913_v5 }
 0x15b   : > { %9596 = vmatmul.mubr.msk.bf16.gmra.mrb[12].mxu0 %vm349_vm0, %v11446_v54 }
 0x15c   : > { %9599 = vmatprep.mubr.msk.bf16.mxu0 %vm349_vm0, %v11448_v61 }
 0x15f   : > { %9298 = vmatmul.mubr.msk.bf16.gmra.mrb[20].mxu1 %vm349_vm0, %v10915_v31 }
 0x160   : > { %9301 = vmatprep.mubr.msk.bf16.mxu1 %vm349_vm0, %v10927_v33 }
 0x163   : > { %9600 = vmatmul.mubr.msk.bf16.gmra.mrb[16].mxu0 %vm349_vm0, %v11458_v50 }
 0x164   : > { %9603 = vmatprep.mubr.msk.bf16.mxu0 %vm349_vm0, %v10929_v32  ;;  %v13363_v32 = vld [vmem:[#allocation38_spill] sm:$0xff] }
 0x167   : > { %9302 = vmatmul.mubr.msk.bf16.gmra.mrb[24].mxu1 %vm349_vm0, %v10931_v46 }
 0x168   : > { %9305 = vmatprep.mubr.msk.bf16.mxu1 %vm349_vm0, %v10943_v3 }
 0x16b   : > { %9604 = vmatmul.mubr.msk.bf16.gmra.mrb[20].mxu0 %vm349_vm0, %v10933_v41  ;;  %v4374_v41 = vld [vmem:[#allocation2 + $0x189] sm:$0xff] }
 0x16c   : > { %9607 = vmatprep.mubr.msk.bf16.mxu0 %vm349_vm0, %v13361_v7  ;;  %v11484_v42 = vpack.c.bf16 %v4374_v41, %v4373_v58  ;;  %v13365_v7 = vld [vmem:[#allocation7_spill] sm:$0xff]  ;;  %v13372_v41 = vld [vmem:[#allocation18_spill] sm:$0xff] }
 0x16d   : > { %v13370_v58 = vld [vmem:[#allocation15_spill] sm:$0xff] }
 0x16f   : > { %9306 = vmatmul.mubr.msk.bf16.gmra.mrb[28].mxu1 %vm349_vm0, %v11293_v43 }
 0x170   : > { %9311 = vmatprep.mubr.msk.bf16.mxu1 %vm349_vm0, %v11142_v15  ;;  %v10319_v15 = vld [vmem:[%s13225_s4 + $0x38] sm:$0xff]  }
 0x173   : > { %9608 = vmatmul.mubr.msk.bf16.gmra.mrb[24].mxu0 %vm349_vm0, %v13362_v25  ;;  %v13366_v25 = vld [vmem:[#allocation10_spill] sm:$0xff] }
 0x174   : > { %9611 = vmatprep.mubr.msk.bf16.mxu0 %vm349_vm0, %v13363_v32  ;;  %v13369_v32 = vld [vmem:[#allocation13_spill] sm:$0xff] }
 0x177   : > { %9312 = vmatmul.mubr.msk.bf16.vlgmr.msra.gmra.mrb[0].mxu1 %vm349_vm0, %v11148_v19 }
 0x178   : > { %9315 = vmatprep.mubr.msk.bf16.mxu1 %vm349_vm0, %v11166_v51  ;;  %9344 = vmatpush3.bf16.msra.mxu1 %v11394_v17  ;;  %v13368_v17 = vld [vmem:[#allocation12_spill] sm:$0xff] }
 0x179   : > { %9377 = vmatprep.subr.bf16.mxu1 %v10318_v55 }
 0x17b   : > { %9612 = vmatmul.mubr.msk.bf16.gmra.mrb[28].mxu0 %vm349_vm0, %v11484_v42 }
 0x17c   : > { %9617 = vmatprep.mubr.msk.bf16.mxu0 %vm349_vm0, %v11168_v56  ;;  %v13367_v56 = vld [vmem:[#allocation11_spill] sm:$0xff] }
 0x17f   : > { %9316 = vmatmul.mubr.msk.bf16.gmra.mrb[4].mxu1 %vm349_vm0, %v11172_v20 }
 0x180   : > { %9319 = vmatprep.mubr.msk.bf16.mxu1 %vm349_vm0, %v13365_v7 }
 0x183   : > { %9618 = vmatmul.mubr.msk.bf16.vlgmr.msra.gmra.mrb[0].mxu0 %vm349_vm0, %v13364_v52  ;;  %v13373_v52 = vld [vmem:[#allocation19_spill] sm:$0xff] }
 0x184   : > { %9650 = vmatpush3.bf16.msra.mxu0 %v11411_v53  ;;  %9621 = vmatprep.mubr.msk.bf16.mxu0 %vm349_vm0, %v13366_v25  ;;  %v13371_v53 = vld [vmem:[#allocation16_spill] sm:$0xff] }
 0x185   : > { %9683 = vmatprep.subr.bf16.mxu0 %v10319_v15  ;;  %v13374_v25 = vld [vmem:[#allocation20_spill] sm:$0xff] }
 0x187   : > { %9320 = vmatmul.mubr.msk.bf16.gmra.mrb[8].mxu1 %vm349_vm0, %v13367_v56  ;;  %v13375_v56 = vld [vmem:[#allocation21_spill] sm:$0xff] }
 0x188   : > { %9323 = vmatprep.mubr.msk.bf16.mxu1 %vm349_vm0, %v13369_v32  ;;  %v13377_v32 = vld [vmem:[#allocation23_spill] sm:$0xff] }
 0x18b   : > { %9622 = vmatmul.mubr.msk.bf16.gmra.mrb[4].mxu0 %vm349_vm0, %v13368_v17  ;;  %v13376_v17 = vld [vmem:[#allocation22_spill] sm:$0xff] }
 0x18c   : > { %9625 = vmatprep.mubr.msk.bf16.mxu0 %vm349_vm0, %v13370_v58  ;;  %v13378_v58 = vld [vmem:[#allocation26_spill] sm:$0xff] }
 0x18f   : > { %9324 = vmatmul.mubr.msk.bf16.gmra.mrb[12].mxu1 %vm349_vm0, %v13371_v53 }
 0x190   : > { %9327 = vmatprep.mubr.msk.bf16.mxu1 %vm349_vm0, %v13373_v52 }
 0x193   : > { %9626 = vmatmul.mubr.msk.bf16.gmra.mrb[8].mxu0 %vm349_vm0, %v13372_v41  ;;  %v13379_v41 = vld [vmem:[#allocation39_spill] sm:$0xff] }
 0x194   : > { %9629 = vmatprep.mubr.msk.bf16.mxu0 %vm349_vm0, %v13374_v25 }
 0x197   : > { %9328 = vmatmul.mubr.msk.bf16.gmra.mrb[16].mxu1 %vm349_vm0, %v13375_v56 }
 0x198   : > { %9331 = vmatprep.mubr.msk.bf16.mxu1 %vm349_vm0, %v13377_v32 }
 0x19b   : > { %9630 = vmatmul.mubr.msk.bf16.gmra.mrb[12].mxu0 %vm349_vm0, %v13376_v17  ;;  %v4939_v17 = vld [vmem:[#allocation2 + $0x30] sm:$0xff] }
 0x19c   : > { %9633 = vmatprep.mubr.msk.bf16.mxu0 %vm349_vm0, %v13378_v58 }
 0x19f   : > { %9332 = vmatmul.mubr.msk.bf16.gmra.mrb[20].mxu1 %vm349_vm0, %v11259_v14 }
 0x1a0   : > { %9335 = vmatprep.mubr.msk.bf16.mxu1 %vm349_vm0, %v11273_v38 }
 0x1a3   : > { %9634 = vmatmul.mubr.msk.bf16.gmra.mrb[16].mxu0 %vm349_vm0, %v11261_v60  ;;  %v13380_v60 = vld [vmem:[#allocation40_spill] sm:$0xff] }
 0x1a4   : > { %9637 = vmatprep.mubr.msk.bf16.mxu0 %vm349_vm0, %v11275_v11  ;;  %v11552_v25 = vpack.c.bf16 %v13380_v60, %v13379_v41  ;;  %v4672_v11 = vld [vmem:[#allocation2 + $0x18a] sm:$0xff]  ;;  %v11567_v60 = vld [vmem:[%s13224_s3 + $0x40] sm:$0xff]  }
 0x1a7   : > { %9336 = vmatmul.mubr.msk.bf16.gmra.mrb[24].mxu1 %vm349_vm0, %v11279_v18 }
 0x1a8   : > { %9339 = vmatprep.mubr.msk.bf16.mxu1 %vm349_vm0, %v11297_v35 }
 0x1ab   : > { %9638 = vmatmul.mubr.msk.bf16.gmra.mrb[20].mxu0 %vm349_vm0, %v11281_v57  ;;  %v4671_v57 = vld [vmem:[#allocation2 + $0x182] sm:$0xff] }
 0x1ac   : > { %9641 = vmatprep.mubr.msk.bf16.mxu0 %vm349_vm0, %v11299_v12  ;;  %v4940_v12 = vld [vmem:[#allocation2 + $0x38] sm:$0xff]  ;;  %v11562_v58 = vpack.c.bf16 %v4672_v11, %v4671_v57  ;;  %v4944_v57 = vld [vmem:[#allocation2 + $0x68] sm:$0xff] }
 0x1ad   : > { %v4971_v41 = vpack.c.bf16 %v4940_v12, %v4939_v17  ;;  %v4947_v12 = vld [vmem:[#allocation2 + $0x90] sm:$0xff] }
 0x1af   : > { %9340 = vmatmul.mubr.msk.bf16.gmra.mrb[28].mxu1 %vm349_vm0, %v11552_v25 }
 0x1b0   : > { %9345 = vmatprep.mubr.msk.bf16.mxu1 %vm349_vm0, %v10964_v47  ;;  %v4941_v47 = vld [vmem:[#allocation2 + $0x48] sm:$0xff] }
 0x1b3   : > { %9642 = vmatmul.mubr.msk.bf16.gmra.mrb[24].mxu0 %vm349_vm0, %v11301_v59  ;;  %v4942_v59 = vld [vmem:[#allocation2 + $0x50] sm:$0xff] }
 0x1b4   : > { %9645 = vmatprep.mubr.msk.bf16.mxu0 %vm349_vm0, %v11311_v26  ;;  %v4943_v26 = vld [vmem:[#allocation2 + $0x60] sm:$0xff]  ;;  %v4972_v11 = vpack.c.bf16 %v4942_v59, %v4941_v47 }
 0x1b5   : > { %v4973_v17 = vpack.c.bf16 %v4944_v57, %v4943_v26  ;;  %v4952_v26 = vld [vmem:[#allocation2 + $0xc8] sm:$0xff] }
 0x1b7   : > { %9346 = vmatmul.mubr.msk.bf16.vlgmr.msra.gmra.mrb[0].mxu1 %vm349_vm0, %v10982_v29  ;;  %v11580_v29 = vld [vmem:[%s13225_s4 + $0x40] sm:$0xff]  }
 0x1b8   : > { %9349 = vmatprep.mubr.msk.bf16.mxu1 %vm349_vm0, %v10988_v30  ;;  %9378 = vmatpush3.bf16.msra.mxu1 %v10318_v55  ;;  %v4945_v30 = vld [vmem:[#allocation2 + $0x78] sm:$0xff]  ;;  %v4946_v55 = vld [vmem:[#allocation2 + $0x80] sm:$0xff] }
 0x1b9   : > { %9411 = vmatprep.subr.bf16.mxu1 %v11567_v60  ;;  %v4974_v47 = vpack.c.bf16 %v4946_v55, %v4945_v30  ;;  %v4956_v30 = vld [vmem:[#allocation2 + $0xf8] sm:$0xff] }
 0x1bb   : > { %9646 = vmatmul.mubr.msk.bf16.gmra.mrb[28].mxu0 %vm349_vm0, %v11562_v58 }
 0x1bc   : > { %9651 = vmatprep.mubr.msk.bf16.mxu0 %vm349_vm0, %v4971_v41  ;;  %v4948_v41 = vld [vmem:[#allocation2 + $0x98] sm:$0xff] }
 0x1bd   : > { %v4975_v59 = vpack.c.bf16 %v4948_v41, %v4947_v12  ;;  %v4959_v41 = vld [vmem:[#allocation2 + $0x120] sm:$0xff] }
 0x1bf   : > { %9350 = vmatmul.mubr.msk.bf16.gmra.mrb[4].mxu1 %vm349_vm0, %v11009_v44  ;;  %v4949_v44 = vld [vmem:[#allocation2 + $0xa8] sm:$0xff] }
 0x1c0   : > { %9353 = vmatprep.mubr.msk.bf16.mxu1 %vm349_vm0, %v11015_v39  ;;  %v4950_v39 = vld [vmem:[#allocation2 + $0xb0] sm:$0xff] }
 0x1c1   : > { %v4976_v57 = vpack.c.bf16 %v4950_v39, %v4949_v44  ;;  %v4963_v39 = vld [vmem:[#allocation2 + $0x150] sm:$0xff] }
 0x1c3   : > { %9652 = vmatmul.mubr.msk.bf16.vlgmr.msra.gmra.mrb[0].mxu0 %vm349_vm0, %v4972_v11 }
 0x1c4   : > { %9684 = vmatpush3.bf16.msra.mxu0 %v10319_v15  ;;  %9655 = vmatprep.mubr.msk.bf16.mxu0 %vm349_vm0, %v4973_v17  ;;  %v4951_v15 = vld [vmem:[#allocation2 + $0xc0] sm:$0xff]  ;;  %v4955_v17 = vld [vmem:[#allocation2 + $0xf0] sm:$0xff] }
 0x1c5   : > { %9717 = vmatprep.subr.bf16.mxu0 %v11580_v29  ;;  %v4977_v11 = vpack.c.bf16 %v4952_v26, %v4951_v15  ;;  %v4979_v12 = vpack.c.bf16 %v4956_v30, %v4955_v17  ;;  %v4964_v15 = vld [vmem:[#allocation2 + $0x158] sm:$0xff] }
 0x1c6   : > { %v5544_v30 = vld [vmem:[#allocation2 + $0x9a] sm:$0xff] }
 0x1c7   : > { %9354 = vmatmul.mubr.msk.bf16.gmra.mrb[8].mxu1 %vm349_vm0, %v11029_v48  ;;  %v4953_v48 = vld [vmem:[#allocation2 + $0xd8] sm:$0xff] }
 0x1c8   : > { %9357 = vmatprep.mubr.msk.bf16.mxu1 %vm349_vm0, %v11035_v9  ;;  %v4954_v9 = vld [vmem:[#allocation2 + $0xe0] sm:$0xff] }
 0x1c9   : > { %v4978_v55 = vpack.c.bf16 %v4954_v9, %v4953_v48  ;;  %v4966_v48 = vld [vmem:[#allocation2 + $0x170] sm:$0xff] }
 0x1cb   : > { %9656 = vmatmul.mubr.msk.bf16.gmra.mrb[4].mxu0 %vm349_vm0, %v4974_v47  ;;  %v4960_v47 = vld [vmem:[#allocation2 + $0x128] sm:$0xff] }
 0x1cc   : > { %9659 = vmatprep.mubr.msk.bf16.mxu0 %vm349_vm0, %v4975_v59  ;;  %v4981_v44 = vpack.c.bf16 %v4960_v47, %v4959_v41  ;;  %v5547_v41 = vld [vmem:[#allocation2 + $0xc2] sm:$0xff]  ;;  %v5548_v47 = vld [vmem:[#allocation2 + $0xca] sm:$0xff] }
 0x1cf   : > { %9358 = vmatmul.mubr.msk.bf16.gmra.mrb[12].mxu1 %vm349_vm0, %v11049_v4  ;;  %v4957_v4 = vld [vmem:[#allocation2 + $0x108] sm:$0xff] }
 0x1d0   : > { %9361 = vmatprep.mubr.msk.bf16.mxu1 %vm349_vm0, %v11055_v1  ;;  %v4958_v1 = vld [vmem:[#allocation2 + $0x110] sm:$0xff] }
 0x1d1   : > { %v4980_v59 = vpack.c.bf16 %v4958_v1, %v4957_v4  ;;  %v13383_v4 = vld [vmem:[#allocation13_spill] sm:$0xff] }
 0x1d2   : > { %v5546_v1 = vld [vmem:[#allocation2 + $0xb2] sm:$0xff] }
 0x1d3   : > { %9660 = vmatmul.mubr.msk.bf16.gmra.mrb[8].mxu0 %vm349_vm0, %v4976_v57  ;;  %v4983_v57 = vpack.c.bf16 %v4964_v15, %v4963_v39  ;;  %v5552_v39 = vld [vmem:[#allocation2 + $0xfa] sm:$0xff] }
 0x1d4   : > { %9663 = vmatprep.mubr.msk.bf16.mxu0 %vm349_vm0, %v4977_v11  ;;  %v11616_v11 = vld [vmem:[#allocation2 + $0x198] sm:$0xff] }
 0x1d7   : > { %9362 = vmatmul.mubr.msk.bf16.gmra.mrb[16].mxu1 %vm349_vm0, %v11069_v23  ;;  %v4961_v23 = vld [vmem:[#allocation2 + $0x138] sm:$0xff] }
 0x1d8   : > { %9365 = vmatprep.mubr.msk.bf16.mxu1 %vm349_vm0, %v11075_v27  ;;  %v4962_v27 = vld [vmem:[#allocation2 + $0x140] sm:$0xff] }
 0x1d9   : > { %v4982_v26 = vpack.c.bf16 %v4962_v27, %v4961_v23  ;;  %v5549_v23 = vld [vmem:[#allocation2 + $0xda] sm:$0xff]  ;;  %v5551_v27 = vld [vmem:[#allocation2 + $0xf2] sm:$0xff] }
 0x1db   : > { %9664 = vmatmul.mubr.msk.bf16.gmra.mrb[12].mxu0 %vm349_vm0, %v4978_v55 }
 0x1dc   : > { %9667 = vmatprep.mubr.msk.bf16.mxu0 %vm349_vm0, %v4979_v12 }
 0x1df   : > { %9366 = vmatmul.mubr.msk.bf16.gmra.mrb[20].mxu1 %vm349_vm0, %v11090_v8  ;;  %v11621_v8 = vld [vmem:[#allocation2 + $0x1a0] sm:$0xff] }
 0x1e0   : > { %9369 = vmatprep.mubr.msk.bf16.mxu1 %vm349_vm0, %v11096_v13  ;;  %v4965_v13 = vld [vmem:[#allocation2 + $0x168] sm:$0xff]  ;;  %v2273_v9 = vpack.c.bf16 %v11621_v8, %v11616_v11 }
 0x1e1   : > { %v4984_v17 = vpack.c.bf16 %v4966_v48, %v4965_v13  ;;  %v5556_v13 = vld [vmem:[#allocation2 + $0x12a] sm:$0xff] }
 0x1e3   : > { %9668 = vmatmul.mubr.msk.bf16.gmra.mrb[16].mxu0 %vm349_vm0, %v4980_v59 }
 0x1e4   : > { %9671 = vmatprep.mubr.msk.bf16.mxu0 %vm349_vm0, %v4981_v44  ;;  %v5573_v44 = vpack.c.bf16 %v5548_v47, %v5547_v41  ;;  %v8555_v47 = vld [vmem:[%s13227_s6 + $0x7] sm:$0x1] }
 0x1e7   : > { %9370 = vmatmul.mubr.msk.bf16.gmra.mrb[24].mxu1 %vm349_vm0, %v11113_v16  ;;  %v13381_v16 = vld [vmem:[#allocation27_spill] sm:$0xff] }
 0x1e8   : > { %9373 = vmatprep.mubr.msk.bf16.mxu1 %vm349_vm0, %v11379_v62  ;;  %v5255_v62 = vld [vmem:[#allocation2 + $0x109] sm:$0xff] }
 0x1eb   : > { %9672 = vmatmul.mubr.msk.bf16.gmra.mrb[20].mxu0 %vm349_vm0, %v4982_v26  ;;  %v5575_v26 = vpack.c.bf16 %v5552_v39, %v5551_v27 }
 0x1ec   : > { %9675 = vmatprep.mubr.msk.bf16.mxu0 %vm349_vm0, %v4983_v57  ;;  %v5555_v57 = vld [vmem:[#allocation2 + $0x122] sm:$0xff] }
 0x1ef   : > { %9374 = vmatmul.mubr.msk.bf16.gmra.mrb[28].mxu1 %vm349_vm0, %v2273_v9 }
 0x1f0   : > { %9379 = vmatprep.mubr.msk.bf16.mxu1 %vm349_vm0, %v13351_v28  ;;  %v5257_v28 = vld [vmem:[#allocation2 + $0x121] sm:$0xff] }
 0x1f3   : > { %9676 = vmatmul.mubr.msk.bf16.gmra.mrb[24].mxu0 %vm349_vm0, %v4984_v17  ;;  %v5559_v17 = vld [vmem:[#allocation2 + $0x152] sm:$0xff] }
 0x1f4   : > { %9679 = vmatprep.mubr.msk.bf16.mxu0 %vm349_vm0, %v11389_v40  ;;  %v5256_v40 = vld [vmem:[#allocation2 + $0x111] sm:$0xff] }
 0x1f7   : > { %9380 = vmatmul.mubr.msk.bf16.vlgmr.msra.gmra.mrb[0].mxu1 %vm349_vm0, %v13352_v63  ;;  %v5258_v63 = vld [vmem:[#allocation2 + $0x129] sm:$0xff] }
 0x1f8   : > { %9383 = vmatprep.mubr.msk.bf16.mxu1 %vm349_vm0, %v13353_v6  ;;  %9412 = vmatpush3.bf16.msra.mxu1 %v11567_v60  ;;  %v5261_v6 = vld [vmem:[#allocation2 + $0x151] sm:$0xff] }
 0x1fb   : > { %9680 = vmatmul.mubr.msk.bf16.gmra.mrb[28].mxu0 %vm349_vm0, %v2273_v9  ;;  %v5577_v9 = vpack.c.bf16 %v5556_v13, %v5555_v57 }
 0x1fc   : > { %9685 = vmatprep.mubr.msk.bf16.mxu0 %vm349_vm0, %v11404_v21  ;;  %v5278_v21 = vpack.c.bf16 %v5256_v40, %v5255_v62 }
 0x1ff   : > { %9384 = vmatmul.mubr.msk.bf16.gmra.mrb[4].mxu1 %vm349_vm0, %v13354_v24  ;;  %v5262_v24 = vld [vmem:[#allocation2 + $0x159] sm:$0xff] }
 0x200   : > { %9387 = vmatprep.mubr.msk.bf16.mxu1 %vm349_vm0, %v13355_v37  ;;  %v11681_v37 = vld [vmem:[#allocation2 + $0x199] sm:$0xff] }
 0x203   : > { %9686 = vmatmul.mubr.msk.bf16.vlgmr.msra.gmra.mrb[0].mxu0 %vm349_vm0, %v11406_v0  ;;  %v5279_v0 = vpack.c.bf16 %v5258_v63, %v5257_v28  ;;  %v2852_v28 = vld [vmem:[#allocation2 + $0x19a] sm:$0xff]  ;;  %v5562_v63 = vld [vmem:[#allocation2 + $0x172] sm:$0xff] }
 0x204   : > { %9718 = vmatpush3.bf16.msra.mxu0 %v11580_v29  ;;  %9689 = vmatprep.mubr.msk.bf16.mxu0 %vm349_vm0, %v11422_v10  ;;  %v5543_v29 = vld [vmem:[#allocation2 + $0x92] sm:$0xff] }
 0x205   : > { %v5571_v12 = vpack.c.bf16 %v5544_v30, %v5543_v29  ;;  %v6461_v29 = vld [vmem:[#allocation2 + $0x2] sm:$0xff] }
 0x207   : > { %9388 = vmatmul.mubr.msk.bf16.gmra.mrb[8].mxu1 %vm349_vm0, %v13356_v34  ;;  %v5264_v34 = vld [vmem:[#allocation2 + $0x171] sm:$0xff] }
 0x208   : > { %9391 = vmatprep.mubr.msk.bf16.mxu1 %vm349_vm0, %v13358_v22 }
 0x20b   : > { %9690 = vmatmul.mubr.msk.bf16.gmra.mrb[4].mxu0 %vm349_vm0, %v11424_v45  ;;  %v5281_v45 = vpack.c.bf16 %v5262_v24, %v5261_v6 }
 0x20c   : > { %9693 = vmatprep.mubr.msk.bf16.mxu0 %vm349_vm0, %v11434_v2 }
 0x20f   : > { %9392 = vmatmul.mubr.msk.bf16.gmra.mrb[12].mxu1 %vm349_vm0, %v13359_v36  ;;  %v5537_v36 = vld [vmem:[#allocation2 + $0x4a] sm:$0xff] }
 0x210   : > { %9395 = vmatprep.mubr.msk.bf16.mxu1 %vm349_vm0, %v13360_v49 }
 0x213   : > { %9694 = vmatmul.mubr.msk.bf16.gmra.mrb[8].mxu0 %vm349_vm0, %v13381_v16  ;;  %v5560_v16 = vld [vmem:[#allocation2 + $0x15a] sm:$0xff] }
 0x214   : > { %9697 = vmatprep.mubr.msk.bf16.mxu0 %vm349_vm0, %v11446_v54  ;;  %v5538_v54 = vld [vmem:[#allocation2 + $0x52] sm:$0xff]  ;;  %v5579_v40 = vpack.c.bf16 %v5560_v16, %v5559_v17  ;;  %v8725_v16 = vld [vmem:[%s11803_s24] sm:$0xff]  }
 0x215   : > { %v5568_v49 = vpack.c.bf16 %v5538_v54, %v5537_v36  ;;  %v6262_v36 = vld [vmem:[#allocation2 + $0x1] sm:$0xff] }
 0x216   : > { %v8550_v54 = vld [vmem:[%s13227_s6 + $0x2] sm:$0x1] }
 0x217   : > { %9396 = vmatmul.mubr.msk.bf16.gmra.mrb[16].mxu1 %vm349_vm0, %v10913_v5  ;;  %v5260_v5 = vld [vmem:[#allocation2 + $0x141] sm:$0xff] }
 0x218   : > { %9399 = vmatprep.mubr.msk.bf16.mxu1 %vm349_vm0, %v10915_v31  ;;  %v5259_v31 = vld [vmem:[#allocation2 + $0x139] sm:$0xff] }
 0x219   : > { %v5280_v10 = vpack.c.bf16 %v5260_v5, %v5259_v31 }
 0x21b   : > { %9698 = vmatmul.mubr.msk.bf16.gmra.mrb[12].mxu0 %vm349_vm0, %v11448_v61  ;;  %v5539_v61 = vld [vmem:[#allocation2 + $0x62] sm:$0xff] }
 0x21c   : > { %9701 = vmatprep.mubr.msk.bf16.mxu0 %vm349_vm0, %v11458_v50 }
 0x21f   : > { %9400 = vmatmul.mubr.msk.bf16.gmra.mrb[20].mxu1 %vm349_vm0, %v10927_v33  ;;  %v11686_v33 = vld [vmem:[#allocation2 + $0x1a1] sm:$0xff] }
 0x220   : > { %9403 = vmatprep.mubr.msk.bf16.mxu1 %vm349_vm0, %v10931_v46  ;;  %v5263_v46 = vld [vmem:[#allocation2 + $0x169] sm:$0xff]  ;;  %v2571_v2 = vpack.c.bf16 %v11686_v33, %v11681_v37 }
 0x221   : > { %v5282_v50 = vpack.c.bf16 %v5264_v34, %v5263_v46  ;;  %v8549_v34 = vld [vmem:[%s13227_s6 + $0x1] sm:$0x1] }
 0x223   : > { %9702 = vmatmul.mubr.msk.bf16.gmra.mrb[16].mxu0 %vm349_vm0, %v5278_v21 }
 0x224   : > { %9705 = vmatprep.mubr.msk.bf16.mxu0 %vm349_vm0, %v5279_v0 }
 0x227   : > { %9404 = vmatmul.mubr.msk.bf16.gmra.mrb[24].mxu1 %vm349_vm0, %v10943_v3  ;;  %v5535_v3 = vld [vmem:[#allocation2 + $0x32] sm:$0xff] }
 0x228   : > { %9407 = vmatprep.mubr.msk.bf16.mxu1 %vm349_vm0, %v11293_v43  ;;  %v5536_v43 = vld [vmem:[#allocation2 + $0x3a] sm:$0xff] }
 0x229   : > { %v5567_v22 = vpack.c.bf16 %v5536_v43, %v5535_v3 }
 0x22b   : > { %9706 = vmatmul.mubr.msk.bf16.gmra.mrb[20].mxu0 %vm349_vm0, %v5280_v10  ;;  %v6064_v10 = vld [vmem:[#allocation2] sm:$0xff] }
 0x22c   : > { %9709 = vmatprep.mubr.msk.bf16.mxu0 %vm349_vm0, %v5281_v45 }
 0x22f   : > { %9408 = vmatmul.mubr.msk.bf16.gmra.mrb[28].mxu1 %vm349_vm0, %v2571_v2 }
 0x230   : > { %9413 = vmatprep.mubr.msk.bf16.mxu1 %vm349_vm0, %v11148_v19  ;;  %v5540_v19 = vld [vmem:[#allocation2 + $0x6a] sm:$0xff] }
 0x231   : > { %v5569_v60 = vpack.c.bf16 %v5540_v19, %v5539_v61 }
 0x233   : > { %9710 = vmatmul.mubr.msk.bf16.gmra.mrb[24].mxu0 %vm349_vm0, %v5282_v50  ;;  %v6296_v50 = vunpack.c.l.bf16 %v8549_v34  ;;  %v8727_v34 = vunpack.c.h.bf16 %v8725_v16 }
 0x234   : > { %9713 = vmatprep.mubr.msk.bf16.mxu0 %vm349_vm0, %v11484_v42  ;;  %v13382_v42 = vld [vmem:[#allocation11_spill] sm:$0xff] }
 0x237   : > { %9414 = vmatmul.mubr.msk.bf16.vlgmr.msra.gmra.mrb[0].mxu1 %vm349_vm0, %v11166_v51  ;;  %v5541_v51 = vld [vmem:[#allocation2 + $0x7a] sm:$0xff] }
 0x238   : > { %9417 = vmatprep.mubr.msk.bf16.mxu1 %vm349_vm0, %v11172_v20  ;;  %v5542_v20 = vld [vmem:[#allocation2 + $0x82] sm:$0xff] }
 0x239   : > { %v5570_v55 = vpack.c.bf16 %v5542_v20, %v5541_v51  ;;  %v6462_v20 = vld [vmem:[#allocation2 + $0xa] sm:$0xff] }
 0x23b   : > { %9714 = vmatmul.mubr.msk.bf16.gmra.mrb[28].mxu0 %vm349_vm0, %v2571_v2 }
 0x23c   : > { %9719 = vmatprep.mubr.msk.bf16.mxu0 %vm349_vm0, %v5567_v22  ;;  %v6263_v22 = vld [vmem:[#allocation2 + $0x9] sm:$0xff] }
 0x23f   : > { %9418 = vmatmul.mubr.msk.bf16.gmra.mrb[4].mxu1 %vm349_vm0, %v13365_v7  ;;  %v5545_v7 = vld [vmem:[#allocation2 + $0xaa] sm:$0xff] }
 0x240   : > { %9421 = vmatprep.mubr.msk.bf16.mxu1 %vm349_vm0, %v13382_v42  ;;  %v5572_v59 = vpack.c.bf16 %v5546_v1, %v5545_v7 }
 0x243   : > { %9720 = vmatmul.mubr.msk.bf16.vlgmr.msra.gmra.mrb[0].mxu0 %vm349_vm0, %v5568_v49  ;;  %v6495_v49 = vunpack.c.l.bf16 %v8550_v54 }
 0x244   : > { %9723 = vmatprep.mubr.msk.bf16.mxu0 %vm349_vm0, %v5569_v60 }
 0x247   : > { %9422 = vmatmul.mubr.msk.bf16.gmra.mrb[8].mxu1 %vm349_vm0, %v13383_v4 }
 0x248   : > { %9425 = vmatprep.mubr.msk.bf16.mxu1 %vm349_vm0, %v13371_v53  ;;  %v5550_v53 = vld [vmem:[#allocation2 + $0xe2] sm:$0xff] }
 0x249   : > { %v5574_v15 = vpack.c.bf16 %v5550_v53, %v5549_v23 }
 0x24b   : > { %9724 = vmatmul.mubr.msk.bf16.gmra.mrb[4].mxu0 %vm349_vm0, %v5570_v55 }
 0x24c   : > { %9727 = vmatprep.mubr.msk.bf16.mxu0 %vm349_vm0, %v5571_v12  ;;  %v8554_v12 = vld [vmem:[%s13227_s6 + $0x6] sm:$0x1] }
 0x24d   : > { %v7291_v4 = vunpack.c.l.bf16 %v8554_v12 }
 0x24f   : > { %9426 = vmatmul.mubr.msk.bf16.gmra.mrb[12].mxu1 %vm349_vm0, %v13373_v52  ;;  %v5553_v52 = vld [vmem:[#allocation2 + $0x10a] sm:$0xff] }
 0x250   : > { %9429 = vmatprep.mubr.msk.bf16.mxu1 %vm349_vm0, %v13375_v56  ;;  %v5554_v56 = vld [vmem:[#allocation2 + $0x112] sm:$0xff] }
 0x251   : > { %v5576_v48 = vpack.c.bf16 %v5554_v56, %v5553_v52 }
 0x253   : > { %9728 = vmatmul.mubr.msk.bf16.gmra.mrb[8].mxu0 %vm349_vm0, %v5572_v59 }
 0x254   : > { %9731 = vmatprep.mubr.msk.bf16.mxu0 %vm349_vm0, %v5573_v44  ;;  %v7490_v44 = vunpack.c.l.bf16 %v8555_v47 }
 0x257   : > { %9430 = vmatmul.mubr.msk.bf16.gmra.mrb[16].mxu1 %vm349_vm0, %v13377_v32  ;;  %v5557_v32 = vld [vmem:[#allocation2 + $0x13a] sm:$0xff] }
 0x258   : > { %9433 = vmatprep.mubr.msk.bf16.mxu1 %vm349_vm0, %v11259_v14  ;;  %v5558_v14 = vld [vmem:[#allocation2 + $0x142] sm:$0xff] }
 0x259   : > { %v5578_v62 = vpack.c.bf16 %v5558_v14, %v5557_v32 }
 0x25b   : > { %9732 = vmatmul.mubr.msk.bf16.gmra.mrb[12].mxu0 %vm349_vm0, %v5574_v15 }
 0x25c   : > { %9735 = vmatprep.mubr.msk.bf16.mxu0 %vm349_vm0, %v5575_v26 }
 0x25f   : > { %9434 = vmatmul.mubr.msk.bf16.gmra.mrb[20].mxu1 %vm349_vm0, %v11273_v38  ;;  %v5561_v38 = vld [vmem:[#allocation2 + $0x16a] sm:$0xff] }
 0x260   : > { %9437 = vmatprep.mubr.msk.bf16.mxu1 %vm349_vm0, %v11279_v18  ;;  %v2853_v18 = vld [vmem:[#allocation2 + $0x1a2] sm:$0xff]  ;;  %v5580_v0 = vpack.c.bf16 %v5562_v63, %v5561_v38 }
 0x261   : > { %v2869_v21 = vpack.c.bf16 %v2853_v18, %v2852_v28 }
 0x263   : > { %9736 = vmatmul.mubr.msk.bf16.gmra.mrb[16].mxu0 %vm349_vm0, %v5576_v48 }
 0x264   : > { %9739 = vmatprep.mubr.msk.bf16.mxu0 %vm349_vm0, %v5577_v9  ;;  %v8818_v9 = vld [vmem:[%s11803_s24 + $0x8] sm:$0xff]  }
 0x265   : > { %v8730_v38 = vunpack.c.l.bf16 %v8818_v9 }
 0x267   : > { %9438 = vmatmul.mubr.msk.bf16.gmra.mrb[24].mxu1 %vm349_vm0, %v11297_v35  ;;  %v6098_v35 = vlaneseq }
 0x268   : > { %9441 = vmatprep.mubr.msk.bf16.mxu1 %vm349_vm0, %v11552_v25  ;;  %v6096_v25 = vld [vmem:[%s13227_s6] sm:$0x1] }
 0x269   : > { %v6099_v31 = vshrl.u32 %v6098_v35, 7  ;;  %v6097_v5 = vunpack.c.l.bf16 %v6096_v25 }
 0x26b   : > { %9740 = vmatmul.mubr.msk.bf16.gmra.mrb[20].mxu0 %vm349_vm0, %v5578_v62  ;;  %v11746_v6 = vsub.s32 0, %v6099_v31  ;;  %v8726_v31 = vunpack.c.l.bf16 %v8725_v16 }
 0x26c   : > { %9743 = vmatprep.mubr.msk.bf16.mxu0 %vm349_vm0, %v5579_v40 }
 0x26d   : > { %v11749_v24 = vrot.slane %v6097_v5, %v11746_v6  ;;  %v11759_v43 = vrot.slane %v6296_v50, %v11746_v6  ;;  %v11769_v51 = vrot.slane %v6495_v49, %v11746_v6  ;;  %v11779_v41 = vrot.slane %v7291_v4, %v11746_v6 }
 0x26e   : > { %v11790_v27 = vrot.slane %v7490_v44, %v11746_v6 }
 0x26f   : > { %9442 = vmatmul.mubr.msk.bf16.gmra.mrb[28].mxu1 %vm349_vm0, %v2869_v21  ;;  %v6102_v45 = vmul.f32 %v11749_v24, %v6064_v10  ;;  %v6302_v61 = vmul.f32 %v11759_v43, %v6263_v22  ;;  %v6301_v19 = vmul.f32 %v11759_v43, %v6262_v36  ;;  %v6501_v30 = vmul.f32 %v11769_v51, %v6462_v20  ;;  %v8819_v20 = vld [vmem:[%s11803_s24 + $0x10] sm:$0xff]  }
 0x270   : > { %v6500_v55 = vmul.f32 %v11769_v51, %v6461_v29  ;;  %v7326_v59 = vmul.f32 %v11779_v41, %v11616_v11  ;;  %v7327_v23 = vmul.f32 %v11779_v41, %v11621_v8  ;;  %v7525_v15 = vmul.f32 %v11790_v27, %v11681_v37  ;;  %v8551_v29 = vld [vmem:[%s13227_s6 + $0x3] sm:$0x1] }
 0x271   : > { %v6134_v46 = vsel %vm349_vm0, %v6102_v45, 0.0  ;;  %v6336_v60 = vsel %vm349_vm0, %v6302_v61, 0.0  ;;  %v6333_v42 = vsel %vm349_vm0, %v6301_v19, 0.0  ;;  %v6535_v7 = vsel %vm349_vm0, %v6501_v30, 0.0  ;;  %v8820_v61 = vld [vmem:[%s11803_s24 + $0x18] sm:$0xff]  }
 0x272   : > { %6135 = vadd.xlane.f32.xlu0 %v6134_v46  ;;  %6337 = vadd.xlane.f32.xlu1 %v6336_v60  ;;  %v6532_v1 = vsel %vm349_vm0, %v6500_v55, 0.0  ;;  %v7418_v53 = vsel %vm349_vm0, %v7326_v59, 0.0  ;;  %v7421_v39 = vsel %vm349_vm0, %v7327_v23, 0.0  ;;  %v7526_v11 = vmul.f32 %v11790_v27, %v11686_v33  ;;  %v11808_v33 = vld [vmem:[%s13226_s5] ss:$0 sm:$0xff] }
 0x273   : > { %9744 = vmatmul.mubr.msk.bf16.gmra.mrb[24].mxu0 %vm349_vm0, %v5580_v0  ;;  %v7617_v26 = vsel %vm349_vm0, %v7525_v15, 0.0  ;;  %v8731_v45 = vunpack.c.h.bf16 %v8818_v9  ;;  %v6694_v15 = vunpack.c.l.bf16 %v8551_v29 }
 0x274   : > { %9747 = vmatprep.mubr.msk.bf16.mxu0 %vm349_vm0, %v11562_v58  ;;  %v6065_v58 = vld [vmem:[#allocation2 + $0x8] sm:$0xff]  ;;  %v7620_v8 = vsel %vm349_vm0, %v7526_v11, 0.0 }
 0x275   : > { %v6103_v2 = vmul.f32 %v11749_v24, %v6065_v58 }
 0x276   : > { %6536 = vadd.xlane.f32.xlu1 %v6535_v7 }
 0x277   : > { %v6137_v3 = vsel %vm349_vm0, %v6103_v2, 0.0 }
 0x278   : > { %6138 = vadd.xlane.f32.xlu0 %v6137_v3 }
 0x27a   : > { %7422 = vadd.xlane.f32.xlu1 %v7421_v39 }
 0x27b   : > { %9748 = vmatmul.mubr.msk.bf16.gmra.mrb[28].mxu0 %vm349_vm0, %v2869_v21 }
 0x27c   : > { %6334 = vadd.xlane.f32.xlu0 %v6333_v42 }
 0x27e   : > { %7621 = vadd.xlane.f32.xlu1 %v7620_v8  ;;  %v8739_v8 = vunpack.c.h.bf16 %v8820_v61 }
 0x280   : > { %6533 = vadd.xlane.f32.xlu0 %v6532_v1  ;;  %v8738_v1 = vunpack.c.l.bf16 %v8820_v61 }
 0x284   : > { %7419 = vadd.xlane.f32.xlu0 %v7418_v53  ;;  %v8734_v53 = vunpack.c.l.bf16 %v8819_v20 }
 0x288   : > { %7618 = vadd.xlane.f32.xlu0 %v7617_v26 }
 0x30a   : > { %v9415_v52 = vpop.f32.mrb[0].mxu1 }
 0x30b   : > { %v2961_v56 = vpop.f32.mrb[1].mxu1 }
 0x30c   : > { %v9416_v57 = vpop.f32.mrb[2].mxu1 }
 0x30d   : > { %v2964_v13 = vpop.f32.mrb[3].mxu1 }
 0x312   : > { %v9419_v37 = vpop.f32.mrb[4].mxu1 }
 0x313   : > { %v2977_v14 = vpop.f32.mrb[5].mxu1 }
 0x314   : > { %v9420_v40 = vpop.f32.mrb[6].mxu1 }
 0x315   : > { %v2980_v21 = vpop.f32.mrb[7].mxu1 }
 0x316   : > { %v9721_v48 = vpop.f32.mrb[0].mxu0 }
 0x317   : > { %v9751_v32 = vadd.f32 %v9721_v48, %v9415_v52  ;;  %v5674_v17 = vpop.f32.mrb[1].mxu0  ;;  %v8552_v52 = vld [vmem:[%s13227_s6 + $0x4] sm:$0x1] }
 0x318   : > { %v9752_v62 = vadd.f32 %v5674_v17, %v2961_v56  ;;  %v9722_v28 = vpop.f32.mrb[2].mxu0 }
 0x319   : > { %v5874_v18 = vadd.f32 %v9751_v32, %v11808_v33  ;;  %v9753_v63 = vadd.f32 %v9722_v28, %v9416_v57  ;;  %v5677_v0 = vpop.f32.mrb[3].mxu0  ;;  %v11836_v32 = vld [vmem:[%s11803_s24 + $0x20] sm:$0xff]  }
 0x31a   : > { %v5872_v35 = vadd.f32 %v9752_v62, %v11808_v33  ;;  %v9754_v25 = vadd.f32 %v5677_v0, %v2964_v13  ;;  %v9423_v36 = vpop.f32.mrb[8].mxu1  ;;  %v8735_v13 = vunpack.c.h.bf16 %v8819_v20 }
 0x31b   : > { %v5906_v5 = vmax.f32 %v5874_v18, 0.0  ;;  %v5875_v10 = vadd.f32 %v9753_v63, %v11808_v33  ;;  %v2993_v60 = vpop.f32.mrb[9].mxu1  ;;  %v11843_v18 = vrot.slane %v6694_v15, %v11746_v6 }
 0x31c   : > { %v5904_v46 = vmax.f32 %v5872_v35, 0.0  ;;  %v5873_v58 = vadd.f32 %v9754_v25, %v11808_v33  ;;  %v9424_v12 = vpop.f32.mrb[10].mxu1 }
 0x31d   : > { %v6002_v2 = vadd.f32 %v8730_v38, %v5906_v5  ;;  %v5907_v50 = vmax.f32 %v5875_v10, 0.0  ;;  %v2996_v59 = vpop.f32.mrb[11].mxu1  ;;  %v6893_v38 = vunpack.c.l.bf16 %v8552_v52 }
 0x31e   : > { %v6000_v3 = vadd.f32 %v8726_v31, %v5904_v46  ;;  %v5905_v22 = vmax.f32 %v5873_v58, 0.0  ;;  %v9725_v54 = vpop.f32.mrb[4].mxu0  ;;  %v8742_v46 = vunpack.c.l.bf16 %v11836_v32 }
 0x31f   : > { %6034 = vst.msk [vmem:[#allocation2 + $0x31] sm:$0xff] %vm349_vm0, %v6002_v2  ;;  %v6003_v19 = vadd.f32 %v8731_v45, %v5907_v50  ;;  %v9755_v49 = vadd.f32 %v9725_v54, %v9419_v37  ;;  %v5690_v42 = vpop.f32.mrb[5].mxu0  ;;  %v11833_v37 = vld [vmem:[%s11803_s24 + $0x28] sm:$0xff]  }
 0x320   : > { %6032 = vst.msk [vmem:[#allocation2 + $0x19] sm:$0xff] %vm349_vm0, %v6000_v3  ;;  %v6001_v30 = vadd.f32 %v8727_v34, %v5905_v22  ;;  %v9756_v55 = vadd.f32 %v5690_v42, %v2977_v14  ;;  %v9726_v4 = vpop.f32.mrb[6].mxu0  ;;  %v8746_v0 = vunpack.c.l.bf16 %v11833_v37 }
 0x321   : > { %6035 = vst.msk [vmem:[#allocation2 + $0x39] sm:$0xff] %vm349_vm0, %v6003_v19  ;;  %v5878_v7 = vadd.f32 %v9755_v49, %v11808_v33  ;;  %v9757_v47 = vadd.f32 %v9726_v4, %v9420_v40  ;;  %v5693_v44 = vpop.f32.mrb[7].mxu0 }
 0x322   : > { %6033 = vst.msk [vmem:[#allocation2 + $0x21] sm:$0xff] %vm349_vm0, %v6001_v30  ;;  %v5876_v23 = vadd.f32 %v9756_v55, %v11808_v33  ;;  %v9758_v39 = vadd.f32 %v5693_v44, %v2980_v21  ;;  %v9427_v16 = vpop.f32.mrb[12].mxu1  ;;  %v8747_v55 = vunpack.c.h.bf16 %v11833_v37 }
 0x323   : > { %v5910_v11 = vmax.f32 %v5878_v7, 0.0  ;;  %v5879_v26 = vadd.f32 %v9757_v47, %v11808_v33  ;;  %v3009_v35 = vpop.f32.mrb[13].mxu1  ;;  %v11874_v47 = vrot.slane %v6893_v38, %v11746_v6 }
 0x324   : > { %v5908_v56 = vmax.f32 %v5876_v23, 0.0  ;;  %v5877_v57 = vadd.f32 %v9758_v39, %v11808_v33  ;;  %v9428_v58 = vpop.f32.mrb[14].mxu1  ;;  %v8824_v23 = vld [vmem:[%s11803_s24 + $0x38] sm:$0xff]   ;;  %v11879_v39 = vld [vmem:[%s11803_s24 + $0x30] sm:$0xff]  }
 0x325   : > { %v6006_v48 = vadd.f32 %v8738_v1, %v5910_v11  ;;  %v5911_v9 = vmax.f32 %v5879_v26, 0.0  ;;  %v8743_v1 = vunpack.c.h.bf16 %v11836_v32  ;;  %v8750_v38 = vunpack.c.l.bf16 %v11879_v39 }
 0x326   : > { %v6004_v14 = vadd.f32 %v8734_v53, %v5908_v56  ;;  %v5909_v17 = vmax.f32 %v5877_v57, 0.0  ;;  %v9729_v62 = vpop.f32.mrb[8].mxu0  ;;  %v11838_v40 = vld [vmem:[#allocation2 + $0x30] sm:$0xff] }
 0x327   : > { %v11840_v28 = vld [vmem:[#allocation2 + $0x31] sm:$0xff]  ;;  %6038 = vst.msk [vmem:[#allocation2 + $0x61] sm:$0xff] %vm349_vm0, %v6006_v48  ;;  %v6007_v63 = vadd.f32 %v8739_v8, %v5911_v9  ;;  %v9759_v21 = vadd.f32 %v9729_v62, %v9423_v36  ;;  %v5706_v31 = vpop.f32.mrb[9].mxu0  ;;  %v6106_v25 = vmul.f32 %v11749_v24, %v11838_v40  ;;  %v3012_v36 = vpop.f32.mrb[15].mxu1  ;;  %v6701_v15 = vmul.f32 %v11843_v18, %v11838_v40 }
 0x328   : > { %v11849_v5 = vld [vmem:[#allocation2 + $0x18] sm:$0xff]  ;;  %6036 = vst.msk [vmem:[#allocation2 + $0x49] sm:$0xff] %vm349_vm0, %v6004_v14  ;;  %v6005_v10 = vadd.f32 %v8735_v13, %v5909_v17  ;;  %v9760_v45 = vadd.f32 %v5706_v31, %v2993_v60  ;;  %v9730_v34 = vpop.f32.mrb[10].mxu0  ;;  %v6305_v19 = vmul.f32 %v11759_v43, %v11840_v28  ;;  %v8754_v17 = vunpack.c.l.bf16 %v8824_v23 }
 0x329   : > { %v6104_v2 = vmul.f32 %v11749_v24, %v11849_v5  ;;  %v11855_v50 = vld [vmem:[#allocation2 + $0x38] sm:$0xff]  ;;  %6039 = vst.msk [vmem:[#allocation2 + $0x69] sm:$0xff] %vm349_vm0, %v6007_v63  ;;  %v5882_v3 = vadd.f32 %v9759_v21, %v11808_v33  ;;  %v9761_v22 = vadd.f32 %v9730_v34, %v9424_v12  ;;  %v5709_v54 = vpop.f32.mrb[11].mxu0  ;;  %v6146_v61 = vsel %vm349_vm0, %v6106_v25, 0.0 }
 0x32a   : > { %6037 = vst.msk [vmem:[#allocation2 + $0x51] sm:$0xff] %vm349_vm0, %v6005_v10  ;;  %v5880_v49 = vadd.f32 %v9760_v45, %v11808_v33  ;;  %v9762_v60 = vadd.f32 %v5709_v54, %v2996_v59  ;;  %6147 = vadd.xlane.f32.xlu0 %v6146_v61  ;;  %v6107_v20 = vmul.f32 %v11749_v24, %v11855_v50  ;;  %v11869_v12 = vld [vmem:[#allocation2 + $0x39] sm:$0xff]  ;;  %v6345_v53 = vsel %vm349_vm0, %v6305_v19, 0.0  ;;  %v9431_v52 = vpop.f32.mrb[16].mxu1 }
 0x32b   : > { %v6140_v42 = vsel %vm349_vm0, %v6104_v2, 0.0  ;;  %v5914_v29 = vmax.f32 %v5882_v3, 0.0  ;;  %v5883_v30 = vadd.f32 %v9761_v22, %v11808_v33  ;;  %v6306_v57 = vmul.f32 %v11759_v43, %v11869_v12  ;;  %v3025_v9 = vpop.f32.mrb[17].mxu1  ;;  %v11887_v32 = vld [vmem:[#allocation2 + $0x3a] sm:$0xff] }
 0x32c   : > { %6141 = vadd.xlane.f32.xlu1 %v6140_v42  ;;  %v5912_v4 = vmax.f32 %v5880_v49, 0.0  ;;  %v5881_v7 = vadd.f32 %v9762_v60, %v11808_v33  ;;  %v6149_v56 = vsel %vm349_vm0, %v6107_v20, 0.0  ;;  %v9432_v63 = vpop.f32.mrb[18].mxu1  ;;  %v6737_v45 = vsel %vm349_vm0, %v6701_v15, 0.0  ;;  %v8826_v20 = vld [vmem:[%s11803_s24 + $0x48] sm:$0xff]  }
 0x32d   : > { %v6010_v59 = vadd.f32 %v8746_v0, %v5914_v29  ;;  %v5915_v44 = vmax.f32 %v5883_v30, 0.0  ;;  %v8553_v0 = vld [vmem:[%s13227_s6 + $0x5] sm:$0x1]  ;;  %v3028_v25 = vpop.f32.mrb[19].mxu1  ;;  %v6348_v2 = vsel %vm349_vm0, %v6306_v57, 0.0  ;;  %v8755_v54 = vunpack.c.h.bf16 %v8824_v23 }
 0x32e   : > { %v6008_v11 = vadd.f32 %v8742_v46, %v5912_v4  ;;  %v5913_v26 = vmax.f32 %v5881_v7, 0.0  ;;  %v9733_v8 = vpop.f32.mrb[12].mxu0  ;;  %6346 = vadd.xlane.f32.xlu0 %v6345_v53  ;;  %v7092_v61 = vunpack.c.l.bf16 %v8553_v0  ;;  %v8751_v60 = vunpack.c.h.bf16 %v11879_v39  ;;  %v11910_v30 = vld [vmem:[%s11803_s24 + $0x40] sm:$0xff]  }
 0x32f   : > { %6042 = vst.msk [vmem:[#allocation2 + $0x91] sm:$0xff] %vm349_vm0, %v6010_v59  ;;  %v6011_v13 = vadd.f32 %v8747_v55, %v5915_v44  ;;  %v9763_v37 = vadd.f32 %v9733_v8, %v9427_v16  ;;  %v5722_v48 = vpop.f32.mrb[13].mxu0  ;;  %v7296_v55 = vmul.f32 %v11779_v41, %v11838_v40  ;;  %v6702_v23 = vmul.f32 %v11843_v18, %v11855_v50 }
 0x330   : > { %6150 = vadd.xlane.f32.xlu1 %v6149_v56  ;;  %6040 = vst.msk [vmem:[#allocation2 + $0x79] sm:$0xff] %vm349_vm0, %v6008_v11  ;;  %v6009_v14 = vadd.f32 %v8743_v1, %v5913_v26  ;;  %v9764_v62 = vadd.f32 %v5722_v48, %v3009_v35  ;;  %v9734_v21 = vpop.f32.mrb[14].mxu0  ;;  %v6900_v35 = vmul.f32 %v11874_v47, %v11840_v28  ;;  %v8762_v8 = vunpack.c.l.bf16 %v8826_v20 }
 0x331   : > { %6043 = vst.msk [vmem:[#allocation2 + $0x99] sm:$0xff] %vm349_vm0, %v6011_v13  ;;  %v5886_v16 = vadd.f32 %v9763_v37, %v11808_v33  ;;  %v9765_v31 = vadd.f32 %v9734_v21, %v9428_v58  ;;  %v5725_v10 = vpop.f32.mrb[15].mxu0  ;;  %v6505_v58 = vmul.f32 %v11769_v51, %v11887_v32  ;;  %v11919_v26 = vrot.slane %v7092_v61, %v11746_v6 }
 0x332   : > { %6041 = vst.msk [vmem:[#allocation2 + $0x81] sm:$0xff] %vm349_vm0, %v6009_v14  ;;  %v5884_v46 = vadd.f32 %v9764_v62, %v11808_v33  ;;  %v9766_v34 = vadd.f32 %v5725_v10, %v3012_v36  ;;  %6738 = vadd.xlane.f32.xlu0 %v6737_v45  ;;  %v6936_v29 = vsel %vm349_vm0, %v6900_v35, 0.0  ;;  %v9435_v59 = vpop.f32.mrb[20].mxu1  ;;  %v8758_v57 = vunpack.c.l.bf16 %v11910_v30 }
 0x333   : > { %v5918_v3 = vmax.f32 %v5886_v16, 0.0  ;;  %v5887_v22 = vadd.f32 %v9765_v31, %v11808_v33  ;;  %v6547_v44 = vsel %vm349_vm0, %v6505_v58, 0.0  ;;  %v3041_v11 = vpop.f32.mrb[21].mxu1  ;;  %v7328_v62 = vsel %vm349_vm0, %v7296_v55, 0.0  ;;  %v6264_v16 = vld [vmem:[#allocation2 + $0x19] sm:$0xff] }
 0x334   : > { %6349 = vadd.xlane.f32.xlu1 %v6348_v2  ;;  %v5916_v19 = vmax.f32 %v5884_v46, 0.0  ;;  %v5885_v49 = vadd.f32 %v9766_v34, %v11808_v33  ;;  %v9436_v13 = vpop.f32.mrb[22].mxu1  ;;  %v6740_v0 = vsel %vm349_vm0, %v6702_v23, 0.0  ;;  %v8763_v45 = vunpack.c.h.bf16 %v8826_v20  ;;  %v8828_v58 = vld [vmem:[%s11803_s24 + $0x58] sm:$0xff]  }
 0x335   : > { %v6014_v42 = vadd.f32 %v8754_v17, %v5918_v3  ;;  %v5919_v36 = vmax.f32 %v5887_v22, 0.0  ;;  %v3044_v14 = vpop.f32.mrb[23].mxu1  ;;  %v8759_v46 = vunpack.c.h.bf16 %v11910_v30  ;;  %v11942_v22 = vld [vmem:[%s11803_s24 + $0x50] sm:$0xff]  }
 0x336   : > { %v6012_v4 = vadd.f32 %v8750_v38, %v5916_v19  ;;  %v5917_v7 = vmax.f32 %v5885_v49, 0.0  ;;  %v9737_v1 = vpop.f32.mrb[16].mxu0  ;;  %6937 = vadd.xlane.f32.xlu0 %v6936_v29  ;;  %v7495_v38 = vmul.f32 %v11790_v27, %v11840_v28  ;;  %v8766_v23 = vunpack.c.l.bf16 %v11942_v22 }
 0x337   : > { %6046 = vst.msk [vmem:[#allocation2 + $0xc1] sm:$0xff] %vm349_vm0, %v6014_v42  ;;  %v6015_v53 = vadd.f32 %v8755_v54, %v5919_v36  ;;  %v9767_v39 = vadd.f32 %v9737_v1, %v9431_v52  ;;  %v5738_v15 = vpop.f32.mrb[17].mxu0  ;;  %v6303_v54 = vmul.f32 %v11759_v43, %v6264_v16  ;;  %v7100_v36 = vmul.f32 %v11919_v26, %v11887_v32 }
 0x338   : > { %6548 = vadd.xlane.f32.xlu1 %v6547_v44  ;;  %6044 = vst.msk [vmem:[#allocation2 + $0xa9] sm:$0xff] %vm349_vm0, %v6012_v4  ;;  %v6013_v40 = vadd.f32 %v8751_v60, %v5917_v7  ;;  %v9768_v56 = vadd.f32 %v5738_v15, %v3025_v9  ;;  %v9738_v37 = vpop.f32.mrb[18].mxu0  ;;  %v7527_v3 = vsel %vm349_vm0, %v7495_v38, 0.0  ;;  %v8770_v1 = vunpack.c.l.bf16 %v8828_v58 }
 0x339   : > { %6047 = vst.msk [vmem:[#allocation2 + $0xc9] sm:$0xff] %vm349_vm0, %v6015_v53  ;;  %v5890_v48 = vadd.f32 %v9767_v39, %v11808_v33  ;;  %v9769_v52 = vadd.f32 %v9738_v37, %v9432_v63  ;;  %v5741_v17 = vpop.f32.mrb[19].mxu0  ;;  %v6901_v63 = vmul.f32 %v11874_v47, %v11869_v12 }
 0x33a   : > { %6045 = vst.msk [vmem:[#allocation2 + $0xb1] sm:$0xff] %vm349_vm0, %v6013_v40  ;;  %v5888_v9 = vadd.f32 %v9768_v56, %v11808_v33  ;;  %v9770_v21 = vadd.f32 %v5741_v17, %v3028_v25  ;;  %7329 = vadd.xlane.f32.xlu0 %v7328_v62  ;;  %v8556_v25 = vld [vmem:[%s13227_s6 + $0x8] sm:$0x1]  ;;  %v9439_v60 = vpop.f32.mrb[24].mxu1  ;;  %v6339_v56 = vsel %vm349_vm0, %v6303_v54, 0.0  ;;  %v8771_v62 = vunpack.c.h.bf16 %v8828_v58 }
 0x33b   : > { %v5922_v31 = vmax.f32 %v5890_v48, 0.0  ;;  %v5891_v10 = vadd.f32 %v9769_v52, %v11808_v33  ;;  %v6939_v42 = vsel %vm349_vm0, %v6901_v63, 0.0  ;;  %v3057_v55 = vpop.f32.mrb[25].mxu1  ;;  %v7689_v4 = vunpack.c.l.bf16 %v8556_v25  ;;  %v8830_v63 = vld [vmem:[%s11803_s24 + $0x68] sm:$0xff]  }
 0x33c   : > { %6741 = vadd.xlane.f32.xlu1 %v6740_v0  ;;  %v5920_v28 = vmax.f32 %v5888_v9, 0.0  ;;  %v5889_v35 = vadd.f32 %v9770_v21, %v11808_v33  ;;  %v9440_v53 = vpop.f32.mrb[26].mxu1  ;;  %v7138_v48 = vsel %vm349_vm0, %v7100_v36, 0.0  ;;  %v8767_v9 = vunpack.c.h.bf16 %v11942_v22 }
 0x33d   : > { %v6018_v34 = vadd.f32 %v8762_v8, %v5922_v31  ;;  %v5923_v2 = vmax.f32 %v5891_v10, 0.0  ;;  %v3060_v8 = vpop.f32.mrb[27].mxu1  ;;  %v11965_v21 = vrot.slane %v7689_v4, %v11746_v6  ;;  %v11970_v10 = vld [vmem:[%s11803_s24 + $0x60] sm:$0xff]   ;;  %v7496_v6 = vmul.f32 %v11790_v27, %v11869_v12 }
 0x33e   : > { %v6016_v61 = vadd.f32 %v8758_v57, %v5920_v28  ;;  %v5921_v19 = vmax.f32 %v5889_v35, 0.0  ;;  %v9741_v49 = vpop.f32.mrb[20].mxu0  ;;  %7528 = vadd.xlane.f32.xlu0 %v7527_v3  ;;  %v6699_v57 = vmul.f32 %v11843_v18, %v11849_v5  ;;  %v8778_v54 = vunpack.c.l.bf16 %v8830_v63 }
 0x33f   : > { %6050 = vst.msk [vmem:[#allocation2 + $0xf1] sm:$0xff] %vm349_vm0, %v6018_v34  ;;  %v6019_v20 = vadd.f32 %v8763_v45, %v5923_v2  ;;  %v9771_v29 = vadd.f32 %v9741_v49, %v9435_v59  ;;  %v5754_v30 = vpop.f32.mrb[21].mxu0  ;;  %v11976_v34 = vld [vmem:[#allocation2 + $0x32] sm:$0xff] }
 0x340   : > { %6940 = vadd.xlane.f32.xlu1 %v6939_v42  ;;  %6048 = vst.msk [vmem:[#allocation2 + $0xd9] sm:$0xff] %vm349_vm0, %v6016_v61  ;;  %v6017_v7 = vadd.f32 %v8759_v46, %v5921_v19  ;;  %v9772_v44 = vadd.f32 %v5754_v30, %v3041_v11  ;;  %v9742_v39 = vpop.f32.mrb[22].mxu0  ;;  %v6731_v31 = vsel %vm349_vm0, %v6699_v57, 0.0  ;;  %v8774_v19 = vunpack.c.l.bf16 %v11970_v10  ;;  %v8832_v57 = vld [vmem:[%s11803_s24 + $0x78] sm:$0xff]  }
 0x341   : > { %6051 = vst.msk [vmem:[#allocation2 + $0xf9] sm:$0xff] %vm349_vm0, %v6019_v20  ;;  %v5894_v15 = vadd.f32 %v9771_v29, %v11808_v33  ;;  %v9773_v40 = vadd.f32 %v9742_v39, %v9436_v13  ;;  %v5757_v59 = vpop.f32.mrb[23].mxu0  ;;  %v7297_v13 = vmul.f32 %v11779_v41, %v11855_v50  ;;  %v6898_v50 = vmul.f32 %v11874_v47, %v6264_v16  ;;  %v11992_v39 = vld [vmem:[#allocation2 + $0x20] sm:$0xff] }
 0x342   : > { %6049 = vst.msk [vmem:[#allocation2 + $0xe1] sm:$0xff] %vm349_vm0, %v6017_v7  ;;  %v5892_v11 = vadd.f32 %v9772_v44, %v11808_v33  ;;  %v9774_v37 = vadd.f32 %v5757_v59, %v3044_v14  ;;  %6340 = vadd.xlane.f32.xlu0 %v6339_v56  ;;  %v9443_v46 = vpop.f32.mrb[28].mxu1  ;;  %v6504_v30 = vmul.f32 %v11769_v51, %v11976_v34  ;;  %v7530_v7 = vsel %vm349_vm0, %v7496_v6, 0.0 }
 0x343   : > { %v5926_v52 = vmax.f32 %v5894_v15, 0.0  ;;  %v5895_v17 = vadd.f32 %v9773_v40, %v11808_v33  ;;  %v7331_v25 = vsel %vm349_vm0, %v7297_v13, 0.0  ;;  %v3073_v22 = vpop.f32.mrb[29].mxu1  ;;  %v8775_v59 = vunpack.c.h.bf16 %v11970_v10 }
 0x344   : > { %7139 = vadd.xlane.f32.xlu1 %v7138_v48  ;;  %v5924_v38 = vmax.f32 %v5892_v11, 0.0  ;;  %v5893_v5 = vadd.f32 %v9774_v37, %v11808_v33  ;;  %v9444_v49 = vpop.f32.mrb[30].mxu1  ;;  %v6544_v11 = vsel %vm349_vm0, %v6504_v30, 0.0  ;;  %v8831_v37 = vld [vmem:[%s11803_s24 + $0x70] sm:$0xff]  }
 0x345   : > { %v6022_v14 = vadd.f32 %v8770_v1, %v5926_v52  ;;  %v5927_v0 = vmax.f32 %v5895_v17, 0.0  ;;  %v3076_v20 = vpop.f32.mrb[31].mxu1  ;;  %v7695_v1 = vmul.f32 %v11965_v21, %v11887_v32  ;;  %v7099_v32 = vmul.f32 %v11919_v26, %v11976_v34 }
 0x346   : > { %v6020_v45 = vadd.f32 %v8766_v23, %v5924_v38  ;;  %v5925_v28 = vmax.f32 %v5893_v5, 0.0  ;;  %v9745_v35 = vpop.f32.mrb[24].mxu0  ;;  %6732 = vadd.xlane.f32.xlu0 %v6731_v31  ;;  %v8782_v10 = vunpack.c.l.bf16 %v8831_v37 }
 0x347   : > { %6054 = vst.msk [vmem:[#allocation2 + $0x121] sm:$0xff] %vm349_vm0, %v6022_v14  ;;  %v6023_v2 = vadd.f32 %v8771_v62, %v5927_v0  ;;  %v9775_v58 = vadd.f32 %v9745_v35, %v9439_v60  ;;  %v5770_v3 = vpop.f32.mrb[25].mxu0  ;;  %v6930_v60 = vsel %vm349_vm0, %v6898_v50, 0.0  ;;  %v7729_v17 = vsel %vm349_vm0, %v7695_v1, 0.0  ;;  %v6265_v14 = vld [vmem:[#allocation2 + $0x21] sm:$0xff] }
 0x348   : > { %7332 = vadd.xlane.f32.xlu1 %v7331_v25  ;;  %6052 = vst.msk [vmem:[#allocation2 + $0x109] sm:$0xff] %vm349_vm0, %v6020_v45  ;;  %v6021_v16 = vadd.f32 %v8767_v9, %v5925_v28  ;;  %v9776_v61 = vadd.f32 %v5770_v3, %v3057_v55  ;;  %v9746_v42 = vpop.f32.mrb[26].mxu0  ;;  %v6105_v62 = vmul.f32 %v11749_v24, %v11992_v39  ;;  %v7135_v25 = vsel %vm349_vm0, %v7099_v32, 0.0 }
 0x349   : > { %6055 = vst.msk [vmem:[#allocation2 + $0x129] sm:$0xff] %vm349_vm0, %v6023_v2  ;;  %v5898_v12 = vadd.f32 %v9775_v58, %v11808_v33  ;;  %v9777_v36 = vadd.f32 %v9746_v42, %v9440_v53  ;;  %v5773_v29 = vpop.f32.mrb[27].mxu0  ;;  %v8779_v53 = vunpack.c.h.bf16 %v8830_v63  ;;  %v8786_v63 = vunpack.c.l.bf16 %v8832_v57 }
 0x34a   : > { %6053 = vst.msk [vmem:[#allocation2 + $0x111] sm:$0xff] %vm349_vm0, %v6021_v16  ;;  %v5896_v55 = vadd.f32 %v9776_v61, %v11808_v33  ;;  %v9778_v4 = vadd.f32 %v5773_v29, %v3060_v8  ;;  %6931 = vadd.xlane.f32.xlu0 %v6930_v60  ;;  %v6143_v58 = vsel %vm349_vm0, %v6105_v62, 0.0  ;;  %v6304_v3 = vmul.f32 %v11759_v43, %v6265_v14 }
 0x34b   : > { %v5930_v44 = vmax.f32 %v5898_v12, 0.0  ;;  %v5899_v23 = vadd.f32 %v9777_v36, %v11808_v33  ;;  %v8787_v61 = vunpack.c.h.bf16 %v8832_v57  ;;  %v8783_v42 = vunpack.c.h.bf16 %v8831_v37  ;;  %v6270_v57 = vld [vmem:[#allocation2 + $0x61] sm:$0xff] }
 0x34c   : > { %7531 = vadd.xlane.f32.xlu1 %v7530_v7  ;;  %v5928_v15 = vmax.f32 %v5896_v55, 0.0  ;;  %v5897_v40 = vadd.f32 %v9778_v4, %v11808_v33  ;;  %v6342_v55 = vsel %vm349_vm0, %v6304_v3, 0.0  ;;  %v6309_v37 = vmul.f32 %v11759_v43, %v6270_v57 }
 0x34d   : > { %v6026_v8 = vadd.f32 %v8778_v54, %v5930_v44  ;;  %v5931_v56 = vmax.f32 %v5899_v23, 0.0 }
 0x34e   : > { %v6024_v48 = vadd.f32 %v8774_v19, %v5928_v15  ;;  %v5929_v13 = vmax.f32 %v5897_v40, 0.0  ;;  %v9749_v52 = vpop.f32.mrb[28].mxu0  ;;  %6545 = vadd.xlane.f32.xlu0 %v6544_v11  ;;  %v6464_v19 = vld [vmem:[#allocation2 + $0x22] sm:$0xff] }
 0x34f   : > { %6058 = vst.msk [vmem:[#allocation2 + $0x151] sm:$0xff] %vm349_vm0, %v6026_v8  ;;  %v6027_v38 = vadd.f32 %v8779_v53, %v5931_v56  ;;  %v9779_v5 = vadd.f32 %v9749_v52, %v9443_v46  ;;  %v5786_v9 = vpop.f32.mrb[29].mxu0  ;;  %v7694_v46 = vmul.f32 %v11965_v21, %v11976_v34  ;;  %v6503_v4 = vmul.f32 %v11769_v51, %v6464_v19  ;;  %v6072_v15 = vld [vmem:[#allocation2 + $0x60] sm:$0xff] }
 0x350   : > { %7730 = vadd.xlane.f32.xlu1 %v7729_v17  ;;  %6056 = vst.msk [vmem:[#allocation2 + $0x139] sm:$0xff] %vm349_vm0, %v6024_v48  ;;  %v6025_v0 = vadd.f32 %v8775_v59, %v5929_v13  ;;  %v9780_v31 = vadd.f32 %v5786_v9, %v3073_v22  ;;  %v9750_v50 = vpop.f32.mrb[30].mxu0  ;;  %v6463_v22 = vld [vmem:[#allocation2 + $0x1a] sm:$0xff]  ;;  %v6700_v53 = vmul.f32 %v11843_v18, %v11992_v39  ;;  %v6073_v48 = vld [vmem:[#allocation2 + $0x68] sm:$0xff]  ;;  %v6357_v13 = vsel %vm349_vm0, %v6309_v37, 0.0  ;;  %v6468_v37 = vld [vmem:[#allocation2 + $0x52] sm:$0xff] }
 0x351   : > { %6059 = vst.msk [vmem:[#allocation2 + $0x159] sm:$0xff] %vm349_vm0, %v6027_v38  ;;  %v5902_v45 = vadd.f32 %v9779_v5, %v11808_v33  ;;  %v9781_v28 = vadd.f32 %v9750_v50, %v9444_v49  ;;  %v5789_v35 = vpop.f32.mrb[31].mxu0  ;;  %v6502_v29 = vmul.f32 %v11769_v51, %v6463_v22  ;;  %v7097_v44 = vmul.f32 %v11919_v26, %v6463_v22  ;;  %v6271_v38 = vld [vmem:[#allocation2 + $0x69] sm:$0xff] }
 0x352   : > { %6057 = vst.msk [vmem:[#allocation2 + $0x141] sm:$0xff] %vm349_vm0, %v6025_v0  ;;  %v5900_v6 = vadd.f32 %v9780_v31, %v11808_v33  ;;  %v9782_v2 = vadd.f32 %v5789_v35, %v3076_v20  ;;  %7136 = vadd.xlane.f32.xlu0 %v7135_v25  ;;  %v7726_v20 = vsel %vm349_vm0, %v7694_v46, 0.0  ;;  %v6541_v23 = vsel %vm349_vm0, %v6503_v4, 0.0 }
 0x353   : > { %v5934_v16 = vmax.f32 %v5902_v45, 0.0  ;;  %v5903_v54 = vadd.f32 %v9781_v28, %v11808_v33  ;;  %v6538_v1 = vsel %vm349_vm0, %v6502_v29, 0.0  ;;  %v7129_v40 = vsel %vm349_vm0, %v7097_v44, 0.0 }
 0x354   : > { %6144 = vadd.xlane.f32.xlu1 %v6143_v58  ;;  %v5932_v49 = vmax.f32 %v5900_v6, 0.0  ;;  %v5901_v34 = vadd.f32 %v9782_v2, %v11808_v33  ;;  %v6110_v59 = vmul.f32 %v11749_v24, %v6072_v15  ;;  %v6734_v8 = vsel %vm349_vm0, %v6700_v53, 0.0  ;;  %v6070_v6 = vld [vmem:[#allocation2 + $0x48] sm:$0xff] }
 0x355   : > { %v6030_v12 = vadd.f32 %v8786_v63, %v5934_v16  ;;  %v5935_v36 = vmax.f32 %v5903_v54, 0.0  ;;  %v6899_v56 = vmul.f32 %v11874_v47, %v6265_v14  ;;  %v7098_v32 = vmul.f32 %v11919_v26, %v6464_v19  ;;  %v6470_v63 = vld [vmem:[#allocation2 + $0x6a] sm:$0xff] }
 0x356   : > { %v6028_v60 = vadd.f32 %v8782_v10, %v5932_v49  ;;  %v5933_v30 = vmax.f32 %v5901_v34, 0.0  ;;  %7727 = vadd.xlane.f32.xlu0 %v7726_v20  ;;  %v6158_v11 = vsel %vm349_vm0, %v6110_v59, 0.0  ;;  %v6705_v52 = vmul.f32 %v11843_v18, %v6072_v15  ;;  %v6268_v16 = vld [vmem:[#allocation2 + $0x49] sm:$0xff]  ;;  %v6269_v59 = vld [vmem:[#allocation2 + $0x51] sm:$0xff] }
 0x357   : > { %6062 = vst.msk [vmem:[#allocation2 + $0x181] sm:$0xff] %vm349_vm0, %v6030_v12  ;;  %v6031_v7 = vadd.f32 %v8787_v61, %v5935_v36  ;;  %v6933_v39 = vsel %vm349_vm0, %v6899_v56, 0.0  ;;  %v7132_v17 = vsel %vm349_vm0, %v7098_v32, 0.0  ;;  %v6111_v62 = vmul.f32 %v11749_v24, %v6073_v48 }
 0x358   : > { %6343 = vadd.xlane.f32.xlu1 %v6342_v55  ;;  %6060 = vst.msk [vmem:[#allocation2 + $0x169] sm:$0xff] %vm349_vm0, %v6028_v60  ;;  %v6029_v33 = vadd.f32 %v8783_v42, %v5933_v30  ;;  %v6749_v5 = vsel %vm349_vm0, %v6705_v52, 0.0  ;;  %v6904_v9 = vmul.f32 %v11874_v47, %v6270_v57  ;;  %v6310_v0 = vmul.f32 %v11759_v43, %v6271_v38  ;;  %v12086_v52 = vpop.xlane.xlu0 %6135 }
 0x359   : > { %6063 = vst.msk [vmem:[#allocation2 + $0x189] sm:$0xff] %vm349_vm0, %v6031_v7  ;;  %v6161_v14 = vsel %vm349_vm0, %v6111_v62, 0.0  ;;  %v7300_v10 = vmul.f32 %v11779_v41, %v6072_v15  ;;  %v6509_v45 = vmul.f32 %v11769_v51, %v6470_v63  ;;  %v7499_v35 = vmul.f32 %v11790_v27, %v6270_v57 }
 0x35a   : > { %6061 = vst.msk [vmem:[#allocation2 + $0x171] sm:$0xff] %vm349_vm0, %v6029_v33  ;;  %6539 = vadd.xlane.f32.xlu0 %v6538_v1  ;;  %v6948_v31 = vsel %vm349_vm0, %v6904_v9, 0.0  ;;  %v6360_v50 = vsel %vm349_vm0, %v6310_v0, 0.0  ;;  %v6706_v46 = vmul.f32 %v11843_v18, %v6073_v48  ;;  %v6108_v58 = vmul.f32 %v11749_v24, %v6070_v6  ;;  %v6071_v1 = vld [vmem:[#allocation2 + $0x50] sm:$0xff] }
 0x35b   : > { %v7340_v28 = vsel %vm349_vm0, %v7300_v10, 0.0  ;;  %v6559_v25 = vsel %vm349_vm0, %v6509_v45, 0.0  ;;  %v7539_v2 = vsel %vm349_vm0, %v7499_v35, 0.0  ;;  %v6905_v22 = vmul.f32 %v11874_v47, %v6271_v38  ;;  %v6467_v9 = vld [vmem:[#allocation2 + $0x4a] sm:$0xff] }
 0x35c   : > { %6542 = vadd.xlane.f32.xlu1 %v6541_v23  ;;  %v6752_v3 = vsel %vm349_vm0, %v6706_v46, 0.0  ;;  %v6152_v54 = vsel %vm349_vm0, %v6108_v58, 0.0  ;;  %v6307_v61 = vmul.f32 %v11759_v43, %v6268_v16  ;;  %v7104_v49 = vmul.f32 %v11919_v26, %v6470_v63  ;;  %v12107_v58 = vpop.xlane.xlu1 %6337 }
 0x35d   : > { %v6951_v19 = vsel %vm349_vm0, %v6905_v22, 0.0  ;;  %v6703_v42 = vmul.f32 %v11843_v18, %v6070_v6  ;;  %v7301_v36 = vmul.f32 %v11779_v41, %v6073_v48  ;;  %v6902_v29 = vmul.f32 %v11874_v47, %v6268_v16  ;;  %v6076_v22 = vld [vmem:[#allocation2 + $0x90] sm:$0xff] }
 0x35e   : > { %7130 = vadd.xlane.f32.xlu0 %v7129_v40  ;;  %v6351_v34 = vsel %vm349_vm0, %v6307_v61, 0.0  ;;  %v7150_v12 = vsel %vm349_vm0, %v7104_v49, 0.0  ;;  %v7500_v30 = vmul.f32 %v11790_v27, %v6271_v38  ;;  %v7298_v4 = vmul.f32 %v11779_v41, %v6070_v6  ;;  %v6469_v40 = vld [vmem:[#allocation2 + $0x62] sm:$0xff] }
 0x35f   : > { %v6743_v20 = vsel %vm349_vm0, %v6703_v42, 0.0  ;;  %v7343_v60 = vsel %vm349_vm0, %v7301_v36, 0.0  ;;  %v6942_v55 = vsel %vm349_vm0, %v6902_v29, 0.0  ;;  %v7699_v33 = vmul.f32 %v11965_v21, %v6470_v63  ;;  %v12094_v63 = vpop.xlane.xlu0 %6138 }
 0x360   : > { %6735 = vadd.xlane.f32.xlu1 %v6734_v8  ;;  %v7542_v7 = vsel %vm349_vm0, %v7500_v30, 0.0  ;;  %v7334_v44 = vsel %vm349_vm0, %v7298_v4, 0.0  ;;  %v7497_v23 = vmul.f32 %v11790_v27, %v6268_v16  ;;  %v6109_v15 = vmul.f32 %v11749_v24, %v6071_v1  ;;  %v12116_v42 = vpop.xlane.xlu1 %6536  ;;  %v6077_v30 = vld [vmem:[#allocation2 + $0x98] sm:$0xff] }
 0x361   : > { %v7741_v53 = vsel %vm349_vm0, %v7699_v33, 0.0  ;;  %v6508_v56 = vmul.f32 %v11769_v51, %v6469_v40  ;;  %v7103_v32 = vmul.f32 %v11919_v26, %v6469_v40  ;;  %v7698_v62 = vmul.f32 %v11965_v21, %v6469_v40 }
 0x362   : > { %6159 = vadd.xlane.f32.xlu0 %v6158_v11  ;;  %v7533_v8 = vsel %vm349_vm0, %v7497_v23, 0.0  ;;  %v6155_v57 = vsel %vm349_vm0, %v6109_v15, 0.0  ;;  %v6308_v11 = vmul.f32 %v11759_v43, %v6269_v59  ;;  %v6506_v0 = vmul.f32 %v11769_v51, %v6467_v9 }
 0x363   : > { %v6903_v10 = vmul.f32 %v11874_v47, %v6269_v59  ;;  %v7101_v45 = vmul.f32 %v11919_v26, %v6467_v9  ;;  %v7102_v35 = vmul.f32 %v11919_v26, %v6468_v37  ;;  %v7696_v6 = vmul.f32 %v11965_v21, %v6467_v9 }
 0x364   : > { %6934 = vadd.xlane.f32.xlu1 %v6933_v39  ;;  %v6556_v39 = vsel %vm349_vm0, %v6508_v56, 0.0  ;;  %v6354_v48 = vsel %vm349_vm0, %v6308_v11, 0.0  ;;  %v6114_v61 = vmul.f32 %v11749_v24, %v6076_v22  ;;  %v7498_v49 = vmul.f32 %v11790_v27, %v6269_v59  ;;  %v6474_v56 = vld [vmem:[#allocation2 + $0x9a] sm:$0xff] }
 0x365   : > { %v7141_v46 = vsel %vm349_vm0, %v7101_v45, 0.0  ;;  %v7732_v16 = vsel %vm349_vm0, %v7696_v6, 0.0  ;;  %v7697_v29 = vmul.f32 %v11965_v21, %v6468_v37  ;;  %v7304_v11 = vmul.f32 %v11779_v41, %v6076_v22 }
 0x366   : > { %6358 = vadd.xlane.f32.xlu0 %v6357_v13  ;;  %v6507_v13 = vmul.f32 %v11769_v51, %v6468_v37 }
 0x367   : > { %v7735_v33 = vsel %vm349_vm0, %v7697_v29, 0.0 }
 0x368   : > { %7133 = vadd.xlane.f32.xlu1 %v7132_v17  ;;  %v7147_v17 = vsel %vm349_vm0, %v7103_v32, 0.0  ;;  %v6553_v38 = vsel %vm349_vm0, %v6507_v13, 0.0  ;;  %v7352_v13 = vsel %vm349_vm0, %v7304_v11, 0.0  ;;  %v7703_v11 = vmul.f32 %v11965_v21, %v6474_v56 }
 0x36a   : > { %6750 = vadd.xlane.f32.xlu0 %v6749_v5  ;;  %v6704_v5 = vmul.f32 %v11843_v18, %v6071_v1 }
 0x36c   : > { %6162 = vadd.xlane.f32.xlu1 %v6161_v14  ;;  %v7738_v14 = vsel %vm349_vm0, %v7698_v62, 0.0 }
 0x36e   : > { %6949 = vadd.xlane.f32.xlu0 %v6948_v31  ;;  %v6746_v31 = vsel %vm349_vm0, %v6704_v5, 0.0  ;;  %v6074_v5 = vld [vmem:[#allocation2 + $0x78] sm:$0xff] }
 0x370   : > { %6361 = vadd.xlane.f32.xlu1 %v6360_v50  ;;  %v6550_v50 = vsel %vm349_vm0, %v6506_v0, 0.0 }
 0x372   : > { %7341 = vadd.xlane.f32.xlu0 %v7340_v28  ;;  %v6945_v28 = vsel %vm349_vm0, %v6903_v10, 0.0  ;;  %v6112_v10 = vmul.f32 %v11749_v24, %v6074_v5 }
 0x374   : > { %6560 = vadd.xlane.f32.xlu1 %v6559_v25  ;;  %v12102_v25 = vpop.xlane.xlu0 %6334 }
 0x376   : > { %7540 = vadd.xlane.f32.xlu0 %v7539_v2  ;;  %v7144_v2 = vsel %vm349_vm0, %v7102_v35, 0.0 }
 0x378   : > { %6753 = vadd.xlane.f32.xlu1 %v6752_v3  ;;  %v7299_v3 = vmul.f32 %v11779_v41, %v6071_v1  ;;  %v6115_v1 = vmul.f32 %v11749_v24, %v6077_v30 }
 0x37a   : > { %6153 = vadd.xlane.f32.xlu0 %v6152_v54  ;;  %v12111_v54 = vpop.xlane.xlu0 %6533  ;;  %v6173_v40 = vsel %vm349_vm0, %v6115_v1, 0.0 }
 0x37c   : > { %6952 = vadd.xlane.f32.xlu1 %v6951_v19  ;;  %v7337_v19 = vsel %vm349_vm0, %v7299_v3, 0.0 }
 0x37e   : > { %6352 = vadd.xlane.f32.xlu0 %v6351_v34  ;;  %v6274_v34 = vld [vmem:[#allocation2 + $0x91] sm:$0xff] }
 0x37f   : > { %v6313_v36 = vmul.f32 %v11759_v43, %v6274_v34  ;;  %v6908_v15 = vmul.f32 %v11874_v47, %v6274_v34 }
 0x380   : > { %7151 = vadd.xlane.f32.xlu1 %v7150_v12  ;;  %v6170_v12 = vsel %vm349_vm0, %v6114_v61, 0.0 }
 0x381   : > { %v6369_v4 = vsel %vm349_vm0, %v6313_v36, 0.0 }
 0x382   : > { %6744 = vadd.xlane.f32.xlu0 %v6743_v20  ;;  %v7536_v20 = vsel %vm349_vm0, %v7498_v49, 0.0 }
 0x384   : > { %7344 = vadd.xlane.f32.xlu1 %v7343_v60  ;;  %v12122_v60 = vpop.xlane.xlu0 %7419 }
 0x386   : > { %6943 = vadd.xlane.f32.xlu0 %v6942_v55  ;;  %v12124_v55 = vpop.xlane.xlu1 %7422 }
 0x388   : > { %7543 = vadd.xlane.f32.xlu1 %v7542_v7  ;;  %v6709_v7 = vmul.f32 %v11843_v18, %v6076_v22 }
 0x38a   : > { %7335 = vadd.xlane.f32.xlu0 %v7334_v44  ;;  %v6275_v44 = vld [vmem:[#allocation2 + $0x99] sm:$0xff]  ;;  %v6761_v23 = vsel %vm349_vm0, %v6709_v7, 0.0  ;;  %v12135_v59 = vpop.xlane.xlu1 %7621 }
 0x38b   : > { %v6909_v45 = vmul.f32 %v11874_v47, %v6275_v44 }
 0x38c   : > { %7742 = vadd.xlane.f32.xlu1 %v7741_v53  ;;  %v12131_v53 = vpop.xlane.xlu0 %7618 }
 0x38d   : > { %v6963_v22 = vsel %vm349_vm0, %v6909_v45, 0.0 }
 0x38e   : > { %7534 = vadd.xlane.f32.xlu0 %v7533_v8  ;;  %v6314_v8 = vmul.f32 %v11759_v43, %v6275_v44 }
 0x390   : > { %6156 = vadd.xlane.f32.xlu1 %v6155_v57  ;;  %v6960_v57 = vsel %vm349_vm0, %v6908_v15, 0.0  ;;  %v6372_v37 = vsel %vm349_vm0, %v6314_v8, 0.0  ;;  %v7302_v8 = vmul.f32 %v11779_v41, %v6074_v5 }
 0x392   : > { %6557 = vadd.xlane.f32.xlu0 %v6556_v39  ;;  %v6513_v39 = vmul.f32 %v11769_v51, %v6474_v56 }
 0x394   : > { %6355 = vadd.xlane.f32.xlu1 %v6354_v48  ;;  %v6571_v62 = vsel %vm349_vm0, %v6513_v39, 0.0  ;;  %v12182_v39 = vld [vmem:[#allocation2 + $0x80] sm:$0xff] }
 0x396   : > { %7148 = vadd.xlane.f32.xlu0 %v7147_v17  ;;  %v7503_v17 = vmul.f32 %v11790_v27, %v6274_v34 }
 0x398   : > { %6554 = vadd.xlane.f32.xlu1 %v6553_v38  ;;  %v6710_v38 = vmul.f32 %v11843_v18, %v6077_v30 }
 0x39a   : > { %7739 = vadd.xlane.f32.xlu0 %v7738_v14 }
 0x39c   : > { %6747 = vadd.xlane.f32.xlu1 %v6746_v31  ;;  %v7551_v31 = vsel %vm349_vm0, %v7503_v17, 0.0 }
 0x39e   : > { %6551 = vadd.xlane.f32.xlu0 %v6550_v50  ;;  %v6764_v50 = vsel %vm349_vm0, %v6710_v38, 0.0  ;;  %v6113_v38 = vmul.f32 %v11749_v24, %v12182_v39 }
 0x3a0   : > { %6946 = vadd.xlane.f32.xlu1 %v6945_v28  ;;  %v6272_v28 = vld [vmem:[#allocation2 + $0x79] sm:$0xff] }
 0x3a1   : > { %v6311_v3 = vmul.f32 %v11759_v43, %v6272_v28  ;;  %v7501_v17 = vmul.f32 %v11790_v27, %v6272_v28 }
 0x3a2   : > { %7142 = vadd.xlane.f32.xlu0 %v7141_v46 }
 0x3a3   : > { %v6363_v34 = vsel %vm349_vm0, %v6311_v3, 0.0 }
 0x3a4   : > { %7145 = vadd.xlane.f32.xlu1 %v7144_v2  ;;  %v6164_v2 = vsel %vm349_vm0, %v6112_v10, 0.0  ;;  %v6167_v10 = vsel %vm349_vm0, %v6113_v38, 0.0 }
 0x3a6   : > { %7733 = vadd.xlane.f32.xlu0 %v7732_v16  ;;  %v7108_v16 = vmul.f32 %v11919_v26, %v6474_v56  ;;  %v12191_v56 = vld [vmem:[#allocation2 + $0x81] sm:$0xff] }
 0x3a8   : > { %7338 = vadd.xlane.f32.xlu1 %v7337_v19  ;;  %v7162_v36 = vsel %vm349_vm0, %v7108_v16, 0.0 }
 0x3aa   : > { %6171 = vadd.xlane.f32.xlu0 %v6170_v12  ;;  %v6707_v12 = vmul.f32 %v11843_v18, %v6074_v5  ;;  %v6473_v5 = vld [vmem:[#allocation2 + $0x92] sm:$0xff] }
 0x3ac   : > { %7537 = vadd.xlane.f32.xlu1 %v7536_v20  ;;  %v7305_v20 = vmul.f32 %v11779_v41, %v6077_v30  ;;  %v6755_v7 = vsel %vm349_vm0, %v6707_v12, 0.0 }
 0x3ae   : > { %6370 = vadd.xlane.f32.xlu0 %v6369_v4  ;;  %v7355_v1 = vsel %vm349_vm0, %v7305_v20, 0.0 }
 0x3b0   : > { %7736 = vadd.xlane.f32.xlu1 %v7735_v33  ;;  %v6906_v33 = vmul.f32 %v11874_v47, %v6272_v28  ;;  %v12200_v28 = vld [vmem:[#allocation2 + $0x82] sm:$0xff] }
 0x3b2   : > { %6762 = vadd.xlane.f32.xlu0 %v6761_v23  ;;  %v7504_v23 = vmul.f32 %v11790_v27, %v6275_v44  ;;  %v6954_v30 = vsel %vm349_vm0, %v6906_v33, 0.0  ;;  %v6471_v33 = vld [vmem:[#allocation2 + $0x7a] sm:$0xff] }
 0x3b3   : > { %v7105_v38 = vmul.f32 %v11919_v26, %v6471_v33 }
 0x3b4   : > { %6174 = vadd.xlane.f32.xlu1 %v6173_v40 }
 0x3b6   : > { %6961 = vadd.xlane.f32.xlu0 %v6960_v57  ;;  %v7554_v57 = vsel %vm349_vm0, %v7504_v23, 0.0 }
 0x3b7   : > { %v6148_v32 = vpop.xlane.xlu0 %6147 }
 0x3b8   : > { %6373 = vadd.xlane.f32.xlu1 %v6372_v37 }
 0x3b9   : > { %v6142_v48 = vpop.xlane.xlu1 %6141 }
 0x3ba   : > { %7353 = vadd.xlane.f32.xlu0 %v7352_v13  ;;  %v7346_v13 = vsel %vm349_vm0, %v7302_v8, 0.0  ;;  %v6429_v8 = vadd.f32 %v12102_v25, %v12086_v52  ;;  %v7106_v52 = vmul.f32 %v11919_v26, %v12200_v28 }
 0x3bb   : > { %v6347_v9 = vpop.xlane.xlu0 %6346 }
 0x3bc   : > { %6572 = vadd.xlane.f32.xlu1 %v6571_v62  ;;  %v12146_v14 = vadd.f32 %v6347_v9, %v6148_v32  ;;  %v7753_v62 = vsel %vm349_vm0, %v7703_v11, 0.0  ;;  %v6907_v11 = vmul.f32 %v11874_v47, %v12191_v56 }
 0x3bd   : > { %v6151_v0 = vpop.xlane.xlu1 %6150 }
 0x3be   : > { %7552 = vadd.xlane.f32.xlu0 %v7551_v31  ;;  %v6512_v31 = vmul.f32 %v11769_v51, %v6473_v5 }
 0x3bf   : > { %v12152_v35 = vpop.xlane.xlu0 %6738 }
 0x3c0   : > { %6765 = vadd.xlane.f32.xlu1 %v6764_v50  ;;  %v6312_v50 = vmul.f32 %v11759_v43, %v12191_v56 }
 0x3c1   : > { %v6350_v46 = vpop.xlane.xlu1 %6349 }
 0x3c2   : > { %v6434_v6 = vadd.f32 %v6350_v46, %v6151_v0  ;;  %6165 = vadd.xlane.f32.xlu0 %v6164_v2  ;;  %v7107_v2 = vmul.f32 %v11919_v26, %v6473_v5  ;;  %v6366_v3 = vsel %vm349_vm0, %v6312_v50, 0.0 }
 0x3c3   : > { %v12158_v61 = vpop.xlane.xlu0 %6937 }
 0x3c4   : > { %6964 = vadd.xlane.f32.xlu1 %v6963_v22  ;;  %v6511_v22 = vmul.f32 %v11769_v51, %v12200_v28  ;;  %v7159_v12 = vsel %vm349_vm0, %v7107_v2, 0.0  ;;  %v7153_v2 = vsel %vm349_vm0, %v7105_v38, 0.0 }
 0x3c5   : > { %v6549_v19 = vpop.xlane.xlu1 %6548 }
 0x3c6   : > { %v12160_v49 = vadd.f32 %v6549_v19, %v6434_v6  ;;  %6364 = vadd.xlane.f32.xlu0 %v6363_v34  ;;  %v6568_v6 = vsel %vm349_vm0, %v6512_v31, 0.0  ;;  %v6565_v20 = vsel %vm349_vm0, %v6511_v22, 0.0 }
 0x3c7   : > { %v12166_v29 = vpop.xlane.xlu0 %7329 }
 0x3c8   : > { %7163 = vadd.xlane.f32.xlu1 %v7162_v36  ;;  %v7702_v36 = vmul.f32 %v11965_v21, %v6473_v5  ;;  %v6628_v5 = vadd.f32 %v12111_v54, %v6429_v8  ;;  %v7156_v54 = vsel %vm349_vm0, %v7106_v52, 0.0 }
 0x3c9   : > { %v12168_v4 = vpop.xlane.xlu1 %6741 }
 0x3ca   : > { %6756 = vadd.xlane.f32.xlu0 %v6755_v7  ;;  %v6708_v7 = vmul.f32 %v11843_v18, %v12182_v39 }
 0x3cb   : > { %v12174_v15 = vpop.xlane.xlu0 %7528 }
 0x3cc   : > { %7356 = vadd.xlane.f32.xlu1 %v7355_v1 }
 0x3cd   : > { %v12176_v40 = vpop.xlane.xlu1 %6940 }
 0x3ce   : > { %6955 = vadd.xlane.f32.xlu0 %v6954_v30  ;;  %v7750_v30 = vsel %vm349_vm0, %v7702_v36, 0.0  ;;  %v12238_v36 = vld [vmem:[#allocation2 + $0xc0] sm:$0xff] }
 0x3cf   : > { %v6341_v37 = vpop.xlane.xlu0 %6340 }
 0x3d0   : > { %7555 = vadd.xlane.f32.xlu1 %v7554_v57  ;;  %v6431_v32 = vadd.f32 %v6341_v37, %v6142_v48  ;;  %v7545_v48 = vsel %vm349_vm0, %v7501_v17, 0.0  ;;  %v6758_v57 = vsel %vm349_vm0, %v6708_v7, 0.0 }
 0x3d1   : > { %v12184_v44 = vpop.xlane.xlu1 %7139 }
 0x3d2   : > { %7347 = vadd.xlane.f32.xlu0 %v7346_v13 }
 0x3d3   : > { %v6733_v9 = vpop.xlane.xlu0 %6732 }
 0x3d4   : > { %7754 = vadd.xlane.f32.xlu1 %v7753_v62  ;;  %v6827_v31 = vadd.f32 %v6733_v9, %v6628_v5  ;;  %v12266_v5 = vld [vmem:[#allocation2 + $0xc8] sm:$0xff] }
 0x3d5   : > { %v12193_v0 = vpop.xlane.xlu1 %7332 }
 0x3d6   : > { %7546 = vadd.xlane.f32.xlu0 %v7545_v48  ;;  %v6957_v48 = vsel %vm349_vm0, %v6907_v11, 0.0 }
 0x3d7   : > { %v6932_v45 = vpop.xlane.xlu0 %6931 }
 0x3d8   : > { %6168 = vadd.xlane.f32.xlu1 %v6167_v10  ;;  %v7026_v22 = vadd.f32 %v6932_v45, %v6827_v31 }
 0x3d9   : > { %v12202_v46 = vpop.xlane.xlu1 %7531 }
 0x3da   : > { %6569 = vadd.xlane.f32.xlu0 %v6568_v6 }
 0x3db   : > { %v6546_v16 = vpop.xlane.xlu0 %6545 }
 0x3dc   : > { %6367 = vadd.xlane.f32.xlu1 %v6366_v3  ;;  %v12210_v19 = vadd.f32 %v6546_v16, %v12146_v14  ;;  %v6510_v14 = vmul.f32 %v11769_v51, %v6471_v33  ;;  %v7700_v3 = vmul.f32 %v11965_v21, %v6471_v33 }
 0x3dd   : > { %v12212_v34 = vpop.xlane.xlu1 %7730 }
 0x3de   : > { %7160 = vadd.xlane.f32.xlu0 %v7159_v12  ;;  %v6562_v62 = vsel %vm349_vm0, %v6510_v14, 0.0  ;;  %v7303_v12 = vmul.f32 %v11779_v41, %v12182_v39 }
 0x3df   : > { %v7137_v1 = vpop.xlane.xlu0 %7136 }
 0x3e0   : > { %6566 = vadd.xlane.f32.xlu1 %v6565_v20 }
 0x3e1   : > { %v6145_v23 = vpop.xlane.xlu1 %6144 }
 0x3e2   : > { %7751 = vadd.xlane.f32.xlu0 %v7750_v30 }
 0x3e3   : > { %v7728_v37 = vpop.xlane.xlu0 %7727 }
 0x3e4   : > { %6759 = vadd.xlane.f32.xlu1 %v6758_v57 }
 0x3e5   : > { %v6344_v13 = vpop.xlane.xlu1 %6343 }
 0x3e6   : > { %v6432_v17 = vadd.f32 %v6344_v13, %v6145_v23  ;;  %6563 = vadd.xlane.f32.xlu0 %v6562_v62  ;;  %v6118_v23 = vmul.f32 %v11749_v24, %v12238_v36 }
 0x3e7   : > { %v6540_v25 = vpop.xlane.xlu0 %6539 }
 0x3e8   : > { %6958 = vadd.xlane.f32.xlu1 %v6957_v48  ;;  %v6630_v10 = vadd.f32 %v6540_v25, %v6431_v32  ;;  %v6430_v32 = vadd.f32 %v12107_v58, %v12094_v63  ;;  %v7349_v63 = vsel %vm349_vm0, %v7303_v12, 0.0  ;;  %v7502_v58 = vmul.f32 %v11790_v27, %v12191_v56 }
 0x3e9   : > { %v6543_v50 = vpop.xlane.xlu1 %6542 }
 0x3ea   : > { %v6631_v6 = vadd.f32 %v6543_v50, %v6432_v17  ;;  %v6829_v16 = vadd.f32 %v12152_v35, %v6630_v10  ;;  %7154 = vadd.xlane.f32.xlu0 %v7153_v2  ;;  %v7744_v35 = vsel %vm349_vm0, %v7700_v3, 0.0  ;;  %v6182_v17 = vsel %vm349_vm0, %v6118_v23, 0.0  ;;  %v12280_v3 = vld [vmem:[#allocation2 + $0xc9] sm:$0xff] }
 0x3eb   : > { %v7131_v20 = vpop.xlane.xlu0 %7130  ;;  %v6119_v50 = vmul.f32 %v11749_v24, %v12266_v5  ;;  %v7308_v23 = vmul.f32 %v11779_v41, %v12238_v36 }
 0x3ec   : > { %v6830_v9 = vadd.f32 %v12168_v4, %v6631_v6  ;;  %7157 = vadd.xlane.f32.xlu1 %v7156_v54  ;;  %v7225_v7 = vadd.f32 %v7131_v20, %v7026_v22  ;;  %v7028_v45 = vadd.f32 %v12158_v61, %v6829_v16  ;;  %v6278_v4 = vld [vmem:[#allocation2 + $0xc1] sm:$0xff]  ;;  %v6629_v61 = vadd.f32 %v12116_v42, %v6430_v32 }
 0x3ed   : > { %v6736_v33 = vpop.xlane.xlu1 %6735  ;;  %v6317_v56 = vmul.f32 %v11759_v43, %v6278_v4  ;;  %v7701_v42 = vmul.f32 %v11965_v21, %v12200_v28  ;;  %v6912_v12 = vmul.f32 %v11874_v47, %v6278_v4  ;;  %v6185_v32 = vsel %vm349_vm0, %v6119_v50, 0.0 }
 0x3ee   : > { %v7029_v39 = vadd.f32 %v12176_v40, %v6830_v9  ;;  %v7424_v30 = vadd.f32 %v12166_v29, %v7225_v7  ;;  %7745 = vadd.xlane.f32.xlu0 %v7744_v35  ;;  %v12252_v14 = vadd.f32 %v7137_v1, %v7028_v45  ;;  %v12259_v29 = vld [vmem:[#allocation3] ss:$0 sm:$0xff]  ;;  %v6828_v13 = vadd.f32 %v6736_v33, %v6629_v61 }
 0x3ef   : > { %v6160_v8 = vpop.xlane.xlu0 %6159  ;;  %v7548_v1 = vsel %vm349_vm0, %v7502_v58, 0.0  ;;  %v6381_v31 = vsel %vm349_vm0, %v6317_v56, 0.0  ;;  %v7747_v28 = vsel %vm349_vm0, %v7701_v42, 0.0  ;;  %v6318_v9 = vmul.f32 %v11759_v43, %v12280_v3  ;;  %v12291_v7 = vld [vmem:[#allocation2 + $0xca] sm:$0xff] }
 0x3f0   : > { %7350 = vadd.xlane.f32.xlu1 %v7349_v63  ;;  %v12256_v57 = vadd.f32 %v12184_v44, %v7029_v39  ;;  %v7623_v40 = vadd.f32 %v12174_v15, %v7424_v30  ;;  %v6972_v35 = vsel %vm349_vm0, %v6912_v12, 0.0 }
 0x3f1   : > { %v6935_v11 = vpop.xlane.xlu1 %6934  ;;  %v6384_v39 = vsel %vm349_vm0, %v6318_v9, 0.0 }
 0x3f2   : > { %v7822_v62 = vadd.f32 %v7728_v37, %v7623_v40  ;;  %6183 = vadd.xlane.f32.xlu0 %v6182_v17  ;;  %v7027_v38 = vadd.f32 %v6935_v11, %v6828_v13  ;;  %v6713_v37 = vmul.f32 %v11843_v18, %v12238_v36  ;;  %v7507_v40 = vmul.f32 %v11790_v27, %v6278_v4  ;;  %v6078_v17 = vld [vmem:[#allocation2 + $0xa8] sm:$0xff] }
 0x3f3   : > { %v6359_v44 = vpop.xlane.xlu0 %6358  ;;  %v6714_v13 = vmul.f32 %v11843_v18, %v12266_v5  ;;  %v6116_v4 = vmul.f32 %v11749_v24, %v6078_v17 }
 0x3f4   : > { %7549 = vadd.xlane.f32.xlu1 %v7548_v1  ;;  %v7861_v15 = vadd.f32 %v12259_v29, %v7822_v62  ;;  %v12269_v48 = vadd.f32 %v6359_v44, %v6160_v8  ;;  %v6773_v54 = vsel %vm349_vm0, %v6713_v37, 0.0  ;;  %v7364_v8 = vsel %vm349_vm0, %v7308_v23, 0.0 }
 0x3f5   : > { %v7134_v52 = vpop.xlane.xlu1 %7133  ;;  %v7563_v42 = vsel %vm349_vm0, %v7507_v40, 0.0  ;;  %v6913_v44 = vmul.f32 %v11874_v47, %v12280_v3 }
 0x3f6   : > { %v7226_v25 = vadd.f32 %v7134_v52, %v7027_v38  ;;  %v8558_v10 = vmul.f32 -1.442695, %v7861_v15  ;;  %6382 = vadd.xlane.f32.xlu0 %v6381_v31  ;;  %v6776_v38 = vsel %vm349_vm0, %v6714_v13, 0.0  ;;  %v6276_v15 = vld [vmem:[#allocation2 + $0xa9] sm:$0xff]  ;;  %v6176_v31 = vsel %vm349_vm0, %v6116_v4, 0.0 }
 0x3f7   : > { %v12278_v2 = vpop.xlane.xlu0 %6750  ;;  %v6315_v37 = vmul.f32 %v11759_v43, %v6276_v15  ;;  %v6910_v23 = vmul.f32 %v11874_v47, %v6276_v15  ;;  %v12362_v13 = vld [vmem:[#allocation2 + $0xb0] sm:$0xff] }
 0x3f8   : > { %v7425_v6 = vadd.f32 %v12193_v0, %v7226_v25  ;;  %7748 = vadd.xlane.f32.xlu1 %v7747_v28  ;;  %10322 = vpow2.f32 %v8558_v10  ;;  %v6975_v10 = vsel %vm349_vm0, %v6913_v44, 0.0  ;;  %v7112_v28 = vmul.f32 %v11919_v26, %v12291_v7 }
 0x3f9   : > { %v6163_v22 = vpop.xlane.xlu1 %6162  ;;  %v6375_v12 = vsel %vm349_vm0, %v6315_v37, 0.0 }
 0x3fa   : > { %v7624_v16 = vadd.f32 %v12202_v46, %v7425_v6  ;;  %6774 = vadd.xlane.f32.xlu0 %v6773_v54  ;;  %v7174_v9 = vsel %vm349_vm0, %v7112_v28, 0.0 }
 0x3fb   : > { %v12289_v20 = vpop.xlane.xlu0 %6949 }
 0x3fc   : > { %v7823_v0 = vadd.f32 %v12212_v34, %v7624_v16  ;;  %6186 = vadd.xlane.f32.xlu1 %v6185_v32  ;;  %v6517_v34 = vmul.f32 %v11769_v51, %v12291_v7  ;;  %v6711_v32 = vmul.f32 %v11843_v18, %v6078_v17 }
 0x3fd   : > { %v6362_v33 = vpop.xlane.xlu1 %6361 }
 0x3fe   : > { %v7862_v46 = vadd.f32 %v12259_v29, %v7823_v0  ;;  %v6438_v45 = vadd.f32 %v6362_v33, %v6163_v22  ;;  %6973 = vadd.xlane.f32.xlu0 %v6972_v35  ;;  %v6583_v36 = vsel %vm349_vm0, %v6517_v34, 0.0  ;;  %v7309_v0 = vmul.f32 %v11779_v41, %v12266_v5 }
 0x3ff   : > { %v12300_v63 = vpop.xlane.xlu0 %7341  ;;  %v6767_v35 = vsel %vm349_vm0, %v6711_v32, 0.0  ;;  %v7508_v34 = vmul.f32 %v11790_v27, %v12280_v3 }
 0x400   : > { %v8559_v30 = vmul.f32 -1.442695, %v7862_v46  ;;  %6385 = vadd.xlane.f32.xlu1 %v6384_v39  ;;  %v7367_v39 = vsel %vm349_vm0, %v7309_v0, 0.0 }
 0x401   : > { %v6561_v58 = vpop.xlane.xlu1 %6560  ;;  %v7566_v40 = vsel %vm349_vm0, %v7508_v34, 0.0 }
 0x402   : > { %10324 = vpow2.f32 %v8559_v30  ;;  %v12302_v61 = vadd.f32 %v6561_v58, %v6438_v45  ;;  %v10323_v11 = vpop.eup %10322  ;;  %7365 = vadd.xlane.f32.xlu0 %v7364_v8  ;;  %v6966_v58 = vsel %vm349_vm0, %v6910_v23, 0.0  ;;  %v7306_v8 = vmul.f32 %v11779_v41, %v6078_v17 }
 0x403   : > { %v7989_v56 = vadd.f32 1.0, %v10323_v11  ;;  %v12309_v62 = vpop.xlane.xlu0 %7540  ;;  %v7707_v11 = vmul.f32 %v11965_v21, %v12291_v7  ;;  %v7505_v17 = vmul.f32 %v11790_v27, %v6276_v15  ;;  %v6117_v7 = vmul.f32 %v11749_v24, %v12362_v13 }
 0x404   : > { %6584 = vadd.xlane.f32.xlu1 %v6583_v36 }
 0x405   : > { %v12311_v1 = vpop.xlane.xlu1 %6753  ;;  %10326 = vrcp.f32 %v7989_v56  ;;  %v7765_v4 = vsel %vm349_vm0, %v7707_v11, 0.0  ;;  %v7557_v37 = vsel %vm349_vm0, %v7505_v17, 0.0  ;;  %v6179_v15 = vsel %vm349_vm0, %v6117_v7, 0.0  ;;  %v6475_v11 = vld [vmem:[#allocation2 + $0xaa] sm:$0xff] }
 0x406   : > { %7564 = vadd.xlane.f32.xlu0 %v7563_v42  ;;  %v7358_v42 = vsel %vm349_vm0, %v7306_v8, 0.0  ;;  %v6514_v7 = vmul.f32 %v11769_v51, %v6475_v11 }
 0x407   : > { %v6154_v52 = vpop.xlane.xlu0 %6153 }
 0x408   : > { %6777 = vadd.xlane.f32.xlu1 %v6776_v38  ;;  %v6477_v38 = vld [vmem:[#allocation2 + $0xc2] sm:$0xff] }
 0x409   : > { %v12318_v25 = vpop.xlane.xlu1 %6952  ;;  %v7111_v0 = vmul.f32 %v11919_v26, %v6477_v38 }
 0x40a   : > { %6177 = vadd.xlane.f32.xlu0 %v6176_v31 }
 0x40b   : > { %v6353_v6 = vpop.xlane.xlu0 %6352 }
 0x40c   : > { %v10325_v50 = vpop.eup %10324  ;;  %6976 = vadd.xlane.f32.xlu1 %v6975_v10  ;;  %v12326_v16 = vadd.f32 %v6353_v6, %v6154_v52  ;;  %v12375_v52 = vld [vmem:[#allocation2 + $0xb1] sm:$0xff]  ;;  %v6516_v10 = vmul.f32 %v11769_v51, %v6477_v38 }
 0x40d   : > { %v7990_v22 = vadd.f32 1.0, %v10325_v50  ;;  %v12328_v54 = vpop.xlane.xlu1 %7151  ;;  %v6316_v28 = vmul.f32 %v11759_v43, %v12375_v52  ;;  %v12382_v6 = vld [vmem:[#allocation2 + $0xb2] sm:$0xff] }
 0x40e   : > { %6376 = vadd.xlane.f32.xlu0 %v6375_v12 }
 0x40f   : > { %10328 = vrcp.f32 %v7990_v22  ;;  %v10327_v33 = vpop.eup %10326  ;;  %v12340_v46 = vpop.xlane.xlu0 %6744 }
 0x410   : > { %7175 = vadd.xlane.f32.xlu1 %v7174_v9  ;;  %8086 = vst.msk [vmem:[%s12333_s16] sm:$0xff] %vm8085_vm2, %v10327_v33  ;;  %v6580_v9 = vsel %vm349_vm0, %v6516_v10, 0.0  ;;  %v6378_v33 = vsel %vm349_vm0, %v6316_v28, 0.0 }
 0x411   : > { %v12344_v45 = vpop.xlane.xlu1 %7344 }
 0x412   : > { %6768 = vadd.xlane.f32.xlu0 %v6767_v35  ;;  %v6515_v35 = vmul.f32 %v11769_v51, %v12382_v6 }
 0x413   : > { %v12351_v5 = vpop.xlane.xlu0 %6943 }
 0x414   : > { %7368 = vadd.xlane.f32.xlu1 %v7367_v39  ;;  %v6577_v8 = vsel %vm349_vm0, %v6515_v35, 0.0 }
 0x415   : > { %v12353_v30 = vpop.xlane.xlu1 %7543 }
 0x416   : > { %6967 = vadd.xlane.f32.xlu0 %v6966_v58  ;;  %v7171_v58 = vsel %vm349_vm0, %v7111_v0, 0.0 }
 0x417   : > { %v12360_v36 = vpop.xlane.xlu0 %7335 }
 0x418   : > { %7567 = vadd.xlane.f32.xlu1 %v7566_v40  ;;  %v6712_v40 = vmul.f32 %v11843_v18, %v12362_v13 }
 0x419   : > { %v10329_v3 = vpop.eup %10328  ;;  %v12364_v56 = vpop.xlane.xlu1 %7742 }
 0x41a   : > { %8087 = vst.msk [vmem:[%s12333_s16 + $0x8] sm:$0xff] %vm8085_vm2, %v10329_v3  ;;  %7359 = vadd.xlane.f32.xlu0 %v7358_v42 }
 0x41b   : > { %v12373_v44 = vpop.xlane.xlu0 %7534 }
 0x41c   : > { %7766 = vadd.xlane.f32.xlu1 %v7765_v4 }
 0x41d   : > { %v6157_v31 = vpop.xlane.xlu1 %6156 }
 0x41e   : > { %7558 = vadd.xlane.f32.xlu0 %v7557_v37  ;;  %v6911_v37 = vmul.f32 %v11874_v47, %v12375_v52 }
 0x41f   : > { %v6558_v50 = vpop.xlane.xlu0 %6557 }
 0x420   : > { %6180 = vadd.xlane.f32.xlu1 %v6179_v15  ;;  %v12385_v22 = vadd.f32 %v6558_v50, %v12269_v48  ;;  %v7706_v48 = vmul.f32 %v11965_v21, %v6477_v38  ;;  %v6770_v38 = vsel %vm349_vm0, %v6712_v40, 0.0 }
 0x421   : > { %v6356_v12 = vpop.xlane.xlu1 %6355 }
 0x422   : > { %v6436_v32 = vadd.f32 %v6356_v12, %v6157_v31  ;;  %6581 = vadd.xlane.f32.xlu0 %v6580_v9  ;;  %v7762_v4 = vsel %vm349_vm0, %v7706_v48, 0.0 }
 0x423   : > { %v7149_v23 = vpop.xlane.xlu0 %7148 }
 0x424   : > { %6379 = vadd.xlane.f32.xlu1 %v6378_v33  ;;  %v7110_v33 = vmul.f32 %v11919_v26, %v12382_v6 }
 0x425   : > { %v6555_v39 = vpop.xlane.xlu1 %6554 }
 0x426   : > { %v6635_v34 = vadd.f32 %v6555_v39, %v6436_v32  ;;  %7172 = vadd.xlane.f32.xlu0 %v7171_v58  ;;  %v7109_v32 = vmul.f32 %v11919_v26, %v6475_v11  ;;  %v7307_v58 = vmul.f32 %v11779_v41, %v12362_v13  ;;  %v7168_v40 = vsel %vm349_vm0, %v7110_v33, 0.0 }
 0x427   : > { %v7740_v42 = vpop.xlane.xlu0 %7739 }
 0x428   : > { %v6834_v3 = vadd.f32 %v12311_v1, %v6635_v34  ;;  %6578 = vadd.xlane.f32.xlu1 %v6577_v8  ;;  %v6831_v1 = vadd.f32 %v12340_v46, %v12210_v19 }
 0x429   : > { %v6748_v17 = vpop.xlane.xlu1 %6747 }
 0x42a   : > { %v7033_v31 = vadd.f32 %v12318_v25, %v6834_v3  ;;  %7763 = vadd.xlane.f32.xlu0 %v7762_v4  ;;  %v6832_v12 = vadd.f32 %v6748_v17, %v12160_v49  ;;  %v6574_v25 = vsel %vm349_vm0, %v6514_v7, 0.0  ;;  %v7030_v9 = vadd.f32 %v12351_v5, %v6831_v1 }
 0x42b   : > { %v6552_v10 = vpop.xlane.xlu0 %6551  ;;  %v7426_v49 = vadd.f32 %v12360_v36, %v12252_v14  ;;  %v7165_v5 = vsel %vm349_vm0, %v7109_v32, 0.0  ;;  %v12428_v14 = vld [vmem:[#allocation2 + $0xf0] sm:$0xff] }
 0x42c   : > { %6771 = vadd.xlane.f32.xlu1 %v6770_v38  ;;  %v12405_v15 = vadd.f32 %v12328_v54, %v7033_v31  ;;  %v6634_v28 = vadd.f32 %v6552_v10, %v12326_v16  ;;  %v6969_v54 = vsel %vm349_vm0, %v6911_v37, 0.0  ;;  %v12442_v38 = vld [vmem:[#allocation2 + $0xf1] sm:$0xff] }
 0x42d   : > { %v6947_v50 = vpop.xlane.xlu1 %6946  ;;  %v7625_v48 = vadd.f32 %v12373_v44, %v7426_v49  ;;  %v6717_v49 = vmul.f32 %v11843_v18, %v12428_v14 }
 0x42e   : > { %v6833_v0 = vadd.f32 %v12278_v2, %v6634_v28  ;;  %6575 = vadd.xlane.f32.xlu0 %v6574_v25  ;;  %v7031_v19 = vadd.f32 %v6947_v50, %v6832_v12  ;;  %v7704_v2 = vmul.f32 %v11965_v21, %v6475_v11  ;;  %v6321_v12 = vmul.f32 %v11759_v43, %v12442_v38 }
 0x42f   : > { %v7143_v46 = vpop.xlane.xlu0 %7142  ;;  %v7705_v25 = vmul.f32 %v11965_v21, %v12382_v6 }
 0x430   : > { %6970 = vadd.xlane.f32.xlu1 %v6969_v54  ;;  %v7229_v16 = vadd.f32 %v7143_v46, %v7030_v9  ;;  %v7032_v39 = vadd.f32 %v12289_v20, %v6833_v0  ;;  %v7756_v44 = vsel %vm349_vm0, %v7704_v2, 0.0  ;;  %v12454_v54 = vld [vmem:[#allocation2 + $0xf8] sm:$0xff]  ;;  %v6393_v46 = vsel %vm349_vm0, %v6321_v12, 0.0 }
 0x431   : > { %v7146_v35 = vpop.xlane.xlu1 %7145  ;;  %v7759_v6 = vsel %vm349_vm0, %v7705_v25, 0.0  ;;  %v6082_v12 = vld [vmem:[#allocation2 + $0xd8] sm:$0xff] }
 0x432   : > { %v7230_v34 = vadd.f32 %v7146_v35, %v7031_v19  ;;  %v7428_v8 = vadd.f32 %v12300_v63, %v7229_v16  ;;  %7166 = vadd.xlane.f32.xlu0 %v7165_v5  ;;  %v12430_v36 = vadd.f32 %v7149_v23, %v7032_v39  ;;  %v6122_v63 = vmul.f32 %v11749_v24, %v12428_v14 }
 0x433   : > { %v7734_v3 = vpop.xlane.xlu0 %7733  ;;  %v7361_v23 = vsel %vm349_vm0, %v7307_v58, 0.0  ;;  %v6123_v16 = vmul.f32 %v11749_v24, %v12454_v54  ;;  %v6785_v58 = vsel %vm349_vm0, %v6717_v49, 0.0 }
 0x434   : > { %v7429_v20 = vadd.f32 %v12344_v45, %v7230_v34  ;;  %7169 = vadd.xlane.f32.xlu1 %v7168_v40  ;;  %v7627_v11 = vadd.f32 %v12309_v62, %v7428_v8  ;;  %v7824_v17 = vadd.f32 %v7734_v3, %v7625_v48  ;;  %v7506_v45 = vmul.f32 %v11790_v27, %v12375_v52  ;;  %v12467_v34 = vld [vmem:[#allocation2 + $0xf9] sm:$0xff] }
 0x435   : > { %v7339_v4 = vpop.xlane.xlu1 %7338  ;;  %v6194_v50 = vsel %vm349_vm0, %v6122_v63, 0.0  ;;  %v6916_v48 = vmul.f32 %v11874_v47, %v12442_v38  ;;  %v6197_v8 = vsel %vm349_vm0, %v6123_v16, 0.0  ;;  %v6322_v40 = vmul.f32 %v11759_v43, %v12467_v34  ;;  %v12477_v3 = vld [vmem:[#allocation2 + $0xfa] sm:$0xff] }
 0x436   : > { %v7628_v13 = vadd.f32 %v12353_v30, %v7429_v20  ;;  %v7826_v7 = vadd.f32 %v7740_v42, %v7627_v11  ;;  %v7863_v31 = vadd.f32 %v12259_v29, %v7824_v17  ;;  %7757 = vadd.xlane.f32.xlu0 %v7756_v44  ;;  %v7427_v28 = vadd.f32 %v7339_v4, %v12256_v57 }
 0x437   : > { %v6172_v37 = vpop.xlane.xlu0 %6171  ;;  %v6984_v44 = vsel %vm349_vm0, %v6916_v48, 0.0  ;;  %v7312_v63 = vmul.f32 %v11779_v41, %v12428_v14 }
 0x438   : > { %v7827_v62 = vadd.f32 %v12364_v56, %v7628_v13  ;;  %7362 = vadd.xlane.f32.xlu1 %v7361_v23  ;;  %v7865_v30 = vadd.f32 %v12259_v29, %v7826_v7  ;;  %v8560_v10 = vmul.f32 -1.442695, %v7863_v31  ;;  %v7560_v56 = vsel %vm349_vm0, %v7506_v45, 0.0 }
 0x439   : > { %v7538_v1 = vpop.xlane.xlu1 %7537  ;;  %v6396_v31 = vsel %vm349_vm0, %v6322_v40, 0.0  ;;  %v6521_v23 = vmul.f32 %v11769_v51, %v12477_v3  ;;  %v7376_v14 = vsel %vm349_vm0, %v7312_v63, 0.0 }
 0x43a   : > { %v7866_v42 = vadd.f32 %v12259_v29, %v7827_v62  ;;  %v8562_v52 = vmul.f32 -1.442695, %v7865_v30  ;;  %10330 = vpow2.f32 %v8560_v10  ;;  %6195 = vadd.xlane.f32.xlu0 %v6194_v50  ;;  %v7626_v9 = vadd.f32 %v7538_v1, %v7427_v28 }
 0x43b   : > { %v6371_v0 = vpop.xlane.xlu0 %6370  ;;  %v6595_v28 = vsel %vm349_vm0, %v6521_v23, 0.0  ;;  %v6718_v50 = vmul.f32 %v11843_v18, %v12454_v54 }
 0x43c   : > { %v8563_v32 = vmul.f32 -1.442695, %v7866_v42  ;;  %7561 = vadd.xlane.f32.xlu1 %v7560_v56  ;;  %10332 = vpow2.f32 %v8562_v52  ;;  %v12456_v57 = vadd.f32 %v6371_v0, %v6172_v37  ;;  %v7511_v42 = vmul.f32 %v11790_v27, %v12442_v38 }
 0x43d   : > { %v7737_v33 = vpop.xlane.xlu1 %7736  ;;  %v6788_v0 = vsel %vm349_vm0, %v6718_v50, 0.0  ;;  %v7711_v50 = vmul.f32 %v11965_v21, %v12477_v3 }
 0x43e   : > { %10334 = vpow2.f32 %v8563_v32  ;;  %v7825_v19 = vadd.f32 %v7737_v33, %v7626_v9  ;;  %6394 = vadd.xlane.f32.xlu0 %v6393_v46  ;;  %v7575_v32 = vsel %vm349_vm0, %v7511_v42, 0.0  ;;  %v6120_v9 = vmul.f32 %v11749_v24, %v6082_v12 }
 0x43f   : > { %v12465_v39 = vpop.xlane.xlu0 %6762  ;;  %v6917_v33 = vmul.f32 %v11874_v47, %v12467_v34  ;;  %v7310_v42 = vmul.f32 %v11779_v41, %v6082_v12 }
 0x440   : > { %v7864_v35 = vadd.f32 %v12259_v29, %v7825_v19  ;;  %7760 = vadd.xlane.f32.xlu1 %v7759_v6  ;;  %v6280_v19 = vld [vmem:[#allocation2 + $0xd9] sm:$0xff]  ;;  %v6188_v16 = vsel %vm349_vm0, %v6120_v9, 0.0 }
 0x441   : > { %v6175_v5 = vpop.xlane.xlu1 %6174  ;;  %v6914_v23 = vmul.f32 %v11874_v47, %v6280_v19  ;;  %v7370_v9 = vsel %vm349_vm0, %v7310_v42, 0.0 }
 0x442   : > { %v8561_v2 = vmul.f32 -1.442695, %v7864_v35  ;;  %6786 = vadd.xlane.f32.xlu0 %v6785_v58  ;;  %v6319_v35 = vmul.f32 %v11759_v43, %v6280_v19 }
 0x443   : > { %v12475_v20 = vpop.xlane.xlu0 %6961 }
 0x444   : > { %10336 = vpow2.f32 %v8561_v2  ;;  %6198 = vadd.xlane.f32.xlu1 %v6197_v8  ;;  %v10331_v11 = vpop.eup %10330  ;;  %v7116_v2 = vmul.f32 %v11919_v26, %v12477_v3  ;;  %v12559_v3 = vld [vmem:[#allocation2 + $0xe1] sm:$0xff] }
 0x445   : > { %v6374_v17 = vpop.xlane.xlu1 %6373  ;;  %v7991_v4 = vadd.f32 1.0, %v10331_v11 }
 0x446   : > { %v6442_v13 = vadd.f32 %v6374_v17, %v6175_v5  ;;  %v10333_v7 = vpop.eup %10332  ;;  %6985 = vadd.xlane.f32.xlu0 %v6984_v44  ;;  %v6987_v5 = vsel %vm349_vm0, %v6917_v33, 0.0  ;;  %v6387_v17 = vsel %vm349_vm0, %v6319_v35, 0.0  ;;  %v7313_v44 = vmul.f32 %v11779_v41, %v12454_v54  ;;  %v6481_v33 = vld [vmem:[#allocation2 + $0xf2] sm:$0xff] }
 0x447   : > { %v7993_v62 = vadd.f32 1.0, %v10333_v7  ;;  %10338 = vrcp.f32 %v7991_v4  ;;  %v12485_v37 = vpop.xlane.xlu0 %7353  ;;  %v6715_v4 = vmul.f32 %v11843_v18, %v6082_v12  ;;  %v7777_v12 = vsel %vm349_vm0, %v7711_v50, 0.0 }
 0x448   : > { %v10335_v45 = vpop.eup %10334  ;;  %6397 = vadd.xlane.f32.xlu1 %v6396_v31  ;;  %v6520_v35 = vmul.f32 %v11769_v51, %v6481_v33 }
 0x449   : > { %v7994_v30 = vadd.f32 1.0, %v10335_v45  ;;  %v6573_v10 = vpop.xlane.xlu1 %6572  ;;  %10340 = vrcp.f32 %v7993_v62  ;;  %v6779_v31 = vsel %vm349_vm0, %v6715_v4, 0.0  ;;  %v7379_v62 = vsel %vm349_vm0, %v7313_v44, 0.0 }
 0x44a   : > { %v12487_v1 = vadd.f32 %v6573_v10, %v6442_v13  ;;  %7377 = vadd.xlane.f32.xlu0 %v7376_v14  ;;  %v7186_v13 = vsel %vm349_vm0, %v7116_v2, 0.0  ;;  %v6978_v14 = vsel %vm349_vm0, %v6914_v23, 0.0  ;;  %v6592_v4 = vsel %vm349_vm0, %v6520_v35, 0.0 }
 0x44b   : > { %10342 = vrcp.f32 %v7994_v30  ;;  %v12495_v52 = vpop.xlane.xlu0 %7552  ;;  %v7512_v30 = vmul.f32 %v11790_v27, %v12467_v34  ;;  %v12548_v34 = vld [vmem:[#allocation2 + $0xe0] sm:$0xff] }
 0x44c   : > { %6596 = vadd.xlane.f32.xlu1 %v6595_v28  ;;  %v6716_v42 = vmul.f32 %v11843_v18, %v12548_v34 }
 0x44d   : > { %v12497_v56 = vpop.xlane.xlu1 %6765  ;;  %v7578_v28 = vsel %vm349_vm0, %v7512_v30, 0.0 }
 0x44e   : > { %v10337_v25 = vpop.eup %10336  ;;  %7576 = vadd.xlane.f32.xlu0 %v7575_v32 }
 0x44f   : > { %v7992_v38 = vadd.f32 1.0, %v10337_v25  ;;  %v6166_v46 = vpop.xlane.xlu0 %6165 }
 0x450   : > { %6789 = vadd.xlane.f32.xlu1 %v6788_v0  ;;  %v6121_v0 = vmul.f32 %v11749_v24, %v12548_v34 }
 0x451   : > { %10344 = vrcp.f32 %v7992_v38  ;;  %v12504_v49 = vpop.xlane.xlu1 %6964  ;;  %v10339_v6 = vpop.eup %10338  ;;  %v7509_v38 = vmul.f32 %v11790_v27, %v6280_v19 }
 0x452   : > { %8088 = vst.msk [vmem:[%s12333_s16 + $0x10] sm:$0xff] %vm8085_vm2, %v10339_v6  ;;  %6189 = vadd.xlane.f32.xlu0 %v6188_v16  ;;  %v6191_v19 = vsel %vm349_vm0, %v6121_v0, 0.0 }
 0x453   : > { %v10341_v58 = vpop.eup %10340  ;;  %v6365_v48 = vpop.xlane.xlu0 %6364  ;;  %v7569_v16 = vsel %vm349_vm0, %v7509_v38, 0.0 }
 0x454   : > { %6988 = vadd.xlane.f32.xlu1 %v6987_v5  ;;  %8090 = vst.msk [vmem:[%s12333_s16 + $0x20] sm:$0xff] %vm8085_vm2, %v10341_v58  ;;  %v12515_v40 = vadd.f32 %v6365_v48, %v6166_v46  ;;  %v6320_v5 = vmul.f32 %v11759_v43, %v12559_v3  ;;  %v12566_v58 = vld [vmem:[#allocation2 + $0xe2] sm:$0xff] }
 0x455   : > { %v10343_v8 = vpop.eup %10342  ;;  %v12517_v11 = vpop.xlane.xlu1 %7163 }
 0x456   : > { %8091 = vst.msk [vmem:[%s12333_s16 + $0x28] sm:$0xff] %vm8085_vm2, %v10343_v8  ;;  %6388 = vadd.xlane.f32.xlu0 %v6387_v17  ;;  %v6390_v44 = vsel %vm349_vm0, %v6320_v5, 0.0 }
 0x457   : > { %v12526_v63 = vpop.xlane.xlu0 %6756 }
 0x458   : > { %7187 = vadd.xlane.f32.xlu1 %v7186_v13  ;;  %v7115_v13 = vmul.f32 %v11919_v26, %v6481_v33 }
 0x459   : > { %v12528_v7 = vpop.xlane.xlu1 %7356 }
 0x45a   : > { %6780 = vadd.xlane.f32.xlu0 %v6779_v31  ;;  %v6519_v31 = vmul.f32 %v11769_v51, %v12566_v58  ;;  %v7183_v30 = vsel %vm349_vm0, %v7115_v13, 0.0 }
 0x45b   : > { %v10345_v45 = vpop.eup %10344  ;;  %v12537_v10 = vpop.xlane.xlu0 %6955 }
 0x45c   : > { %8089 = vst.msk [vmem:[%s12333_s16 + $0x18] sm:$0xff] %vm8085_vm2, %v10345_v45  ;;  %7380 = vadd.xlane.f32.xlu1 %v7379_v62 }
 0x45d   : > { %v12539_v54 = vpop.xlane.xlu1 %7555 }
 0x45e   : > { %6979 = vadd.xlane.f32.xlu0 %v6978_v14  ;;  %v6589_v14 = vsel %vm349_vm0, %v6519_v31, 0.0 }
 0x45f   : > { %v12546_v25 = vpop.xlane.xlu0 %7347 }
 0x460   : > { %7579 = vadd.xlane.f32.xlu1 %v7578_v28  ;;  %v6479_v28 = vld [vmem:[#allocation2 + $0xda] sm:$0xff] }
 0x461   : > { %v12550_v32 = vpop.xlane.xlu1 %7754  ;;  %v6518_v0 = vmul.f32 %v11769_v51, %v6479_v28 }
 0x462   : > { %7371 = vadd.xlane.f32.xlu0 %v7370_v9 }
 0x463   : > { %v12557_v46 = vpop.xlane.xlu0 %7546 }
 0x464   : > { %7778 = vadd.xlane.f32.xlu1 %v7777_v12 }
 0x465   : > { %v6169_v6 = vpop.xlane.xlu1 %6168 }
 0x466   : > { %7570 = vadd.xlane.f32.xlu0 %v7569_v16  ;;  %v6915_v16 = vmul.f32 %v11874_v47, %v12559_v3 }
 0x467   : > { %v6570_v2 = vpop.xlane.xlu0 %6569 }
 0x468   : > { %6192 = vadd.xlane.f32.xlu1 %v6191_v19  ;;  %v12569_v48 = vadd.f32 %v6570_v2, %v12456_v57  ;;  %v7710_v57 = vmul.f32 %v11965_v21, %v6481_v33  ;;  %v6782_v33 = vsel %vm349_vm0, %v6716_v42, 0.0 }
 0x469   : > { %v6368_v8 = vpop.xlane.xlu1 %6367 }
 0x46a   : > { %v6440_v17 = vadd.f32 %v6368_v8, %v6169_v6  ;;  %6593 = vadd.xlane.f32.xlu0 %v6592_v4  ;;  %v7774_v12 = vsel %vm349_vm0, %v7710_v57, 0.0 }
 0x46b   : > { %v7161_v23 = vpop.xlane.xlu0 %7160 }
 0x46c   : > { %6391 = vadd.xlane.f32.xlu1 %v6390_v44  ;;  %v7114_v44 = vmul.f32 %v11919_v26, %v12566_v58 }
 0x46d   : > { %v6567_v45 = vpop.xlane.xlu1 %6566 }
 0x46e   : > { %v6639_v62 = vadd.f32 %v6567_v45, %v6440_v17  ;;  %7184 = vadd.xlane.f32.xlu0 %v7183_v30  ;;  %v7113_v17 = vmul.f32 %v11919_v26, %v6479_v28  ;;  %v7311_v30 = vmul.f32 %v11779_v41, %v12548_v34  ;;  %v7180_v42 = vsel %vm349_vm0, %v7114_v44, 0.0 }
 0x46f   : > { %v7752_v9 = vpop.xlane.xlu0 %7751 }
 0x470   : > { %v6838_v50 = vadd.f32 %v12497_v56, %v6639_v62  ;;  %6590 = vadd.xlane.f32.xlu1 %v6589_v14  ;;  %v6835_v56 = vadd.f32 %v12526_v63, %v12385_v22 }
 0x471   : > { %v6760_v38 = vpop.xlane.xlu1 %6759 }
 0x472   : > { %v7037_v6 = vadd.f32 %v12504_v49, %v6838_v50  ;;  %7775 = vadd.xlane.f32.xlu0 %v7774_v12  ;;  %v6836_v8 = vadd.f32 %v6760_v38, %v12302_v61  ;;  %v6586_v49 = vsel %vm349_vm0, %v6518_v0, 0.0  ;;  %v7034_v4 = vadd.f32 %v12537_v10, %v6835_v56 }
 0x473   : > { %v6564_v35 = vpop.xlane.xlu0 %6563  ;;  %v7430_v61 = vadd.f32 %v12546_v25, %v12430_v36  ;;  %v7177_v10 = vsel %vm349_vm0, %v7113_v17, 0.0  ;;  %v12612_v36 = vld [vmem:[#allocation2 + $0x120] sm:$0xff] }
 0x474   : > { %6783 = vadd.xlane.f32.xlu1 %v6782_v33  ;;  %v12589_v19 = vadd.f32 %v12517_v11, %v7037_v6  ;;  %v6638_v5 = vadd.f32 %v6564_v35, %v12515_v40  ;;  %v6981_v11 = vsel %vm349_vm0, %v6915_v16, 0.0  ;;  %v12626_v33 = vld [vmem:[#allocation2 + $0x121] sm:$0xff] }
 0x475   : > { %v6959_v2 = vpop.xlane.xlu1 %6958  ;;  %v7629_v57 = vadd.f32 %v12557_v46, %v7430_v61  ;;  %v6721_v61 = vmul.f32 %v11843_v18, %v12612_v36 }
 0x476   : > { %v6837_v13 = vadd.f32 %v12465_v39, %v6638_v5  ;;  %6587 = vadd.xlane.f32.xlu0 %v6586_v49  ;;  %v7035_v22 = vadd.f32 %v6959_v2, %v6836_v8  ;;  %v7708_v39 = vmul.f32 %v11965_v21, %v6479_v28  ;;  %v6325_v8 = vmul.f32 %v11759_v43, %v12626_v33 }
 0x477   : > { %v7155_v63 = vpop.xlane.xlu0 %7154  ;;  %v7709_v49 = vmul.f32 %v11965_v21, %v12566_v58 }
 0x478   : > { %6982 = vadd.xlane.f32.xlu1 %v6981_v11  ;;  %v7233_v40 = vadd.f32 %v7155_v63, %v7034_v4  ;;  %v7036_v45 = vadd.f32 %v12475_v20, %v6837_v13  ;;  %v7768_v46 = vsel %vm349_vm0, %v7708_v39, 0.0  ;;  %v12638_v11 = vld [vmem:[#allocation2 + $0x128] sm:$0xff]  ;;  %v6405_v63 = vsel %vm349_vm0, %v6325_v8, 0.0 }
 0x479   : > { %v7158_v31 = vpop.xlane.xlu1 %7157  ;;  %v7771_v58 = vsel %vm349_vm0, %v7709_v49, 0.0 }
 0x47a   : > { %v7234_v62 = vadd.f32 %v7158_v31, %v7035_v22  ;;  %v7432_v14 = vadd.f32 %v12485_v37, %v7233_v40  ;;  %7178 = vadd.xlane.f32.xlu0 %v7177_v10  ;;  %v12614_v25 = vadd.f32 %v7161_v23, %v7036_v45  ;;  %v6126_v37 = vmul.f32 %v11749_v24, %v12612_v36 }
 0x47b   : > { %v7746_v50 = vpop.xlane.xlu0 %7745  ;;  %v7373_v23 = vsel %vm349_vm0, %v7311_v30, 0.0  ;;  %v6127_v40 = vmul.f32 %v11749_v24, %v12638_v11  ;;  %v6797_v30 = vsel %vm349_vm0, %v6721_v61, 0.0 }
 0x47c   : > { %v7433_v20 = vadd.f32 %v12528_v7, %v7234_v62  ;;  %7181 = vadd.xlane.f32.xlu1 %v7180_v42  ;;  %v7631_v28 = vadd.f32 %v12495_v52, %v7432_v14  ;;  %v7828_v38 = vadd.f32 %v7746_v50, %v7629_v57  ;;  %v7510_v7 = vmul.f32 %v11790_v27, %v12559_v3  ;;  %v12651_v62 = vld [vmem:[#allocation2 + $0x129] sm:$0xff] }
 0x47d   : > { %v7351_v12 = vpop.xlane.xlu1 %7350  ;;  %v6206_v2 = vsel %vm349_vm0, %v6126_v37, 0.0  ;;  %v6920_v57 = vmul.f32 %v11874_v47, %v12626_v33  ;;  %v6209_v14 = vsel %vm349_vm0, %v6127_v40, 0.0  ;;  %v6326_v42 = vmul.f32 %v11759_v43, %v12651_v62 }
 0x47e   : > { %v7632_v34 = vadd.f32 %v12539_v54, %v7433_v20  ;;  %v7830_v0 = vadd.f32 %v7752_v9, %v7631_v28  ;;  %v7867_v6 = vadd.f32 %v12259_v29, %v7828_v38  ;;  %7769 = vadd.xlane.f32.xlu0 %v7768_v46  ;;  %v7431_v5 = vadd.f32 %v7351_v12, %v12405_v15  ;;  %v12661_v20 = vld [vmem:[#allocation2 + $0x12a] sm:$0xff] }
 0x47f   : > { %v6184_v16 = vpop.xlane.xlu0 %6183  ;;  %v7316_v46 = vmul.f32 %v11779_v41, %v12612_v36 }
 0x480   : > { %v7831_v52 = vadd.f32 %v12550_v32, %v7632_v34  ;;  %7374 = vadd.xlane.f32.xlu1 %v7373_v23  ;;  %v7869_v54 = vadd.f32 %v12259_v29, %v7830_v0  ;;  %v8564_v35 = vmul.f32 -1.442695, %v7867_v6  ;;  %v7572_v32 = vsel %vm349_vm0, %v7510_v7, 0.0 }
 0x481   : > { %v7550_v56 = vpop.xlane.xlu1 %7549  ;;  %v6996_v34 = vsel %vm349_vm0, %v6920_v57, 0.0  ;;  %v6408_v0 = vsel %vm349_vm0, %v6326_v42, 0.0  ;;  %v6525_v6 = vmul.f32 %v11769_v51, %v12661_v20  ;;  %v7388_v36 = vsel %vm349_vm0, %v7316_v46, 0.0 }
 0x482   : > { %v7870_v9 = vadd.f32 %v12259_v29, %v7831_v52  ;;  %v8566_v3 = vmul.f32 -1.442695, %v7869_v54  ;;  %10346 = vpow2.f32 %v8564_v35  ;;  %6207 = vadd.xlane.f32.xlu0 %v6206_v2  ;;  %v7630_v4 = vadd.f32 %v7550_v56, %v7431_v5  ;;  %v6086_v2 = vld [vmem:[#allocation2 + $0x108] sm:$0xff] }
 0x483   : > { %v6383_v13 = vpop.xlane.xlu0 %6382  ;;  %v7515_v56 = vmul.f32 %v11790_v27, %v12626_v33  ;;  %v6722_v5 = vmul.f32 %v11843_v18, %v12638_v11 }
 0x484   : > { %v8567_v17 = vmul.f32 -1.442695, %v7870_v9  ;;  %7573 = vadd.xlane.f32.xlu1 %v7572_v32  ;;  %10348 = vpow2.f32 %v8566_v3  ;;  %v12640_v15 = vadd.f32 %v6383_v13, %v6184_v16  ;;  %v6607_v9 = vsel %vm349_vm0, %v6525_v6, 0.0 }
 0x485   : > { %v7749_v44 = vpop.xlane.xlu1 %7748  ;;  %v7587_v49 = vsel %vm349_vm0, %v7515_v56, 0.0  ;;  %v6921_v13 = vmul.f32 %v11874_v47, %v12651_v62 }
 0x486   : > { %10350 = vpow2.f32 %v8567_v17  ;;  %v7829_v22 = vadd.f32 %v7749_v44, %v7630_v4  ;;  %6406 = vadd.xlane.f32.xlu0 %v6405_v63  ;;  %v6124_v17 = vmul.f32 %v11749_v24, %v6086_v2  ;;  %v6800_v4 = vsel %vm349_vm0, %v6722_v5, 0.0  ;;  %v6284_v44 = vld [vmem:[#allocation2 + $0x109] sm:$0xff] }
 0x487   : > { %v12649_v45 = vpop.xlane.xlu0 %6774  ;;  %v6323_v40 = vmul.f32 %v11759_v43, %v6284_v44 }
 0x488   : > { %v7868_v31 = vadd.f32 %v12259_v29, %v7829_v22  ;;  %7772 = vadd.xlane.f32.xlu1 %v7771_v58  ;;  %v6200_v58 = vsel %vm349_vm0, %v6124_v17, 0.0  ;;  %v7513_v17 = vmul.f32 %v11790_v27, %v6284_v44 }
 0x489   : > { %v6187_v10 = vpop.xlane.xlu1 %6186 }
 0x48a   : > { %v8565_v39 = vmul.f32 -1.442695, %v7868_v31  ;;  %6798 = vadd.xlane.f32.xlu0 %v6797_v30  ;;  %v6999_v31 = vsel %vm349_vm0, %v6921_v13, 0.0 }
 0x48b   : > { %v12659_v29 = vpop.xlane.xlu0 %6973 }
 0x48c   : > { %10352 = vpow2.f32 %v8565_v39  ;;  %6210 = vadd.xlane.f32.xlu1 %v6209_v14  ;;  %v10347_v50 = vpop.eup %10346 }
 0x48d   : > { %v6386_v28 = vpop.xlane.xlu1 %6385  ;;  %v7995_v38 = vadd.f32 1.0, %v10347_v50  ;;  %v6399_v50 = vsel %vm349_vm0, %v6323_v40, 0.0 }
 0x48e   : > { %v6446_v12 = vadd.f32 %v6386_v28, %v6187_v10  ;;  %v10349_v37 = vpop.eup %10348  ;;  %6997 = vadd.xlane.f32.xlu0 %v6996_v34  ;;  %v7120_v10 = vmul.f32 %v11919_v26, %v12661_v20  ;;  %v6719_v28 = vmul.f32 %v11843_v18, %v6086_v2 }
 0x48f   : > { %v7997_v7 = vadd.f32 1.0, %v10349_v37  ;;  %10354 = vrcp.f32 %v7995_v38  ;;  %v12669_v52 = vpop.xlane.xlu0 %7365 }
 0x490   : > { %v10351_v23 = vpop.eup %10350  ;;  %6409 = vadd.xlane.f32.xlu1 %v6408_v0  ;;  %v7198_v38 = vsel %vm349_vm0, %v7120_v10, 0.0  ;;  %v6791_v37 = vsel %vm349_vm0, %v6719_v28, 0.0  ;;  %v6918_v0 = vmul.f32 %v11874_v47, %v6284_v44  ;;  %v12750_v10 = vld [vmem:[#allocation2 + $0x112] sm:$0xff] }
 0x491   : > { %v7998_v16 = vadd.f32 1.0, %v10351_v23  ;;  %v6585_v54 = vpop.xlane.xlu1 %6584  ;;  %10356 = vrcp.f32 %v7997_v7  ;;  %v7516_v7 = vmul.f32 %v11790_v27, %v12651_v62  ;;  %v12732_v62 = vld [vmem:[#allocation2 + $0x110] sm:$0xff] }
 0x492   : > { %v12671_v35 = vadd.f32 %v6585_v54, %v6446_v12  ;;  %7389 = vadd.xlane.f32.xlu0 %v7388_v36  ;;  %v7317_v12 = vmul.f32 %v11779_v41, %v12638_v11  ;;  %v6990_v54 = vsel %vm349_vm0, %v6918_v0, 0.0  ;;  %v7314_v36 = vmul.f32 %v11779_v41, %v6086_v2 }
 0x493   : > { %10358 = vrcp.f32 %v7998_v16  ;;  %v12679_v8 = vpop.xlane.xlu0 %7564  ;;  %v7590_v56 = vsel %vm349_vm0, %v7516_v7, 0.0 }
 0x494   : > { %6608 = vadd.xlane.f32.xlu1 %v6607_v9  ;;  %v7391_v23 = vsel %vm349_vm0, %v7317_v12, 0.0  ;;  %v7715_v9 = vmul.f32 %v11965_v21, %v12661_v20  ;;  %v12743_v20 = vld [vmem:[#allocation2 + $0x111] sm:$0xff]  ;;  %v6523_v12 = vmul.f32 %v11769_v51, %v12750_v10 }
 0x495   : > { %v12681_v3 = vpop.xlane.xlu1 %6777  ;;  %v6324_v40 = vmul.f32 %v11759_v43, %v12743_v20 }
 0x496   : > { %v10353_v32 = vpop.eup %10352  ;;  %7588 = vadd.xlane.f32.xlu0 %v7587_v49  ;;  %v7382_v49 = vsel %vm349_vm0, %v7314_v36, 0.0  ;;  %v7789_v2 = vsel %vm349_vm0, %v7715_v9, 0.0  ;;  %v6601_v7 = vsel %vm349_vm0, %v6523_v12, 0.0  ;;  %v6483_v36 = vld [vmem:[#allocation2 + $0x10a] sm:$0xff] }
 0x497   : > { %v7996_v33 = vadd.f32 1.0, %v10353_v32  ;;  %v6178_v22 = vpop.xlane.xlu0 %6177 }
 0x498   : > { %6801 = vadd.xlane.f32.xlu1 %v6800_v4  ;;  %v6485_v4 = vld [vmem:[#allocation2 + $0x122] sm:$0xff] }
 0x499   : > { %10360 = vrcp.f32 %v7996_v33  ;;  %v12688_v63 = vpop.xlane.xlu1 %6976  ;;  %v10355_v61 = vpop.eup %10354  ;;  %v6125_v33 = vmul.f32 %v11749_v24, %v12732_v62  ;;  %v7119_v28 = vmul.f32 %v11919_v26, %v6485_v4 }
 0x49a   : > { %8092 = vst.msk [vmem:[%s12333_s16 + $0x30] sm:$0xff] %vm8085_vm2, %v10355_v61  ;;  %6201 = vadd.xlane.f32.xlu0 %v6200_v58  ;;  %v7581_v61 = vsel %vm349_vm0, %v7513_v17, 0.0  ;;  %v6524_v58 = vmul.f32 %v11769_v51, %v6485_v4 }
 0x49b   : > { %v10357_v39 = vpop.eup %10356  ;;  %v6377_v30 = vpop.xlane.xlu0 %6376  ;;  %v6203_v44 = vsel %vm349_vm0, %v6125_v33, 0.0 }
 0x49c   : > { %7000 = vadd.xlane.f32.xlu1 %v6999_v31  ;;  %8094 = vst.msk [vmem:[%s12333_s16 + $0x40] sm:$0xff] %vm8085_vm2, %v10357_v39  ;;  %v12699_v14 = vadd.f32 %v6377_v30, %v6178_v22 }
 0x49d   : > { %v10359_v57 = vpop.eup %10358  ;;  %v12701_v42 = vpop.xlane.xlu1 %7175 }
 0x49e   : > { %8095 = vst.msk [vmem:[%s12333_s16 + $0x48] sm:$0xff] %vm8085_vm2, %v10359_v57  ;;  %6400 = vadd.xlane.f32.xlu0 %v6399_v50  ;;  %v6604_v50 = vsel %vm349_vm0, %v6524_v58, 0.0 }
 0x49f   : > { %v12710_v34 = vpop.xlane.xlu0 %6768 }
 0x4a0   : > { %7199 = vadd.xlane.f32.xlu1 %v7198_v38  ;;  %v6402_v38 = vsel %vm349_vm0, %v6324_v40, 0.0 }
 0x4a1   : > { %v12712_v46 = vpop.xlane.xlu1 %7368 }
 0x4a2   : > { %6792 = vadd.xlane.f32.xlu0 %v6791_v37 }
 0x4a3   : > { %v10361_v6 = vpop.eup %10360  ;;  %v12721_v16 = vpop.xlane.xlu0 %6967 }
 0x4a4   : > { %8093 = vst.msk [vmem:[%s12333_s16 + $0x38] sm:$0xff] %vm8085_vm2, %v10361_v6  ;;  %7392 = vadd.xlane.f32.xlu1 %v7391_v23  ;;  %v7195_v23 = vsel %vm349_vm0, %v7119_v28, 0.0  ;;  %v7118_v28 = vmul.f32 %v11919_v26, %v12750_v10 }
 0x4a5   : > { %v12723_v11 = vpop.xlane.xlu1 %7567 }
 0x4a6   : > { %6991 = vadd.xlane.f32.xlu0 %v6990_v54  ;;  %v6720_v54 = vmul.f32 %v11843_v18, %v12732_v62 }
 0x4a7   : > { %v12730_v5 = vpop.xlane.xlu0 %7359 }
 0x4a8   : > { %7591 = vadd.xlane.f32.xlu1 %v7590_v56 }
 0x4a9   : > { %v12734_v32 = vpop.xlane.xlu1 %7766 }
 0x4aa   : > { %7383 = vadd.xlane.f32.xlu0 %v7382_v49 }
 0x4ab   : > { %v12741_v13 = vpop.xlane.xlu0 %7558 }
 0x4ac   : > { %7790 = vadd.xlane.f32.xlu1 %v7789_v2  ;;  %v6522_v2 = vmul.f32 %v11769_v51, %v6483_v36 }
 0x4ad   : > { %v6181_v22 = vpop.xlane.xlu1 %6180 }
 0x4ae   : > { %7582 = vadd.xlane.f32.xlu0 %v7581_v61 }
 0x4af   : > { %v6582_v31 = vpop.xlane.xlu0 %6581 }
 0x4b0   : > { %6204 = vadd.xlane.f32.xlu1 %v6203_v44  ;;  %v12753_v39 = vadd.f32 %v6582_v31, %v12640_v15  ;;  %v7714_v15 = vmul.f32 %v11965_v21, %v6485_v4  ;;  %v6794_v4 = vsel %vm349_vm0, %v6720_v54, 0.0 }
 0x4b1   : > { %v6380_v30 = vpop.xlane.xlu1 %6379 }
 0x4b2   : > { %v6444_v57 = vadd.f32 %v6380_v30, %v6181_v22  ;;  %6605 = vadd.xlane.f32.xlu0 %v6604_v50  ;;  %v7786_v17 = vsel %vm349_vm0, %v7714_v15, 0.0  ;;  %v6919_v22 = vmul.f32 %v11874_v47, %v12743_v20  ;;  %v7117_v30 = vmul.f32 %v11919_v26, %v6483_v36 }
 0x4b3   : > { %v7173_v37 = vpop.xlane.xlu0 %7172 }
 0x4b4   : > { %6403 = vadd.xlane.f32.xlu1 %v6402_v38 }
 0x4b5   : > { %v6579_v0 = vpop.xlane.xlu1 %6578 }
 0x4b6   : > { %v6643_v6 = vadd.f32 %v6579_v0, %v6444_v57  ;;  %7196 = vadd.xlane.f32.xlu0 %v7195_v23 }
 0x4b7   : > { %v7764_v9 = vpop.xlane.xlu0 %7763 }
 0x4b8   : > { %v6842_v56 = vadd.f32 %v12681_v3, %v6643_v6  ;;  %6602 = vadd.xlane.f32.xlu1 %v6601_v7  ;;  %v6839_v3 = vadd.f32 %v12710_v34, %v12569_v48  ;;  %v7315_v6 = vmul.f32 %v11779_v41, %v12732_v62  ;;  %v7192_v7 = vsel %vm349_vm0, %v7118_v28, 0.0 }
 0x4b9   : > { %v6772_v49 = vpop.xlane.xlu1 %6771 }
 0x4ba   : > { %v7041_v33 = vadd.f32 %v12688_v63, %v6842_v56  ;;  %7787 = vadd.xlane.f32.xlu0 %v7786_v17  ;;  %v6840_v31 = vadd.f32 %v6772_v49, %v12487_v1  ;;  %v6598_v63 = vsel %vm349_vm0, %v6522_v2, 0.0  ;;  %v7038_v57 = vadd.f32 %v12721_v16, %v6839_v3  ;;  %v12806_v2 = vld [vmem:[#allocation3] ss:$0 sm:$0xff] }
 0x4bb   : > { %v6576_v61 = vpop.xlane.xlu0 %6575  ;;  %v7434_v1 = vadd.f32 %v12730_v5, %v12614_v25  ;;  %v7189_v16 = vsel %vm349_vm0, %v7117_v30, 0.0  ;;  %v12796_v25 = vld [vmem:[#allocation2 + $0x150] sm:$0xff] }
 0x4bc   : > { %6795 = vadd.xlane.f32.xlu1 %v6794_v4  ;;  %v12773_v58 = vadd.f32 %v12701_v42, %v7041_v33  ;;  %v6642_v44 = vadd.f32 %v6576_v61, %v12699_v14  ;;  %v6993_v42 = vsel %vm349_vm0, %v6919_v22, 0.0  ;;  %v12812_v33 = vld [vmem:[#allocation2 + $0x151] sm:$0xff] }
 0x4bd   : > { %v6971_v40 = vpop.xlane.xlu1 %6970  ;;  %v7633_v23 = vadd.f32 %v12741_v13, %v7434_v1  ;;  %v6725_v1 = vmul.f32 %v11843_v18, %v12796_v25 }
 0x4be   : > { %v6841_v50 = vadd.f32 %v12649_v45, %v6642_v44  ;;  %6599 = vadd.xlane.f32.xlu0 %v6598_v63  ;;  %v7039_v48 = vadd.f32 %v6971_v40, %v6840_v31  ;;  %v7712_v45 = vmul.f32 %v11965_v21, %v6483_v36  ;;  %v6329_v31 = vmul.f32 %v11759_v43, %v12812_v33 }
 0x4bf   : > { %v7167_v34 = vpop.xlane.xlu0 %7166  ;;  %v7713_v63 = vmul.f32 %v11965_v21, %v12750_v10 }
 0x4c0   : > { %6994 = vadd.xlane.f32.xlu1 %v6993_v42  ;;  %v7237_v14 = vadd.f32 %v7167_v34, %v7038_v57  ;;  %v7040_v12 = vadd.f32 %v12659_v29, %v6841_v50  ;;  %v7780_v13 = vsel %vm349_vm0, %v7712_v45, 0.0  ;;  %v12824_v42 = vld [vmem:[#allocation2 + $0x158] sm:$0xff]  ;;  %v6417_v34 = vsel %vm349_vm0, %v6329_v31, 0.0 }
 0x4c1   : > { %v7170_v38 = vpop.xlane.xlu1 %7169  ;;  %v7783_v10 = vsel %vm349_vm0, %v7713_v63, 0.0  ;;  %v6090_v31 = vld [vmem:[#allocation2 + $0x138] sm:$0xff] }
 0x4c2   : > { %v7238_v0 = vadd.f32 %v7170_v38, %v7039_v48  ;;  %v7436_v15 = vadd.f32 %v12669_v52, %v7237_v14  ;;  %7190 = vadd.xlane.f32.xlu0 %v7189_v16  ;;  %v12798_v5 = vadd.f32 %v7173_v37, %v7040_v12  ;;  %v6130_v52 = vmul.f32 %v11749_v24, %v12796_v25 }
 0x4c3   : > { %v7758_v54 = vpop.xlane.xlu0 %7757  ;;  %v6131_v14 = vmul.f32 %v11749_v24, %v12824_v42 }
 0x4c4   : > { %v7437_v29 = vadd.f32 %v12712_v46, %v7238_v0  ;;  %7193 = vadd.xlane.f32.xlu1 %v7192_v7  ;;  %v7635_v36 = vadd.f32 %v12679_v8, %v7436_v15  ;;  %v7832_v56 = vadd.f32 %v7758_v54, %v7633_v23  ;;  %v7385_v46 = vsel %vm349_vm0, %v7315_v6, 0.0  ;;  %v12837_v0 = vld [vmem:[#allocation2 + $0x159] sm:$0xff] }
 0x4c5   : > { %v7363_v49 = vpop.xlane.xlu1 %7362  ;;  %v7514_v8 = vmul.f32 %v11790_v27, %v12743_v20  ;;  %v6218_v40 = vsel %vm349_vm0, %v6130_v52, 0.0  ;;  %v6809_v6 = vsel %vm349_vm0, %v6725_v1, 0.0  ;;  %v6924_v23 = vmul.f32 %v11874_v47, %v12812_v33  ;;  %v12847_v54 = vld [vmem:[#allocation2 + $0x15a] sm:$0xff] }
 0x4c6   : > { %v7636_v62 = vadd.f32 %v12723_v11, %v7437_v29  ;;  %v7834_v17 = vadd.f32 %v7764_v9, %v7635_v36  ;;  %v7871_v37 = vadd.f32 %v12806_v2, %v7832_v56  ;;  %7781 = vadd.xlane.f32.xlu0 %v7780_v13  ;;  %v7435_v44 = vadd.f32 %v7363_v49, %v12589_v19 }
 0x4c7   : > { %v6196_v4 = vpop.xlane.xlu0 %6195  ;;  %v6221_v15 = vsel %vm349_vm0, %v6131_v14, 0.0  ;;  %v6330_v7 = vmul.f32 %v11759_v43, %v12837_v0  ;;  %v7008_v13 = vsel %vm349_vm0, %v6924_v23, 0.0  ;;  %v7320_v52 = vmul.f32 %v11779_v41, %v12796_v25 }
 0x4c8   : > { %v7835_v11 = vadd.f32 %v12734_v32, %v7636_v62  ;;  %7386 = vadd.xlane.f32.xlu1 %v7385_v46  ;;  %v7873_v22 = vadd.f32 %v12806_v2, %v7834_v17  ;;  %v8568_v61 = vmul.f32 -1.442695, %v7871_v37  ;;  %v7584_v32 = vsel %vm349_vm0, %v7514_v8, 0.0 }
 0x4c9   : > { %v7562_v9 = vpop.xlane.xlu1 %7561  ;;  %v6420_v37 = vsel %vm349_vm0, %v6330_v7, 0.0  ;;  %v6529_v46 = vmul.f32 %v11769_v51, %v12847_v54  ;;  %v7400_v25 = vsel %vm349_vm0, %v7320_v52, 0.0 }
 0x4ca   : > { %v7874_v3 = vadd.f32 %v12806_v2, %v7835_v11  ;;  %v8570_v20 = vmul.f32 -1.442695, %v7873_v22  ;;  %10362 = vpow2.f32 %v8568_v61  ;;  %6219 = vadd.xlane.f32.xlu0 %v6218_v40  ;;  %v7634_v57 = vadd.f32 %v7562_v9, %v7435_v44 }
 0x4cb   : > { %v6395_v50 = vpop.xlane.xlu0 %6394  ;;  %v6619_v44 = vsel %vm349_vm0, %v6529_v46, 0.0  ;;  %v6726_v40 = vmul.f32 %v11843_v18, %v12824_v42 }
 0x4cc   : > { %v8571_v30 = vmul.f32 -1.442695, %v7874_v3  ;;  %7585 = vadd.xlane.f32.xlu1 %v7584_v32  ;;  %10364 = vpow2.f32 %v8570_v20  ;;  %v12826_v19 = vadd.f32 %v6395_v50, %v6196_v4  ;;  %v7519_v3 = vmul.f32 %v11790_v27, %v12812_v33 }
 0x4cd   : > { %v7761_v28 = vpop.xlane.xlu1 %7760  ;;  %v6812_v50 = vsel %vm349_vm0, %v6726_v40, 0.0  ;;  %v7719_v40 = vmul.f32 %v11965_v21, %v12847_v54 }
 0x4ce   : > { %10366 = vpow2.f32 %v8571_v30  ;;  %v7833_v48 = vadd.f32 %v7761_v28, %v7634_v57  ;;  %6418 = vadd.xlane.f32.xlu0 %v6417_v34  ;;  %v7599_v30 = vsel %vm349_vm0, %v7519_v3, 0.0  ;;  %v6128_v57 = vmul.f32 %v11749_v24, %v6090_v31 }
 0x4cf   : > { %v12835_v12 = vpop.xlane.xlu0 %6786  ;;  %v6925_v28 = vmul.f32 %v11874_v47, %v12837_v0  ;;  %v7318_v3 = vmul.f32 %v11779_v41, %v6090_v31 }
 0x4d0   : > { %v7872_v38 = vadd.f32 %v12806_v2, %v7833_v48  ;;  %7784 = vadd.xlane.f32.xlu1 %v7783_v10  ;;  %v6288_v48 = vld [vmem:[#allocation2 + $0x139] sm:$0xff]  ;;  %v6212_v14 = vsel %vm349_vm0, %v6128_v57, 0.0 }
 0x4d1   : > { %v6199_v16 = vpop.xlane.xlu1 %6198  ;;  %v6922_v46 = vmul.f32 %v11874_v47, %v6288_v48  ;;  %v7394_v57 = vsel %vm349_vm0, %v7318_v3, 0.0 }
 0x4d2   : > { %v8569_v45 = vmul.f32 -1.442695, %v7872_v38  ;;  %6810 = vadd.xlane.f32.xlu0 %v6809_v6  ;;  %v6327_v38 = vmul.f32 %v11759_v43, %v6288_v48 }
 0x4d3   : > { %v12845_v29 = vpop.xlane.xlu0 %6985 }
 0x4d4   : > { %10368 = vpow2.f32 %v8569_v45  ;;  %6222 = vadd.xlane.f32.xlu1 %v6221_v15  ;;  %v10363_v36 = vpop.eup %10362  ;;  %v7124_v45 = vmul.f32 %v11919_v26, %v12847_v54  ;;  %v12929_v54 = vld [vmem:[#allocation2 + $0x141] sm:$0xff] }
 0x4d5   : > { %v6398_v56 = vpop.xlane.xlu1 %6397  ;;  %v7999_v49 = vadd.f32 1.0, %v10363_v36 }
 0x4d6   : > { %v6450_v62 = vadd.f32 %v6398_v56, %v6199_v16  ;;  %v10365_v17 = vpop.eup %10364  ;;  %7009 = vadd.xlane.f32.xlu0 %v7008_v13  ;;  %v7011_v16 = vsel %vm349_vm0, %v6925_v28, 0.0  ;;  %v6411_v56 = vsel %vm349_vm0, %v6327_v38, 0.0  ;;  %v7321_v13 = vmul.f32 %v11779_v41, %v12824_v42  ;;  %v6489_v28 = vld [vmem:[#allocation2 + $0x152] sm:$0xff] }
 0x4d7   : > { %v8001_v11 = vadd.f32 1.0, %v10365_v17  ;;  %10370 = vrcp.f32 %v7999_v49  ;;  %v12855_v4 = vpop.xlane.xlu0 %7377  ;;  %v6723_v49 = vmul.f32 %v11843_v18, %v6090_v31  ;;  %v7801_v31 = vsel %vm349_vm0, %v7719_v40, 0.0 }
 0x4d8   : > { %v10367_v8 = vpop.eup %10366  ;;  %6421 = vadd.xlane.f32.xlu1 %v6420_v37  ;;  %v6528_v38 = vmul.f32 %v11769_v51, %v6489_v28 }
 0x4d9   : > { %v8002_v22 = vadd.f32 1.0, %v10367_v8  ;;  %v6597_v61 = vpop.xlane.xlu1 %6596  ;;  %10372 = vrcp.f32 %v8001_v11  ;;  %v6803_v37 = vsel %vm349_vm0, %v6723_v49, 0.0  ;;  %v7403_v11 = vsel %vm349_vm0, %v7321_v13, 0.0 }
 0x4da   : > { %v12857_v9 = vadd.f32 %v6597_v61, %v6450_v62  ;;  %7401 = vadd.xlane.f32.xlu0 %v7400_v25  ;;  %v7210_v62 = vsel %vm349_vm0, %v7124_v45, 0.0  ;;  %v7002_v25 = vsel %vm349_vm0, %v6922_v46, 0.0  ;;  %v6616_v49 = vsel %vm349_vm0, %v6528_v38, 0.0 }
 0x4db   : > { %10374 = vrcp.f32 %v8002_v22  ;;  %v12865_v20 = vpop.xlane.xlu0 %7576  ;;  %v7520_v22 = vmul.f32 %v11790_v27, %v12837_v0  ;;  %v12918_v0 = vld [vmem:[#allocation2 + $0x140] sm:$0xff] }
 0x4dc   : > { %6620 = vadd.xlane.f32.xlu1 %v6619_v44  ;;  %v6724_v3 = vmul.f32 %v11843_v18, %v12918_v0 }
 0x4dd   : > { %v12867_v32 = vpop.xlane.xlu1 %6789  ;;  %v7602_v44 = vsel %vm349_vm0, %v7520_v22, 0.0 }
 0x4de   : > { %v10369_v63 = vpop.eup %10368  ;;  %7600 = vadd.xlane.f32.xlu0 %v7599_v30 }
 0x4df   : > { %v8000_v33 = vadd.f32 1.0, %v10369_v63  ;;  %v6190_v34 = vpop.xlane.xlu0 %6189 }
 0x4e0   : > { %6813 = vadd.xlane.f32.xlu1 %v6812_v50  ;;  %v6129_v50 = vmul.f32 %v11749_v24, %v12918_v0 }
 0x4e1   : > { %10376 = vrcp.f32 %v8000_v33  ;;  %v12874_v1 = vpop.xlane.xlu1 %6988  ;;  %v10371_v10 = vpop.eup %10370  ;;  %v7517_v33 = vmul.f32 %v11790_v27, %v6288_v48 }
 0x4e2   : > { %8096 = vst.msk [vmem:[%s12333_s16 + $0x50] sm:$0xff] %vm8085_vm2, %v10371_v10  ;;  %6213 = vadd.xlane.f32.xlu0 %v6212_v14  ;;  %v6215_v48 = vsel %vm349_vm0, %v6129_v50, 0.0 }
 0x4e3   : > { %v10373_v6 = vpop.eup %10372  ;;  %v6389_v23 = vpop.xlane.xlu0 %6388  ;;  %v7593_v14 = vsel %vm349_vm0, %v7517_v33, 0.0 }
 0x4e4   : > { %7012 = vadd.xlane.f32.xlu1 %v7011_v16  ;;  %8098 = vst.msk [vmem:[%s12333_s16 + $0x60] sm:$0xff] %vm8085_vm2, %v10373_v6  ;;  %v12885_v7 = vadd.f32 %v6389_v23, %v6190_v34  ;;  %v6328_v16 = vmul.f32 %v11759_v43, %v12929_v54  ;;  %v12936_v6 = vld [vmem:[#allocation2 + $0x142] sm:$0xff] }
 0x4e5   : > { %v10375_v15 = vpop.eup %10374  ;;  %v12887_v36 = vpop.xlane.xlu1 %7187 }
 0x4e6   : > { %8099 = vst.msk [vmem:[%s12333_s16 + $0x68] sm:$0xff] %vm8085_vm2, %v10375_v15  ;;  %6412 = vadd.xlane.f32.xlu0 %v6411_v56  ;;  %v6414_v13 = vsel %vm349_vm0, %v6328_v16, 0.0 }
 0x4e7   : > { %v12896_v52 = vpop.xlane.xlu0 %6780 }
 0x4e8   : > { %7211 = vadd.xlane.f32.xlu1 %v7210_v62  ;;  %v7123_v62 = vmul.f32 %v11919_v26, %v6489_v28 }
 0x4e9   : > { %v12898_v17 = vpop.xlane.xlu1 %7380 }
 0x4ea   : > { %6804 = vadd.xlane.f32.xlu0 %v6803_v37  ;;  %v6527_v37 = vmul.f32 %v11769_v51, %v12936_v6  ;;  %v7207_v22 = vsel %vm349_vm0, %v7123_v62, 0.0 }
 0x4eb   : > { %v10377_v8 = vpop.eup %10376  ;;  %v12907_v61 = vpop.xlane.xlu0 %6979 }
 0x4ec   : > { %8097 = vst.msk [vmem:[%s12333_s16 + $0x58] sm:$0xff] %vm8085_vm2, %v10377_v8  ;;  %7404 = vadd.xlane.f32.xlu1 %v7403_v11 }
 0x4ed   : > { %v12909_v42 = vpop.xlane.xlu1 %7579 }
 0x4ee   : > { %7003 = vadd.xlane.f32.xlu0 %v7002_v25  ;;  %v6613_v25 = vsel %vm349_vm0, %v6527_v37, 0.0 }
 0x4ef   : > { %v12916_v63 = vpop.xlane.xlu0 %7371 }
 0x4f0   : > { %7603 = vadd.xlane.f32.xlu1 %v7602_v44  ;;  %v6487_v44 = vld [vmem:[#allocation2 + $0x13a] sm:$0xff] }
 0x4f1   : > { %v12920_v30 = vpop.xlane.xlu1 %7778  ;;  %v6526_v50 = vmul.f32 %v11769_v51, %v6487_v44 }
 0x4f2   : > { %7395 = vadd.xlane.f32.xlu0 %v7394_v57 }
 0x4f3   : > { %v12927_v34 = vpop.xlane.xlu0 %7570 }
 0x4f4   : > { %7802 = vadd.xlane.f32.xlu1 %v7801_v31 }
 0x4f5   : > { %v6193_v10 = vpop.xlane.xlu1 %6192 }
 0x4f6   : > { %7594 = vadd.xlane.f32.xlu0 %v7593_v14  ;;  %v6923_v14 = vmul.f32 %v11874_v47, %v12929_v54 }
 0x4f7   : > { %v6594_v45 = vpop.xlane.xlu0 %6593 }
 0x4f8   : > { %6216 = vadd.xlane.f32.xlu1 %v6215_v48  ;;  %v12939_v23 = vadd.f32 %v6594_v45, %v12826_v19  ;;  %v7718_v19 = vmul.f32 %v11965_v21, %v6489_v28  ;;  %v6806_v28 = vsel %vm349_vm0, %v6724_v3, 0.0 }
 0x4f9   : > { %v6392_v15 = vpop.xlane.xlu1 %6391 }
 0x4fa   : > { %v6448_v56 = vadd.f32 %v6392_v15, %v6193_v10  ;;  %6617 = vadd.xlane.f32.xlu0 %v6616_v49  ;;  %v7798_v31 = vsel %vm349_vm0, %v7718_v19, 0.0 }
 0x4fb   : > { %v7185_v46 = vpop.xlane.xlu0 %7184 }
 0x4fc   : > { %6415 = vadd.xlane.f32.xlu1 %v6414_v13  ;;  %v7122_v13 = vmul.f32 %v11919_v26, %v12936_v6 }
 0x4fd   : > { %v6591_v8 = vpop.xlane.xlu1 %6590 }
 0x4fe   : > { %v6647_v11 = vadd.f32 %v6591_v8, %v6448_v56  ;;  %7208 = vadd.xlane.f32.xlu0 %v7207_v22  ;;  %v7121_v56 = vmul.f32 %v11919_v26, %v6487_v44  ;;  %v7319_v22 = vmul.f32 %v11779_v41, %v12918_v0  ;;  %v7204_v3 = vsel %vm349_vm0, %v7122_v13, 0.0 }
 0x4ff   : > { %v7776_v57 = vpop.xlane.xlu0 %7775 }
 0x500   : > { %v6846_v40 = vadd.f32 %v12867_v32, %v6647_v11  ;;  %6614 = vadd.xlane.f32.xlu1 %v6613_v25  ;;  %v6843_v32 = vadd.f32 %v12896_v52, %v12753_v39 }
 0x501   : > { %v6784_v33 = vpop.xlane.xlu1 %6783 }
 0x502   : > { %v7045_v10 = vadd.f32 %v12874_v1, %v6846_v40  ;;  %7799 = vadd.xlane.f32.xlu0 %v7798_v31  ;;  %v6844_v15 = vadd.f32 %v6784_v33, %v12671_v35  ;;  %v6610_v1 = vsel %vm349_vm0, %v6526_v50, 0.0  ;;  %v7042_v49 = vadd.f32 %v12907_v61, %v6843_v32 }
 0x503   : > { %v6588_v38 = vpop.xlane.xlu0 %6587  ;;  %v7438_v35 = vadd.f32 %v12916_v63, %v12798_v5  ;;  %v7201_v61 = vsel %vm349_vm0, %v7121_v56, 0.0  ;;  %v6690_v5 = vld [vmem:[#allocation2 + $0x180] sm:$0xff] }
 0x504   : > { %6807 = vadd.xlane.f32.xlu1 %v6806_v28  ;;  %v12959_v48 = vadd.f32 %v12887_v36, %v7045_v10  ;;  %v6646_v16 = vadd.f32 %v6588_v38, %v12885_v7  ;;  %v7005_v36 = vsel %vm349_vm0, %v6923_v14, 0.0  ;;  %v6889_v28 = vld [vmem:[#allocation2 + $0x181] sm:$0xff] }
 0x505   : > { %v6983_v45 = vpop.xlane.xlu1 %6982  ;;  %v7637_v19 = vadd.f32 %v12927_v34, %v7438_v35  ;;  %v7324_v35 = vmul.f32 %v11779_v41, %v6690_v5 }
 0x506   : > { %v6845_v62 = vadd.f32 %v12835_v12, %v6646_v16  ;;  %6611 = vadd.xlane.f32.xlu0 %v6610_v1  ;;  %v7043_v39 = vadd.f32 %v6983_v45, %v6844_v15  ;;  %v7716_v12 = vmul.f32 %v11965_v21, %v6487_v44  ;;  %v6928_v15 = vmul.f32 %v11874_v47, %v6889_v28 }
 0x507   : > { %v7179_v52 = vpop.xlane.xlu0 %7178 }
 0x508   : > { %7006 = vadd.xlane.f32.xlu1 %v7005_v36  ;;  %v7241_v7 = vadd.f32 %v7179_v52, %v7042_v49  ;;  %v7044_v8 = vadd.f32 %v12845_v29, %v6845_v62  ;;  %v7792_v34 = vsel %vm349_vm0, %v7716_v12, 0.0  ;;  %v6691_v36 = vld [vmem:[#allocation2 + $0x188] sm:$0xff]  ;;  %v7020_v52 = vsel %vm349_vm0, %v6928_v15, 0.0 }
 0x509   : > { %v7182_v37 = vpop.xlane.xlu1 %7181  ;;  %v7325_v15 = vmul.f32 %v11779_v41, %v6691_v36 }
 0x50a   : > { %v7242_v11 = vadd.f32 %v7182_v37, %v7043_v39  ;;  %v7440_v25 = vadd.f32 %v12855_v4, %v7241_v7  ;;  %7202 = vadd.xlane.f32.xlu0 %v7201_v61  ;;  %v12982_v63 = vadd.f32 %v7185_v46, %v7044_v8  ;;  %v6729_v4 = vmul.f32 %v11843_v18, %v6690_v5  ;;  %v6094_v5 = vld [vmem:[#allocation2 + $0x168] sm:$0xff] }
 0x50b   : > { %v7770_v40 = vpop.xlane.xlu0 %7769  ;;  %v7397_v46 = vsel %vm349_vm0, %v7319_v22, 0.0  ;;  %v7412_v22 = vsel %vm349_vm0, %v7324_v35, 0.0 }
 0x50c   : > { %v7441_v29 = vadd.f32 %v12898_v17, %v7242_v11  ;;  %7205 = vadd.xlane.f32.xlu1 %v7204_v3  ;;  %v7639_v33 = vadd.f32 %v12865_v20, %v7440_v25  ;;  %v7836_v44 = vadd.f32 %v7770_v40, %v7637_v19  ;;  %v7518_v17 = vmul.f32 %v11790_v27, %v12929_v54  ;;  %v6890_v11 = vld [vmem:[#allocation2 + $0x189] sm:$0xff] }
 0x50d   : > { %v7375_v31 = vpop.xlane.xlu1 %7374  ;;  %v6821_v45 = vsel %vm349_vm0, %v6729_v4, 0.0  ;;  %v7523_v19 = vmul.f32 %v11790_v27, %v6889_v28  ;;  %v6929_v3 = vmul.f32 %v11874_v47, %v6890_v11  ;;  %v7089_v40 = vld [vmem:[#allocation2 + $0x18a] sm:$0xff]  ;;  %v6132_v4 = vmul.f32 %v11749_v24, %v6094_v5 }
 0x50e   : > { %v7640_v0 = vadd.f32 %v12909_v42, %v7441_v29  ;;  %v7838_v50 = vadd.f32 %v7776_v57, %v7639_v33  ;;  %v7875_v10 = vadd.f32 %v12806_v2, %v7836_v44  ;;  %7793 = vadd.xlane.f32.xlu0 %v7792_v34  ;;  %v7439_v57 = vadd.f32 %v7375_v31, %v12773_v58 }
 0x50f   : > { %v6208_v14 = vpop.xlane.xlu0 %6207  ;;  %v7596_v54 = vsel %vm349_vm0, %v7518_v17, 0.0  ;;  %v7611_v34 = vsel %vm349_vm0, %v7523_v19, 0.0  ;;  %v6292_v17 = vld [vmem:[#allocation2 + $0x169] sm:$0xff] }
 0x510   : > { %v7839_v20 = vadd.f32 %v12920_v30, %v7640_v0  ;;  %7398 = vadd.xlane.f32.xlu1 %v7397_v46  ;;  %v7877_v42 = vadd.f32 %v12806_v2, %v7838_v50  ;;  %v8572_v38 = vmul.f32 -1.442695, %v7875_v10  ;;  %v7717_v30 = vmul.f32 %v11965_v21, %v12936_v6 }
 0x511   : > { %v7574_v32 = vpop.xlane.xlu1 %7573  ;;  %v6730_v6 = vmul.f32 %v11843_v18, %v6691_v36  ;;  %v7023_v10 = vsel %vm349_vm0, %v6929_v3, 0.0  ;;  %v7128_v46 = vmul.f32 %v11919_v26, %v7089_v40 }
 0x512   : > { %v7878_v16 = vadd.f32 %v12806_v2, %v7839_v20  ;;  %v8574_v1 = vmul.f32 -1.442695, %v7877_v42  ;;  %10378 = vpow2.f32 %v8572_v38  ;;  %6822 = vadd.xlane.f32.xlu0 %v6821_v45  ;;  %v7638_v49 = vadd.f32 %v7574_v32, %v7439_v57 }
 0x513   : > { %v6407_v62 = vpop.xlane.xlu0 %6406  ;;  %v7795_v7 = vsel %vm349_vm0, %v7717_v30, 0.0  ;;  %v6824_v25 = vsel %vm349_vm0, %v6730_v6, 0.0  ;;  %v6331_v57 = vmul.f32 %v11759_v43, %v6292_v17  ;;  %v7222_v45 = vsel %vm349_vm0, %v7128_v46, 0.0 }
 0x514   : > { %v8575_v56 = vmul.f32 -1.442695, %v7878_v16  ;;  %7597 = vadd.xlane.f32.xlu1 %v7596_v54  ;;  %10380 = vpow2.f32 %v8574_v1  ;;  %v13002_v13 = vadd.f32 %v6407_v62, %v6208_v14  ;;  %v6224_v16 = vsel %vm349_vm0, %v6132_v4, 0.0 }
 0x515   : > { %v7773_v58 = vpop.xlane.xlu1 %7772  ;;  %v6926_v6 = vmul.f32 %v11874_v47, %v6292_v17 }
 0x516   : > { %10382 = vpow2.f32 %v8575_v56  ;;  %v7837_v39 = vadd.f32 %v7773_v58, %v7638_v49  ;;  %7021 = vadd.xlane.f32.xlu0 %v7020_v52  ;;  %v6423_v56 = vsel %vm349_vm0, %v6331_v57, 0.0  ;;  %v6727_v49 = vmul.f32 %v11843_v18, %v6094_v5 }
 0x517   : > { %v13009_v8 = vpop.xlane.xlu0 %6798  ;;  %v7415_v58 = vsel %vm349_vm0, %v7325_v15, 0.0 }
 0x518   : > { %v7876_v37 = vadd.f32 %v12806_v2, %v7837_v39  ;;  %7796 = vadd.xlane.f32.xlu1 %v7795_v7  ;;  %v7524_v39 = vmul.f32 %v11790_v27, %v6890_v11  ;;  %v6815_v7 = vsel %vm349_vm0, %v6727_v49, 0.0 }
 0x519   : > { %v6211_v61 = vpop.xlane.xlu1 %6210 }
 0x51a   : > { %v8573_v12 = vmul.f32 -1.442695, %v7876_v37  ;;  %7413 = vadd.xlane.f32.xlu0 %v7412_v22  ;;  %v7614_v37 = vsel %vm349_vm0, %v7524_v39, 0.0  ;;  %v13045_v22 = vld [vmem:[#allocation2 + $0x170] sm:$0xff] }
 0x51b   : > { %v13015_v29 = vpop.xlane.xlu0 %6997 }
 0x51c   : > { %10384 = vpow2.f32 %v8573_v12  ;;  %6825 = vadd.xlane.f32.xlu1 %v6824_v25  ;;  %v10379_v33 = vpop.eup %10378 }
 0x51d   : > { %v6410_v44 = vpop.xlane.xlu1 %6409  ;;  %v8003_v31 = vadd.f32 1.0, %v10379_v33  ;;  %v7014_v33 = vsel %vm349_vm0, %v6926_v6, 0.0 }
 0x51e   : > { %v6454_v0 = vadd.f32 %v6410_v44, %v6211_v61  ;;  %v10381_v50 = vpop.eup %10380  ;;  %7612 = vadd.xlane.f32.xlu0 %v7611_v34  ;;  %v7723_v61 = vmul.f32 %v11965_v21, %v7089_v40  ;;  %v7322_v44 = vmul.f32 %v11779_v41, %v6094_v5  ;;  %v13062_v34 = vld [vmem:[#allocation2 + $0x171] sm:$0xff] }
 0x51f   : > { %v8005_v20 = vadd.f32 1.0, %v10381_v50  ;;  %10386 = vrcp.f32 %v8003_v31  ;;  %v13021_v14 = vpop.xlane.xlu0 %7389  ;;  %v6133_v31 = vmul.f32 %v11749_v24, %v13045_v22 }
 0x520   : > { %v10383_v28 = vpop.eup %10382  ;;  %7024 = vadd.xlane.f32.xlu1 %v7023_v10  ;;  %v7813_v40 = vsel %vm349_vm0, %v7723_v61, 0.0  ;;  %v7406_v50 = vsel %vm349_vm0, %v7322_v44, 0.0  ;;  %v7521_v10 = vmul.f32 %v11790_v27, %v6292_v17 }
 0x521   : > { %v8006_v42 = vadd.f32 1.0, %v10383_v28  ;;  %v6609_v38 = vpop.xlane.xlu1 %6608  ;;  %10388 = vrcp.f32 %v8005_v20  ;;  %v6227_v5 = vsel %vm349_vm0, %v6133_v31, 0.0  ;;  %v6332_v28 = vmul.f32 %v11759_v43, %v13062_v34  ;;  %v7088_v20 = vld [vmem:[#allocation2 + $0x182] sm:$0xff]  ;;  %v7685_v31 = vld [vmem:[#allocation2 + $0x19a] sm:$0xff] }
 0x522   : > { %v13023_v32 = vadd.f32 %v6609_v38, %v6454_v0  ;;  %6225 = vadd.xlane.f32.xlu0 %v6224_v16  ;;  %v7605_v16 = vsel %vm349_vm0, %v7521_v10, 0.0  ;;  %v7127_v17 = vmul.f32 %v11919_v26, %v7088_v20 }
 0x523   : > { %10390 = vrcp.f32 %v8006_v42  ;;  %v13029_v1 = vpop.xlane.xlu0 %7588  ;;  %v13075_v42 = vld [vmem:[#allocation2 + $0x172] sm:$0xff]  ;;  %v6426_v57 = vsel %vm349_vm0, %v6332_v28, 0.0 }
 0x524   : > { %7223 = vadd.xlane.f32.xlu1 %v7222_v45  ;;  %v6531_v43 = vmul.f32 %v11769_v51, %v13075_v42  ;;  %v7126_v44 = vmul.f32 %v11919_v26, %v13075_v42 }
 0x525   : > { %v13031_v54 = vpop.xlane.xlu1 %6801 }
 0x526   : > { %v10385_v30 = vpop.eup %10384  ;;  %6424 = vadd.xlane.f32.xlu0 %v6423_v56  ;;  %v7722_v56 = vmul.f32 %v11965_v21, %v7088_v20  ;;  %v6625_v49 = vsel %vm349_vm0, %v6531_v43, 0.0 }
 0x527   : > { %v8004_v62 = vadd.f32 1.0, %v10385_v30  ;;  %v6202_v52 = vpop.xlane.xlu0 %6201  ;;  %v7219_v30 = vsel %vm349_vm0, %v7127_v17, 0.0 }
 0x528   : > { %7416 = vadd.xlane.f32.xlu1 %v7415_v58  ;;  %v6491_v58 = vld [vmem:[#allocation2 + $0x16a] sm:$0xff] }
 0x529   : > { %10392 = vrcp.f32 %v8004_v62  ;;  %v13037_v36 = vpop.xlane.xlu1 %7000  ;;  %v10387_v35 = vpop.eup %10386  ;;  %v6728_v62 = vmul.f32 %v11843_v18, %v13045_v22  ;;  %v7720_v10 = vmul.f32 %v11965_v21, %v6491_v58 }
 0x52a   : > { %8100 = vst.msk [vmem:[%s12333_s16 + $0x70] sm:$0xff] %vm8085_vm2, %v10387_v35  ;;  %6816 = vadd.xlane.f32.xlu0 %v6815_v7  ;;  %v7810_v35 = vsel %vm349_vm0, %v7722_v56, 0.0  ;;  %v6530_v7 = vmul.f32 %v11769_v51, %v6491_v58 }
 0x52b   : > { %v10389_v11 = vpop.eup %10388  ;;  %v6401_v12 = vpop.xlane.xlu0 %6400  ;;  %v6818_v6 = vsel %vm349_vm0, %v6728_v62, 0.0  ;;  %v7804_v17 = vsel %vm349_vm0, %v7720_v10, 0.0 }
 0x52c   : > { %7615 = vadd.xlane.f32.xlu1 %v7614_v37  ;;  %8102 = vst.msk [vmem:[%s12333_s16 + $0x80] sm:$0xff] %vm8085_vm2, %v10389_v11  ;;  %v13049_v25 = vadd.f32 %v6401_v12, %v6202_v52  ;;  %v6927_v37 = vmul.f32 %v11874_v47, %v13062_v34 }
 0x52d   : > { %v10391_v19 = vpop.eup %10390  ;;  %v13051_v3 = vpop.xlane.xlu1 %7199 }
 0x52e   : > { %8103 = vst.msk [vmem:[%s12333_s16 + $0x88] sm:$0xff] %vm8085_vm2, %v10391_v19  ;;  %7015 = vadd.xlane.f32.xlu0 %v7014_v33  ;;  %v6622_v19 = vsel %vm349_vm0, %v6530_v7, 0.0  ;;  %v7125_v33 = vmul.f32 %v11919_v26, %v6491_v58  ;;  %v7017_v51 = vsel %vm349_vm0, %v6927_v37, 0.0  ;;  %v7724_v26 = vmul.f32 %v11965_v21, %v7685_v31  ;;  %v7686_v58 = vld [vmem:[#allocation2 + $0x1a2] sm:$0xff] }
 0x52f   : > { %v13060_v0 = vpop.xlane.xlu0 %6792 }
 0x530   : > { %7814 = vadd.xlane.f32.xlu1 %v7813_v40 }
 0x531   : > { %v13064_v4 = vpop.xlane.xlu1 %7392 }
 0x532   : > { %7407 = vadd.xlane.f32.xlu0 %v7406_v50 }
 0x533   : > { %v10393_v46 = vpop.eup %10392  ;;  %v13073_v24 = vpop.xlane.xlu0 %6991 }
 0x534   : > { %8101 = vst.msk [vmem:[%s12333_s16 + $0x78] sm:$0xff] %vm8085_vm2, %v10393_v46  ;;  %6228 = vadd.xlane.f32.xlu1 %v6227_v5  ;;  %v7216_v46 = vsel %vm349_vm0, %v7126_v44, 0.0  ;;  %v7323_v5 = vmul.f32 %v11779_v41, %v13045_v22  ;;  %v7816_v41 = vsel %vm349_vm0, %v7724_v26, 0.0  ;;  %v6847_v22 = vadd.f32 %v13060_v0, %v12939_v23 }
 0x535   : > { %v13077_v38 = vpop.xlane.xlu1 %7591 }
 0x536   : > { %7606 = vadd.xlane.f32.xlu0 %v7605_v16  ;;  %v7409_v43 = vsel %vm349_vm0, %v7323_v5, 0.0 }
 0x537   : > { %v13084_v45 = vpop.xlane.xlu0 %7383 }
 0x538   : > { %6427 = vadd.xlane.f32.xlu1 %v6426_v57  ;;  %v7442_v23 = vadd.f32 %v13084_v45, %v12982_v63 }
 0x539   : > { %v13086_v15 = vpop.xlane.xlu1 %7790 }
 0x53a   : > { %7220 = vadd.xlane.f32.xlu0 %v7219_v30  ;;  %v7522_v30 = vmul.f32 %v11790_v27, %v13062_v34 }
 0x53b   : > { %v7583_v39 = vpop.xlane.xlu0 %7582 }
 0x53c   : > { %6626 = vadd.xlane.f32.xlu1 %v6625_v49  ;;  %v7608_v34 = vsel %vm349_vm0, %v7522_v30, 0.0 }
 0x53d   : > { %v6205_v52 = vpop.xlane.xlu1 %6204 }
 0x53e   : > { %7811 = vadd.xlane.f32.xlu0 %v7810_v35 }
 0x53f   : > { %v6606_v61 = vpop.xlane.xlu0 %6605 }
 0x540   : > { %6819 = vadd.xlane.f32.xlu1 %v6818_v6  ;;  %v13099_v11 = vadd.f32 %v6606_v61, %v13002_v13  ;;  %v7213_v13 = vsel %vm349_vm0, %v7125_v33, 0.0 }
 0x541   : > { %v6404_v18 = vpop.xlane.xlu1 %6403 }
 0x542   : > { %v6452_v12 = vadd.f32 %v6404_v18, %v6205_v52  ;;  %6623 = vadd.xlane.f32.xlu0 %v6622_v19  ;;  %v7046_v52 = vadd.f32 %v13073_v24, %v6847_v22 }
 0x543   : > { %v7197_v40 = vpop.xlane.xlu0 %7196 }
 0x544   : > { %7018 = vadd.xlane.f32.xlu1 %v7017_v51 }
 0x545   : > { %v6603_v47 = vpop.xlane.xlu1 %6602 }
 0x546   : > { %v6651_v50 = vadd.f32 %v6603_v47, %v6452_v12  ;;  %7214 = vadd.xlane.f32.xlu0 %v7213_v13 }
 0x547   : > { %v7788_v20 = vpop.xlane.xlu0 %7787 }
 0x548   : > { %v6850_v28 = vadd.f32 %v13031_v54, %v6651_v50  ;;  %7217 = vadd.xlane.f32.xlu1 %v7216_v46 }
 0x549   : > { %v6796_v16 = vpop.xlane.xlu1 %6795 }
 0x54a   : > { %v7049_v57 = vadd.f32 %v13037_v36, %v6850_v28  ;;  %7805 = vadd.xlane.f32.xlu0 %v7804_v17  ;;  %v6848_v36 = vadd.f32 %v6796_v16, %v12857_v9  ;;  %v7725_v9 = vmul.f32 %v11965_v21, %v7686_v58 }
 0x54b   : > { %v6600_v56 = vpop.xlane.xlu0 %6599 }
 0x54c   : > { %7410 = vadd.xlane.f32.xlu1 %v7409_v43  ;;  %v13120_v54 = vadd.f32 %v13051_v3, %v7049_v57  ;;  %v6650_v49 = vadd.f32 %v6600_v56, %v13049_v25  ;;  %v7721_v3 = vmul.f32 %v11965_v21, %v13075_v42  ;;  %v7819_v21 = vsel %vm349_vm0, %v7725_v9, 0.0 }
 0x54d   : > { %v6995_v62 = vpop.xlane.xlu1 %6994 }
 0x54e   : > { %v6849_v27 = vadd.f32 %v13009_v8, %v6650_v49  ;;  %7817 = vadd.xlane.f32.xlu0 %v7816_v41  ;;  %v7047_v35 = vadd.f32 %v6995_v62, %v6848_v36  ;;  %v7641_v8 = vadd.f32 %v7583_v39, %v7442_v23  ;;  %v7807_v61 = vsel %vm349_vm0, %v7721_v3, 0.0 }
 0x54f   : > { %v7191_v7 = vpop.xlane.xlu0 %7190 }
 0x550   : > { %7609 = vadd.xlane.f32.xlu1 %v7608_v34  ;;  %v7245_v25 = vadd.f32 %v7191_v7, %v7046_v52  ;;  %v7048_v24 = vadd.f32 %v13015_v29, %v6849_v27 }
 0x551   : > { %v7194_v0 = vpop.xlane.xlu1 %7193 }
 0x552   : > { %v7246_v6 = vadd.f32 %v7194_v0, %v7047_v35  ;;  %v7444_v37 = vadd.f32 %v13021_v14, %v7245_v25  ;;  %v13137_v18 = vadd.f32 %v7197_v40, %v7048_v24 }
 0x553   : > { %v7782_v12 = vpop.xlane.xlu0 %7781 }
 0x554   : > { %v7445_v42 = vadd.f32 %v13064_v4, %v7246_v6  ;;  %7808 = vadd.xlane.f32.xlu1 %v7807_v61  ;;  %v7643_v63 = vadd.f32 %v13029_v1, %v7444_v37  ;;  %v7840_v45 = vadd.f32 %v7782_v12, %v7641_v8 }
 0x555   : > { %v7387_v19 = vpop.xlane.xlu1 %7386 }
 0x556   : > { %v7644_v29 = vadd.f32 %v13077_v38, %v7445_v42  ;;  %v7842_v33 = vadd.f32 %v7788_v20, %v7643_v63  ;;  %v7879_v39 = vadd.f32 %v12806_v2, %v7840_v45  ;;  %v7443_v1 = vadd.f32 %v7387_v19, %v12959_v48 }
 0x557   : > { %v6220_v51 = vpop.xlane.xlu0 %6219 }
 0x558   : > { %v7843_v14 = vadd.f32 %v13086_v15, %v7644_v29  ;;  %7820 = vadd.xlane.f32.xlu1 %v7819_v21  ;;  %v7881_v44 = vadd.f32 %v12806_v2, %v7842_v33  ;;  %v8576_v4 = vmul.f32 -1.442695, %v7879_v39 }
 0x559   : > { %v7586_v40 = vpop.xlane.xlu1 %7585 }
 0x55a   : > { %v7882_v47 = vadd.f32 %v12806_v2, %v7843_v14  ;;  %v8578_v31 = vmul.f32 -1.442695, %v7881_v44  ;;  %10394 = vpow2.f32 %v8576_v4  ;;  %v7642_v13 = vadd.f32 %v7586_v40, %v7443_v1 }
 0x55b   : > { %v6419_v38 = vpop.xlane.xlu0 %6418 }
 0x55c   : > { %v8579_v50 = vmul.f32 -1.442695, %v7882_v47  ;;  %10396 = vpow2.f32 %v8578_v31  ;;  %v6457_v10 = vadd.f32 %v6419_v38, %v6220_v51 }
 0x55d   : > { %v7785_v46 = vpop.xlane.xlu1 %7784 }
 0x55e   : > { %10398 = vpow2.f32 %v8579_v50  ;;  %v7841_v15 = vadd.f32 %v7785_v46, %v7642_v13 }
 0x55f   : > { %v13149_v28 = vpop.xlane.xlu0 %6810 }
 0x560   : > { %v7880_v5 = vadd.f32 %v12806_v2, %v7841_v15 }
 0x561   : > { %v6223_v20 = vpop.xlane.xlu1 %6222 }
 0x562   : > { %v8577_v26 = vmul.f32 -1.442695, %v7880_v5 }
 0x563   : > { %v13151_v16 = vpop.xlane.xlu0 %7009 }
 0x564   : > { %10400 = vpow2.f32 %v8577_v26  ;;  %v10395_v48 = vpop.eup %10394 }
 0x565   : > { %v6422_v17 = vpop.xlane.xlu1 %6421  ;;  %v8007_v57 = vadd.f32 1.0, %v10395_v48 }
 0x566   : > { %v6458_v43 = vadd.f32 %v6422_v17, %v6223_v20  ;;  %v10397_v30 = vpop.eup %10396 }
 0x567   : > { %v8009_v41 = vadd.f32 1.0, %v10397_v30  ;;  %10402 = vrcp.f32 %v8007_v57  ;;  %v7402_v22 = vpop.xlane.xlu0 %7401 }
 0x568   : > { %v10399_v56 = vpop.eup %10398 }
 0x569   : > { %v8010_v49 = vadd.f32 1.0, %v10399_v56  ;;  %v6621_v62 = vpop.xlane.xlu1 %6620  ;;  %10404 = vrcp.f32 %v8009_v41 }
 0x56a   : > { %v13153_v2 = vadd.f32 %v6621_v62, %v6458_v43 }
 0x56b   : > { %10406 = vrcp.f32 %v8010_v49  ;;  %v7601_v36 = vpop.xlane.xlu0 %7600 }
 0x56d   : > { %v6814_v58 = vpop.xlane.xlu1 %6813 }
 0x56e   : > { %v10401_v52 = vpop.eup %10400 }
 0x56f   : > { %v8008_v27 = vadd.f32 1.0, %v10401_v52  ;;  %v6214_v34 = vpop.xlane.xlu0 %6213 }
 0x571   : > { %10408 = vrcp.f32 %v8008_v27  ;;  %v7013_v3 = vpop.xlane.xlu1 %7012  ;;  %v10403_v35 = vpop.eup %10402  ;;  %v13174_v27 = vld [vmem:[#allocation3] ss:$0 sm:$0xff] }
 0x572   : > { %8104 = vst.msk [vmem:[%s12333_s16 + $0x90] sm:$0xff] %vm8085_vm2, %v10403_v35 }
 0x573   : > { %v10405_v7 = vpop.eup %10404  ;;  %v6413_v23 = vpop.xlane.xlu0 %6412 }
 0x574   : > { %8106 = vst.msk [vmem:[%s12333_s16 + $0xa0] sm:$0xff] %vm8085_vm2, %v10405_v7  ;;  %v6455_v0 = vadd.f32 %v6413_v23, %v6214_v34 }
 0x575   : > { %v10407_v25 = vpop.eup %10406  ;;  %v7212_v9 = vpop.xlane.xlu1 %7211 }
 0x576   : > { %8107 = vst.msk [vmem:[%s12333_s16 + $0xa8] sm:$0xff] %vm8085_vm2, %v10407_v25 }
 0x577   : > { %v6805_v24 = vpop.xlane.xlu0 %6804 }
 0x578   : > { %v6851_v50 = vadd.f32 %v6805_v24, %v13099_v11 }
 0x579   : > { %v7405_v6 = vpop.xlane.xlu1 %7404 }
 0x57b   : > { %v10409_v8 = vpop.eup %10408  ;;  %v7004_v37 = vpop.xlane.xlu0 %7003 }
 0x57c   : > { %8105 = vst.msk [vmem:[%s12333_s16 + $0x98] sm:$0xff] %vm8085_vm2, %v10409_v8 }
 0x57d   : > { %v7604_v61 = vpop.xlane.xlu1 %7603 }
 0x57f   : > { %v7396_v42 = vpop.xlane.xlu0 %7395 }
 0x580   : > { %v7446_v26 = vadd.f32 %v7396_v42, %v13137_v18 }
 0x581   : > { %v7803_v12 = vpop.xlane.xlu1 %7802 }
 0x583   : > { %v7595_v63 = vpop.xlane.xlu0 %7594 }
 0x584   : > { %v7645_v30 = vadd.f32 %v7595_v63, %v7446_v26 }
 0x585   : > { %v6217_v45 = vpop.xlane.xlu1 %6216 }
 0x587   : > { %v6618_v19 = vpop.xlane.xlu0 %6617 }
 0x588   : > { %v13163_v21 = vadd.f32 %v6618_v19, %v6457_v10  ;;  %v7050_v10 = vadd.f32 %v7004_v37, %v6851_v50 }
 0x589   : > { %v6416_v29 = vpop.xlane.xlu1 %6415 }
 0x58a   : > { %v6456_v33 = vadd.f32 %v6416_v29, %v6217_v45 }
 0x58b   : > { %v7209_v39 = vpop.xlane.xlu0 %7208 }
 0x58d   : > { %v6615_v14 = vpop.xlane.xlu1 %6614 }
 0x58e   : > { %v6655_v51 = vadd.f32 %v6615_v14, %v6456_v33 }
 0x58f   : > { %v7800_v4 = vpop.xlane.xlu0 %7799 }
 0x590   : > { %v6854_v44 = vadd.f32 %v6814_v58, %v6655_v51 }
 0x591   : > { %v6808_v40 = vpop.xlane.xlu1 %6807 }
 0x592   : > { %v7053_v47 = vadd.f32 %v7013_v3, %v6854_v44  ;;  %v6852_v46 = vadd.f32 %v6808_v40, %v13023_v32 }
 0x593   : > { %v6612_v1 = vpop.xlane.xlu0 %6611 }
 0x594   : > { %v13165_v31 = vadd.f32 %v7212_v9, %v7053_v47  ;;  %v6654_v13 = vadd.f32 %v6612_v1, %v6455_v0 }
 0x595   : > { %v7007_v38 = vpop.xlane.xlu1 %7006 }
 0x596   : > { %v6853_v15 = vadd.f32 %v13149_v28, %v6654_v13  ;;  %v7051_v5 = vadd.f32 %v7007_v38, %v6852_v46 }
 0x597   : > { %v7203_v20 = vpop.xlane.xlu0 %7202 }
 0x598   : > { %v7249_v48 = vadd.f32 %v7203_v20, %v7050_v10  ;;  %v7052_v57 = vadd.f32 %v13151_v16, %v6853_v15 }
 0x599   : > { %v7206_v17 = vpop.xlane.xlu1 %7205 }
 0x59a   : > { %v7250_v43 = vadd.f32 %v7206_v17, %v7051_v5  ;;  %v7448_v56 = vadd.f32 %v7402_v22, %v7249_v48  ;;  %v13172_v41 = vadd.f32 %v7209_v39, %v7052_v57 }
 0x59b   : > { %v7794_v49 = vpop.xlane.xlu0 %7793 }
 0x59c   : > { %v7449_v11 = vadd.f32 %v7405_v6, %v7250_v43  ;;  %v7647_v62 = vadd.f32 %v7601_v36, %v7448_v56  ;;  %v7844_v32 = vadd.f32 %v7794_v49, %v7645_v30 }
 0x59d   : > { %v7399_v58 = vpop.xlane.xlu1 %7398 }
 0x59e   : > { %v7648_v52 = vadd.f32 %v7604_v61, %v7449_v11  ;;  %v7846_v28 = vadd.f32 %v7800_v4, %v7647_v62  ;;  %v7883_v18 = vadd.f32 %v13174_v27, %v7844_v32  ;;  %v7447_v23 = vadd.f32 %v7399_v58, %v13120_v54 }
 0x59f   : > { %v13177_v3 = vpop.xlane.xlu0 %6822 }
 0x5a0   : > { %v7847_v34 = vadd.f32 %v7803_v12, %v7648_v52  ;;  %v7885_v16 = vadd.f32 %v13174_v27, %v7846_v28  ;;  %v8580_v35 = vmul.f32 -1.442695, %v7883_v18 }
 0x5a1   : > { %v7598_v22 = vpop.xlane.xlu1 %7597 }
 0x5a2   : > { %v7886_v7 = vadd.f32 %v13174_v27, %v7847_v34  ;;  %v8582_v36 = vmul.f32 -1.442695, %v7885_v16  ;;  %10410 = vpow2.f32 %v8580_v35  ;;  %v7646_v0 = vadd.f32 %v7598_v22, %v7447_v23 }
 0x5a3   : > { %v7022_v9 = vpop.xlane.xlu0 %7021 }
 0x5a4   : > { %v8583_v25 = vmul.f32 -1.442695, %v7886_v7  ;;  %10412 = vpow2.f32 %v8582_v36 }
 0x5a5   : > { %v7797_v24 = vpop.xlane.xlu1 %7796 }
 0x5a6   : > { %10414 = vpow2.f32 %v8583_v25  ;;  %v7845_v6 = vadd.f32 %v7797_v24, %v7646_v0 }
 0x5a7   : > { %v7414_v37 = vpop.xlane.xlu0 %7413 }
 0x5a8   : > { %v7884_v8 = vadd.f32 %v13174_v27, %v7845_v6 }
 0x5a9   : > { %v6826_v61 = vpop.xlane.xlu1 %6825 }
 0x5aa   : > { %v8581_v42 = vmul.f32 -1.442695, %v7884_v8 }
 0x5ab   : > { %v7613_v12 = vpop.xlane.xlu0 %7612 }
 0x5ac   : > { %10416 = vpow2.f32 %v8581_v42  ;;  %v10411_v63 = vpop.eup %10410 }
 0x5ad   : > { %v7025_v45 = vpop.xlane.xlu1 %7024  ;;  %v8011_v19 = vadd.f32 1.0, %v10411_v63 }
 0x5ae   : > { %v10413_v54 = vpop.eup %10412 }
 0x5af   : > { %v8013_v33 = vadd.f32 1.0, %v10413_v54  ;;  %10418 = vrcp.f32 %v8011_v19  ;;  %v6226_v39 = vpop.xlane.xlu0 %6225 }
 0x5b0   : > { %v10415_v29 = vpop.eup %10414 }
 0x5b1   : > { %v8014_v14 = vadd.f32 1.0, %v10415_v29  ;;  %v7224_v51 = vpop.xlane.xlu1 %7223  ;;  %10420 = vrcp.f32 %v8013_v33 }
 0x5b3   : > { %10422 = vrcp.f32 %v8014_v14  ;;  %v6425_v44 = vpop.xlane.xlu0 %6424 }
 0x5b4   : > { %v6459_v49 = vadd.f32 %v6425_v44, %v6226_v39 }
 0x5b5   : > { %v7417_v4 = vpop.xlane.xlu1 %7416 }
 0x5b6   : > { %v10417_v40 = vpop.eup %10416 }
 0x5b7   : > { %v8012_v47 = vadd.f32 1.0, %v10417_v40  ;;  %v6817_v1 = vpop.xlane.xlu0 %6816 }
 0x5b8   : > { %v6855_v58 = vadd.f32 %v6817_v1, %v13163_v21 }
 0x5b9   : > { %10424 = vrcp.f32 %v8012_v47  ;;  %v7616_v50 = vpop.xlane.xlu1 %7615  ;;  %v10419_v13 = vpop.eup %10418 }
 0x5ba   : > { %8108 = vst.msk [vmem:[%s12333_s16 + $0xb0] sm:$0xff] %vm8085_vm2, %v10419_v13 }
 0x5bb   : > { %v10421_v38 = vpop.eup %10420  ;;  %v7016_v46 = vpop.xlane.xlu0 %7015 }
 0x5bc   : > { %8110 = vst.msk [vmem:[%s12333_s16 + $0xc0] sm:$0xff] %vm8085_vm2, %v10421_v38  ;;  %v7054_v34 = vadd.f32 %v7016_v46, %v6855_v58 }
 0x5bd   : > { %v10423_v10 = vpop.eup %10422  ;;  %v7815_v15 = vpop.xlane.xlu1 %7814 }
 0x5be   : > { %8111 = vst.msk [vmem:[%s12333_s16 + $0xc8] sm:$0xff] %vm8085_vm2, %v10423_v10 }
 0x5bf   : > { %v7408_v5 = vpop.xlane.xlu0 %7407 }
 0x5c0   : > { %v7450_v23 = vadd.f32 %v7408_v5, %v13172_v41 }
 0x5c1   : > { %v6229_v20 = vpop.xlane.xlu1 %6228 }
 0x5c3   : > { %v10425_v26 = vpop.eup %10424  ;;  %v7607_v48 = vpop.xlane.xlu0 %7606 }
 0x5c4   : > { %8109 = vst.msk [vmem:[%s12333_s16 + $0xb8] sm:$0xff] %vm8085_vm2, %v10425_v26  ;;  %v7649_v6 = vadd.f32 %v7607_v48, %v7450_v23 }
 0x5c5   : > { %v6428_v17 = vpop.xlane.xlu1 %6427 }
 0x5c6   : > { %v6460_v11 = vadd.f32 %v6428_v17, %v6229_v20 }
 0x5c7   : > { %v7221_v57 = vpop.xlane.xlu0 %7220 }
 0x5c9   : > { %v6627_v43 = vpop.xlane.xlu1 %6626 }
 0x5ca   : > { %v6659_v62 = vadd.f32 %v6627_v43, %v6460_v11 }
 0x5cb   : > { %v7812_v30 = vpop.xlane.xlu0 %7811 }
 0x5cc   : > { %v6858_v35 = vadd.f32 %v6826_v61, %v6659_v62 }
 0x5cd   : > { %v6820_v56 = vpop.xlane.xlu1 %6819 }
 0x5ce   : > { %v6856_v18 = vadd.f32 %v6820_v56, %v13153_v2  ;;  %v7057_v21 = vadd.f32 %v7025_v45, %v6858_v35 }
 0x5cf   : > { %v6624_v32 = vpop.xlane.xlu0 %6623 }
 0x5d0   : > { %v6658_v52 = vadd.f32 %v6624_v32, %v6459_v49  ;;  %v7256_v44 = vadd.f32 %v7224_v51, %v7057_v21 }
 0x5d1   : > { %v7019_v28 = vpop.xlane.xlu1 %7018 }
 0x5d2   : > { %v6857_v16 = vadd.f32 %v13177_v3, %v6658_v52  ;;  %v7055_v22 = vadd.f32 %v7019_v28, %v6856_v18 }
 0x5d3   : > { %v7215_v7 = vpop.xlane.xlu0 %7214 }
 0x5d4   : > { %v7056_v36 = vadd.f32 %v7022_v9, %v6857_v16  ;;  %v7253_v25 = vadd.f32 %v7215_v7, %v7054_v34 }
 0x5d5   : > { %v7218_v0 = vpop.xlane.xlu1 %7217 }
 0x5d6   : > { %v7254_v24 = vadd.f32 %v7218_v0, %v7055_v22  ;;  %v7452_v8 = vadd.f32 %v7414_v37, %v7253_v25  ;;  %v7255_v42 = vadd.f32 %v7221_v57, %v7056_v36 }
 0x5d7   : > { %v7806_v19 = vpop.xlane.xlu0 %7805 }
 0x5d8   : > { %v7453_v63 = vadd.f32 %v7417_v4, %v7254_v24  ;;  %v7651_v54 = vadd.f32 %v7613_v12, %v7452_v8  ;;  %v7848_v2 = vadd.f32 %v7806_v19, %v7649_v6  ;;  %v7454_v3 = vadd.f32 %v12122_v60, %v7255_v42 }
 0x5d9   : > { %v7411_v29 = vpop.xlane.xlu1 %7410 }
 0x5da   : > { %v7652_v61 = vadd.f32 %v7616_v50, %v7453_v63  ;;  %v7850_v33 = vadd.f32 %v7812_v30, %v7651_v54  ;;  %v7887_v39 = vadd.f32 %v13174_v27, %v7848_v2  ;;  %v7653_v41 = vadd.f32 %v12131_v53, %v7454_v3 }
 0x5db   : > { %v7818_v14 = vpop.xlane.xlu0 %7817  ;;  %v7451_v47 = vadd.f32 %v7411_v29, %v13165_v31  ;;  %v7455_v53 = vadd.f32 %v12124_v55, %v7256_v44 }
 0x5dc   : > { %v7851_v9 = vadd.f32 %v7815_v15, %v7652_v61  ;;  %v7889_v37 = vadd.f32 %v13174_v27, %v7850_v33  ;;  %v8584_v40 = vmul.f32 -1.442695, %v7887_v39  ;;  %v7852_v45 = vadd.f32 %v7818_v14, %v7653_v41 }
 0x5dd   : > { %v7610_v4 = vpop.xlane.xlu1 %7609  ;;  %v7654_v15 = vadd.f32 %v12135_v59, %v7455_v53 }
 0x5de   : > { %v7890_v12 = vadd.f32 %v13174_v27, %v7851_v9  ;;  %v8586_v1 = vmul.f32 -1.442695, %v7889_v37  ;;  %10426 = vpow2.f32 %v8584_v40  ;;  %v7891_v60 = vadd.f32 %v13174_v27, %v7852_v45 }
 0x5df   : > { %v7650_v13 = vadd.f32 %v7610_v4, %v7451_v47 }
 0x5e0   : > { %v8587_v50 = vmul.f32 -1.442695, %v7890_v12  ;;  %10428 = vpow2.f32 %v8586_v1  ;;  %v8588_v38 = vmul.f32 -1.442695, %v7891_v60 }
 0x5e1   : > { %v7809_v51 = vpop.xlane.xlu1 %7808 }
 0x5e2   : > { %10430 = vpow2.f32 %v8587_v50  ;;  %v7849_v46 = vadd.f32 %v7809_v51, %v7650_v13 }
 0x5e3   : > { %10432 = vpow2.f32 %v8588_v38 }
 0x5e4   : > { %v7888_v10 = vadd.f32 %v13174_v27, %v7849_v46 }
 0x5e5   : > { %v7821_v5 = vpop.xlane.xlu1 %7820 }
 0x5e6   : > { %v8585_v31 = vmul.f32 -1.442695, %v7888_v10  ;;  %v7853_v20 = vadd.f32 %v7821_v5, %v7654_v15 }
 0x5e8   : > { %10434 = vpow2.f32 %v8585_v31  ;;  %v7892_v26 = vadd.f32 %v13174_v27, %v7853_v20  ;;  %v10427_v48 = vpop.eup %10426 }
 0x5e9   : > { %v8015_v17 = vadd.f32 1.0, %v10427_v48 }
 0x5ea   : > { %v8589_v57 = vmul.f32 -1.442695, %v7892_v26  ;;  %v10429_v55 = vpop.eup %10428 }
 0x5eb   : > { %v8017_v30 = vadd.f32 1.0, %v10429_v55  ;;  %10436 = vrcp.f32 %v8015_v17 }
 0x5ec   : > { %v10431_v43 = vpop.eup %10430  ;;  %10438 = vpow2.f32 %v8589_v57 }
 0x5ed   : > { %v10433_v56 = vpop.eup %10432  ;;  %v8018_v11 = vadd.f32 1.0, %v10431_v43  ;;  %10440 = vrcp.f32 %v8017_v30 }
 0x5ee   : > { %v8019_v59 = vadd.f32 1.0, %v10433_v56 }
 0x5ef   : > { %10442 = vrcp.f32 %v8018_v11 }
 0x5f0   : > { %10444 = vrcp.f32 %v8019_v59 }
 0x5f2   : > { %v10435_v27 = vpop.eup %10434 }
 0x5f3   : > { %v8016_v49 = vadd.f32 1.0, %v10435_v27 }
 0x5f5   : > { %10446 = vrcp.f32 %v8016_v49  ;;  %v10437_v62 = vpop.eup %10436 }
 0x5f6   : > { %v10439_v32 = vpop.eup %10438  ;;  %8112 = vst.msk [vmem:[%s12333_s16 + $0xd0] sm:$0xff] %vm8085_vm2, %v10437_v62 }
 0x5f7   : > { %v10441_v58 = vpop.eup %10440  ;;  %v8020_v52 = vadd.f32 1.0, %v10439_v32 }
 0x5f8   : > { %8114 = vst.msk [vmem:[%s12333_s16 + $0xe0] sm:$0xff] %vm8085_vm2, %v10441_v58 }
 0x5f9   : > { %v10443_v28 = vpop.eup %10442  ;;  %10448 = vrcp.f32 %v8020_v52 }
 0x5fa   : > { %v10445_v18 = vpop.eup %10444  ;;  %8115 = vst.msk [vmem:[%s12333_s16 + $0xe8] sm:$0xff] %vm8085_vm2, %v10443_v28 }
 0x5fb   : > { %8116 = vst.msk [vmem:[%s12333_s16 + $0xf0] sm:$0xff] %vm8085_vm2, %v10445_v18 }
 0x5ff   : > { %v10447_v34 = vpop.eup %10446 }
 0x600   : > { %8113 = vst.msk [vmem:[%s12333_s16 + $0xd8] sm:$0xff] %vm8085_vm2, %v10447_v34 }
 0x603   : > { %v10449_v16 = vpop.eup %10448 }
 0x604   : > { %8117 = vst.msk [vmem:[%s12333_s16 + $0xf8] sm:$0xff] %vm8085_vm2, %v10449_v16 }
 0x605 PF: > { %s20_s29 = sadd.s32 1, %s10458_s29  }
 0x606   : > { %p17_p4 = scmp.ge.s32.totalorder %s20_s29, 4  }
 0x608   :  { %19 = sbr.rel (!%p17_p4) target bundleno = 3 (0x3), region = 114 }

</bundles_post_ra>
